<compile_context>
chip_gen: v7x
topology: tpu7x:2x2x1
jax: 0.10.0
libtpu: 0.0.40
codegen_flags: <defaults>
</compile_context>

<pallas_src>
import functools

import jax
import jax.numpy as jnp
from jax.experimental import pallas as pl
from jax.experimental.pallas import tpu as pltpu


# Packed head slab layout (128 lanes, lane-dense):
#   cols 0:2  -> cls logits
#   cols 2:6  -> loc
#   col  6    -> cen
#   cols 7:9  -> cls logits again (log_softmax is written in place here)
#   cols 9:   -> zero padding
HEAD_PAD = 128


# ---------------------------------------------------------------------------
# Row-tiling heuristics
# ---------------------------------------------------------------------------
def _choose_row_tiling(Ho, Wo, C):
    """Pick (grid row tile, in-kernel register row tile)."""
    # Grid-level row tile: must divide Ho evenly and give an (8, 128)-aligned
    # flat output block so output stores are unmasked; largest proper divisor
    # preferred (splits rows across v7x's two TensorCores at B=1).
    th_g = Ho
    for d in range(Ho - 1, 0, -1):
        if Ho % d == 0 and (d * Wo) % 8 == 0:
            th_g = d
            break
    # In-kernel register tile: keep the f32 (th_in, Wo, C) accumulator around
    # <= 8 vregs (32 KiB) so it stays register-resident through the tap loop.
    per_row_bytes = Wo * C * 4
    th_in = max(1, min(th_g, (8 * 4096) // per_row_bytes))
    return th_g, th_in


# ---------------------------------------------------------------------------
# Fused per-(batch, row-tile) kernel:
#   xcorr(3 levels) -> down -> tower(1x1+ReLU) -> packed heads -> log_softmax
# ---------------------------------------------------------------------------
def _fused_track_kernel(x_ref, z_ref, dw_ref, tw_ref, tb_ref, hw_ref, hb_ref,
                        o_ref, *, Hz, Wz, Wo, th_g, th_in):
    L = x_ref.shape[0]
    C = dw_ref.shape[1]
    r_base = pl.program_id(1) * th_g          # first output row of this block

    # Static in-kernel loop over register-sized row tiles of this grid block.
    for r0 in range(0, th_g, th_in):
        th = min(th_in, th_g - r0)            # static
        tn = th * Wo
        span = th + Hz - 1                    # x rows needed for these outputs

        # ---- depthwise xcorr fused with the "down" 1x1 ConvTranspose -------
        # concat_l(xcorr_l) @ down_w  ==  sum_l xcorr_l @ down_w[l]
        down_t = jnp.zeros((tn, C), jnp.float32)
        for l in range(L):                                   # static, L == 3
            zl = z_ref[l].astype(jnp.float32)                # (Hz, Wz, C), small
            acc = jnp.zeros((th, Wo, C), jnp.float32)        # register-resident
            for dj in range(Wz):
                # One sublane-shifted load per dj, reused for all Hz taps.
                xj = x_ref[l, pl.ds(r_base + r0, span),
                           pl.ds(dj, Wo), :].astype(jnp.float32)   # (span, Wo, C)
                for di in range(Hz):
                    # f32 VPU multiply-add (v5e-safe); acc never hits VMEM.
                    acc = acc + xj[di:di + th] * zl[di, dj, :]
            down_t = down_t + jnp.dot(
                acc.reshape(tn, C).astype(jnp.bfloat16), dw_ref[l],
                preferred_element_type=jnp.float32)
        # (down bias is pre-folded into tb_ref at pack time)

        # ---- simplified GTRHead tower: 1x1 conv + ReLU ----------------------
        h = jnp.dot(down_t.astype(jnp.bfloat16), tw_ref[...],
                    preferred_element_type=jnp.float32) + tb_ref[...]
        h = jnp.maximum(h, 0.0)

        # ---- merged cls/loc/cen heads: one lane-dense (tn, 128) matmul ------
        y = jnp.dot(h.astype(jnp.bfloat16), hw_ref[...],
                    preferred_element_type=jnp.float32) + hb_ref[...]

        # ---- K=2 log_softmax written into the duplicated cls columns 7:9 ----
        c0 = y[:, 0:1]
        c1 = y[:, 1:2]
        m = jnp.maximum(c0, c1)
        lse = m + jnp.log(jnp.exp(c0 - m) + jnp.exp(c1 - m))
        lane = jax.lax.broadcasted_iota(jnp.int32, y.shape, 1)
        y = jnp.where((lane >= 7) & (lane < 9), y - lse, y)

        o_ref[r0 * Wo:r0 * Wo + tn, :] = y.astype(o_ref.dtype)


# ---------------------------------------------------------------------------
# Parameter packing (bf16 MXU weights, folded bias, lane-dense packed heads)
# ---------------------------------------------------------------------------
def _pack_params(params, L, C):
    dw3 = params["down_w"].reshape(L, C, C).astype(jnp.bfloat16)
    tw = params["tower_w"].astype(jnp.bfloat16)
    # Fold the down bias through the (linear) tower matmul:
    #   relu((x@Wd + bd)@Wt + bt) == relu((x@Wd)@Wt + (bd@Wt + bt))
    tb = (params["down_b"] @ params["tower_w"]
          + params["tower_b"]).reshape(1, C).astype(jnp.float32)

    hw = jnp.zeros((C, HEAD_PAD), jnp.float32)
    hw = (hw.at[:, 0:2].set(params["cls_w"])
            .at[:, 2:6].set(params["loc_w"])
            .at[:, 6:7].set(params["cen_w"])
            .at[:, 7:9].set(params["cls_w"]))    # duplicated cls cols for log_softmax
    hb = jnp.zeros((HEAD_PAD,), jnp.float32)
    hb = (hb.at[0:2].set(params["cls_b"])
            .at[2:6].set(params["loc_b"])
            .at[6:7].set(params["cen_b"])
            .at[7:9].set(params["cls_b"]))
    return dw3, tw, tb, hw.astype(jnp.bfloat16), hb.reshape(1, HEAD_PAD)


# ---------------------------------------------------------------------------
# ModelBuilder forward (starting from backbone+neck features, as track() does)
# ---------------------------------------------------------------------------
def model_builder_forward(params, xf_stacked, zf_stacked):
    """Fused hot path.

    xf_stacked: (L=3, B, Hx, Wx, C=256) search features, channels-last.
    zf_stacked: (L=3, B, Hz, Wz, C=256) template features, channels-last.
    Features are consumed in bf16 (cast once here / by the backbone); the
    one-time NCHW->NHWC transpose also belongs to the caller.
    """
    L, B, Hx, Wx, C = xf_stacked.shape
    _, _, Hz, Wz, _ = zf_stacked.shape
    Ho, Wo = Hx - Hz + 1, Wx - Wz + 1
    N = Ho * Wo

    xf = xf_stacked.astype(jnp.bfloat16)     # halves DMA per grid step
    zf = zf_stacked.astype(jnp.bfloat16)

    dw3, tw, tb, hw, hb = _pack_params(params, L, C)

    th_g, th_in = _choose_row_tiling(Ho, Wo, C)
    nr = Ho // th_g

    kernel = functools.partial(_fused_track_kernel,
                               Hz=Hz, Wz=Wz, Wo=Wo, th_g=th_g, th_in=th_in)

    slab = pl.pallas_call(
        kernel,
        out_shape=jax.ShapeDtypeStruct((B, N, HEAD_PAD), jnp.float32),
        grid=(B, nr),
        in_specs=[
            pl.BlockSpec((L, None, Hx, Wx, C), lambda b, r: (0, b, 0, 0, 0)),
            pl.BlockSpec((L, None, Hz, Wz, C), lambda b, r: (0, b, 0, 0, 0)),
            pl.BlockSpec((L, C, C), lambda b, r: (0, 0, 0)),
            pl.BlockSpec((C, C), lambda b, r: (0, 0)),
            pl.BlockSpec((1, C), lambda b, r: (0, 0)),
            pl.BlockSpec((C, HEAD_PAD), lambda b, r: (0, 0)),
            pl.BlockSpec((1, HEAD_PAD), lambda b, r: (0, 0)),
        ],
        out_specs=pl.BlockSpec((None, th_g * Wo, HEAD_PAD), lambda b, r: (b, r, 0)),
        compiler_params=pltpu.CompilerParams(
            dimension_semantics=("parallel", "parallel"),
            vmem_limit_bytes=32 * 1024 * 1024),
    )(xf, zf, dw3, tw, tb, hw, hb)

    slab = slab.reshape(B, Ho, Wo, HEAD_PAD)
    cls = slab[..., 0:2]
    loc = slab[..., 2:6]
    cen = slab[..., 6:7]
    cls_ls = slab[..., 7:9]

    # Tiny (<=4-channel) transposes back to the PyTorch NCHW return layout.
    return {
        "cls": jnp.transpose(cls, (0, 3, 1, 2)),              # (B, 2, Ho, Wo)
        "loc": jnp.transpose(loc, (0, 3, 1, 2)),              # (B, 4, Ho, Wo)
        "cen": jnp.transpose(cen, (0, 3, 1, 2)),              # (B, 1, Ho, Wo)
        "cls_log_softmax": cls_ls.reshape(B, 1, Ho, Wo, 2),   # ModelBuilder.log_softmax
    }


# ---------------------------------------------------------------------------
# Deterministic parameter init (synthetic — no checkpoint loading)
# ---------------------------------------------------------------------------
def init_params(key, c=256):
    keys = jax.random.split(key, 10)

    def u(k, shape, fan_in):
        bound = 1.0 / jnp.sqrt(float(fan_in))
        return jax.random.uniform(k, shape, jnp.float32, -bound, bound)

    return {
        # nn.ConvTranspose2d(256*3, 256, 1, 1): weight (768, 256, 1, 1) -> (768, 256)
        "down_w": u(keys[0], (3 * c, c), 3 * c),
        "down_b": u(keys[1], (c,), 3 * c),
        # simplified GTRHead: 1x1 conv tower (256->256, ReLU) + prediction convs
        "tower_w": u(keys[2], (c, c), c),
        "tower_b": u(keys[3], (c,), c),
        "cls_w": u(keys[4], (c, 2), c),
        "cls_b": u(keys[5], (2,), c),
        "loc_w": u(keys[6], (c, 4), c),
        "loc_b": u(keys[7], (4,), c),
        "cen_w": u(keys[8], (c, 1), c),
        "cen_b": u(keys[9], (1,), c),
    }


# ---------------------------------------------------------------------------
# Pure-JAX f32 reference (NCHW, mirroring the PyTorch module) for a smoke check
# ---------------------------------------------------------------------------
def _ref_forward(params, xf_levels, zf_levels):
    def xcorr_ref(x, z):
        B, C, Hx, Wx = x.shape
        _, _, Hz, Wz = z.shape
        Ho, Wo = Hx - Hz + 1, Wx - Wz + 1
        out = jnp.zeros((B, C, Ho, Wo), jnp.float32)
        for di in range(Hz):
            for dj in range(Wz):
                out = out + x[:, :, di:di + Ho, dj:dj + Wo] * z[:, :, di:di + 1, dj:dj + 1]
        return out

    def conv1x1(x, w, b):
        return jnp.einsum("bihw,io->bohw", x, w) + b[None, :, None, None]

    feats = [xcorr_ref(x, z) for x, z in zip(xf_levels, zf_levels)]
    features = jnp.concatenate(feats, axis=1)
    down = conv1x1(features, params["down_w"], params["down_b"])
    h = jnp.maximum(conv1x1(down, params["tower_w"], params["tower_b"]), 0.0)
    cls = conv1x1(h, params["cls_w"], params["cls_b"])
    loc = conv1x1(h, params["loc_w"], params["loc_b"])
    cen = conv1x1(h, params["cen_w"], params["cen_b"])
    b, a2, H, W = cls.shape
    cls_perm = jnp.transpose(cls.reshape(b, 2, a2 // 2, H, W), (0, 2, 3, 4, 1))
    cls_ls = jax.nn.log_softmax(cls_perm, axis=4)
    return {"cls": cls, "loc": loc, "cen": cen, "cls_log_softmax": cls_ls}


if __name__ == "__main__":
    key = jax.random.PRNGKey(0)
    B, C, L = 2, 256, 3           # down layer hard-codes 256*3 -> 256
    Hx = Wx = 12                  # small search-feature spatial size
    Hz = Wz = 5                   # small template-feature spatial size
    kp, kx, kz = jax.random.split(key, 3)
    params = init_params(kp, C)

    xf32 = 0.1 * jax.random.normal(kx, (L, B, Hx, Wx, C), jnp.float32)
    zf32 = 0.1 * jax.random.normal(kz, (L, B, Hz, Wz, C), jnp.float32)
    # Features enter the per-frame path as bf16 (what the backbone would emit).
    xf_bf = xf32.astype(jnp.bfloat16)
    zf_bf = zf32.astype(jnp.bfloat16)

    fwd = jax.jit(model_builder_forward)
    out = fwd(params, xf_bf, zf_bf)
    out = jax.tree_util.tree_map(jax.block_until_ready, out)

    # Reference operates on NCHW level lists like the PyTorch module, fed the
    # same bf16-rounded features so only the bf16-MXU deviation remains.
    xf_levels = [jnp.transpose(xf_bf[l].astype(jnp.float32), (0, 3, 1, 2)) for l in range(L)]
    zf_levels = [jnp.transpose(zf_bf[l].astype(jnp.float32), (0, 3, 1, 2)) for l in range(L)]
    ref = _ref_forward(params, xf_levels, zf_levels)

    for name in ("cls", "loc", "cen", "cls_log_softmax"):
        assert out[name].shape == ref[name].shape, (name, out[name].shape, ref[name].shape)
        # bf16 MXU operands (f32 accumulate) vs. pure-f32 reference.
        assert bool(jnp.allclose(out[name], ref[name], rtol=5e-2, atol=2e-2)), name

    print("KERNEL_OK")
</pallas_src>

<mosaic_0001>
module attributes {stable_mosaic.version = 11 : i64} {
  func.func @_fused_track_kernel(%arg0: i32, %arg1: i32, %arg2: memref<3x1x12x12x256xbf16, #tpu.memory_space<vmem>>, %arg3: memref<3x1x5x5x256xbf16, #tpu.memory_space<vmem>>, %arg4: memref<3x256x256xbf16, #tpu.memory_space<vmem>>, %arg5: memref<256x256xbf16, #tpu.memory_space<vmem>>, %arg6: memref<1x256xf32, #tpu.memory_space<vmem>>, %arg7: memref<256x128xbf16, #tpu.memory_space<vmem>>, %arg8: memref<1x128xf32, #tpu.memory_space<vmem>>, %arg9: memref<1x32x128xf32, #tpu.memory_space<vmem>>) attributes {dimension_semantics = [#tpu.dimension_semantics<parallel>, #tpu.dimension_semantics<parallel>], iteration_bounds = array<i64: 2, 2>, scalar_prefetch = 0 : i64, scratch_operands = 0 : i64, tpu.core_type = #tpu.core_type<tc>, window_params = [{transform_indices = @transform_0, window_bounds = array<i64: 3, 1, 12, 12, 256>}, {transform_indices = @transform_1, window_bounds = array<i64: 3, 1, 5, 5, 256>}, {pipeline_mode = #tpu.pipeline_mode<synchronous>, transform_indices = @transform_2, window_bounds = array<i64: 3, 256, 256>}, {pipeline_mode = #tpu.pipeline_mode<synchronous>, transform_indices = @transform_3, window_bounds = array<i64: 256, 256>}, {pipeline_mode = #tpu.pipeline_mode<synchronous>, transform_indices = @transform_4, window_bounds = array<i64: 1, 256>}, {pipeline_mode = #tpu.pipeline_mode<synchronous>, transform_indices = @transform_5, window_bounds = array<i64: 256, 128>}, {pipeline_mode = #tpu.pipeline_mode<synchronous>, transform_indices = @transform_6, window_bounds = array<i64: 1, 128>}, {transform_indices = @transform_7, window_bounds = array<i64: 1, 32, 128>}]} {
    %c4_i32 = arith.constant 4 : i32
    %0 = arith.muli %arg1, %c4_i32 : i32
    %cst = arith.constant 0.000000e+00 : f32
    %1 = vector.broadcast %cst : f32 to vector<32x256xf32>
    %c0 = arith.constant 0 : index
    %c0_0 = arith.constant 0 : index
    %c0_1 = arith.constant 0 : index
    %c0_2 = arith.constant 0 : index
    %c0_3 = arith.constant 0 : index
    %2 = vector.load %arg3[%c0, %c0_0, %c0_1, %c0_2, %c0_3] : memref<3x1x5x5x256xbf16, #tpu.memory_space<vmem>>, vector<1x1x5x5x256xbf16>
    %3 = vector.shape_cast %2 : vector<1x1x5x5x256xbf16> to vector<5x5x256xbf16>
    %4 = arith.extf %3 : vector<5x5x256xbf16> to vector<5x5x256xf32>
    %cst_4 = arith.constant 0.000000e+00 : f32
    %5 = vector.broadcast %cst_4 : f32 to vector<4x8x256xf32>
    %c0_i32 = arith.constant 0 : i32
    %6 = arith.addi %0, %c0_i32 : i32
    %c0_5 = arith.constant 0 : index
    %c0_6 = arith.constant 0 : index
    %7 = arith.index_cast %6 : i32 to index
    %c0_7 = arith.constant 0 : index
    %c0_8 = arith.constant 0 : index
    %8 = vector.load %arg2[%c0_5, %c0_6, %7, %c0_7, %c0_8] : memref<3x1x12x12x256xbf16, #tpu.memory_space<vmem>>, vector<1x1x8x8x256xbf16>
    %9 = vector.shape_cast %8 : vector<1x1x8x8x256xbf16> to vector<8x8x256xbf16>
    %10 = arith.extf %9 : vector<8x8x256xbf16> to vector<8x8x256xf32>
    %11 = vector.extract_strided_slice %10 {offsets = [0, 0, 0], sizes = [4, 8, 256], strides = [1, 1, 1]} : vector<8x8x256xf32> to vector<4x8x256xf32>
    %12 = vector.extract_strided_slice %4 {offsets = [0, 0, 0], sizes = [1, 1, 256], strides = [1, 1, 1]} : vector<5x5x256xf32> to vector<1x1x256xf32>
    %13 = vector.shape_cast %12 : vector<1x1x256xf32> to vector<256xf32>
    %14 = vector.shape_cast %13 : vector<256xf32> to vector<1x1x256xf32>
    %15 = vector.broadcast %14 : vector<1x1x256xf32> to vector<4x8x256xf32>
    %16 = arith.mulf %11, %15 : vector<4x8x256xf32>
    %17 = arith.addf %5, %16 : vector<4x8x256xf32>
    %18 = vector.extract_strided_slice %10 {offsets = [1, 0, 0], sizes = [4, 8, 256], strides = [1, 1, 1]} : vector<8x8x256xf32> to vector<4x8x256xf32>
    %19 = vector.extract_strided_slice %4 {offsets = [1, 0, 0], sizes = [1, 1, 256], strides = [1, 1, 1]} : vector<5x5x256xf32> to vector<1x1x256xf32>
    %20 = vector.shape_cast %19 : vector<1x1x256xf32> to vector<256xf32>
    %21 = vector.shape_cast %20 : vector<256xf32> to vector<1x1x256xf32>
    %22 = vector.broadcast %21 : vector<1x1x256xf32> to vector<4x8x256xf32>
    %23 = arith.mulf %18, %22 : vector<4x8x256xf32>
    %24 = arith.addf %17, %23 : vector<4x8x256xf32>
    %25 = vector.extract_strided_slice %10 {offsets = [2, 0, 0], sizes = [4, 8, 256], strides = [1, 1, 1]} : vector<8x8x256xf32> to vector<4x8x256xf32>
    %26 = vector.extract_strided_slice %4 {offsets = [2, 0, 0], sizes = [1, 1, 256], strides = [1, 1, 1]} : vector<5x5x256xf32> to vector<1x1x256xf32>
    %27 = vector.shape_cast %26 : vector<1x1x256xf32> to vector<256xf32>
    %28 = vector.shape_cast %27 : vector<256xf32> to vector<1x1x256xf32>
    %29 = vector.broadcast %28 : vector<1x1x256xf32> to vector<4x8x256xf32>
    %30 = arith.mulf %25, %29 : vector<4x8x256xf32>
    %31 = arith.addf %24, %30 : vector<4x8x256xf32>
    %32 = vector.extract_strided_slice %10 {offsets = [3, 0, 0], sizes = [4, 8, 256], strides = [1, 1, 1]} : vector<8x8x256xf32> to vector<4x8x256xf32>
    %33 = vector.extract_strided_slice %4 {offsets = [3, 0, 0], sizes = [1, 1, 256], strides = [1, 1, 1]} : vector<5x5x256xf32> to vector<1x1x256xf32>
    %34 = vector.shape_cast %33 : vector<1x1x256xf32> to vector<256xf32>
    %35 = vector.shape_cast %34 : vector<256xf32> to vector<1x1x256xf32>
    %36 = vector.broadcast %35 : vector<1x1x256xf32> to vector<4x8x256xf32>
    %37 = arith.mulf %32, %36 : vector<4x8x256xf32>
    %38 = arith.addf %31, %37 : vector<4x8x256xf32>
    %39 = vector.extract_strided_slice %10 {offsets = [4, 0, 0], sizes = [4, 8, 256], strides = [1, 1, 1]} : vector<8x8x256xf32> to vector<4x8x256xf32>
    %40 = vector.extract_strided_slice %4 {offsets = [4, 0, 0], sizes = [1, 1, 256], strides = [1, 1, 1]} : vector<5x5x256xf32> to vector<1x1x256xf32>
    %41 = vector.shape_cast %40 : vector<1x1x256xf32> to vector<256xf32>
    %42 = vector.shape_cast %41 : vector<256xf32> to vector<1x1x256xf32>
    %43 = vector.broadcast %42 : vector<1x1x256xf32> to vector<4x8x256xf32>
    %44 = arith.mulf %39, %43 : vector<4x8x256xf32>
    %45 = arith.addf %38, %44 : vector<4x8x256xf32>
    %c0_i32_9 = arith.constant 0 : i32
    %46 = arith.addi %0, %c0_i32_9 : i32
    %c0_10 = arith.constant 0 : index
    %c0_11 = arith.constant 0 : index
    %47 = arith.index_cast %46 : i32 to index
    %c1 = arith.constant 1 : index
    %c0_12 = arith.constant 0 : index
    %48 = vector.load %arg2[%c0_10, %c0_11, %47, %c1, %c0_12] : memref<3x1x12x12x256xbf16, #tpu.memory_space<vmem>>, vector<1x1x8x8x256xbf16>
    %49 = vector.shape_cast %48 : vector<1x1x8x8x256xbf16> to vector<8x8x256xbf16>
    %50 = arith.extf %49 : vector<8x8x256xbf16> to vector<8x8x256xf32>
    %51 = vector.extract_strided_slice %50 {offsets = [0, 0, 0], sizes = [4, 8, 256], strides = [1, 1, 1]} : vector<8x8x256xf32> to vector<4x8x256xf32>
    %52 = vector.extract_strided_slice %4 {offsets = [0, 1, 0], sizes = [1, 1, 256], strides = [1, 1, 1]} : vector<5x5x256xf32> to vector<1x1x256xf32>
    %53 = vector.shape_cast %52 : vector<1x1x256xf32> to vector<256xf32>
    %54 = vector.shape_cast %53 : vector<256xf32> to vector<1x1x256xf32>
    %55 = vector.broadcast %54 : vector<1x1x256xf32> to vector<4x8x256xf32>
    %56 = arith.mulf %51, %55 : vector<4x8x256xf32>
    %57 = arith.addf %45, %56 : vector<4x8x256xf32>
    %58 = vector.extract_strided_slice %50 {offsets = [1, 0, 0], sizes = [4, 8, 256], strides = [1, 1, 1]} : vector<8x8x256xf32> to vector<4x8x256xf32>
    %59 = vector.extract_strided_slice %4 {offsets = [1, 1, 0], sizes = [1, 1, 256], strides = [1, 1, 1]} : vector<5x5x256xf32> to vector<1x1x256xf32>
    %60 = vector.shape_cast %59 : vector<1x1x256xf32> to vector<256xf32>
    %61 = vector.shape_cast %60 : vector<256xf32> to vector<1x1x256xf32>
    %62 = vector.broadcast %61 : vector<1x1x256xf32> to vector<4x8x256xf32>
    %63 = arith.mulf %58, %62 : vector<4x8x256xf32>
    %64 = arith.addf %57, %63 : vector<4x8x256xf32>
    %65 = vector.extract_strided_slice %50 {offsets = [2, 0, 0], sizes = [4, 8, 256], strides = [1, 1, 1]} : vector<8x8x256xf32> to vector<4x8x256xf32>
    %66 = vector.extract_strided_slice %4 {offsets = [2, 1, 0], sizes = [1, 1, 256], strides = [1, 1, 1]} : vector<5x5x256xf32> to vector<1x1x256xf32>
    %67 = vector.shape_cast %66 : vector<1x1x256xf32> to vector<256xf32>
    %68 = vector.shape_cast %67 : vector<256xf32> to vector<1x1x256xf32>
    %69 = vector.broadcast %68 : vector<1x1x256xf32> to vector<4x8x256xf32>
    %70 = arith.mulf %65, %69 : vector<4x8x256xf32>
    %71 = arith.addf %64, %70 : vector<4x8x256xf32>
    %72 = vector.extract_strided_slice %50 {offsets = [3, 0, 0], sizes = [4, 8, 256], strides = [1, 1, 1]} : vector<8x8x256xf32> to vector<4x8x256xf32>
    %73 = vector.extract_strided_slice %4 {offsets = [3, 1, 0], sizes = [1, 1, 256], strides = [1, 1, 1]} : vector<5x5x256xf32> to vector<1x1x256xf32>
    %74 = vector.shape_cast %73 : vector<1x1x256xf32> to vector<256xf32>
    %75 = vector.shape_cast %74 : vector<256xf32> to vector<1x1x256xf32>
    %76 = vector.broadcast %75 : vector<1x1x256xf32> to vector<4x8x256xf32>
    %77 = arith.mulf %72, %76 : vector<4x8x256xf32>
    %78 = arith.addf %71, %77 : vector<4x8x256xf32>
    %79 = vector.extract_strided_slice %50 {offsets = [4, 0, 0], sizes = [4, 8, 256], strides = [1, 1, 1]} : vector<8x8x256xf32> to vector<4x8x256xf32>
    %80 = vector.extract_strided_slice %4 {offsets = [4, 1, 0], sizes = [1, 1, 256], strides = [1, 1, 1]} : vector<5x5x256xf32> to vector<1x1x256xf32>
    %81 = vector.shape_cast %80 : vector<1x1x256xf32> to vector<256xf32>
    %82 = vector.shape_cast %81 : vector<256xf32> to vector<1x1x256xf32>
    %83 = vector.broadcast %82 : vector<1x1x256xf32> to vector<4x8x256xf32>
    %84 = arith.mulf %79, %83 : vector<4x8x256xf32>
    %85 = arith.addf %78, %84 : vector<4x8x256xf32>
    %c0_i32_13 = arith.constant 0 : i32
    %86 = arith.addi %0, %c0_i32_13 : i32
    %c0_14 = arith.constant 0 : index
    %c0_15 = arith.constant 0 : index
    %87 = arith.index_cast %86 : i32 to index
    %c2 = arith.constant 2 : index
    %c0_16 = arith.constant 0 : index
    %88 = vector.load %arg2[%c0_14, %c0_15, %87, %c2, %c0_16] : memref<3x1x12x12x256xbf16, #tpu.memory_space<vmem>>, vector<1x1x8x8x256xbf16>
    %89 = vector.shape_cast %88 : vector<1x1x8x8x256xbf16> to vector<8x8x256xbf16>
    %90 = arith.extf %89 : vector<8x8x256xbf16> to vector<8x8x256xf32>
    %91 = vector.extract_strided_slice %90 {offsets = [0, 0, 0], sizes = [4, 8, 256], strides = [1, 1, 1]} : vector<8x8x256xf32> to vector<4x8x256xf32>
    %92 = vector.extract_strided_slice %4 {offsets = [0, 2, 0], sizes = [1, 1, 256], strides = [1, 1, 1]} : vector<5x5x256xf32> to vector<1x1x256xf32>
    %93 = vector.shape_cast %92 : vector<1x1x256xf32> to vector<256xf32>
    %94 = vector.shape_cast %93 : vector<256xf32> to vector<1x1x256xf32>
    %95 = vector.broadcast %94 : vector<1x1x256xf32> to vector<4x8x256xf32>
    %96 = arith.mulf %91, %95 : vector<4x8x256xf32>
    %97 = arith.addf %85, %96 : vector<4x8x256xf32>
    %98 = vector.extract_strided_slice %90 {offsets = [1, 0, 0], sizes = [4, 8, 256], strides = [1, 1, 1]} : vector<8x8x256xf32> to vector<4x8x256xf32>
    %99 = vector.extract_strided_slice %4 {offsets = [1, 2, 0], sizes = [1, 1, 256], strides = [1, 1, 1]} : vector<5x5x256xf32> to vector<1x1x256xf32>
    %100 = vector.shape_cast %99 : vector<1x1x256xf32> to vector<256xf32>
    %101 = vector.shape_cast %100 : vector<256xf32> to vector<1x1x256xf32>
    %102 = vector.broadcast %101 : vector<1x1x256xf32> to vector<4x8x256xf32>
    %103 = arith.mulf %98, %102 : vector<4x8x256xf32>
    %104 = arith.addf %97, %103 : vector<4x8x256xf32>
    %105 = vector.extract_strided_slice %90 {offsets = [2, 0, 0], sizes = [4, 8, 256], strides = [1, 1, 1]} : vector<8x8x256xf32> to vector<4x8x256xf32>
    %106 = vector.extract_strided_slice %4 {offsets = [2, 2, 0], sizes = [1, 1, 256], strides = [1, 1, 1]} : vector<5x5x256xf32> to vector<1x1x256xf32>
    %107 = vector.shape_cast %106 : vector<1x1x256xf32> to vector<256xf32>
    %108 = vector.shape_cast %107 : vector<256xf32> to vector<1x1x256xf32>
    %109 = vector.broadcast %108 : vector<1x1x256xf32> to vector<4x8x256xf32>
    %110 = arith.mulf %105, %109 : vector<4x8x256xf32>
    %111 = arith.addf %104, %110 : vector<4x8x256xf32>
    %112 = vector.extract_strided_slice %90 {offsets = [3, 0, 0], sizes = [4, 8, 256], strides = [1, 1, 1]} : vector<8x8x256xf32> to vector<4x8x256xf32>
    %113 = vector.extract_strided_slice %4 {offsets = [3, 2, 0], sizes = [1, 1, 256], strides = [1, 1, 1]} : vector<5x5x256xf32> to vector<1x1x256xf32>
    %114 = vector.shape_cast %113 : vector<1x1x256xf32> to vector<256xf32>
    %115 = vector.shape_cast %114 : vector<256xf32> to vector<1x1x256xf32>
    %116 = vector.broadcast %115 : vector<1x1x256xf32> to vector<4x8x256xf32>
    %117 = arith.mulf %112, %116 : vector<4x8x256xf32>
    %118 = arith.addf %111, %117 : vector<4x8x256xf32>
    %119 = vector.extract_strided_slice %90 {offsets = [4, 0, 0], sizes = [4, 8, 256], strides = [1, 1, 1]} : vector<8x8x256xf32> to vector<4x8x256xf32>
    %120 = vector.extract_strided_slice %4 {offsets = [4, 2, 0], sizes = [1, 1, 256], strides = [1, 1, 1]} : vector<5x5x256xf32> to vector<1x1x256xf32>
    %121 = vector.shape_cast %120 : vector<1x1x256xf32> to vector<256xf32>
    %122 = vector.shape_cast %121 : vector<256xf32> to vector<1x1x256xf32>
    %123 = vector.broadcast %122 : vector<1x1x256xf32> to vector<4x8x256xf32>
    %124 = arith.mulf %119, %123 : vector<4x8x256xf32>
    %125 = arith.addf %118, %124 : vector<4x8x256xf32>
    %c0_i32_17 = arith.constant 0 : i32
    %126 = arith.addi %0, %c0_i32_17 : i32
    %c0_18 = arith.constant 0 : index
    %c0_19 = arith.constant 0 : index
    %127 = arith.index_cast %126 : i32 to index
    %c3 = arith.constant 3 : index
    %c0_20 = arith.constant 0 : index
    %128 = vector.load %arg2[%c0_18, %c0_19, %127, %c3, %c0_20] : memref<3x1x12x12x256xbf16, #tpu.memory_space<vmem>>, vector<1x1x8x8x256xbf16>
    %129 = vector.shape_cast %128 : vector<1x1x8x8x256xbf16> to vector<8x8x256xbf16>
    %130 = arith.extf %129 : vector<8x8x256xbf16> to vector<8x8x256xf32>
    %131 = vector.extract_strided_slice %130 {offsets = [0, 0, 0], sizes = [4, 8, 256], strides = [1, 1, 1]} : vector<8x8x256xf32> to vector<4x8x256xf32>
    %132 = vector.extract_strided_slice %4 {offsets = [0, 3, 0], sizes = [1, 1, 256], strides = [1, 1, 1]} : vector<5x5x256xf32> to vector<1x1x256xf32>
    %133 = vector.shape_cast %132 : vector<1x1x256xf32> to vector<256xf32>
    %134 = vector.shape_cast %133 : vector<256xf32> to vector<1x1x256xf32>
    %135 = vector.broadcast %134 : vector<1x1x256xf32> to vector<4x8x256xf32>
    %136 = arith.mulf %131, %135 : vector<4x8x256xf32>
    %137 = arith.addf %125, %136 : vector<4x8x256xf32>
    %138 = vector.extract_strided_slice %130 {offsets = [1, 0, 0], sizes = [4, 8, 256], strides = [1, 1, 1]} : vector<8x8x256xf32> to vector<4x8x256xf32>
    %139 = vector.extract_strided_slice %4 {offsets = [1, 3, 0], sizes = [1, 1, 256], strides = [1, 1, 1]} : vector<5x5x256xf32> to vector<1x1x256xf32>
    %140 = vector.shape_cast %139 : vector<1x1x256xf32> to vector<256xf32>
    %141 = vector.shape_cast %140 : vector<256xf32> to vector<1x1x256xf32>
    %142 = vector.broadcast %141 : vector<1x1x256xf32> to vector<4x8x256xf32>
    %143 = arith.mulf %138, %142 : vector<4x8x256xf32>
    %144 = arith.addf %137, %143 : vector<4x8x256xf32>
    %145 = vector.extract_strided_slice %130 {offsets = [2, 0, 0], sizes = [4, 8, 256], strides = [1, 1, 1]} : vector<8x8x256xf32> to vector<4x8x256xf32>
    %146 = vector.extract_strided_slice %4 {offsets = [2, 3, 0], sizes = [1, 1, 256], strides = [1, 1, 1]} : vector<5x5x256xf32> to vector<1x1x256xf32>
    %147 = vector.shape_cast %146 : vector<1x1x256xf32> to vector<256xf32>
    %148 = vector.shape_cast %147 : vector<256xf32> to vector<1x1x256xf32>
    %149 = vector.broadcast %148 : vector<1x1x256xf32> to vector<4x8x256xf32>
    %150 = arith.mulf %145, %149 : vector<4x8x256xf32>
    %151 = arith.addf %144, %150 : vector<4x8x256xf32>
    %152 = vector.extract_strided_slice %130 {offsets = [3, 0, 0], sizes = [4, 8, 256], strides = [1, 1, 1]} : vector<8x8x256xf32> to vector<4x8x256xf32>
    %153 = vector.extract_strided_slice %4 {offsets = [3, 3, 0], sizes = [1, 1, 256], strides = [1, 1, 1]} : vector<5x5x256xf32> to vector<1x1x256xf32>
    %154 = vector.shape_cast %153 : vector<1x1x256xf32> to vector<256xf32>
    %155 = vector.shape_cast %154 : vector<256xf32> to vector<1x1x256xf32>
    %156 = vector.broadcast %155 : vector<1x1x256xf32> to vector<4x8x256xf32>
    %157 = arith.mulf %152, %156 : vector<4x8x256xf32>
    %158 = arith.addf %151, %157 : vector<4x8x256xf32>
    %159 = vector.extract_strided_slice %130 {offsets = [4, 0, 0], sizes = [4, 8, 256], strides = [1, 1, 1]} : vector<8x8x256xf32> to vector<4x8x256xf32>
    %160 = vector.extract_strided_slice %4 {offsets = [4, 3, 0], sizes = [1, 1, 256], strides = [1, 1, 1]} : vector<5x5x256xf32> to vector<1x1x256xf32>
    %161 = vector.shape_cast %160 : vector<1x1x256xf32> to vector<256xf32>
    %162 = vector.shape_cast %161 : vector<256xf32> to vector<1x1x256xf32>
    %163 = vector.broadcast %162 : vector<1x1x256xf32> to vector<4x8x256xf32>
    %164 = arith.mulf %159, %163 : vector<4x8x256xf32>
    %165 = arith.addf %158, %164 : vector<4x8x256xf32>
    %c0_i32_21 = arith.constant 0 : i32
    %166 = arith.addi %0, %c0_i32_21 : i32
    %c0_22 = arith.constant 0 : index
    %c0_23 = arith.constant 0 : index
    %167 = arith.index_cast %166 : i32 to index
    %c4 = arith.constant 4 : index
    %c0_24 = arith.constant 0 : index
    %168 = vector.load %arg2[%c0_22, %c0_23, %167, %c4, %c0_24] : memref<3x1x12x12x256xbf16, #tpu.memory_space<vmem>>, vector<1x1x8x8x256xbf16>
    %169 = vector.shape_cast %168 : vector<1x1x8x8x256xbf16> to vector<8x8x256xbf16>
    %170 = arith.extf %169 : vector<8x8x256xbf16> to vector<8x8x256xf32>
    %171 = vector.extract_strided_slice %170 {offsets = [0, 0, 0], sizes = [4, 8, 256], strides = [1, 1, 1]} : vector<8x8x256xf32> to vector<4x8x256xf32>
    %172 = vector.extract_strided_slice %4 {offsets = [0, 4, 0], sizes = [1, 1, 256], strides = [1, 1, 1]} : vector<5x5x256xf32> to vector<1x1x256xf32>
    %173 = vector.shape_cast %172 : vector<1x1x256xf32> to vector<256xf32>
    %174 = vector.shape_cast %173 : vector<256xf32> to vector<1x1x256xf32>
    %175 = vector.broadcast %174 : vector<1x1x256xf32> to vector<4x8x256xf32>
    %176 = arith.mulf %171, %175 : vector<4x8x256xf32>
    %177 = arith.addf %165, %176 : vector<4x8x256xf32>
    %178 = vector.extract_strided_slice %170 {offsets = [1, 0, 0], sizes = [4, 8, 256], strides = [1, 1, 1]} : vector<8x8x256xf32> to vector<4x8x256xf32>
    %179 = vector.extract_strided_slice %4 {offsets = [1, 4, 0], sizes = [1, 1, 256], strides = [1, 1, 1]} : vector<5x5x256xf32> to vector<1x1x256xf32>
    %180 = vector.shape_cast %179 : vector<1x1x256xf32> to vector<256xf32>
    %181 = vector.shape_cast %180 : vector<256xf32> to vector<1x1x256xf32>
    %182 = vector.broadcast %181 : vector<1x1x256xf32> to vector<4x8x256xf32>
    %183 = arith.mulf %178, %182 : vector<4x8x256xf32>
    %184 = arith.addf %177, %183 : vector<4x8x256xf32>
    %185 = vector.extract_strided_slice %170 {offsets = [2, 0, 0], sizes = [4, 8, 256], strides = [1, 1, 1]} : vector<8x8x256xf32> to vector<4x8x256xf32>
    %186 = vector.extract_strided_slice %4 {offsets = [2, 4, 0], sizes = [1, 1, 256], strides = [1, 1, 1]} : vector<5x5x256xf32> to vector<1x1x256xf32>
    %187 = vector.shape_cast %186 : vector<1x1x256xf32> to vector<256xf32>
    %188 = vector.shape_cast %187 : vector<256xf32> to vector<1x1x256xf32>
    %189 = vector.broadcast %188 : vector<1x1x256xf32> to vector<4x8x256xf32>
    %190 = arith.mulf %185, %189 : vector<4x8x256xf32>
    %191 = arith.addf %184, %190 : vector<4x8x256xf32>
    %192 = vector.extract_strided_slice %170 {offsets = [3, 0, 0], sizes = [4, 8, 256], strides = [1, 1, 1]} : vector<8x8x256xf32> to vector<4x8x256xf32>
    %193 = vector.extract_strided_slice %4 {offsets = [3, 4, 0], sizes = [1, 1, 256], strides = [1, 1, 1]} : vector<5x5x256xf32> to vector<1x1x256xf32>
    %194 = vector.shape_cast %193 : vector<1x1x256xf32> to vector<256xf32>
    %195 = vector.shape_cast %194 : vector<256xf32> to vector<1x1x256xf32>
    %196 = vector.broadcast %195 : vector<1x1x256xf32> to vector<4x8x256xf32>
    %197 = arith.mulf %192, %196 : vector<4x8x256xf32>
    %198 = arith.addf %191, %197 : vector<4x8x256xf32>
    %199 = vector.extract_strided_slice %170 {offsets = [4, 0, 0], sizes = [4, 8, 256], strides = [1, 1, 1]} : vector<8x8x256xf32> to vector<4x8x256xf32>
    %200 = vector.extract_strided_slice %4 {offsets = [4, 4, 0], sizes = [1, 1, 256], strides = [1, 1, 1]} : vector<5x5x256xf32> to vector<1x1x256xf32>
    %201 = vector.shape_cast %200 : vector<1x1x256xf32> to vector<256xf32>
    %202 = vector.shape_cast %201 : vector<256xf32> to vector<1x1x256xf32>
    %203 = vector.broadcast %202 : vector<1x1x256xf32> to vector<4x8x256xf32>
    %204 = arith.mulf %199, %203 : vector<4x8x256xf32>
    %205 = arith.addf %198, %204 : vector<4x8x256xf32>
    %206 = vector.shape_cast %205 : vector<4x8x256xf32> to vector<32x256xf32>
    %207 = arith.truncf %206 : vector<32x256xf32> to vector<32x256xbf16>
    %c0_25 = arith.constant 0 : index
    %c0_26 = arith.constant 0 : index
    %c0_27 = arith.constant 0 : index
    %208 = vector.load %arg4[%c0_25, %c0_26, %c0_27] : memref<3x256x256xbf16, #tpu.memory_space<vmem>>, vector<1x256x256xbf16>
    %209 = vector.shape_cast %208 : vector<1x256x256xbf16> to vector<256x256xbf16>
    %cst_28 = arith.constant dense<0.000000e+00> : vector<32x256xf32>
    %210 = tpu.matmul %207, %209, %cst_28 {dimension_numbers = #tpu.dot_dimension_numbers<[1], [0], [0], [1], [0, 0, 1, 1], [], []>} : vector<32x256xbf16>, vector<256x256xbf16>, vector<32x256xf32> -> vector<32x256xf32>
    %211 = arith.addf %1, %210 : vector<32x256xf32>
    %c1_29 = arith.constant 1 : index
    %c0_30 = arith.constant 0 : index
    %c0_31 = arith.constant 0 : index
    %c0_32 = arith.constant 0 : index
    %c0_33 = arith.constant 0 : index
    %212 = vector.load %arg3[%c1_29, %c0_30, %c0_31, %c0_32, %c0_33] : memref<3x1x5x5x256xbf16, #tpu.memory_space<vmem>>, vector<1x1x5x5x256xbf16>
    %213 = vector.shape_cast %212 : vector<1x1x5x5x256xbf16> to vector<5x5x256xbf16>
    %214 = arith.extf %213 : vector<5x5x256xbf16> to vector<5x5x256xf32>
    %cst_34 = arith.constant 0.000000e+00 : f32
    %215 = vector.broadcast %cst_34 : f32 to vector<4x8x256xf32>
    %c0_i32_35 = arith.constant 0 : i32
    %216 = arith.addi %0, %c0_i32_35 : i32
    %c1_36 = arith.constant 1 : index
    %c0_37 = arith.constant 0 : index
    %217 = arith.index_cast %216 : i32 to index
    %c0_38 = arith.constant 0 : index
    %c0_39 = arith.constant 0 : index
    %218 = vector.load %arg2[%c1_36, %c0_37, %217, %c0_38, %c0_39] : memref<3x1x12x12x256xbf16, #tpu.memory_space<vmem>>, vector<1x1x8x8x256xbf16>
    %219 = vector.shape_cast %218 : vector<1x1x8x8x256xbf16> to vector<8x8x256xbf16>
    %220 = arith.extf %219 : vector<8x8x256xbf16> to vector<8x8x256xf32>
    %221 = vector.extract_strided_slice %220 {offsets = [0, 0, 0], sizes = [4, 8, 256], strides = [1, 1, 1]} : vector<8x8x256xf32> to vector<4x8x256xf32>
    %222 = vector.extract_strided_slice %214 {offsets = [0, 0, 0], sizes = [1, 1, 256], strides = [1, 1, 1]} : vector<5x5x256xf32> to vector<1x1x256xf32>
    %223 = vector.shape_cast %222 : vector<1x1x256xf32> to vector<256xf32>
    %224 = vector.shape_cast %223 : vector<256xf32> to vector<1x1x256xf32>
    %225 = vector.broadcast %224 : vector<1x1x256xf32> to vector<4x8x256xf32>
    %226 = arith.mulf %221, %225 : vector<4x8x256xf32>
    %227 = arith.addf %215, %226 : vector<4x8x256xf32>
    %228 = vector.extract_strided_slice %220 {offsets = [1, 0, 0], sizes = [4, 8, 256], strides = [1, 1, 1]} : vector<8x8x256xf32> to vector<4x8x256xf32>
    %229 = vector.extract_strided_slice %214 {offsets = [1, 0, 0], sizes = [1, 1, 256], strides = [1, 1, 1]} : vector<5x5x256xf32> to vector<1x1x256xf32>
    %230 = vector.shape_cast %229 : vector<1x1x256xf32> to vector<256xf32>
    %231 = vector.shape_cast %230 : vector<256xf32> to vector<1x1x256xf32>
    %232 = vector.broadcast %231 : vector<1x1x256xf32> to vector<4x8x256xf32>
    %233 = arith.mulf %228, %232 : vector<4x8x256xf32>
    %234 = arith.addf %227, %233 : vector<4x8x256xf32>
    %235 = vector.extract_strided_slice %220 {offsets = [2, 0, 0], sizes = [4, 8, 256], strides = [1, 1, 1]} : vector<8x8x256xf32> to vector<4x8x256xf32>
    %236 = vector.extract_strided_slice %214 {offsets = [2, 0, 0], sizes = [1, 1, 256], strides = [1, 1, 1]} : vector<5x5x256xf32> to vector<1x1x256xf32>
    %237 = vector.shape_cast %236 : vector<1x1x256xf32> to vector<256xf32>
    %238 = vector.shape_cast %237 : vector<256xf32> to vector<1x1x256xf32>
    %239 = vector.broadcast %238 : vector<1x1x256xf32> to vector<4x8x256xf32>
    %240 = arith.mulf %235, %239 : vector<4x8x256xf32>
    %241 = arith.addf %234, %240 : vector<4x8x256xf32>
    %242 = vector.extract_strided_slice %220 {offsets = [3, 0, 0], sizes = [4, 8, 256], strides = [1, 1, 1]} : vector<8x8x256xf32> to vector<4x8x256xf32>
    %243 = vector.extract_strided_slice %214 {offsets = [3, 0, 0], sizes = [1, 1, 256], strides = [1, 1, 1]} : vector<5x5x256xf32> to vector<1x1x256xf32>
    %244 = vector.shape_cast %243 : vector<1x1x256xf32> to vector<256xf32>
    %245 = vector.shape_cast %244 : vector<256xf32> to vector<1x1x256xf32>
    %246 = vector.broadcast %245 : vector<1x1x256xf32> to vector<4x8x256xf32>
    %247 = arith.mulf %242, %246 : vector<4x8x256xf32>
    %248 = arith.addf %241, %247 : vector<4x8x256xf32>
    %249 = vector.extract_strided_slice %220 {offsets = [4, 0, 0], sizes = [4, 8, 256], strides = [1, 1, 1]} : vector<8x8x256xf32> to vector<4x8x256xf32>
    %250 = vector.extract_strided_slice %214 {offsets = [4, 0, 0], sizes = [1, 1, 256], strides = [1, 1, 1]} : vector<5x5x256xf32> to vector<1x1x256xf32>
    %251 = vector.shape_cast %250 : vector<1x1x256xf32> to vector<256xf32>
    %252 = vector.shape_cast %251 : vector<256xf32> to vector<1x1x256xf32>
    %253 = vector.broadcast %252 : vector<1x1x256xf32> to vector<4x8x256xf32>
    %254 = arith.mulf %249, %253 : vector<4x8x256xf32>
    %255 = arith.addf %248, %254 : vector<4x8x256xf32>
    %c0_i32_40 = arith.constant 0 : i32
    %256 = arith.addi %0, %c0_i32_40 : i32
    %c1_41 = arith.constant 1 : index
    %c0_42 = arith.constant 0 : index
    %257 = arith.index_cast %256 : i32 to index
    %c1_43 = arith.constant 1 : index
    %c0_44 = arith.constant 0 : index
    %258 = vector.load %arg2[%c1_41, %c0_42, %257, %c1_43, %c0_44] : memref<3x1x12x12x256xbf16, #tpu.memory_space<vmem>>, vector<1x1x8x8x256xbf16>
    %259 = vector.shape_cast %258 : vector<1x1x8x8x256xbf16> to vector<8x8x256xbf16>
    %260 = arith.extf %259 : vector<8x8x256xbf16> to vector<8x8x256xf32>
    %261 = vector.extract_strided_slice %260 {offsets = [0, 0, 0], sizes = [4, 8, 256], strides = [1, 1, 1]} : vector<8x8x256xf32> to vector<4x8x256xf32>
    %262 = vector.extract_strided_slice %214 {offsets = [0, 1, 0], sizes = [1, 1, 256], strides = [1, 1, 1]} : vector<5x5x256xf32> to vector<1x1x256xf32>
    %263 = vector.shape_cast %262 : vector<1x1x256xf32> to vector<256xf32>
    %264 = vector.shape_cast %263 : vector<256xf32> to vector<1x1x256xf32>
    %265 = vector.broadcast %264 : vector<1x1x256xf32> to vector<4x8x256xf32>
    %266 = arith.mulf %261, %265 : vector<4x8x256xf32>
    %267 = arith.addf %255, %266 : vector<4x8x256xf32>
    %268 = vector.extract_strided_slice %260 {offsets = [1, 0, 0], sizes = [4, 8, 256], strides = [1, 1, 1]} : vector<8x8x256xf32> to vector<4x8x256xf32>
    %269 = vector.extract_strided_slice %214 {offsets = [1, 1, 0], sizes = [1, 1, 256], strides = [1, 1, 1]} : vector<5x5x256xf32> to vector<1x1x256xf32>
    %270 = vector.shape_cast %269 : vector<1x1x256xf32> to vector<256xf32>
    %271 = vector.shape_cast %270 : vector<256xf32> to vector<1x1x256xf32>
    %272 = vector.broadcast %271 : vector<1x1x256xf32> to vector<4x8x256xf32>
    %273 = arith.mulf %268, %272 : vector<4x8x256xf32>
    %274 = arith.addf %267, %273 : vector<4x8x256xf32>
    %275 = vector.extract_strided_slice %260 {offsets = [2, 0, 0], sizes = [4, 8, 256], strides = [1, 1, 1]} : vector<8x8x256xf32> to vector<4x8x256xf32>
    %276 = vector.extract_strided_slice %214 {offsets = [2, 1, 0], sizes = [1, 1, 256], strides = [1, 1, 1]} : vector<5x5x256xf32> to vector<1x1x256xf32>
    %277 = vector.shape_cast %276 : vector<1x1x256xf32> to vector<256xf32>
    %278 = vector.shape_cast %277 : vector<256xf32> to vector<1x1x256xf32>
    %279 = vector.broadcast %278 : vector<1x1x256xf32> to vector<4x8x256xf32>
    %280 = arith.mulf %275, %279 : vector<4x8x256xf32>
    %281 = arith.addf %274, %280 : vector<4x8x256xf32>
    %282 = vector.extract_strided_slice %260 {offsets = [3, 0, 0], sizes = [4, 8, 256], strides = [1, 1, 1]} : vector<8x8x256xf32> to vector<4x8x256xf32>
    %283 = vector.extract_strided_slice %214 {offsets = [3, 1, 0], sizes = [1, 1, 256], strides = [1, 1, 1]} : vector<5x5x256xf32> to vector<1x1x256xf32>
    %284 = vector.shape_cast %283 : vector<1x1x256xf32> to vector<256xf32>
    %285 = vector.shape_cast %284 : vector<256xf32> to vector<1x1x256xf32>
    %286 = vector.broadcast %285 : vector<1x1x256xf32> to vector<4x8x256xf32>
    %287 = arith.mulf %282, %286 : vector<4x8x256xf32>
    %288 = arith.addf %281, %287 : vector<4x8x256xf32>
    %289 = vector.extract_strided_slice %260 {offsets = [4, 0, 0], sizes = [4, 8, 256], strides = [1, 1, 1]} : vector<8x8x256xf32> to vector<4x8x256xf32>
    %290 = vector.extract_strided_slice %214 {offsets = [4, 1, 0], sizes = [1, 1, 256], strides = [1, 1, 1]} : vector<5x5x256xf32> to vector<1x1x256xf32>
    %291 = vector.shape_cast %290 : vector<1x1x256xf32> to vector<256xf32>
    %292 = vector.shape_cast %291 : vector<256xf32> to vector<1x1x256xf32>
    %293 = vector.broadcast %292 : vector<1x1x256xf32> to vector<4x8x256xf32>
    %294 = arith.mulf %289, %293 : vector<4x8x256xf32>
    %295 = arith.addf %288, %294 : vector<4x8x256xf32>
    %c0_i32_45 = arith.constant 0 : i32
    %296 = arith.addi %0, %c0_i32_45 : i32
    %c1_46 = arith.constant 1 : index
    %c0_47 = arith.constant 0 : index
    %297 = arith.index_cast %296 : i32 to index
    %c2_48 = arith.constant 2 : index
    %c0_49 = arith.constant 0 : index
    %298 = vector.load %arg2[%c1_46, %c0_47, %297, %c2_48, %c0_49] : memref<3x1x12x12x256xbf16, #tpu.memory_space<vmem>>, vector<1x1x8x8x256xbf16>
    %299 = vector.shape_cast %298 : vector<1x1x8x8x256xbf16> to vector<8x8x256xbf16>
    %300 = arith.extf %299 : vector<8x8x256xbf16> to vector<8x8x256xf32>
    %301 = vector.extract_strided_slice %300 {offsets = [0, 0, 0], sizes = [4, 8, 256], strides = [1, 1, 1]} : vector<8x8x256xf32> to vector<4x8x256xf32>
    %302 = vector.extract_strided_slice %214 {offsets = [0, 2, 0], sizes = [1, 1, 256], strides = [1, 1, 1]} : vector<5x5x256xf32> to vector<1x1x256xf32>
    %303 = vector.shape_cast %302 : vector<1x1x256xf32> to vector<256xf32>
    %304 = vector.shape_cast %303 : vector<256xf32> to vector<1x1x256xf32>
    %305 = vector.broadcast %304 : vector<1x1x256xf32> to vector<4x8x256xf32>
    %306 = arith.mulf %301, %305 : vector<4x8x256xf32>
    %307 = arith.addf %295, %306 : vector<4x8x256xf32>
    %308 = vector.extract_strided_slice %300 {offsets = [1, 0, 0], sizes = [4, 8, 256], strides = [1, 1, 1]} : vector<8x8x256xf32> to vector<4x8x256xf32>
    %309 = vector.extract_strided_slice %214 {offsets = [1, 2, 0], sizes = [1, 1, 256], strides = [1, 1, 1]} : vector<5x5x256xf32> to vector<1x1x256xf32>
    %310 = vector.shape_cast %309 : vector<1x1x256xf32> to vector<256xf32>
    %311 = vector.shape_cast %310 : vector<256xf32> to vector<1x1x256xf32>
    %312 = vector.broadcast %311 : vector<1x1x256xf32> to vector<4x8x256xf32>
    %313 = arith.mulf %308, %312 : vector<4x8x256xf32>
    %314 = arith.addf %307, %313 : vector<4x8x256xf32>
    %315 = vector.extract_strided_slice %300 {offsets = [2, 0, 0], sizes = [4, 8, 256], strides = [1, 1, 1]} : vector<8x8x256xf32> to vector<4x8x256xf32>
    %316 = vector.extract_strided_slice %214 {offsets = [2, 2, 0], sizes = [1, 1, 256], strides = [1, 1, 1]} : vector<5x5x256xf32> to vector<1x1x256xf32>
    %317 = vector.shape_cast %316 : vector<1x1x256xf32> to vector<256xf32>
    %318 = vector.shape_cast %317 : vector<256xf32> to vector<1x1x256xf32>
    %319 = vector.broadcast %318 : vector<1x1x256xf32> to vector<4x8x256xf32>
    %320 = arith.mulf %315, %319 : vector<4x8x256xf32>
    %321 = arith.addf %314, %320 : vector<4x8x256xf32>
    %322 = vector.extract_strided_slice %300 {offsets = [3, 0, 0], sizes = [4, 8, 256], strides = [1, 1, 1]} : vector<8x8x256xf32> to vector<4x8x256xf32>
    %323 = vector.extract_strided_slice %214 {offsets = [3, 2, 0], sizes = [1, 1, 256], strides = [1, 1, 1]} : vector<5x5x256xf32> to vector<1x1x256xf32>
    %324 = vector.shape_cast %323 : vector<1x1x256xf32> to vector<256xf32>
    %325 = vector.shape_cast %324 : vector<256xf32> to vector<1x1x256xf32>
    %326 = vector.broadcast %325 : vector<1x1x256xf32> to vector<4x8x256xf32>
    %327 = arith.mulf %322, %326 : vector<4x8x256xf32>
    %328 = arith.addf %321, %327 : vector<4x8x256xf32>
    %329 = vector.extract_strided_slice %300 {offsets = [4, 0, 0], sizes = [4, 8, 256], strides = [1, 1, 1]} : vector<8x8x256xf32> to vector<4x8x256xf32>
    %330 = vector.extract_strided_slice %214 {offsets = [4, 2, 0], sizes = [1, 1, 256], strides = [1, 1, 1]} : vector<5x5x256xf32> to vector<1x1x256xf32>
    %331 = vector.shape_cast %330 : vector<1x1x256xf32> to vector<256xf32>
    %332 = vector.shape_cast %331 : vector<256xf32> to vector<1x1x256xf32>
    %333 = vector.broadcast %332 : vector<1x1x256xf32> to vector<4x8x256xf32>
    %334 = arith.mulf %329, %333 : vector<4x8x256xf32>
    %335 = arith.addf %328, %334 : vector<4x8x256xf32>
    %c0_i32_50 = arith.constant 0 : i32
    %336 = arith.addi %0, %c0_i32_50 : i32
    %c1_51 = arith.constant 1 : index
    %c0_52 = arith.constant 0 : index
    %337 = arith.index_cast %336 : i32 to index
    %c3_53 = arith.constant 3 : index
    %c0_54 = arith.constant 0 : index
    %338 = vector.load %arg2[%c1_51, %c0_52, %337, %c3_53, %c0_54] : memref<3x1x12x12x256xbf16, #tpu.memory_space<vmem>>, vector<1x1x8x8x256xbf16>
    %339 = vector.shape_cast %338 : vector<1x1x8x8x256xbf16> to vector<8x8x256xbf16>
    %340 = arith.extf %339 : vector<8x8x256xbf16> to vector<8x8x256xf32>
    %341 = vector.extract_strided_slice %340 {offsets = [0, 0, 0], sizes = [4, 8, 256], strides = [1, 1, 1]} : vector<8x8x256xf32> to vector<4x8x256xf32>
    %342 = vector.extract_strided_slice %214 {offsets = [0, 3, 0], sizes = [1, 1, 256], strides = [1, 1, 1]} : vector<5x5x256xf32> to vector<1x1x256xf32>
    %343 = vector.shape_cast %342 : vector<1x1x256xf32> to vector<256xf32>
    %344 = vector.shape_cast %343 : vector<256xf32> to vector<1x1x256xf32>
    %345 = vector.broadcast %344 : vector<1x1x256xf32> to vector<4x8x256xf32>
    %346 = arith.mulf %341, %345 : vector<4x8x256xf32>
    %347 = arith.addf %335, %346 : vector<4x8x256xf32>
    %348 = vector.extract_strided_slice %340 {offsets = [1, 0, 0], sizes = [4, 8, 256], strides = [1, 1, 1]} : vector<8x8x256xf32> to vector<4x8x256xf32>
    %349 = vector.extract_strided_slice %214 {offsets = [1, 3, 0], sizes = [1, 1, 256], strides = [1, 1, 1]} : vector<5x5x256xf32> to vector<1x1x256xf32>
    %350 = vector.shape_cast %349 : vector<1x1x256xf32> to vector<256xf32>
    %351 = vector.shape_cast %350 : vector<256xf32> to vector<1x1x256xf32>
    %352 = vector.broadcast %351 : vector<1x1x256xf32> to vector<4x8x256xf32>
    %353 = arith.mulf %348, %352 : vector<4x8x256xf32>
    %354 = arith.addf %347, %353 : vector<4x8x256xf32>
    %355 = vector.extract_strided_slice %340 {offsets = [2, 0, 0], sizes = [4, 8, 256], strides = [1, 1, 1]} : vector<8x8x256xf32> to vector<4x8x256xf32>
    %356 = vector.extract_strided_slice %214 {offsets = [2, 3, 0], sizes = [1, 1, 256], strides = [1, 1, 1]} : vector<5x5x256xf32> to vector<1x1x256xf32>
    %357 = vector.shape_cast %356 : vector<1x1x256xf32> to vector<256xf32>
    %358 = vector.shape_cast %357 : vector<256xf32> to vector<1x1x256xf32>
    %359 = vector.broadcast %358 : vector<1x1x256xf32> to vector<4x8x256xf32>
    %360 = arith.mulf %355, %359 : vector<4x8x256xf32>
    %361 = arith.addf %354, %360 : vector<4x8x256xf32>
    %362 = vector.extract_strided_slice %340 {offsets = [3, 0, 0], sizes = [4, 8, 256], strides = [1, 1, 1]} : vector<8x8x256xf32> to vector<4x8x256xf32>
    %363 = vector.extract_strided_slice %214 {offsets = [3, 3, 0], sizes = [1, 1, 256], strides = [1, 1, 1]} : vector<5x5x256xf32> to vector<1x1x256xf32>
    %364 = vector.shape_cast %363 : vector<1x1x256xf32> to vector<256xf32>
    %365 = vector.shape_cast %364 : vector<256xf32> to vector<1x1x256xf32>
    %366 = vector.broadcast %365 : vector<1x1x256xf32> to vector<4x8x256xf32>
    %367 = arith.mulf %362, %366 : vector<4x8x256xf32>
    %368 = arith.addf %361, %367 : vector<4x8x256xf32>
    %369 = vector.extract_strided_slice %340 {offsets = [4, 0, 0], sizes = [4, 8, 256], strides = [1, 1, 1]} : vector<8x8x256xf32> to vector<4x8x256xf32>
    %370 = vector.extract_strided_slice %214 {offsets = [4, 3, 0], sizes = [1, 1, 256], strides = [1, 1, 1]} : vector<5x5x256xf32> to vector<1x1x256xf32>
    %371 = vector.shape_cast %370 : vector<1x1x256xf32> to vector<256xf32>
    %372 = vector.shape_cast %371 : vector<256xf32> to vector<1x1x256xf32>
    %373 = vector.broadcast %372 : vector<1x1x256xf32> to vector<4x8x256xf32>
    %374 = arith.mulf %369, %373 : vector<4x8x256xf32>
    %375 = arith.addf %368, %374 : vector<4x8x256xf32>
    %c0_i32_55 = arith.constant 0 : i32
    %376 = arith.addi %0, %c0_i32_55 : i32
    %c1_56 = arith.constant 1 : index
    %c0_57 = arith.constant 0 : index
    %377 = arith.index_cast %376 : i32 to index
    %c4_58 = arith.constant 4 : index
    %c0_59 = arith.constant 0 : index
    %378 = vector.load %arg2[%c1_56, %c0_57, %377, %c4_58, %c0_59] : memref<3x1x12x12x256xbf16, #tpu.memory_space<vmem>>, vector<1x1x8x8x256xbf16>
    %379 = vector.shape_cast %378 : vector<1x1x8x8x256xbf16> to vector<8x8x256xbf16>
    %380 = arith.extf %379 : vector<8x8x256xbf16> to vector<8x8x256xf32>
    %381 = vector.extract_strided_slice %380 {offsets = [0, 0, 0], sizes = [4, 8, 256], strides = [1, 1, 1]} : vector<8x8x256xf32> to vector<4x8x256xf32>
    %382 = vector.extract_strided_slice %214 {offsets = [0, 4, 0], sizes = [1, 1, 256], strides = [1, 1, 1]} : vector<5x5x256xf32> to vector<1x1x256xf32>
    %383 = vector.shape_cast %382 : vector<1x1x256xf32> to vector<256xf32>
    %384 = vector.shape_cast %383 : vector<256xf32> to vector<1x1x256xf32>
    %385 = vector.broadcast %384 : vector<1x1x256xf32> to vector<4x8x256xf32>
    %386 = arith.mulf %381, %385 : vector<4x8x256xf32>
    %387 = arith.addf %375, %386 : vector<4x8x256xf32>
    %388 = vector.extract_strided_slice %380 {offsets = [1, 0, 0], sizes = [4, 8, 256], strides = [1, 1, 1]} : vector<8x8x256xf32> to vector<4x8x256xf32>
    %389 = vector.extract_strided_slice %214 {offsets = [1, 4, 0], sizes = [1, 1, 256], strides = [1, 1, 1]} : vector<5x5x256xf32> to vector<1x1x256xf32>
    %390 = vector.shape_cast %389 : vector<1x1x256xf32> to vector<256xf32>
    %391 = vector.shape_cast %390 : vector<256xf32> to vector<1x1x256xf32>
    %392 = vector.broadcast %391 : vector<1x1x256xf32> to vector<4x8x256xf32>
    %393 = arith.mulf %388, %392 : vector<4x8x256xf32>
    %394 = arith.addf %387, %393 : vector<4x8x256xf32>
    %395 = vector.extract_strided_slice %380 {offsets = [2, 0, 0], sizes = [4, 8, 256], strides = [1, 1, 1]} : vector<8x8x256xf32> to vector<4x8x256xf32>
    %396 = vector.extract_strided_slice %214 {offsets = [2, 4, 0], sizes = [1, 1, 256], strides = [1, 1, 1]} : vector<5x5x256xf32> to vector<1x1x256xf32>
    %397 = vector.shape_cast %396 : vector<1x1x256xf32> to vector<256xf32>
    %398 = vector.shape_cast %397 : vector<256xf32> to vector<1x1x256xf32>
    %399 = vector.broadcast %398 : vector<1x1x256xf32> to vector<4x8x256xf32>
    %400 = arith.mulf %395, %399 : vector<4x8x256xf32>
    %401 = arith.addf %394, %400 : vector<4x8x256xf32>
    %402 = vector.extract_strided_slice %380 {offsets = [3, 0, 0], sizes = [4, 8, 256], strides = [1, 1, 1]} : vector<8x8x256xf32> to vector<4x8x256xf32>
    %403 = vector.extract_strided_slice %214 {offsets = [3, 4, 0], sizes = [1, 1, 256], strides = [1, 1, 1]} : vector<5x5x256xf32> to vector<1x1x256xf32>
    %404 = vector.shape_cast %403 : vector<1x1x256xf32> to vector<256xf32>
    %405 = vector.shape_cast %404 : vector<256xf32> to vector<1x1x256xf32>
    %406 = vector.broadcast %405 : vector<1x1x256xf32> to vector<4x8x256xf32>
    %407 = arith.mulf %402, %406 : vector<4x8x256xf32>
    %408 = arith.addf %401, %407 : vector<4x8x256xf32>
    %409 = vector.extract_strided_slice %380 {offsets = [4, 0, 0], sizes = [4, 8, 256], strides = [1, 1, 1]} : vector<8x8x256xf32> to vector<4x8x256xf32>
    %410 = vector.extract_strided_slice %214 {offsets = [4, 4, 0], sizes = [1, 1, 256], strides = [1, 1, 1]} : vector<5x5x256xf32> to vector<1x1x256xf32>
    %411 = vector.shape_cast %410 : vector<1x1x256xf32> to vector<256xf32>
    %412 = vector.shape_cast %411 : vector<256xf32> to vector<1x1x256xf32>
    %413 = vector.broadcast %412 : vector<1x1x256xf32> to vector<4x8x256xf32>
    %414 = arith.mulf %409, %413 : vector<4x8x256xf32>
    %415 = arith.addf %408, %414 : vector<4x8x256xf32>
    %416 = vector.shape_cast %415 : vector<4x8x256xf32> to vector<32x256xf32>
    %417 = arith.truncf %416 : vector<32x256xf32> to vector<32x256xbf16>
    %c1_60 = arith.constant 1 : index
    %c0_61 = arith.constant 0 : index
    %c0_62 = arith.constant 0 : index
    %418 = vector.load %arg4[%c1_60, %c0_61, %c0_62] : memref<3x256x256xbf16, #tpu.memory_space<vmem>>, vector<1x256x256xbf16>
    %419 = vector.shape_cast %418 : vector<1x256x256xbf16> to vector<256x256xbf16>
    %cst_63 = arith.constant dense<0.000000e+00> : vector<32x256xf32>
    %420 = tpu.matmul %417, %419, %cst_63 {dimension_numbers = #tpu.dot_dimension_numbers<[1], [0], [0], [1], [0, 0, 1, 1], [], []>} : vector<32x256xbf16>, vector<256x256xbf16>, vector<32x256xf32> -> vector<32x256xf32>
    %421 = arith.addf %211, %420 : vector<32x256xf32>
    %c2_64 = arith.constant 2 : index
    %c0_65 = arith.constant 0 : index
    %c0_66 = arith.constant 0 : index
    %c0_67 = arith.constant 0 : index
    %c0_68 = arith.constant 0 : index
    %422 = vector.load %arg3[%c2_64, %c0_65, %c0_66, %c0_67, %c0_68] : memref<3x1x5x5x256xbf16, #tpu.memory_space<vmem>>, vector<1x1x5x5x256xbf16>
    %423 = vector.shape_cast %422 : vector<1x1x5x5x256xbf16> to vector<5x5x256xbf16>
    %424 = arith.extf %423 : vector<5x5x256xbf16> to vector<5x5x256xf32>
    %cst_69 = arith.constant 0.000000e+00 : f32
    %425 = vector.broadcast %cst_69 : f32 to vector<4x8x256xf32>
    %c0_i32_70 = arith.constant 0 : i32
    %426 = arith.addi %0, %c0_i32_70 : i32
    %c2_71 = arith.constant 2 : index
    %c0_72 = arith.constant 0 : index
    %427 = arith.index_cast %426 : i32 to index
    %c0_73 = arith.constant 0 : index
    %c0_74 = arith.constant 0 : index
    %428 = vector.load %arg2[%c2_71, %c0_72, %427, %c0_73, %c0_74] : memref<3x1x12x12x256xbf16, #tpu.memory_space<vmem>>, vector<1x1x8x8x256xbf16>
    %429 = vector.shape_cast %428 : vector<1x1x8x8x256xbf16> to vector<8x8x256xbf16>
    %430 = arith.extf %429 : vector<8x8x256xbf16> to vector<8x8x256xf32>
    %431 = vector.extract_strided_slice %430 {offsets = [0, 0, 0], sizes = [4, 8, 256], strides = [1, 1, 1]} : vector<8x8x256xf32> to vector<4x8x256xf32>
    %432 = vector.extract_strided_slice %424 {offsets = [0, 0, 0], sizes = [1, 1, 256], strides = [1, 1, 1]} : vector<5x5x256xf32> to vector<1x1x256xf32>
    %433 = vector.shape_cast %432 : vector<1x1x256xf32> to vector<256xf32>
    %434 = vector.shape_cast %433 : vector<256xf32> to vector<1x1x256xf32>
    %435 = vector.broadcast %434 : vector<1x1x256xf32> to vector<4x8x256xf32>
    %436 = arith.mulf %431, %435 : vector<4x8x256xf32>
    %437 = arith.addf %425, %436 : vector<4x8x256xf32>
    %438 = vector.extract_strided_slice %430 {offsets = [1, 0, 0], sizes = [4, 8, 256], strides = [1, 1, 1]} : vector<8x8x256xf32> to vector<4x8x256xf32>
    %439 = vector.extract_strided_slice %424 {offsets = [1, 0, 0], sizes = [1, 1, 256], strides = [1, 1, 1]} : vector<5x5x256xf32> to vector<1x1x256xf32>
    %440 = vector.shape_cast %439 : vector<1x1x256xf32> to vector<256xf32>
    %441 = vector.shape_cast %440 : vector<256xf32> to vector<1x1x256xf32>
    %442 = vector.broadcast %441 : vector<1x1x256xf32> to vector<4x8x256xf32>
    %443 = arith.mulf %438, %442 : vector<4x8x256xf32>
    %444 = arith.addf %437, %443 : vector<4x8x256xf32>
    %445 = vector.extract_strided_slice %430 {offsets = [2, 0, 0], sizes = [4, 8, 256], strides = [1, 1, 1]} : vector<8x8x256xf32> to vector<4x8x256xf32>
    %446 = vector.extract_strided_slice %424 {offsets = [2, 0, 0], sizes = [1, 1, 256], strides = [1, 1, 1]} : vector<5x5x256xf32> to vector<1x1x256xf32>
    %447 = vector.shape_cast %446 : vector<1x1x256xf32> to vector<256xf32>
    %448 = vector.shape_cast %447 : vector<256xf32> to vector<1x1x256xf32>
    %449 = vector.broadcast %448 : vector<1x1x256xf32> to vector<4x8x256xf32>
    %450 = arith.mulf %445, %449 : vector<4x8x256xf32>
    %451 = arith.addf %444, %450 : vector<4x8x256xf32>
    %452 = vector.extract_strided_slice %430 {offsets = [3, 0, 0], sizes = [4, 8, 256], strides = [1, 1, 1]} : vector<8x8x256xf32> to vector<4x8x256xf32>
    %453 = vector.extract_strided_slice %424 {offsets = [3, 0, 0], sizes = [1, 1, 256], strides = [1, 1, 1]} : vector<5x5x256xf32> to vector<1x1x256xf32>
    %454 = vector.shape_cast %453 : vector<1x1x256xf32> to vector<256xf32>
    %455 = vector.shape_cast %454 : vector<256xf32> to vector<1x1x256xf32>
    %456 = vector.broadcast %455 : vector<1x1x256xf32> to vector<4x8x256xf32>
    %457 = arith.mulf %452, %456 : vector<4x8x256xf32>
    %458 = arith.addf %451, %457 : vector<4x8x256xf32>
    %459 = vector.extract_strided_slice %430 {offsets = [4, 0, 0], sizes = [4, 8, 256], strides = [1, 1, 1]} : vector<8x8x256xf32> to vector<4x8x256xf32>
    %460 = vector.extract_strided_slice %424 {offsets = [4, 0, 0], sizes = [1, 1, 256], strides = [1, 1, 1]} : vector<5x5x256xf32> to vector<1x1x256xf32>
    %461 = vector.shape_cast %460 : vector<1x1x256xf32> to vector<256xf32>
    %462 = vector.shape_cast %461 : vector<256xf32> to vector<1x1x256xf32>
    %463 = vector.broadcast %462 : vector<1x1x256xf32> to vector<4x8x256xf32>
    %464 = arith.mulf %459, %463 : vector<4x8x256xf32>
    %465 = arith.addf %458, %464 : vector<4x8x256xf32>
    %c0_i32_75 = arith.constant 0 : i32
    %466 = arith.addi %0, %c0_i32_75 : i32
    %c2_76 = arith.constant 2 : index
    %c0_77 = arith.constant 0 : index
    %467 = arith.index_cast %466 : i32 to index
    %c1_78 = arith.constant 1 : index
    %c0_79 = arith.constant 0 : index
    %468 = vector.load %arg2[%c2_76, %c0_77, %467, %c1_78, %c0_79] : memref<3x1x12x12x256xbf16, #tpu.memory_space<vmem>>, vector<1x1x8x8x256xbf16>
    %469 = vector.shape_cast %468 : vector<1x1x8x8x256xbf16> to vector<8x8x256xbf16>
    %470 = arith.extf %469 : vector<8x8x256xbf16> to vector<8x8x256xf32>
    %471 = vector.extract_strided_slice %470 {offsets = [0, 0, 0], sizes = [4, 8, 256], strides = [1, 1, 1]} : vector<8x8x256xf32> to vector<4x8x256xf32>
    %472 = vector.extract_strided_slice %424 {offsets = [0, 1, 0], sizes = [1, 1, 256], strides = [1, 1, 1]} : vector<5x5x256xf32> to vector<1x1x256xf32>
    %473 = vector.shape_cast %472 : vector<1x1x256xf32> to vector<256xf32>
    %474 = vector.shape_cast %473 : vector<256xf32> to vector<1x1x256xf32>
    %475 = vector.broadcast %474 : vector<1x1x256xf32> to vector<4x8x256xf32>
    %476 = arith.mulf %471, %475 : vector<4x8x256xf32>
    %477 = arith.addf %465, %476 : vector<4x8x256xf32>
    %478 = vector.extract_strided_slice %470 {offsets = [1, 0, 0], sizes = [4, 8, 256], strides = [1, 1, 1]} : vector<8x8x256xf32> to vector<4x8x256xf32>
    %479 = vector.extract_strided_slice %424 {offsets = [1, 1, 0], sizes = [1, 1, 256], strides = [1, 1, 1]} : vector<5x5x256xf32> to vector<1x1x256xf32>
    %480 = vector.shape_cast %479 : vector<1x1x256xf32> to vector<256xf32>
    %481 = vector.shape_cast %480 : vector<256xf32> to vector<1x1x256xf32>
    %482 = vector.broadcast %481 : vector<1x1x256xf32> to vector<4x8x256xf32>
    %483 = arith.mulf %478, %482 : vector<4x8x256xf32>
    %484 = arith.addf %477, %483 : vector<4x8x256xf32>
    %485 = vector.extract_strided_slice %470 {offsets = [2, 0, 0], sizes = [4, 8, 256], strides = [1, 1, 1]} : vector<8x8x256xf32> to vector<4x8x256xf32>
    %486 = vector.extract_strided_slice %424 {offsets = [2, 1, 0], sizes = [1, 1, 256], strides = [1, 1, 1]} : vector<5x5x256xf32> to vector<1x1x256xf32>
    %487 = vector.shape_cast %486 : vector<1x1x256xf32> to vector<256xf32>
    %488 = vector.shape_cast %487 : vector<256xf32> to vector<1x1x256xf32>
    %489 = vector.broadcast %488 : vector<1x1x256xf32> to vector<4x8x256xf32>
    %490 = arith.mulf %485, %489 : vector<4x8x256xf32>
    %491 = arith.addf %484, %490 : vector<4x8x256xf32>
    %492 = vector.extract_strided_slice %470 {offsets = [3, 0, 0], sizes = [4, 8, 256], strides = [1, 1, 1]} : vector<8x8x256xf32> to vector<4x8x256xf32>
    %493 = vector.extract_strided_slice %424 {offsets = [3, 1, 0], sizes = [1, 1, 256], strides = [1, 1, 1]} : vector<5x5x256xf32> to vector<1x1x256xf32>
    %494 = vector.shape_cast %493 : vector<1x1x256xf32> to vector<256xf32>
    %495 = vector.shape_cast %494 : vector<256xf32> to vector<1x1x256xf32>
    %496 = vector.broadcast %495 : vector<1x1x256xf32> to vector<4x8x256xf32>
    %497 = arith.mulf %492, %496 : vector<4x8x256xf32>
    %498 = arith.addf %491, %497 : vector<4x8x256xf32>
    %499 = vector.extract_strided_slice %470 {offsets = [4, 0, 0], sizes = [4, 8, 256], strides = [1, 1, 1]} : vector<8x8x256xf32> to vector<4x8x256xf32>
    %500 = vector.extract_strided_slice %424 {offsets = [4, 1, 0], sizes = [1, 1, 256], strides = [1, 1, 1]} : vector<5x5x256xf32> to vector<1x1x256xf32>
    %501 = vector.shape_cast %500 : vector<1x1x256xf32> to vector<256xf32>
    %502 = vector.shape_cast %501 : vector<256xf32> to vector<1x1x256xf32>
    %503 = vector.broadcast %502 : vector<1x1x256xf32> to vector<4x8x256xf32>
    %504 = arith.mulf %499, %503 : vector<4x8x256xf32>
    %505 = arith.addf %498, %504 : vector<4x8x256xf32>
    %c0_i32_80 = arith.constant 0 : i32
    %506 = arith.addi %0, %c0_i32_80 : i32
    %c2_81 = arith.constant 2 : index
    %c0_82 = arith.constant 0 : index
    %507 = arith.index_cast %506 : i32 to index
    %c2_83 = arith.constant 2 : index
    %c0_84 = arith.constant 0 : index
    %508 = vector.load %arg2[%c2_81, %c0_82, %507, %c2_83, %c0_84] : memref<3x1x12x12x256xbf16, #tpu.memory_space<vmem>>, vector<1x1x8x8x256xbf16>
    %509 = vector.shape_cast %508 : vector<1x1x8x8x256xbf16> to vector<8x8x256xbf16>
    %510 = arith.extf %509 : vector<8x8x256xbf16> to vector<8x8x256xf32>
    %511 = vector.extract_strided_slice %510 {offsets = [0, 0, 0], sizes = [4, 8, 256], strides = [1, 1, 1]} : vector<8x8x256xf32> to vector<4x8x256xf32>
    %512 = vector.extract_strided_slice %424 {offsets = [0, 2, 0], sizes = [1, 1, 256], strides = [1, 1, 1]} : vector<5x5x256xf32> to vector<1x1x256xf32>
    %513 = vector.shape_cast %512 : vector<1x1x256xf32> to vector<256xf32>
    %514 = vector.shape_cast %513 : vector<256xf32> to vector<1x1x256xf32>
    %515 = vector.broadcast %514 : vector<1x1x256xf32> to vector<4x8x256xf32>
    %516 = arith.mulf %511, %515 : vector<4x8x256xf32>
    %517 = arith.addf %505, %516 : vector<4x8x256xf32>
    %518 = vector.extract_strided_slice %510 {offsets = [1, 0, 0], sizes = [4, 8, 256], strides = [1, 1, 1]} : vector<8x8x256xf32> to vector<4x8x256xf32>
    %519 = vector.extract_strided_slice %424 {offsets = [1, 2, 0], sizes = [1, 1, 256], strides = [1, 1, 1]} : vector<5x5x256xf32> to vector<1x1x256xf32>
    %520 = vector.shape_cast %519 : vector<1x1x256xf32> to vector<256xf32>
    %521 = vector.shape_cast %520 : vector<256xf32> to vector<1x1x256xf32>
    %522 = vector.broadcast %521 : vector<1x1x256xf32> to vector<4x8x256xf32>
    %523 = arith.mulf %518, %522 : vector<4x8x256xf32>
    %524 = arith.addf %517, %523 : vector<4x8x256xf32>
    %525 = vector.extract_strided_slice %510 {offsets = [2, 0, 0], sizes = [4, 8, 256], strides = [1, 1, 1]} : vector<8x8x256xf32> to vector<4x8x256xf32>
    %526 = vector.extract_strided_slice %424 {offsets = [2, 2, 0], sizes = [1, 1, 256], strides = [1, 1, 1]} : vector<5x5x256xf32> to vector<1x1x256xf32>
    %527 = vector.shape_cast %526 : vector<1x1x256xf32> to vector<256xf32>
    %528 = vector.shape_cast %527 : vector<256xf32> to vector<1x1x256xf32>
    %529 = vector.broadcast %528 : vector<1x1x256xf32> to vector<4x8x256xf32>
    %530 = arith.mulf %525, %529 : vector<4x8x256xf32>
    %531 = arith.addf %524, %530 : vector<4x8x256xf32>
    %532 = vector.extract_strided_slice %510 {offsets = [3, 0, 0], sizes = [4, 8, 256], strides = [1, 1, 1]} : vector<8x8x256xf32> to vector<4x8x256xf32>
    %533 = vector.extract_strided_slice %424 {offsets = [3, 2, 0], sizes = [1, 1, 256], strides = [1, 1, 1]} : vector<5x5x256xf32> to vector<1x1x256xf32>
    %534 = vector.shape_cast %533 : vector<1x1x256xf32> to vector<256xf32>
    %535 = vector.shape_cast %534 : vector<256xf32> to vector<1x1x256xf32>
    %536 = vector.broadcast %535 : vector<1x1x256xf32> to vector<4x8x256xf32>
    %537 = arith.mulf %532, %536 : vector<4x8x256xf32>
    %538 = arith.addf %531, %537 : vector<4x8x256xf32>
    %539 = vector.extract_strided_slice %510 {offsets = [4, 0, 0], sizes = [4, 8, 256], strides = [1, 1, 1]} : vector<8x8x256xf32> to vector<4x8x256xf32>
    %540 = vector.extract_strided_slice %424 {offsets = [4, 2, 0], sizes = [1, 1, 256], strides = [1, 1, 1]} : vector<5x5x256xf32> to vector<1x1x256xf32>
    %541 = vector.shape_cast %540 : vector<1x1x256xf32> to vector<256xf32>
    %542 = vector.shape_cast %541 : vector<256xf32> to vector<1x1x256xf32>
    %543 = vector.broadcast %542 : vector<1x1x256xf32> to vector<4x8x256xf32>
    %544 = arith.mulf %539, %543 : vector<4x8x256xf32>
    %545 = arith.addf %538, %544 : vector<4x8x256xf32>
    %c0_i32_85 = arith.constant 0 : i32
    %546 = arith.addi %0, %c0_i32_85 : i32
    %c2_86 = arith.constant 2 : index
    %c0_87 = arith.constant 0 : index
    %547 = arith.index_cast %546 : i32 to index
    %c3_88 = arith.constant 3 : index
    %c0_89 = arith.constant 0 : index
    %548 = vector.load %arg2[%c2_86, %c0_87, %547, %c3_88, %c0_89] : memref<3x1x12x12x256xbf16, #tpu.memory_space<vmem>>, vector<1x1x8x8x256xbf16>
    %549 = vector.shape_cast %548 : vector<1x1x8x8x256xbf16> to vector<8x8x256xbf16>
    %550 = arith.extf %549 : vector<8x8x256xbf16> to vector<8x8x256xf32>
    %551 = vector.extract_strided_slice %550 {offsets = [0, 0, 0], sizes = [4, 8, 256], strides = [1, 1, 1]} : vector<8x8x256xf32> to vector<4x8x256xf32>
    %552 = vector.extract_strided_slice %424 {offsets = [0, 3, 0], sizes = [1, 1, 256], strides = [1, 1, 1]} : vector<5x5x256xf32> to vector<1x1x256xf32>
    %553 = vector.shape_cast %552 : vector<1x1x256xf32> to vector<256xf32>
    %554 = vector.shape_cast %553 : vector<256xf32> to vector<1x1x256xf32>
    %555 = vector.broadcast %554 : vector<1x1x256xf32> to vector<4x8x256xf32>
    %556 = arith.mulf %551, %555 : vector<4x8x256xf32>
    %557 = arith.addf %545, %556 : vector<4x8x256xf32>
    %558 = vector.extract_strided_slice %550 {offsets = [1, 0, 0], sizes = [4, 8, 256], strides = [1, 1, 1]} : vector<8x8x256xf32> to vector<4x8x256xf32>
    %559 = vector.extract_strided_slice %424 {offsets = [1, 3, 0], sizes = [1, 1, 256], strides = [1, 1, 1]} : vector<5x5x256xf32> to vector<1x1x256xf32>
    %560 = vector.shape_cast %559 : vector<1x1x256xf32> to vector<256xf32>
    %561 = vector.shape_cast %560 : vector<256xf32> to vector<1x1x256xf32>
    %562 = vector.broadcast %561 : vector<1x1x256xf32> to vector<4x8x256xf32>
    %563 = arith.mulf %558, %562 : vector<4x8x256xf32>
    %564 = arith.addf %557, %563 : vector<4x8x256xf32>
    %565 = vector.extract_strided_slice %550 {offsets = [2, 0, 0], sizes = [4, 8, 256], strides = [1, 1, 1]} : vector<8x8x256xf32> to vector<4x8x256xf32>
    %566 = vector.extract_strided_slice %424 {offsets = [2, 3, 0], sizes = [1, 1, 256], strides = [1, 1, 1]} : vector<5x5x256xf32> to vector<1x1x256xf32>
    %567 = vector.shape_cast %566 : vector<1x1x256xf32> to vector<256xf32>
    %568 = vector.shape_cast %567 : vector<256xf32> to vector<1x1x256xf32>
    %569 = vector.broadcast %568 : vector<1x1x256xf32> to vector<4x8x256xf32>
    %570 = arith.mulf %565, %569 : vector<4x8x256xf32>
    %571 = arith.addf %564, %570 : vector<4x8x256xf32>
    %572 = vector.extract_strided_slice %550 {offsets = [3, 0, 0], sizes = [4, 8, 256], strides = [1, 1, 1]} : vector<8x8x256xf32> to vector<4x8x256xf32>
    %573 = vector.extract_strided_slice %424 {offsets = [3, 3, 0], sizes = [1, 1, 256], strides = [1, 1, 1]} : vector<5x5x256xf32> to vector<1x1x256xf32>
    %574 = vector.shape_cast %573 : vector<1x1x256xf32> to vector<256xf32>
    %575 = vector.shape_cast %574 : vector<256xf32> to vector<1x1x256xf32>
    %576 = vector.broadcast %575 : vector<1x1x256xf32> to vector<4x8x256xf32>
    %577 = arith.mulf %572, %576 : vector<4x8x256xf32>
    %578 = arith.addf %571, %577 : vector<4x8x256xf32>
    %579 = vector.extract_strided_slice %550 {offsets = [4, 0, 0], sizes = [4, 8, 256], strides = [1, 1, 1]} : vector<8x8x256xf32> to vector<4x8x256xf32>
    %580 = vector.extract_strided_slice %424 {offsets = [4, 3, 0], sizes = [1, 1, 256], strides = [1, 1, 1]} : vector<5x5x256xf32> to vector<1x1x256xf32>
    %581 = vector.shape_cast %580 : vector<1x1x256xf32> to vector<256xf32>
    %582 = vector.shape_cast %581 : vector<256xf32> to vector<1x1x256xf32>
    %583 = vector.broadcast %582 : vector<1x1x256xf32> to vector<4x8x256xf32>
    %584 = arith.mulf %579, %583 : vector<4x8x256xf32>
    %585 = arith.addf %578, %584 : vector<4x8x256xf32>
    %c0_i32_90 = arith.constant 0 : i32
    %586 = arith.addi %0, %c0_i32_90 : i32
    %c2_91 = arith.constant 2 : index
    %c0_92 = arith.constant 0 : index
    %587 = arith.index_cast %586 : i32 to index
    %c4_93 = arith.constant 4 : index
    %c0_94 = arith.constant 0 : index
    %588 = vector.load %arg2[%c2_91, %c0_92, %587, %c4_93, %c0_94] : memref<3x1x12x12x256xbf16, #tpu.memory_space<vmem>>, vector<1x1x8x8x256xbf16>
    %589 = vector.shape_cast %588 : vector<1x1x8x8x256xbf16> to vector<8x8x256xbf16>
    %590 = arith.extf %589 : vector<8x8x256xbf16> to vector<8x8x256xf32>
    %591 = vector.extract_strided_slice %590 {offsets = [0, 0, 0], sizes = [4, 8, 256], strides = [1, 1, 1]} : vector<8x8x256xf32> to vector<4x8x256xf32>
    %592 = vector.extract_strided_slice %424 {offsets = [0, 4, 0], sizes = [1, 1, 256], strides = [1, 1, 1]} : vector<5x5x256xf32> to vector<1x1x256xf32>
    %593 = vector.shape_cast %592 : vector<1x1x256xf32> to vector<256xf32>
    %594 = vector.shape_cast %593 : vector<256xf32> to vector<1x1x256xf32>
    %595 = vector.broadcast %594 : vector<1x1x256xf32> to vector<4x8x256xf32>
    %596 = arith.mulf %591, %595 : vector<4x8x256xf32>
    %597 = arith.addf %585, %596 : vector<4x8x256xf32>
    %598 = vector.extract_strided_slice %590 {offsets = [1, 0, 0], sizes = [4, 8, 256], strides = [1, 1, 1]} : vector<8x8x256xf32> to vector<4x8x256xf32>
    %599 = vector.extract_strided_slice %424 {offsets = [1, 4, 0], sizes = [1, 1, 256], strides = [1, 1, 1]} : vector<5x5x256xf32> to vector<1x1x256xf32>
    %600 = vector.shape_cast %599 : vector<1x1x256xf32> to vector<256xf32>
    %601 = vector.shape_cast %600 : vector<256xf32> to vector<1x1x256xf32>
    %602 = vector.broadcast %601 : vector<1x1x256xf32> to vector<4x8x256xf32>
    %603 = arith.mulf %598, %602 : vector<4x8x256xf32>
    %604 = arith.addf %597, %603 : vector<4x8x256xf32>
    %605 = vector.extract_strided_slice %590 {offsets = [2, 0, 0], sizes = [4, 8, 256], strides = [1, 1, 1]} : vector<8x8x256xf32> to vector<4x8x256xf32>
    %606 = vector.extract_strided_slice %424 {offsets = [2, 4, 0], sizes = [1, 1, 256], strides = [1, 1, 1]} : vector<5x5x256xf32> to vector<1x1x256xf32>
    %607 = vector.shape_cast %606 : vector<1x1x256xf32> to vector<256xf32>
    %608 = vector.shape_cast %607 : vector<256xf32> to vector<1x1x256xf32>
    %609 = vector.broadcast %608 : vector<1x1x256xf32> to vector<4x8x256xf32>
    %610 = arith.mulf %605, %609 : vector<4x8x256xf32>
    %611 = arith.addf %604, %610 : vector<4x8x256xf32>
    %612 = vector.extract_strided_slice %590 {offsets = [3, 0, 0], sizes = [4, 8, 256], strides = [1, 1, 1]} : vector<8x8x256xf32> to vector<4x8x256xf32>
    %613 = vector.extract_strided_slice %424 {offsets = [3, 4, 0], sizes = [1, 1, 256], strides = [1, 1, 1]} : vector<5x5x256xf32> to vector<1x1x256xf32>
    %614 = vector.shape_cast %613 : vector<1x1x256xf32> to vector<256xf32>
    %615 = vector.shape_cast %614 : vector<256xf32> to vector<1x1x256xf32>
    %616 = vector.broadcast %615 : vector<1x1x256xf32> to vector<4x8x256xf32>
    %617 = arith.mulf %612, %616 : vector<4x8x256xf32>
    %618 = arith.addf %611, %617 : vector<4x8x256xf32>
    %619 = vector.extract_strided_slice %590 {offsets = [4, 0, 0], sizes = [4, 8, 256], strides = [1, 1, 1]} : vector<8x8x256xf32> to vector<4x8x256xf32>
    %620 = vector.extract_strided_slice %424 {offsets = [4, 4, 0], sizes = [1, 1, 256], strides = [1, 1, 1]} : vector<5x5x256xf32> to vector<1x1x256xf32>
    %621 = vector.shape_cast %620 : vector<1x1x256xf32> to vector<256xf32>
    %622 = vector.shape_cast %621 : vector<256xf32> to vector<1x1x256xf32>
    %623 = vector.broadcast %622 : vector<1x1x256xf32> to vector<4x8x256xf32>
    %624 = arith.mulf %619, %623 : vector<4x8x256xf32>
    %625 = arith.addf %618, %624 : vector<4x8x256xf32>
    %626 = vector.shape_cast %625 : vector<4x8x256xf32> to vector<32x256xf32>
    %627 = arith.truncf %626 : vector<32x256xf32> to vector<32x256xbf16>
    %c2_95 = arith.constant 2 : index
    %c0_96 = arith.constant 0 : index
    %c0_97 = arith.constant 0 : index
    %628 = vector.load %arg4[%c2_95, %c0_96, %c0_97] : memref<3x256x256xbf16, #tpu.memory_space<vmem>>, vector<1x256x256xbf16>
    %629 = vector.shape_cast %628 : vector<1x256x256xbf16> to vector<256x256xbf16>
    %cst_98 = arith.constant dense<0.000000e+00> : vector<32x256xf32>
    %630 = tpu.matmul %627, %629, %cst_98 {dimension_numbers = #tpu.dot_dimension_numbers<[1], [0], [0], [1], [0, 0, 1, 1], [], []>} : vector<32x256xbf16>, vector<256x256xbf16>, vector<32x256xf32> -> vector<32x256xf32>
    %631 = arith.addf %421, %630 : vector<32x256xf32>
    %632 = arith.truncf %631 : vector<32x256xf32> to vector<32x256xbf16>
    %c0_99 = arith.constant 0 : index
    %c0_100 = arith.constant 0 : index
    %633 = vector.load %arg5[%c0_99, %c0_100] : memref<256x256xbf16, #tpu.memory_space<vmem>>, vector<256x256xbf16>
    %cst_101 = arith.constant dense<0.000000e+00> : vector<32x256xf32>
    %634 = tpu.matmul %632, %633, %cst_101 {dimension_numbers = #tpu.dot_dimension_numbers<[1], [0], [0], [1], [0, 0, 1, 1], [], []>} : vector<32x256xbf16>, vector<256x256xbf16>, vector<32x256xf32> -> vector<32x256xf32>
    %c0_102 = arith.constant 0 : index
    %c0_103 = arith.constant 0 : index
    %635 = vector.load %arg6[%c0_102, %c0_103] : memref<1x256xf32, #tpu.memory_space<vmem>>, vector<1x256xf32>
    %636 = vector.broadcast %635 : vector<1x256xf32> to vector<32x256xf32>
    %637 = arith.addf %634, %636 : vector<32x256xf32>
    %cst_104 = arith.constant 0.000000e+00 : f32
    %638 = vector.broadcast %cst_104 : f32 to vector<32x256xf32>
    %639 = arith.maximumf %637, %638 : vector<32x256xf32>
    %640 = arith.truncf %639 : vector<32x256xf32> to vector<32x256xbf16>
    %c0_105 = arith.constant 0 : index
    %c0_106 = arith.constant 0 : index
    %641 = vector.load %arg7[%c0_105, %c0_106] : memref<256x128xbf16, #tpu.memory_space<vmem>>, vector<256x128xbf16>
    %cst_107 = arith.constant dense<0.000000e+00> : vector<32x128xf32>
    %642 = tpu.matmul %640, %641, %cst_107 {dimension_numbers = #tpu.dot_dimension_numbers<[1], [0], [0], [1], [0, 0, 1, 1], [], []>} : vector<32x256xbf16>, vector<256x128xbf16>, vector<32x128xf32> -> vector<32x128xf32>
    %c0_108 = arith.constant 0 : index
    %c0_109 = arith.constant 0 : index
    %643 = vector.load %arg8[%c0_108, %c0_109] : memref<1x128xf32, #tpu.memory_space<vmem>>, vector<1x128xf32>
    %644 = vector.broadcast %643 : vector<1x128xf32> to vector<32x128xf32>
    %645 = arith.addf %642, %644 : vector<32x128xf32>
    %646 = vector.extract_strided_slice %645 {offsets = [0, 0], sizes = [32, 1], strides = [1, 1]} : vector<32x128xf32> to vector<32x1xf32>
    %647 = vector.extract_strided_slice %645 {offsets = [0, 1], sizes = [32, 1], strides = [1, 1]} : vector<32x128xf32> to vector<32x1xf32>
    %648 = arith.maximumf %646, %647 : vector<32x1xf32>
    %649 = arith.subf %646, %648 : vector<32x1xf32>
    %650 = math.exp %649 : vector<32x1xf32>
    %651 = arith.subf %647, %648 : vector<32x1xf32>
    %652 = math.exp %651 : vector<32x1xf32>
    %653 = arith.addf %650, %652 : vector<32x1xf32>
    %654 = math.log %653 : vector<32x1xf32>
    %655 = arith.addf %648, %654 : vector<32x1xf32>
    %656 = tpu.iota {dimensions = array<i32: 1>} : vector<32x128xi32>
    %c7_i32 = arith.constant 7 : i32
    %657 = vector.broadcast %c7_i32 : i32 to vector<32x128xi32>
    %658 = arith.cmpi sge, %656, %657 : vector<32x128xi32>
    %c9_i32 = arith.constant 9 : i32
    %659 = vector.broadcast %c9_i32 : i32 to vector<32x128xi32>
    %660 = arith.cmpi slt, %656, %659 : vector<32x128xi32>
    %661 = arith.andi %658, %660 : vector<32x128xi1>
    %662 = vector.broadcast %655 : vector<32x1xf32> to vector<32x128xf32>
    %663 = arith.subf %645, %662 : vector<32x128xf32>
    %664 = arith.select %661, %663, %645 : vector<32x128xi1>, vector<32x128xf32>
    %c0_110 = arith.constant 0 : index
    %c0_111 = arith.constant 0 : index
    %c0_112 = arith.constant 0 : index
    %665 = vector.load %arg9[%c0_110, %c0_111, %c0_112] : memref<1x32x128xf32, #tpu.memory_space<vmem>>, vector<1x32x128xf32>
    %666 = vector.shape_cast %665 : vector<1x32x128xf32> to vector<32x128xf32>
    %667 = vector.shape_cast %664 : vector<32x128xf32> to vector<1x32x128xf32>
    tpu.vector_store %arg9[%c0_110, %c0_111, %c0_112], %667 {strides = array<i32>} : memref<1x32x128xf32, #tpu.memory_space<vmem>>, vector<1x32x128xf32>,
    return
  }
  func.func @transform_0(%arg0: i32, %arg1: i32) -> (i32, i32, i32, i32, i32) {
    %c0_i32 = arith.constant 0 : i32
    %c0_i32_0 = arith.constant 0 : i32
    %c0_i32_1 = arith.constant 0 : i32
    %c0_i32_2 = arith.constant 0 : i32
    %c0_i32_3 = arith.constant 0 : i32
    return %c0_i32, %arg0, %c0_i32_0, %c0_i32_1, %c0_i32_2 : i32, i32, i32, i32, i32
  }
  func.func @transform_1(%arg0: i32, %arg1: i32) -> (i32, i32, i32, i32, i32) {
    %c0_i32 = arith.constant 0 : i32
    %c0_i32_0 = arith.constant 0 : i32
    %c0_i32_1 = arith.constant 0 : i32
    %c0_i32_2 = arith.constant 0 : i32
    %c0_i32_3 = arith.constant 0 : i32
    return %c0_i32, %arg0, %c0_i32_0, %c0_i32_1, %c0_i32_2 : i32, i32, i32, i32, i32
  }
  func.func @transform_2(%arg0: i32, %arg1: i32) -> (i32, i32, i32) {
    %c0_i32 = arith.constant 0 : i32
    %c0_i32_0 = arith.constant 0 : i32
    %c0_i32_1 = arith.constant 0 : i32
    %c0_i32_2 = arith.constant 0 : i32
    return %c0_i32, %c0_i32_0, %c0_i32_1 : i32, i32, i32
  }
  func.func @transform_3(%arg0: i32, %arg1: i32) -> (i32, i32) {
    %c0_i32 = arith.constant 0 : i32
    %c0_i32_0 = arith.constant 0 : i32
    %c0_i32_1 = arith.constant 0 : i32
    return %c0_i32, %c0_i32_0 : i32, i32
  }
  func.func @transform_4(%arg0: i32, %arg1: i32) -> (i32, i32) {
    %c0_i32 = arith.constant 0 : i32
    %c0_i32_0 = arith.constant 0 : i32
    %c0_i32_1 = arith.constant 0 : i32
    return %c0_i32, %c0_i32_0 : i32, i32
  }
  func.func @transform_5(%arg0: i32, %arg1: i32) -> (i32, i32) {
    %c0_i32 = arith.constant 0 : i32
    %c0_i32_0 = arith.constant 0 : i32
    %c0_i32_1 = arith.constant 0 : i32
    return %c0_i32, %c0_i32_0 : i32, i32
  }
  func.func @transform_6(%arg0: i32, %arg1: i32) -> (i32, i32) {
    %c0_i32 = arith.constant 0 : i32
    %c0_i32_0 = arith.constant 0 : i32
    %c0_i32_1 = arith.constant 0 : i32
    return %c0_i32, %c0_i32_0 : i32, i32
  }
  func.func @transform_7(%arg0: i32, %arg1: i32) -> (i32, i32, i32) {
    %c0_i32 = arith.constant 0 : i32
    %c0_i32_0 = arith.constant 0 : i32
    return %arg0, %arg1, %c0_i32 : i32, i32, i32
  }
}

</mosaic_0001>

<bundles_post_ra>
// kernel: model_builder_forward.1
= control target key start
LH: loop header
LB: loop body
LE: loop exit
PB: predicated region body
PF: predicated region fallthrough
CT: control target
= control target key end

     0   :  { %s8555_s24 = smov 0   ;;  %s8557_s25 = smov 0   ;;  %s13471_s0 = inlined_call_operand.vmem [shape: bf16[3,2,12,12,256], index: 0, kind: input, shape index: {}]   ;;  %s13472_s1 = inlined_call_operand.vmem [shape: bf16[3,2,5,5,256], index: 1, kind: input, shape index: {}]   ;;  %s13473_s2 = inlined_call_operand.vmem [shape: bf16[3,256,256], index: 2, kind: input, shape index: {}]   ;;  %s13474_s3 = inlined_call_operand.vmem [shape: bf16[256,256], index: 3, kind: input, shape index: {}]   ;;  %s13475_s4 = inlined_call_operand.vmem [shape: f32[1,256], index: 4, kind: input, shape index: {}]   ;;  %s13476_s5 = inlined_call_operand.vmem [shape: bf16[256,128], index: 5, kind: input, shape index: {}]   ;;  %s13477_s6 = inlined_call_operand.vmem [shape: f32[1,128], index: 6, kind: input, shape index: {}]   ;;  %s13478_s7 = inlined_call_operand.vmem [shape: f32[2,64,128], index: 7, kind: output, shape index: {}]  }
   0x1   :  { %s8559_s26 = smov 0   ;;  %s8561_s27 = smov 0  }
   0x2   :  { %s8563_s28 = smov 0   ;;  %s8565_s29 = smov 0  }
   0x3   :  { %s8567_s30 = smov 0  }
   0x4 LB: > { %s26_s8 = sadd.s32 1, %s8502_s28  ;;  %s29_s9 = sadd.s32 1, %s8506_s29  ;;  %s8510_s30 = sphi %s8567_s30, %s17_s30   ;;  %s8506_s29 = sphi %s8565_s29, %s14608_s29   ;;  %s8502_s28 = sphi %s8563_s28, %s14607_s28   ;;  %s8498_s27 = sphi %s8561_s27, %s14606_s27   ;;  %s8494_s26 = sphi %s8559_s26, %s14605_s26   ;;  %s8490_s25 = sphi %s8557_s25, %s14604_s25   ;;  %s8486_s24 = sphi %s8555_s24, %s14603_s24  }
   0x5   : > { %p27_p0 = scmp.ge.s32.totalorder %s26_s8, 2  ;;  %p43_p1 = scmp.ne.s32.totalorder %s8490_s25, %s8486_s24 }
   0x6   : > { %p44_p2 = scmp.eq.s32.totalorder %s8510_s30, 0  ;;  %s36_s12 = sadd.s32 1, %s8490_s25 }
   0x7   : > { %s14610_s8 = smov (%p27_p0, %s26_s8), 0  ;;  %s14612_s9 = smov (!%p27_p0, %s29_s9), %s8506_s29 }
   0x8   : > { %p8598_p3 = por %p44_p2, %p43_p1  ;;  %p31_p4 = scmp.ge.s32.totalorder %s14612_s9, 2 }
   0x9   : > { %p7778_p6 = scmp.ge.s32.totalorder %s8510_s30, 4 }
   0xa   : > { %s14614_s9 = smov (%p31_p4, %s14612_s9), 0 }
   0xb   : > { %s33_s11 = ssub.s32 %s8506_s29, %s14614_s9  ;;  %243 = sbr.rel (%p7778_p6) target bundleno = 72 (0x48), region = 36 }
   0xc   : > { %p34_p5 = scmp.eq.s32.totalorder %s33_s11, 0 }
   0xe   : > { %s8608_s13 = scalar_select %p34_p5, %s8490_s25, %s36_s12  }
  0x12   : > { %246 = sbr.rel (!%p8598_p3) target bundleno = 59 (0x3b), region = 40  ;;  %s248_s14 = sand.u32 (%p8598_p3), 1, %s8490_s25  }
  0x13   : > { %s8158_s15 = smul.u32 (%p8598_p3), 192, %s8506_s29 }
  0x14   : > { %s8157_s16 = smul.u32 (%p8598_p3), 576, %s248_s14 }
  0x15   : > { %s8618_s19 = scalar_lea.vmem (%p8598_p3), %s13471_s0, %s8158_s15 }
  0x16   : > { %v423_v0 = vld [vmem:[%s8618_s19] sm:$0xff] (%p8598_p3)  ;;  %v425_v1 = vld [vmem:[%s8618_s19 + $0x8] sm:$0xff] (%p8598_p3)  ;;  %v427_v2 = vld [vmem:[%s8618_s19 + $0x10] sm:$0xff] (%p8598_p3)  ;;  %s8623_s20 = scalar_lea.vmem (%p8598_p3), [#allocation2], %s8157_s16 }
  0x17   : > { %424 = vst [vmem:[%s8623_s20] sm:$0xff] (%p8598_p3), %v423_v0  ;;  %426 = vst [vmem:[%s8623_s20 + $0x8] sm:$0xff] (%p8598_p3), %v425_v1  ;;  %v429_v3 = vld [vmem:[%s8618_s19 + $0x18] sm:$0xff] (%p8598_p3)  ;;  %v431_v4 = vld [vmem:[%s8618_s19 + $0x20] sm:$0xff] (%p8598_p3) }
  0x18   : > { %428 = vst [vmem:[%s8623_s20 + $0x10] sm:$0xff] (%p8598_p3), %v427_v2  ;;  %v433_v5 = vld [vmem:[%s8618_s19 + $0x28] sm:$0xff] (%p8598_p3)  ;;  %430 = vst [vmem:[%s8623_s20 + $0x18] sm:$0xff] (%p8598_p3), %v429_v3  ;;  %v435_v6 = vld [vmem:[%s8618_s19 + $0x30] sm:$0xff] (%p8598_p3) }
  0x19   : > { %432 = vst [vmem:[%s8623_s20 + $0x20] sm:$0xff] %v431_v4  ;;  %434 = vst [vmem:[%s8623_s20 + $0x28] sm:$0xff] %v433_v5  ;;  %v437_v7 = vld [vmem:[%s8618_s19 + $0x38] sm:$0xff]  ;;  %v439_v8 = vld [vmem:[%s8618_s19 + $0x40] sm:$0xff] }
  0x1a   : > { %436 = vst [vmem:[%s8623_s20 + $0x30] sm:$0xff] %v435_v6  ;;  %438 = vst [vmem:[%s8623_s20 + $0x38] sm:$0xff] %v437_v7  ;;  %v441_v9 = vld [vmem:[%s8618_s19 + $0x48] sm:$0xff]  ;;  %v443_v10 = vld [vmem:[%s8618_s19 + $0x50] sm:$0xff] }
  0x1b   : > { %440 = vst [vmem:[%s8623_s20 + $0x40] sm:$0xff] %v439_v8  ;;  %v445_v11 = vld [vmem:[%s8618_s19 + $0x58] sm:$0xff]  ;;  %442 = vst [vmem:[%s8623_s20 + $0x48] sm:$0xff] %v441_v9  ;;  %v447_v12 = vld [vmem:[%s8618_s19 + $0x60] sm:$0xff] }
  0x1c   : > { %444 = vst [vmem:[%s8623_s20 + $0x50] sm:$0xff] %v443_v10  ;;  %446 = vst [vmem:[%s8623_s20 + $0x58] sm:$0xff] %v445_v11  ;;  %v449_v13 = vld [vmem:[%s8618_s19 + $0x68] sm:$0xff]  ;;  %v451_v14 = vld [vmem:[%s8618_s19 + $0x70] sm:$0xff] }
  0x1d   : > { %448 = vst [vmem:[%s8623_s20 + $0x60] sm:$0xff] %v447_v12  ;;  %450 = vst [vmem:[%s8623_s20 + $0x68] sm:$0xff] %v449_v13  ;;  %v453_v15 = vld [vmem:[%s8618_s19 + $0x78] sm:$0xff]  ;;  %v455_v16 = vld [vmem:[%s8618_s19 + $0x80] sm:$0xff] }
  0x1e   : > { %452 = vst [vmem:[%s8623_s20 + $0x70] sm:$0xff] %v451_v14  ;;  %v457_v17 = vld [vmem:[%s8618_s19 + $0x88] sm:$0xff]  ;;  %454 = vst [vmem:[%s8623_s20 + $0x78] sm:$0xff] %v453_v15  ;;  %v459_v18 = vld [vmem:[%s8618_s19 + $0x90] sm:$0xff] }
  0x1f   : > { %456 = vst [vmem:[%s8623_s20 + $0x80] sm:$0xff] %v455_v16  ;;  %458 = vst [vmem:[%s8623_s20 + $0x88] sm:$0xff] %v457_v17  ;;  %v461_v19 = vld [vmem:[%s8618_s19 + $0x98] sm:$0xff]  ;;  %v463_v20 = vld [vmem:[%s8618_s19 + $0xa0] sm:$0xff] }
  0x20   : > { %460 = vst [vmem:[%s8623_s20 + $0x90] sm:$0xff] %v459_v18  ;;  %462 = vst [vmem:[%s8623_s20 + $0x98] sm:$0xff] %v461_v19  ;;  %v465_v21 = vld [vmem:[%s8618_s19 + $0xa8] sm:$0xff]  ;;  %v467_v22 = vld [vmem:[%s8618_s19 + $0xb0] sm:$0xff] }
  0x21   : > { %464 = vst [vmem:[%s8623_s20 + $0xa0] sm:$0xff] %v463_v20  ;;  %v469_v23 = vld [vmem:[%s8618_s19 + $0xb8] sm:$0xff]  ;;  %466 = vst [vmem:[%s8623_s20 + $0xa8] sm:$0xff] %v465_v21  ;;  %v471_v24 = vld [vmem:[%s8618_s19 + $0x180] sm:$0xff] }
  0x22   : > { %468 = vst [vmem:[%s8623_s20 + $0xb0] sm:$0xff] %v467_v22  ;;  %470 = vst [vmem:[%s8623_s20 + $0xb8] sm:$0xff] %v469_v23  ;;  %v473_v25 = vld [vmem:[%s8618_s19 + $0x188] sm:$0xff]  ;;  %v475_v26 = vld [vmem:[%s8618_s19 + $0x190] sm:$0xff] }
  0x23   : > { %472 = vst [vmem:[%s8623_s20 + $0xc0] sm:$0xff] %v471_v24  ;;  %474 = vst [vmem:[%s8623_s20 + $0xc8] sm:$0xff] %v473_v25  ;;  %v477_v27 = vld [vmem:[%s8618_s19 + $0x198] sm:$0xff]  ;;  %v479_v28 = vld [vmem:[%s8618_s19 + $0x1a0] sm:$0xff] }
  0x24   : > { %476 = vst [vmem:[%s8623_s20 + $0xd0] sm:$0xff] %v475_v26  ;;  %v481_v29 = vld [vmem:[%s8618_s19 + $0x1a8] sm:$0xff]  ;;  %478 = vst [vmem:[%s8623_s20 + $0xd8] sm:$0xff] %v477_v27  ;;  %v483_v30 = vld [vmem:[%s8618_s19 + $0x1b0] sm:$0xff] }
  0x25   : > { %480 = vst [vmem:[%s8623_s20 + $0xe0] sm:$0xff] %v479_v28  ;;  %482 = vst [vmem:[%s8623_s20 + $0xe8] sm:$0xff] %v481_v29  ;;  %v485_v31 = vld [vmem:[%s8618_s19 + $0x1b8] sm:$0xff]  ;;  %v487_v32 = vld [vmem:[%s8618_s19 + $0x1c0] sm:$0xff] }
  0x26   : > { %484 = vst [vmem:[%s8623_s20 + $0xf0] sm:$0xff] %v483_v30  ;;  %486 = vst [vmem:[%s8623_s20 + $0xf8] sm:$0xff] %v485_v31  ;;  %v489_v33 = vld [vmem:[%s8618_s19 + $0x1c8] sm:$0xff]  ;;  %v491_v34 = vld [vmem:[%s8618_s19 + $0x1d0] sm:$0xff] }
  0x27   : > { %488 = vst [vmem:[%s8623_s20 + $0x100] sm:$0xff] %v487_v32  ;;  %v493_v35 = vld [vmem:[%s8618_s19 + $0x1d8] sm:$0xff]  ;;  %490 = vst [vmem:[%s8623_s20 + $0x108] sm:$0xff] %v489_v33  ;;  %v495_v36 = vld [vmem:[%s8618_s19 + $0x1e0] sm:$0xff] }
  0x28   : > { %492 = vst [vmem:[%s8623_s20 + $0x110] sm:$0xff] %v491_v34  ;;  %494 = vst [vmem:[%s8623_s20 + $0x118] sm:$0xff] %v493_v35  ;;  %v497_v37 = vld [vmem:[%s8618_s19 + $0x1e8] sm:$0xff]  ;;  %v499_v38 = vld [vmem:[%s8618_s19 + $0x1f0] sm:$0xff] }
  0x29   : > { %496 = vst [vmem:[%s8623_s20 + $0x120] sm:$0xff] %v495_v36  ;;  %498 = vst [vmem:[%s8623_s20 + $0x128] sm:$0xff] %v497_v37  ;;  %v501_v39 = vld [vmem:[%s8618_s19 + $0x1f8] sm:$0xff]  ;;  %v503_v40 = vld [vmem:[%s8618_s19 + $0x200] sm:$0xff] }
  0x2a   : > { %500 = vst [vmem:[%s8623_s20 + $0x130] sm:$0xff] %v499_v38  ;;  %v505_v41 = vld [vmem:[%s8618_s19 + $0x208] sm:$0xff]  ;;  %502 = vst [vmem:[%s8623_s20 + $0x138] sm:$0xff] %v501_v39  ;;  %v507_v42 = vld [vmem:[%s8618_s19 + $0x210] sm:$0xff] }
  0x2b   : > { %504 = vst [vmem:[%s8623_s20 + $0x140] sm:$0xff] %v503_v40  ;;  %506 = vst [vmem:[%s8623_s20 + $0x148] sm:$0xff] %v505_v41  ;;  %v509_v43 = vld [vmem:[%s8618_s19 + $0x218] sm:$0xff]  ;;  %v511_v44 = vld [vmem:[%s8618_s19 + $0x220] sm:$0xff] }
  0x2c   : > { %508 = vst [vmem:[%s8623_s20 + $0x150] sm:$0xff] %v507_v42  ;;  %510 = vst [vmem:[%s8623_s20 + $0x158] sm:$0xff] %v509_v43  ;;  %v513_v45 = vld [vmem:[%s8618_s19 + $0x228] sm:$0xff]  ;;  %v515_v46 = vld [vmem:[%s8618_s19 + $0x230] sm:$0xff] }
  0x2d   : > { %512 = vst [vmem:[%s8623_s20 + $0x160] sm:$0xff] %v511_v44  ;;  %v517_v47 = vld [vmem:[%s8618_s19 + $0x238] sm:$0xff]  ;;  %514 = vst [vmem:[%s8623_s20 + $0x168] sm:$0xff] %v513_v45  ;;  %v519_v48 = vld [vmem:[%s8618_s19 + $0x300] sm:$0xff] }
  0x2e   : > { %516 = vst [vmem:[%s8623_s20 + $0x170] sm:$0xff] %v515_v46  ;;  %518 = vst [vmem:[%s8623_s20 + $0x178] sm:$0xff] %v517_v47  ;;  %v521_v49 = vld [vmem:[%s8618_s19 + $0x308] sm:$0xff]  ;;  %v523_v50 = vld [vmem:[%s8618_s19 + $0x310] sm:$0xff] }
  0x2f   : > { %520 = vst [vmem:[%s8623_s20 + $0x180] sm:$0xff] %v519_v48  ;;  %522 = vst [vmem:[%s8623_s20 + $0x188] sm:$0xff] %v521_v49  ;;  %v525_v51 = vld [vmem:[%s8618_s19 + $0x318] sm:$0xff]  ;;  %v527_v52 = vld [vmem:[%s8618_s19 + $0x320] sm:$0xff] }
  0x30   : > { %524 = vst [vmem:[%s8623_s20 + $0x190] sm:$0xff] %v523_v50  ;;  %v529_v53 = vld [vmem:[%s8618_s19 + $0x328] sm:$0xff]  ;;  %526 = vst [vmem:[%s8623_s20 + $0x198] sm:$0xff] %v525_v51  ;;  %v531_v54 = vld [vmem:[%s8618_s19 + $0x330] sm:$0xff] }
  0x31   : > { %528 = vst [vmem:[%s8623_s20 + $0x1a0] sm:$0xff] %v527_v52  ;;  %530 = vst [vmem:[%s8623_s20 + $0x1a8] sm:$0xff] %v529_v53  ;;  %v533_v55 = vld [vmem:[%s8618_s19 + $0x338] sm:$0xff]  ;;  %v535_v56 = vld [vmem:[%s8618_s19 + $0x340] sm:$0xff] }
  0x32   : > { %532 = vst [vmem:[%s8623_s20 + $0x1b0] sm:$0xff] %v531_v54  ;;  %534 = vst [vmem:[%s8623_s20 + $0x1b8] sm:$0xff] %v533_v55  ;;  %v537_v57 = vld [vmem:[%s8618_s19 + $0x348] sm:$0xff]  ;;  %v539_v58 = vld [vmem:[%s8618_s19 + $0x350] sm:$0xff] }
  0x33   : > { %536 = vst [vmem:[%s8623_s20 + $0x1c0] sm:$0xff] %v535_v56  ;;  %v541_v59 = vld [vmem:[%s8618_s19 + $0x358] sm:$0xff]  ;;  %538 = vst [vmem:[%s8623_s20 + $0x1c8] sm:$0xff] %v537_v57  ;;  %v543_v60 = vld [vmem:[%s8618_s19 + $0x360] sm:$0xff] }
  0x34   : > { %540 = vst [vmem:[%s8623_s20 + $0x1d0] sm:$0xff] %v539_v58  ;;  %542 = vst [vmem:[%s8623_s20 + $0x1d8] sm:$0xff] %v541_v59  ;;  %v545_v61 = vld [vmem:[%s8618_s19 + $0x368] sm:$0xff]  ;;  %v547_v62 = vld [vmem:[%s8618_s19 + $0x370] sm:$0xff] }
  0x35   : > { %544 = vst [vmem:[%s8623_s20 + $0x1e0] sm:$0xff] %v543_v60  ;;  %546 = vst [vmem:[%s8623_s20 + $0x1e8] sm:$0xff] %v545_v61  ;;  %v549_v63 = vld [vmem:[%s8618_s19 + $0x378] sm:$0xff]  ;;  %v551_v0 = vld [vmem:[%s8618_s19 + $0x380] sm:$0xff] }
  0x36   : > { %548 = vst [vmem:[%s8623_s20 + $0x1f0] sm:$0xff] %v547_v62  ;;  %v553_v1 = vld [vmem:[%s8618_s19 + $0x388] sm:$0xff]  ;;  %550 = vst [vmem:[%s8623_s20 + $0x1f8] sm:$0xff] %v549_v63  ;;  %v555_v2 = vld [vmem:[%s8618_s19 + $0x390] sm:$0xff] }
  0x37   : > { %552 = vst [vmem:[%s8623_s20 + $0x200] sm:$0xff] %v551_v0  ;;  %554 = vst [vmem:[%s8623_s20 + $0x208] sm:$0xff] %v553_v1  ;;  %v557_v3 = vld [vmem:[%s8618_s19 + $0x398] sm:$0xff]  ;;  %v559_v4 = vld [vmem:[%s8618_s19 + $0x3a0] sm:$0xff] }
  0x38   : > { %556 = vst [vmem:[%s8623_s20 + $0x210] sm:$0xff] %v555_v2  ;;  %558 = vst [vmem:[%s8623_s20 + $0x218] sm:$0xff] %v557_v3  ;;  %v561_v5 = vld [vmem:[%s8618_s19 + $0x3a8] sm:$0xff]  ;;  %v563_v6 = vld [vmem:[%s8618_s19 + $0x3b0] sm:$0xff] }
  0x39   : > { %560 = vst [vmem:[%s8623_s20 + $0x220] sm:$0xff] %v559_v4  ;;  %v565_v7 = vld [vmem:[%s8618_s19 + $0x3b8] sm:$0xff]  ;;  %562 = vst [vmem:[%s8623_s20 + $0x228] sm:$0xff] %v561_v5 }
  0x3a   : > { %564 = vst [vmem:[%s8623_s20 + $0x230] sm:$0xff] %v563_v6  ;;  %566 = vst [vmem:[%s8623_s20 + $0x238] sm:$0xff] %v565_v7 }
  0x3b PF: > { %572 = sbr.rel (!%p8598_p3) target bundleno = 72 (0x48), region = 78  ;;  %s574_s21 = sand.u32 (%p8598_p3), 1, %s8490_s25  }
  0x3c   : > { %s8160_s22 = smul.u32 (%p8598_p3), 40, %s8506_s29 }
  0x3d   : > { %s8159_s23 = smul.u32 (%p8598_p3), 120, %s574_s21 }
  0x3e   : > { %s579_s14 = scalar_lea.vmem (%p8598_p3), %s13472_s1, %s8160_s22 }
  0x3f   : > { %v635_v8 = vld [vmem:[%s579_s14] sm:$0xff] (%p8598_p3)  ;;  %v637_v9 = vld [vmem:[%s579_s14 + $0x8] sm:$0xff] (%p8598_p3)  ;;  %v639_v10 = vld [vmem:[%s579_s14 + $0x10] sm:$0xff] (%p8598_p3)  ;;  %s576_s15 = scalar_lea.vmem (%p8598_p3), [#allocation3], %s8159_s23 }
  0x40   : > { %636 = vst [vmem:[%s576_s15] sm:$0xff] (%p8598_p3), %v635_v8  ;;  %638 = vst [vmem:[%s576_s15 + $0x8] sm:$0xff] (%p8598_p3), %v637_v9  ;;  %v641_v11 = vld [vmem:[%s579_s14 + $0x18] sm:$0xff] (%p8598_p3)  ;;  %v643_v12 = vld [vmem:[%s579_s14 + $0x20] sm:$0xff] (%p8598_p3) }
  0x41   : > { %640 = vst [vmem:[%s576_s15 + $0x10] sm:$0xff] (%p8598_p3), %v639_v10  ;;  %v645_v13 = vld [vmem:[%s579_s14 + $0x50] sm:$0xff] (%p8598_p3)  ;;  %642 = vst [vmem:[%s576_s15 + $0x18] sm:$0xff] (%p8598_p3), %v641_v11  ;;  %v647_v14 = vld [vmem:[%s579_s14 + $0x58] sm:$0xff] (%p8598_p3) }
  0x42   : > { %644 = vst [vmem:[%s576_s15 + $0x20] sm:$0xff] %v643_v12  ;;  %646 = vst [vmem:[%s576_s15 + $0x28] sm:$0xff] %v645_v13  ;;  %v649_v15 = vld [vmem:[%s579_s14 + $0x60] sm:$0xff]  ;;  %v651_v16 = vld [vmem:[%s579_s14 + $0x68] sm:$0xff] }
  0x43   : > { %648 = vst [vmem:[%s576_s15 + $0x30] sm:$0xff] %v647_v14  ;;  %650 = vst [vmem:[%s576_s15 + $0x38] sm:$0xff] %v649_v15  ;;  %v653_v17 = vld [vmem:[%s579_s14 + $0x70] sm:$0xff]  ;;  %v655_v18 = vld [vmem:[%s579_s14 + $0xa0] sm:$0xff] }
  0x44   : > { %652 = vst [vmem:[%s576_s15 + $0x40] sm:$0xff] %v651_v16  ;;  %v657_v19 = vld [vmem:[%s579_s14 + $0xa8] sm:$0xff]  ;;  %654 = vst [vmem:[%s576_s15 + $0x48] sm:$0xff] %v653_v17  ;;  %v659_v20 = vld [vmem:[%s579_s14 + $0xb0] sm:$0xff] }
  0x45   : > { %656 = vst [vmem:[%s576_s15 + $0x50] sm:$0xff] %v655_v18  ;;  %658 = vst [vmem:[%s576_s15 + $0x58] sm:$0xff] %v657_v19  ;;  %v661_v21 = vld [vmem:[%s579_s14 + $0xb8] sm:$0xff]  ;;  %v663_v22 = vld [vmem:[%s579_s14 + $0xc0] sm:$0xff] }
  0x46   : > { %660 = vst [vmem:[%s576_s15 + $0x60] sm:$0xff] %v659_v20  ;;  %662 = vst [vmem:[%s576_s15 + $0x68] sm:$0xff] %v661_v21 }
  0x47   : > { %664 = vst [vmem:[%s576_s15 + $0x70] sm:$0xff] %v663_v22 }
  0x48 PF: > { %p7781_p7 = scmp.ge.s32.totalorder %s8510_s30, 1  ;;  %p669_p8 = scmp.lt.s32.totalorder %s8510_s30, 5 }
  0x4a   : > { %p670_p9 = pnand %p7781_p7, %p669_p8 }
  0x4c   : > { %673 = sbr.rel (%p670_p9) target bundleno = 2182 (0x886), region = 116 }
  0x53   : > { %v8224_v23 = vld [vmem:[%s13473_s2 + $0x4] ss:$8 sps:$4 sm:$0xff]   ;;  %v8226_v24 = vld [vmem:[%s13473_s2] ss:$8 sps:$4 sm:$0xff]   ;;  %v8227_v25 = vld [vmem:[%s13473_s2 + $0x14] ss:$8 sps:$4 sm:$0xff]   ;;  %v13479_v31 = vlaneseq }
  0x54   : > { %4901 = vmatprep.subr.bf16.mxu0 %v8224_v23  ;;  %v8229_v26 = vld [vmem:[%s13473_s2 + $0x10] ss:$8 sps:$4 sm:$0xff]   ;;  %v8230_v27 = vld [vmem:[%s13473_s2 + $0x24] ss:$8 sps:$4 sm:$0xff]   ;;  %v8232_v28 = vld [vmem:[%s13473_s2 + $0x20] ss:$8 sps:$4 sm:$0xff]  }
  0x55   : > { %4902 = vmatpush1.bf16.msra.mxu0 %v8226_v24  ;;  %v8233_v29 = vld [vmem:[%s13473_s2 + $0x34] ss:$8 sps:$4 sm:$0xff]   ;;  %v8235_v30 = vld [vmem:[%s13473_s2 + $0x30] ss:$8 sps:$4 sm:$0xff]   ;;  %s676_s18 = sand.u32 1, %s8486_s24   ;;  %v777_v34 = vshrl.u32 %v13479_v31, 7 }
  0x56   : > { %4903 = vmatprep.subr.bf16.mxu0 %v8227_v25  ;;  %v8236_v32 = vld [vmem:[%s13473_s2 + $0x44] ss:$8 sps:$4 sm:$0xff]   ;;  %s8161_s21 = smul.u32 576, %s676_s18  ;;  %v8238_v33 = vld [vmem:[%s13473_s2 + $0x40] ss:$8 sps:$4 sm:$0xff]   ;;  %s8094_s24 = sshll.u32 %s8494_s26, 6 }
  0x57   : > { %s8162_s11 = smul.u32 120, %s676_s18  ;;  %v8239_v35 = vld [vmem:[%s13473_s2 + $0x54] ss:$8 sps:$4 sm:$0xff]   ;;  %v8241_v36 = vld [vmem:[%s13473_s2 + $0x50] ss:$8 sps:$4 sm:$0xff]   ;;  %v8814_v37 = vsub.s32 0, %v777_v34 }
  0x58   : > { %v8242_v38 = vld [vmem:[%s13473_s2 + $0x64] ss:$8 sps:$4 sm:$0xff]   ;;  %v8819_v39 = vsub.s32 1, %v777_v34  ;;  %v8821_v40 = vsub.s32 2, %v777_v34  ;;  %v8244_v41 = vld [vmem:[%s13473_s2 + $0x60] ss:$8 sps:$4 sm:$0xff]  }
  0x59   : > { %4904 = vmatpush1.bf16.msra.mxu0 %v8229_v26  ;;  %13968 = vst [vmem:[#allocation4_spill] sm:$0xff] %v8814_v37  ;;  %v8271_v42 = vld [vmem:[%s13473_s2 + $0x104] ss:$8 sps:$4 sm:$0xff]   ;;  %s678_s23 = scalar_lea.vmem [#allocation2], %s8161_s21  ;;  %v8831_v43 = vsub.s32 3, %v777_v34  ;;  %v8833_v44 = vsub.s32 4, %v777_v34 }
  0x5a   : > { %4905 = vmatprep.subr.bf16.mxu0 %v8230_v27  ;;  %13969 = vst [vmem:[#allocation5_spill] sm:$0xff] %v8819_v39  ;;  %13970 = vst [vmem:[#allocation6_spill] sm:$0xff] %v8821_v40  ;;  %s8829_s12 = scalar_lea.vmem %s678_s23, %s8094_s24 [#allocation2]  ;;  %v8245_v45 = vld [vmem:[%s13473_s2 + $0x74] ss:$8 sps:$4 sm:$0xff]   ;;  %v8274_v46 = vld [vmem:[%s13473_s2 + $0x100] ss:$8 sps:$4 sm:$0xff]   ;;  %4688 = vmatprep.subr.bf16.mxu1 %v8271_v42 }
  0x5b   : > { %13971 = vst [vmem:[#allocation7_spill] sm:$0xff] %v8831_v43  ;;  %13972 = vst [vmem:[#allocation8_spill] sm:$0xff] %v8833_v44  ;;  %s8841_s17 = scalar_lea.vmem [#allocation3], %s8162_s11  ;;  %4689 = vmatpush1.bf16.msra.mxu1 %v8274_v46  ;;  %v8861_v58 = vld [vmem:[%s8829_s12] sm:$0xff]  ;;  %v753_v59 = vld [vmem:[%s8829_s12 + $0x10] sm:$0xff]  ;;  %vm960_vm0 = vcmask 1046528  }
  0x5c   : > { %v734_v47 = vld [vmem:[%s8841_s17] sm:$0x77]  ;;  %v735_v48 = vld [vmem:[%s8841_s17 + $0x8] sm:$0x77]  ;;  %v736_v49 = vld [vmem:[%s8841_s17 + $0x10] sm:$0x77]  ;;  %v13480_v4 = vunpack.c.l.bf16 %v8861_v58  ;;  %v761_v5 = vunpack.c.h.bf16 %v8861_v58  ;;  %v8878_v6 = vunpack.c.l.bf16 %v753_v59  ;;  %v8880_v7 = vunpack.c.h.bf16 %v753_v59 }
  0x5d   : > { %4906 = vmatpush1.bf16.msra.mxu0 %v8232_v28  ;;  %v737_v50 = vld [vmem:[%s8841_s17 + $0x18] sm:$0x77]  ;;  %v8847_v51 = vunpack.c.l.bf16 %v734_v47  ;;  %v8849_v52 = vunpack.c.h.bf16 %v734_v47  ;;  %v738_v53 = vld [vmem:[%s8841_s17 + $0x20] sm:$0x77]  ;;  %v8852_v54 = vunpack.c.l.bf16 %v735_v48  ;;  %v8854_v55 = vunpack.c.h.bf16 %v735_v48  ;;  %v8894_v13 = vld [vmem:[%s8829_s12 + $0x8] sm:$0x11] }
  0x5e   : > { %4907 = vmatprep.subr.bf16.mxu0 %v8233_v29  ;;  %v8856_v56 = vunpack.c.l.bf16 %v736_v49  ;;  %v8858_v57 = vunpack.c.h.bf16 %v736_v49  ;;  %v8864_v60 = vunpack.c.l.bf16 %v737_v50  ;;  %v8866_v61 = vunpack.c.h.bf16 %v737_v50  ;;  %v754_v0 = vld [vmem:[%s8829_s12 + $0x20] sm:$0xff]  ;;  %v755_v1 = vld [vmem:[%s8829_s12 + $0x30] sm:$0xff]  ;;  %v898_v34 = vld [vmem:[%s8829_s12 + $0x28] sm:$0x11]  ;;  %s8512_s20 = smov 127   ;;  %s8513_s22 = smov 1  }
  0x5f   : > { %13973 = vst [vmem:[#allocation9_spill] sm:$0xff] %v8847_v51  ;;  %v8868_v62 = vunpack.c.l.bf16 %v738_v53  ;;  %v8870_v63 = vunpack.c.h.bf16 %v738_v53  ;;  %v756_v2 = vld [vmem:[%s8829_s12 + $0x40] sm:$0xff]  ;;  %v757_v3 = vld [vmem:[%s8829_s12 + $0x50] sm:$0xff]  ;;  %v8885_v9 = vunpack.c.l.bf16 %v754_v0  ;;  %v8887_v10 = vunpack.c.h.bf16 %v754_v0  ;;  %v900_v50 = vld [vmem:[%s8829_s12 + $0x48] sm:$0x11]  ;;  %s7782_s23 = sshll.u32 %s8494_s26, 2 }
  0x60   : > { %v8247_v8 = vld [vmem:[%s13473_s2 + $0x70] ss:$8 sps:$4 sm:$0xff]   ;;  %v8889_v11 = vunpack.c.l.bf16 %v755_v1  ;;  %v8891_v12 = vunpack.c.h.bf16 %v755_v1  ;;  %v8248_v14 = vld [vmem:[%s13473_s2 + $0x84] ss:$8 sps:$4 sm:$0xff]   ;;  %v8899_v15 = vunpack.c.l.bf16 %v756_v2  ;;  %v8901_v16 = vunpack.c.h.bf16 %v756_v2  ;;  %v8250_v27 = vld [vmem:[%s13473_s2 + $0x80] ss:$8 sps:$4 sm:$0xff]  }
  0x61   : > { %4908 = vmatpush1.bf16.msra.mxu0 %v8235_v30  ;;  %13974 = vst [vmem:[#allocation10_spill] sm:$0xff] %v8887_v10  ;;  %v8903_v17 = vunpack.c.l.bf16 %v757_v3  ;;  %v8905_v18 = vunpack.c.h.bf16 %v757_v3  ;;  %v8909_v19 = vrot.slane %v8847_v51, %v8814_v37  ;;  %v8913_v20 = vrot.slane %v8849_v52, %v8814_v37  ;;  %v901_v53 = vld [vmem:[%s8829_s12 + $0x58] sm:$0x11]  ;;  %p723_p10 = scmp.lt.s32.totalorder %s8498_s27, 1  ;;  %p725_p11 = scmp.lt.s32.totalorder %s7782_s23, 7 }
  0x62   : > { %4909 = vmatprep.subr.bf16.mxu0 %v8236_v32  ;;  %13975 = vst [vmem:[#allocation11_spill] sm:$0xff] %v8891_v12  ;;  %13976 = vst [vmem:[#allocation12_spill] sm:$0xff] %v8901_v16  ;;  %v8917_v21 = vrot.slane %v8854_v55, %v8814_v37  ;;  %v8921_v22 = vrot.slane %v8858_v57, %v8814_v37  ;;  %v8925_v23 = vrot.slane %v8866_v61, %v8814_v37  ;;  %v8253_v3 = vld [vmem:[%s13473_s2 + $0x90] ss:$8 sps:$4 sm:$0xff]   ;;  %vm1385_vm1 = vcmask 1045504  }
  0x63   : > { %13977 = vst [vmem:[#allocation13_spill] sm:$0xff] %v8905_v18  ;;  %13978 = vst [vmem:[#allocation14_spill] sm:$0xff] %v8909_v19  ;;  %v8929_v24 = vrot.slane %v8870_v63, %v8814_v37  ;;  %v13485_v25 = vunpack.c.l.bf16 %v8894_v13  ;;  %v8939_v28 = vmul.f32 %v8909_v19, %v13480_v4  ;;  %v785_v29 = vmul.f32 %v8913_v20, %v761_v5  ;;  %v8278_v4 = vld [vmem:[%s13473_s2 + $0x114] ss:$8 sps:$4 sm:$0xff]   ;;  %s14616_s27 = smov (!%p723_p10, %s8498_s27), 1  ;;  %s14618_s23 = smov (!%p725_p11, %s7782_s23), 7 }
  0x64   : > { %13979 = vst [vmem:[#allocation15_spill] sm:$0xff] %v8913_v20  ;;  %13980 = vst [vmem:[#allocation16_spill] sm:$0xff] %v8917_v21  ;;  %v787_v30 = vmul.f32 %v8913_v20, %v8880_v7  ;;  %v809_v32 = vmul.f32 %v8917_v21, %v8880_v7  ;;  %v857_v42 = vmul.f32 %v8925_v23, %v8891_v12  ;;  %v8974_v2 = vunpack.c.l.bf16 %v898_v34  ;;  %s7783_s14 = sshll.u32 %s14616_s27, 3 }
  0x65   : > { %4910 = vmatpush1.bf16.msra.mxu0 %v8238_v33  ;;  %13981 = vst [vmem:[#allocation17_spill] sm:$0xff] %v8921_v22  ;;  %13982 = vst [vmem:[#allocation18_spill] sm:$0xff] %v8925_v23  ;;  %v897_v33 = vld [vmem:[%s8829_s12 + $0x18] sm:$0x11]  ;;  %v859_v47 = vmul.f32 %v8925_v23, %v8901_v16  ;;  %v881_v48 = vmul.f32 %v8929_v24, %v8901_v16  ;;  %v883_v49 = vmul.f32 %v8929_v24, %v8905_v18  ;;  %vm1810_vm2 = vcmask 1044480   ;;  %s728_s15 = sadd.s32 %s7783_s14, %s14618_s23 }
  0x66   : > { %4911 = vmatprep.subr.bf16.mxu0 %v8239_v35  ;;  %13983 = vst [vmem:[#allocation19_spill] sm:$0xff] %v8929_v24  ;;  %v8251_v35 = vld [vmem:[%s13473_s2 + $0x94] ss:$8 sps:$4 sm:$0xff]   ;;  %v817_v46 = vadd.f32 %v809_v32, %v785_v29  ;;  %v8970_v0 = vunpack.c.l.bf16 %v897_v33  ;;  %v8972_v1 = vunpack.c.h.bf16 %v897_v33  ;;  %13984 = vst [vmem:[#allocation20_spill] sm:$0xff] %v8974_v2  ;;  %v8982_v29 = vunpack.c.h.bf16 %v898_v34  ;;  %v8256_v34 = vld [vmem:[%s13473_s2 + $0xa0] ss:$8 sps:$4 sm:$0xff]   ;;  %4690 = vmatprep.subr.bf16.mxu1 %v8278_v4 }
  0x67   : > { %v8992_v31 = vunpack.c.l.bf16 %v901_v53  ;;  %vm2235_vm3 = vcmask 1043456   ;;  %s7784_s26 = sshll.u32 %s728_s15, 3 }
  0x68   : > { %13985 = vst [vmem:[#allocation21_spill] sm:$0xff] %v8982_v29  ;;  %s730_s16 = scalar_lea.vmem %s13478_s7, %s7784_s26 }
  0x69   : > { %4912 = vmatpush1.bf16.msra.mxu0 %v8241_v36  ;;  %v811_v36 = vmul.f32 %v8917_v21, %v8887_v10  ;;  %13990 = vst [vmem:[#allocation26_spill] sm:$0xff] %v8992_v31  ;;  %v9058_v21 = vrot.slane %v8858_v57, %v8819_v39 }
  0x6a   : > { %4913 = vmatprep.subr.bf16.mxu0 %v8242_v38  ;;  %v833_v38 = vmul.f32 %v8921_v22, %v8887_v10 }
  0x6b   : > { %v819_v59 = vadd.f32 %v811_v36, %v787_v30  ;;  %v8988_v36 = vunpack.c.l.bf16 %v900_v50  ;;  %13998 = vst [vmem:[#allocation33_spill] sm:$0xff] %v9058_v21 }
  0x6d   : > { %4914 = vmatpush1.bf16.msra.mxu0 %v8244_v41  ;;  %v835_v41 = vmul.f32 %v8921_v22, %v8891_v12  ;;  %13988 = vst [vmem:[#allocation24_spill] sm:$0xff] %v8988_v36  ;;  %v9062_v36 = vld [vmem:[%s8829_s12] sm:$0xee] }
  0x6e   : > { %4915 = vmatprep.subr.bf16.mxu0 %v8245_v45  ;;  %v899_v45 = vld [vmem:[%s8829_s12 + $0x38] sm:$0x11] }
  0x6f   : > { %v8984_v32 = vunpack.c.l.bf16 %v899_v45  ;;  %v8986_v30 = vunpack.c.h.bf16 %v899_v45  ;;  %v843_v33 = vadd.f32 %v835_v41, %v819_v59  ;;  %v9008_v41 = vrot.slane %v8849_v52, %v8819_v39  ;;  %v8257_v45 = vld [vmem:[%s13473_s2 + $0xb4] ss:$8 sps:$4 sm:$0xff]  }
  0x70   : > { %v9015_v59 = vrot.slane %v8852_v54, %v8819_v39 }
  0x71   : > { %4916 = vmatpush1.bf16.msra.mxu0 %v8247_v8  ;;  %v8254_v8 = vld [vmem:[%s13473_s2 + $0xa4] ss:$8 sps:$4 sm:$0xff]   ;;  %13986 = vst [vmem:[#allocation22_spill] sm:$0xff] %v8984_v32  ;;  %13987 = vst [vmem:[#allocation23_spill] sm:$0xff] %v8986_v30  ;;  %v929_v26 = vmul.f32 %v9008_v41, %v761_v5  ;;  %v933_v4 = vmul.f32 %v9008_v41, %v8880_v7 }
  0x72   : > { %4917 = vmatprep.subr.bf16.mxu0 %v8248_v14  ;;  %v841_v14 = vadd.f32 %v833_v38, %v817_v46  ;;  %v9000_v46 = vunpack.c.h.bf16 %v901_v53  ;;  %13993 = vst [vmem:[#allocation29_spill] sm:$0xff] %v9008_v41  ;;  %13994 = vst [vmem:[#allocation30_spill] sm:$0xff] %v9015_v59  ;;  %v9023_v53 = vrot.slane %v8856_v56, %v8819_v39 }
  0x74   : > { %v865_v38 = vadd.f32 %v857_v42, %v841_v14  ;;  %13991 = vst [vmem:[#allocation27_spill] sm:$0xff] %v9000_v46  ;;  %v9019_v42 = vrot.slane %v8854_v55, %v8819_v39  ;;  %13996 = vst [vmem:[#allocation32_spill] sm:$0xff] %v9023_v53 }
  0x75   : > { %4918 = vmatpush1.bf16.msra.mxu0 %v8250_v27  ;;  %v8990_v27 = vunpack.c.h.bf16 %v900_v50  ;;  %v867_v50 = vadd.f32 %v859_v47, %v843_v33  ;;  %v13997_v33 = vunpack.c.h.bf16 %v8894_v13 }
  0x76   : > { %4919 = vmatprep.subr.bf16.mxu0 %v8251_v35  ;;  %v9004_v35 = vrot.slane %v8847_v51, %v8819_v39  ;;  %13995 = vst [vmem:[#allocation31_spill] sm:$0xff] %v9019_v42  ;;  %v889_v14 = vadd.f32 %v881_v48, %v865_v38  ;;  %v935_v48 = vmul.f32 %v9008_v41, %v8972_v1 }
  0x77   : > { %13989 = vst [vmem:[#allocation25_spill] sm:$0xff] %v8990_v27  ;;  %v931_v24 = vmul.f32 %v9008_v41, %v13997_v33  ;;  %v891_v23 = vadd.f32 %v883_v49, %v867_v50  ;;  %v1010_v5 = vmul.f32 %v9019_v42, %v8880_v7  ;;  %v1012_v49 = vmul.f32 %v9019_v42, %v8972_v1 }
  0x78   : > { %13992 = vst [vmem:[#allocation28_spill] sm:$0xff] %v9004_v35  ;;  %v9031_v47 = vmul.f32 %v9004_v35, %v13485_v25  ;;  %v964_v25 = vrot.slane %v929_v26, 1  ;;  %v970_v50 = vrot.slane %v933_v4, 1  ;;  %v971_v33 = vrot.slane %v935_v48, 1 }
  0x79   : > { %4920 = vmatpush1.bf16.msra.mxu0 %v8253_v3  ;;  %v8259_v3 = vld [vmem:[%s13473_s2 + $0xb0] ss:$8 sps:$4 sm:$0xff]   ;;  %v965_v22 = vrot.slane %v931_v24, 1  ;;  %v1014_v7 = vmul.f32 %v9019_v42, %v8887_v10  ;;  %v1016_v41 = vmul.f32 %v9019_v42, %v8982_v29  ;;  %v1044_v24 = vrot.slane %v1010_v5, 1 }
  0x7a   : > { %4921 = vmatprep.subr.bf16.mxu0 %v8254_v8  ;;  %v8260_v8 = vld [vmem:[%s13473_s2 + $0xc4] ss:$8 sps:$4 sm:$0xff]   ;;  %v1045_v38 = vrot.slane %v1012_v49, 1  ;;  %v972_v20 = vsel %vm960_vm0, %v970_v50, %v971_v33  ;;  %v1094_v49 = vmul.f32 %v9058_v21, %v8891_v12  ;;  %v9082_v33 = vrot.slane %v8864_v60, %v8819_v39 }
  0x7b   : > { %v966_v26 = vsel %vm960_vm0, %v964_v25, %v965_v22  ;;  %v1050_v48 = vrot.slane %v1014_v7, 1  ;;  %v1051_v31 = vrot.slane %v1016_v41, 1  ;;  %v996_v42 = vadd.f32 %v972_v20, %v891_v23 }
  0x7c   : > { %v994_v4 = vadd.f32 %v966_v26, %v889_v14  ;;  %v1046_v22 = vsel %vm960_vm0, %v1044_v24, %v1045_v38  ;;  %v1090_v25 = vmul.f32 %v9058_v21, %v8887_v10  ;;  %v8263_v14 = vld [vmem:[%s13473_s2 + $0xd4] ss:$8 sps:$4 sm:$0xff]   ;;  %v1096_v20 = vmul.f32 %v9058_v21, %v8986_v30  ;;  %13999 = vst [vmem:[#allocation34_spill] sm:$0xff] %v9082_v33 }
  0x7d   : > { %4922 = vmatpush1.bf16.msra.mxu0 %v8256_v34  ;;  %v8262_v34 = vld [vmem:[%s13473_s2 + $0xc0] ss:$8 sps:$4 sm:$0xff]   ;;  %v1052_v41 = vsel %vm960_vm0, %v1050_v48, %v1051_v31  ;;  %v1130_v7 = vrot.slane %v1094_v49, 1  ;;  %v9086_v31 = vrot.slane %v8866_v61, %v8819_v39  ;;  %v9090_v24 = vrot.slane %v8868_v62, %v8819_v39 }
  0x7e   : > { %4923 = vmatprep.subr.bf16.mxu0 %v8257_v45  ;;  %v1092_v45 = vmul.f32 %v9058_v21, %v8982_v29  ;;  %v1074_v5 = vadd.f32 %v1046_v22, %v994_v4  ;;  %v1076_v23 = vadd.f32 %v1052_v41, %v996_v42  ;;  %v1124_v38 = vrot.slane %v1090_v25, 1  ;;  %v8265_v42 = vld [vmem:[%s13473_s2 + $0xd0] ss:$8 sps:$4 sm:$0xff]   ;;  %v8266_v25 = vld [vmem:[%s13473_s2 + $0xe4] ss:$8 sps:$4 sm:$0xff]  }
  0x7f   : > { %v1131_v26 = vrot.slane %v1096_v20, 1  ;;  %14000 = vst [vmem:[#allocation35_spill] sm:$0xff] %v9086_v31  ;;  %14001 = vst [vmem:[#allocation36_spill] sm:$0xff] %v9090_v24  ;;  %v1322_v4 = vld [vmem:[%s8829_s12 + $0x10] sm:$0xee]  ;;  %v1170_v49 = vmul.f32 %v9086_v31, %v8891_v12  ;;  %v1172_v20 = vmul.f32 %v9086_v31, %v8986_v30  ;;  %v1176_v22 = vmul.f32 %v9086_v31, %v8990_v27 }
  0x80   : > { %v1125_v50 = vrot.slane %v1092_v45, 1  ;;  %v9134_v24 = vunpack.c.l.bf16 %v1322_v4 }
  0x81   : > { %4924 = vmatpush1.bf16.msra.mxu0 %v8259_v3  ;;  %v1132_v45 = vsel %vm960_vm0, %v1130_v7, %v1131_v26  ;;  %v1204_v26 = vrot.slane %v1170_v49, 1  ;;  %v1325_v49 = vld [vmem:[%s8829_s12 + $0x40] sm:$0xee] }
  0x82   : > { %4925 = vmatprep.subr.bf16.mxu0 %v8260_v8  ;;  %v1126_v3 = vsel %vm960_vm0, %v1124_v38, %v1125_v50  ;;  %v9098_v8 = vrot.slane %v8870_v63, %v8819_v39  ;;  %v1156_v38 = vadd.f32 %v1132_v45, %v1076_v23  ;;  %v1174_v50 = vmul.f32 %v9086_v31, %v8901_v16  ;;  %v1324_v23 = vld [vmem:[%s8829_s12 + $0x30] sm:$0xee]  ;;  %v8268_v45 = vld [vmem:[%s13473_s2 + $0xe0] ss:$8 sps:$4 sm:$0xff]  }
  0x83   : > { %v1154_v41 = vadd.f32 %v1126_v3, %v1074_v5  ;;  %v1323_v5 = vld [vmem:[%s8829_s12 + $0x20] sm:$0xee]  ;;  %v1205_v3 = vrot.slane %v1172_v20, 1  ;;  %v1211_v31 = vrot.slane %v1176_v22, 1  ;;  %v1326_v20 = vld [vmem:[%s8829_s12 + $0x50] sm:$0xee] }
  0x84   : > { %14002 = vst [vmem:[#allocation37_spill] sm:$0xff] %v9098_v8  ;;  %v1250_v7 = vmul.f32 %v9098_v8, %v8901_v16  ;;  %v1252_v48 = vmul.f32 %v9098_v8, %v8990_v27  ;;  %v1210_v39 = vrot.slane %v1174_v50, 1  ;;  %v1256_v21 = vmul.f32 %v9098_v8, %v9000_v46  ;;  %v8269_v16 = vld [vmem:[%s13473_s2 + $0xf4] ss:$8 sps:$4 sm:$0xff]   ;;  %14003 = vst [vmem:[#allocation38_spill] sm:$0xff] %v9134_v24 }
  0x85   : > { %4926 = vmatpush1.bf16.msra.mxu0 %v8262_v34  ;;  %v1254_v34 = vmul.f32 %v9098_v8, %v8905_v18  ;;  %v1206_v18 = vsel %vm960_vm0, %v1204_v26, %v1205_v3  ;;  %v9137_v8 = vunpack.c.h.bf16 %v1322_v4  ;;  %v9143_v2 = vunpack.c.l.bf16 %v1323_v5 }
  0x86   : > { %4927 = vmatprep.subr.bf16.mxu0 %v8263_v14  ;;  %v1284_v14 = vrot.slane %v1250_v7, 1  ;;  %v1285_v12 = vrot.slane %v1252_v48, 1  ;;  %v1212_v22 = vsel %vm960_vm0, %v1210_v39, %v1211_v31  ;;  %v1234_v50 = vadd.f32 %v1206_v18, %v1154_v41  ;;  %v9140_v7 = vld [vmem:[%s8829_s12 + $0x8] sm:$0x33] }
  0x87   : > { %v1290_v10 = vrot.slane %v1254_v34, 1  ;;  %v1291_v33 = vrot.slane %v1256_v21, 1  ;;  %v1236_v32 = vadd.f32 %v1212_v22, %v1156_v38  ;;  %14004 = vst [vmem:[#allocation39_spill] sm:$0xff] %v9143_v2  ;;  %v9145_v48 = vunpack.c.h.bf16 %v1323_v5  ;;  %v8277_v38 = vld [vmem:[%s13473_s2 + $0x204] ss:$8 sps:$4 sm:$0xff]  }
  0x88   : > { %v1286_v53 = vsel %vm960_vm0, %v1284_v14, %v1285_v12  ;;  %v9151_v21 = vunpack.c.l.bf16 %v1324_v23  ;;  %v9153_v31 = vunpack.c.h.bf16 %v1324_v23  ;;  %v9157_v41 = vunpack.c.h.bf16 %v1325_v49 }
  0x89   : > { %4928 = vmatpush1.bf16.msra.mxu0 %v8265_v42  ;;  %14005 = vst [vmem:[#allocation40_spill] sm:$0xff] %v9145_v48  ;;  %v8273_v42 = vld [vmem:[%s13473_s2 + $0xf0] ss:$8 sps:$4 sm:$0xff]   ;;  %v1292_v39 = vsel %vm960_vm0, %v1290_v10, %v1291_v33  ;;  %v1314_v18 = vadd.f32 %v1286_v53, %v1234_v50  ;;  %v9159_v12 = vunpack.c.l.bf16 %v1326_v20  ;;  %v9164_v5 = vunpack.c.h.bf16 %v1326_v20 }
  0x8a   : > { %4929 = vmatprep.subr.bf16.mxu0 %v8266_v25  ;;  %14006 = vst [vmem:[#allocation41_spill] sm:$0xff] %v9151_v21  ;;  %14007 = vst [vmem:[#allocation42_spill] sm:$0xff] %v9153_v31  ;;  %v1316_v4 = vadd.f32 %v1292_v39, %v1236_v32  ;;  %v9155_v25 = vunpack.c.l.bf16 %v1325_v49  ;;  %v9168_v10 = vrot.slane %v8847_v51, %v8821_v40  ;;  %v14018_v23 = vunpack.c.l.bf16 %v9062_v36  ;;  %v8280_v50 = vld [vmem:[%s13473_s2 + $0x110] ss:$8 sps:$4 sm:$0xff]  }
  0x8b   : > { %14009 = vst [vmem:[#allocation44_spill] sm:$0xff] %v9157_v41  ;;  %14010 = vst [vmem:[#allocation45_spill] sm:$0xff] %v9159_v12  ;;  %v9172_v32 = vrot.slane %v8849_v52, %v8821_v40  ;;  %v9176_v53 = vrot.slane %v8854_v55, %v8821_v40  ;;  %v9180_v33 = vrot.slane %v8858_v57, %v8821_v40  ;;  %v14020_v49 = vunpack.c.h.bf16 %v8894_v13 }
  0x8c   : > { %14008 = vst [vmem:[#allocation43_spill] sm:$0xff] %v9155_v25  ;;  %14011 = vst [vmem:[#allocation46_spill] sm:$0xff] %v9164_v5  ;;  %v9184_v26 = vrot.slane %v8866_v61, %v8821_v40  ;;  %v9188_v3 = vrot.slane %v8870_v63, %v8821_v40  ;;  %4691 = vmatpush1.bf16.msra.mxu1 %v8280_v50 }
  0x8d   : > { %4930 = vmatpush1.bf16.msra.mxu0 %v8268_v45  ;;  %14012 = vst [vmem:[#allocation47_spill] sm:$0xff] %v9168_v10  ;;  %14013 = vst [vmem:[#allocation48_spill] sm:$0xff] %v9172_v32  ;;  %v9194_v45 = vmul.f32 %v9168_v10, %v14018_v23  ;;  %v1356_v20 = vmul.f32 %v9172_v32, %v14020_v49  ;;  %v1358_v22 = vmul.f32 %v9172_v32, %v9137_v8  ;;  %v1751_v49 = vld [vmem:[%s8829_s12 + $0x58] sm:$0x33] }
  0x8e   : > { %14014 = vst [vmem:[#allocation49_spill] sm:$0xff] %v9176_v53  ;;  %4931 = vmatprep.subr.bf16.mxu0 %v8269_v16  ;;  %14015 = vst [vmem:[#allocation50_spill] sm:$0xff] %v9180_v33  ;;  %v14019_v16 = vunpack.c.h.bf16 %v9062_v36  ;;  %v1360_v39 = vmul.f32 %v9172_v32, %v8972_v1  ;;  %v1435_v23 = vmul.f32 %v9176_v53, %v9137_v8 }
  0x8f   : > { %14016 = vst [vmem:[#allocation51_spill] sm:$0xff] %v9184_v26  ;;  %14017 = vst [vmem:[#allocation52_spill] sm:$0xff] %v9188_v3  ;;  %v1439_v34 = vmul.f32 %v9176_v53, %v9145_v48  ;;  %v1390_v25 = vrot.slane %v1356_v20, 2  ;;  %v1395_v21 = vrot.slane %v1358_v22, 2  ;;  %v1441_v40 = vmul.f32 %v9176_v53, %v8982_v29  ;;  %v8286_v22 = vld [vmem:[%s13473_s2 + $0x120] ss:$8 sps:$4 sm:$0xff]  }
  0x90   : > { %v1354_v14 = vmul.f32 %v9172_v32, %v14019_v16  ;;  %v1437_v16 = vmul.f32 %v9176_v53, %v8972_v1  ;;  %v8284_v32 = vld [vmem:[%s13473_s2 + $0x124] ss:$8 sps:$4 sm:$0xff]   ;;  %v1396_v2 = vrot.slane %v1360_v39, 2  ;;  %v1469_v24 = vrot.slane %v1435_v23, 2 }
  0x91   : > { %4932 = vmatpush1.bf16.msra.mxu0 %v8273_v42  ;;  %v1475_v42 = vrot.slane %v1439_v34, 2  ;;  %v1517_v20 = vmul.f32 %v9180_v33, %v8982_v29  ;;  %4692 = vmatprep.subr.bf16.mxu1 %v8284_v32  ;;  %v8290_v32 = vld [vmem:[%s13473_s2 + $0x134] ss:$8 sps:$4 sm:$0xff]  }
  0x92   : > { %v1389_v12 = vrot.slane %v1354_v14, 2  ;;  %v1470_v1 = vrot.slane %v1437_v16, 2  ;;  %7010 = vmatprep.subr.bf16.mxu0 %v8277_v38  ;;  %v1515_v14 = vmul.f32 %v9180_v33, %v9145_v48  ;;  %v1397_v50 = vsel %vm1385_vm1, %v1395_v21, %v1396_v2  ;;  %4693 = vmatpush1.bf16.msra.mxu1 %v8286_v22 }
  0x93   : > { %v1476_v38 = vrot.slane %v1441_v40, 2  ;;  %v1421_v16 = vadd.f32 %v1397_v50, %v1316_v4  ;;  %v1550_v21 = vrot.slane %v1517_v20, 2  ;;  %v1595_v40 = vmul.f32 %v9184_v26, %v9153_v31  ;;  %4694 = vmatprep.subr.bf16.mxu1 %v8290_v32 }
  0x94   : > { %v1391_v10 = vsel %vm1385_vm1, %v1389_v12, %v1390_v25  ;;  %v1471_v23 = vsel %vm1385_vm1, %v1469_v24, %v1470_v1  ;;  %v1519_v25 = vmul.f32 %v9180_v33, %v9153_v31  ;;  %v1521_v12 = vmul.f32 %v9180_v33, %v8986_v30 }
  0x95   : > { %v1419_v39 = vadd.f32 %v1391_v10, %v1314_v18  ;;  %v1549_v34 = vrot.slane %v1515_v14, 2  ;;  %v1477_v2 = vsel %vm1385_vm1, %v1475_v42, %v1476_v38  ;;  %v1597_v1 = vmul.f32 %v9184_v26, %v8986_v30  ;;  %v8292_v14 = vld [vmem:[%s13473_s2 + $0x130] ss:$8 sps:$4 sm:$0xff]  }
  0x96   : > { %v1501_v24 = vadd.f32 %v1477_v2, %v1421_v16  ;;  %v1555_v4 = vrot.slane %v1519_v25, 2  ;;  %v1556_v10 = vrot.slane %v1521_v12, 2  ;;  %v1599_v42 = vmul.f32 %v9184_v26, %v9157_v41  ;;  %v1748_v12 = vld [vmem:[%s8829_s12 + $0x28] sm:$0x33]  ;;  %4695 = vmatpush1.bf16.msra.mxu1 %v8292_v14 }
  0x97   : > { %v1499_v18 = vadd.f32 %v1471_v23, %v1419_v39  ;;  %v1551_v22 = vsel %vm1385_vm1, %v1549_v34, %v1550_v21  ;;  %v1601_v20 = vmul.f32 %v9184_v26, %v8990_v27  ;;  %v1629_v50 = vrot.slane %v1595_v40, 2  ;;  %v1747_v39 = vld [vmem:[%s8829_s12 + $0x18] sm:$0x33]  ;;  %v8296_v34 = vld [vmem:[%s13473_s2 + $0x144] ss:$8 sps:$4 sm:$0xff]  }
  0x98   : > { %v1557_v23 = vsel %vm1385_vm1, %v1555_v4, %v1556_v10  ;;  %v1630_v16 = vrot.slane %v1597_v1, 2  ;;  %v1675_v25 = vmul.f32 %v9188_v3, %v9157_v41  ;;  %v1635_v2 = vrot.slane %v1599_v42, 2  ;;  %v1749_v4 = vld [vmem:[%s8829_s12 + $0x38] sm:$0x33]  ;;  %4696 = vmatprep.subr.bf16.mxu1 %v8296_v34 }
  0x99   : > { %v1579_v38 = vadd.f32 %v1551_v22, %v1499_v18  ;;  %v1581_v32 = vadd.f32 %v1557_v23, %v1501_v24  ;;  %v1636_v21 = vrot.slane %v1601_v20, 2  ;;  %v1677_v40 = vmul.f32 %v9188_v3, %v8990_v27  ;;  %v8298_v24 = vld [vmem:[%s13473_s2 + $0x140] ss:$8 sps:$4 sm:$0xff]   ;;  %v8302_v34 = vld [vmem:[%s13473_s2 + $0x154] ss:$8 sps:$4 sm:$0xff]  }
  0x9a   : > { %v1631_v18 = vsel %vm1385_vm1, %v1629_v50, %v1630_v16  ;;  %v1679_v10 = vmul.f32 %v9188_v3, %v9164_v5  ;;  %v1681_v1 = vmul.f32 %v9188_v3, %v9000_v46  ;;  %v1709_v14 = vrot.slane %v1675_v25, 2  ;;  %v1750_v23 = vld [vmem:[%s8829_s12 + $0x48] sm:$0x33]  ;;  %v9277_v25 = vld [vmem:[%s8829_s12] sm:$0xcc]  ;;  %4697 = vmatpush1.bf16.msra.mxu1 %v8298_v24 }
  0x9b   : > { %v1637_v22 = vsel %vm1385_vm1, %v1635_v2, %v1636_v21  ;;  %v1659_v42 = vadd.f32 %v1631_v18, %v1579_v38  ;;  %v1710_v20 = vrot.slane %v1677_v40, 2  ;;  %v9274_v53 = vunpack.c.l.bf16 %v1747_v39  ;;  %4698 = vmatprep.subr.bf16.mxu1 %v8302_v34  ;;  %v8304_v24 = vld [vmem:[%s13473_s2 + $0x150] ss:$8 sps:$4 sm:$0xff]   ;;  %v8310_v34 = vld [vmem:[%s13473_s2 + $0x160] ss:$8 sps:$4 sm:$0xff]  }
  0x9c   : > { %v1661_v16 = vadd.f32 %v1637_v22, %v1581_v32  ;;  %v1715_v26 = vrot.slane %v1679_v10, 2  ;;  %v1716_v33 = vrot.slane %v1681_v1, 2  ;;  %v9283_v2 = vunpack.c.h.bf16 %v1747_v39 }
  0x9d   : > { %14021 = vst [vmem:[#allocation53_spill] sm:$0xff] %v9274_v53  ;;  %v1711_v38 = vsel %vm1385_vm1, %v1709_v14, %v1710_v20  ;;  %v9285_v21 = vunpack.c.l.bf16 %v1748_v12  ;;  %v9287_v40 = vunpack.c.h.bf16 %v1748_v12  ;;  %v9290_v10 = vunpack.c.l.bf16 %v1749_v4 }
  0x9e   : > { %v1717_v32 = vsel %vm1385_vm1, %v1715_v26, %v1716_v33  ;;  %v1739_v18 = vadd.f32 %v1711_v38, %v1659_v42  ;;  %v9292_v1 = vunpack.c.h.bf16 %v1749_v4  ;;  %v9297_v14 = vunpack.c.l.bf16 %v1750_v23  ;;  %4699 = vmatpush1.bf16.msra.mxu1 %v8304_v24  ;;  %v8308_v42 = vld [vmem:[%s13473_s2 + $0x164] ss:$8 sps:$4 sm:$0xff]  }
  0x9f   : > { %14022 = vst [vmem:[#allocation54_spill] sm:$0xff] %v9285_v21  ;;  %14023 = vst [vmem:[#allocation55_spill] sm:$0xff] %v9290_v10  ;;  %v1741_v22 = vadd.f32 %v1717_v32, %v1661_v16  ;;  %v9299_v39 = vunpack.c.h.bf16 %v1750_v23  ;;  %v9301_v20 = vunpack.c.l.bf16 %v1751_v49  ;;  %v9303_v12 = vunpack.c.h.bf16 %v1751_v49  ;;  %4700 = vmatprep.subr.bf16.mxu1 %v8308_v42 }
  0xa0   : > { %14024 = vst [vmem:[#allocation56_spill] sm:$0xff] %v9297_v14  ;;  %v9307_v33 = vrot.slane %v8847_v51, %v8831_v43  ;;  %v9311_v26 = vrot.slane %v8849_v52, %v8831_v43  ;;  %v9315_v4 = vrot.slane %v8854_v55, %v8831_v43  ;;  %v9322_v49 = vrot.slane %v8858_v57, %v8831_v43  ;;  %v8314_v14 = vld [vmem:[%s13473_s2 + $0x174] ss:$8 sps:$4 sm:$0xff]  }
  0xa1   : > { %14025 = vst [vmem:[#allocation57_spill] sm:$0xff] %v9301_v20  ;;  %v9326_v23 = vrot.slane %v8866_v61, %v8831_v43  ;;  %v9330_v16 = vrot.slane %v8870_v63, %v8831_v43  ;;  %v14032_v38 = vunpack.c.h.bf16 %v9062_v36  ;;  %v14033_v24 = vunpack.c.l.bf16 %v9140_v7 }
  0xa2   : > { %14026 = vst [vmem:[#allocation58_spill] sm:$0xff] %v9307_v33  ;;  %14027 = vst [vmem:[#allocation59_spill] sm:$0xff] %v9311_v26  ;;  %v14034_v3 = vunpack.c.h.bf16 %v9140_v7  ;;  %v1783_v27 = vmul.f32 %v9311_v26, %v9137_v8  ;;  %v1860_v30 = vmul.f32 %v9315_v4, %v9137_v8  ;;  %4701 = vmatpush1.bf16.msra.mxu1 %v8310_v34 }
  0xa3   : > { %14028 = vst [vmem:[#allocation60_spill] sm:$0xff] %v9315_v4  ;;  %14029 = vst [vmem:[#allocation61_spill] sm:$0xff] %v9322_v49  ;;  %v1779_v32 = vmul.f32 %v9311_v26, %v14032_v38  ;;  %v9339_v50 = vmul.f32 %v9307_v33, %v14033_v24  ;;  %v1785_v38 = vmul.f32 %v9311_v26, %v9283_v2  ;;  %4702 = vmatprep.subr.bf16.mxu1 %v8314_v14  ;;  %v8320_v14 = vld [vmem:[%s13473_s2 + $0x184] ss:$8 sps:$4 sm:$0xff]  }
  0xa4   : > { %14030 = vst [vmem:[#allocation62_spill] sm:$0xff] %v9326_v23  ;;  %14031 = vst [vmem:[#allocation63_spill] sm:$0xff] %v9330_v16  ;;  %v1781_v46 = vmul.f32 %v9311_v26, %v14034_v3  ;;  %v1862_v24 = vmul.f32 %v9315_v4, %v9283_v2  ;;  %v1864_v3 = vmul.f32 %v9315_v4, %v9145_v48  ;;  %v1820_v20 = vrot.slane %v1783_v27, 3 }
  0xa5   : > { %v1814_v51 = vrot.slane %v1779_v32, 3  ;;  %v1821_v26 = vrot.slane %v1785_v38, 3  ;;  %v1866_v8 = vmul.f32 %v9315_v4, %v9287_v40  ;;  %v1894_v10 = vrot.slane %v1860_v30, 3 }
  0xa6   : > { %v1815_v42 = vrot.slane %v1781_v46, 3  ;;  %v1895_v21 = vrot.slane %v1862_v24, 3  ;;  %v1900_v53 = vrot.slane %v1864_v3, 3  ;;  %v1940_v29 = vmul.f32 %v9322_v49, %v9145_v48  ;;  %v8316_v46 = vld [vmem:[%s13473_s2 + $0x170] ss:$8 sps:$4 sm:$0xff]  }
  0xa7   : > { %v1942_v27 = vmul.f32 %v9322_v49, %v9287_v40  ;;  %v1822_v34 = vsel %vm1810_vm2, %v1820_v20, %v1821_v26  ;;  %v1901_v38 = vrot.slane %v1866_v8, 3  ;;  %v1946_v3 = vmul.f32 %v9322_v49, %v9292_v1  ;;  %4703 = vmatpush1.bf16.msra.mxu1 %v8316_v46 }
  0xa8   : > { %v1816_v43 = vsel %vm1810_vm2, %v1814_v51, %v1815_v42  ;;  %v1896_v30 = vsel %vm1810_vm2, %v1894_v10, %v1895_v21  ;;  %v1846_v24 = vadd.f32 %v1822_v34, %v1741_v22  ;;  %v1944_v51 = vmul.f32 %v9322_v49, %v9153_v31  ;;  %4704 = vmatprep.subr.bf16.mxu1 %v8320_v14 }
  0xa9   : > { %v1844_v32 = vadd.f32 %v1816_v43, %v1739_v18  ;;  %v1974_v42 = vrot.slane %v1940_v29, 3  ;;  %v1902_v20 = vsel %vm1810_vm2, %v1900_v53, %v1901_v38  ;;  %v1975_v18 = vrot.slane %v1942_v27, 3  ;;  %v8322_v29 = vld [vmem:[%s13473_s2 + $0x180] ss:$8 sps:$4 sm:$0xff]  }
  0xaa   : > { %v2020_v21 = vmul.f32 %v9326_v23, %v9153_v31  ;;  %v1926_v10 = vadd.f32 %v1902_v20, %v1846_v24  ;;  %v1980_v22 = vrot.slane %v1944_v51, 3  ;;  %v1981_v26 = vrot.slane %v1946_v3, 3  ;;  %v8326_v3 = vld [vmem:[%s13473_s2 + $0x194] ss:$8 sps:$4 sm:$0xff]  }
  0xab   : > { %v1924_v43 = vadd.f32 %v1896_v30, %v1844_v32  ;;  %v2022_v8 = vmul.f32 %v9326_v23, %v9292_v1  ;;  %v1976_v46 = vsel %vm1810_vm2, %v1974_v42, %v1975_v18  ;;  %v2024_v53 = vmul.f32 %v9326_v23, %v9157_v41  ;;  %v9394_v32 = vld [vmem:[%s8829_s12 + $0x10] sm:$0xcc]  ;;  %4705 = vmatpush1.bf16.msra.mxu1 %v8322_v29 }
  0xac   : > { %v2026_v27 = vmul.f32 %v9326_v23, %v9299_v39  ;;  %v2054_v34 = vrot.slane %v2020_v21, 3  ;;  %v1982_v30 = vsel %vm1810_vm2, %v1980_v22, %v1981_v26  ;;  %v2100_v51 = vmul.f32 %v9330_v16, %v9157_v41  ;;  %4706 = vmatprep.subr.bf16.mxu1 %v8326_v3  ;;  %v8332_v3 = vld [vmem:[%s13473_s2 + $0x1a4] ss:$8 sps:$4 sm:$0xff]  }
  0xad   : > { %v2004_v38 = vadd.f32 %v1976_v46, %v1924_v43  ;;  %v2055_v24 = vrot.slane %v2022_v8, 3  ;;  %v2006_v42 = vadd.f32 %v1982_v30, %v1926_v10  ;;  %v2060_v14 = vrot.slane %v2024_v53, 3  ;;  %v2173_v8 = vld [vmem:[%s8829_s12 + $0x20] sm:$0xcc]  ;;  %v8328_v10 = vld [vmem:[%s13473_s2 + $0x190] ss:$8 sps:$4 sm:$0xff]  }
  0xae   : > { %v2061_v20 = vrot.slane %v2026_v27, 3  ;;  %v2102_v18 = vmul.f32 %v9330_v16, %v9299_v39  ;;  %v2104_v43 = vmul.f32 %v9330_v16, %v9164_v5  ;;  %v2106_v22 = vmul.f32 %v9330_v16, %v9303_v12  ;;  %v2174_v27 = vld [vmem:[%s8829_s12 + $0x30] sm:$0xcc] }
  0xaf   : > { %v2056_v21 = vsel %vm1810_vm2, %v2054_v34, %v2055_v24  ;;  %v2134_v26 = vrot.slane %v2100_v51, 3  ;;  %v2175_v34 = vld [vmem:[%s8829_s12 + $0x40] sm:$0xcc]  ;;  %v2180_v30 = vunpack.c.h.bf16 %v9277_v25  ;;  %v2176_v16 = vld [vmem:[%s8829_s12 + $0x50] sm:$0xcc]  ;;  %4707 = vmatpush1.bf16.msra.mxu1 %v8328_v10 }
  0xb0   : > { %v2062_v29 = vsel %vm1810_vm2, %v2060_v14, %v2061_v20  ;;  %v2084_v46 = vadd.f32 %v2056_v21, %v2004_v38  ;;  %v2135_v53 = vrot.slane %v2102_v18, 3  ;;  %v2140_v23 = vrot.slane %v2104_v43, 3  ;;  %4708 = vmatprep.subr.bf16.mxu1 %v8332_v3  ;;  %v8334_v10 = vld [vmem:[%s13473_s2 + $0x1a0] ss:$8 sps:$4 sm:$0xff]  }
  0xb1   : > { %v2086_v24 = vadd.f32 %v2062_v29, %v2006_v42  ;;  %v2141_v49 = vrot.slane %v2106_v22, 3  ;;  %v2182_v38 = vunpack.c.h.bf16 %v9394_v32  ;;  %v9424_v20 = vunpack.c.l.bf16 %v2173_v8 }
  0xb2   : > { %v2136_v14 = vsel %vm1810_vm2, %v2134_v26, %v2135_v53  ;;  %v9426_v18 = vunpack.c.h.bf16 %v2173_v8  ;;  %v9429_v43 = vunpack.c.l.bf16 %v2174_v27  ;;  %v9431_v22 = vunpack.c.h.bf16 %v2174_v27  ;;  %v8338_v27 = vld [vmem:[%s13473_s2 + $0x1b4] ss:$8 sps:$4 sm:$0xff]  }
  0xb3   : > { %14035 = vst [vmem:[#allocation64_spill] sm:$0xff] %v9424_v20  ;;  %v2142_v42 = vsel %vm1810_vm2, %v2140_v23, %v2141_v49  ;;  %v2164_v21 = vadd.f32 %v2136_v14, %v2084_v46  ;;  %v9436_v26 = vunpack.c.l.bf16 %v2175_v34  ;;  %v9438_v53 = vunpack.c.h.bf16 %v2175_v34  ;;  %4709 = vmatpush1.bf16.msra.mxu1 %v8334_v10  ;;  %v8340_v14 = vld [vmem:[%s13473_s2 + $0x1b0] ss:$8 sps:$4 sm:$0xff]  }
  0xb4   : > { %14036 = vst [vmem:[#allocation65_spill] sm:$0xff] %v9429_v43  ;;  %v2166_v29 = vadd.f32 %v2142_v42, %v2086_v24  ;;  %v9440_v51 = vunpack.c.l.bf16 %v2176_v16  ;;  %v9442_v8 = vunpack.c.h.bf16 %v2176_v16  ;;  %v9446_v49 = vrot.slane %v8849_v52, %v8833_v44  ;;  %4710 = vmatprep.subr.bf16.mxu1 %v8338_v27  ;;  %v8344_v27 = vld [vmem:[%s13473_s2 + $0x1c4] ss:$8 sps:$4 sm:$0xff]  }
  0xb5   : > { %14037 = vst [vmem:[#allocation66_spill] sm:$0xff] %v9436_v26  ;;  %v9450_v23 = vrot.slane %v8854_v55, %v8833_v44  ;;  %v9454_v46 = vrot.slane %v8858_v57, %v8833_v44  ;;  %v9461_v16 = vrot.slane %v8866_v61, %v8833_v44  ;;  %v9465_v52 = vrot.slane %v8870_v63, %v8833_v44 }
  0xb6   : > { %14038 = vst [vmem:[#allocation67_spill] sm:$0xff] %v9440_v51  ;;  %14039 = vst [vmem:[#allocation68_spill] sm:$0xff] %v9446_v49  ;;  %v9469_v55 = vmul.f32 %v8909_v19, %v8878_v6  ;;  %v9473_v57 = vrot.slane %v8852_v54, %v8814_v37  ;;  %v2204_v34 = vmul.f32 %v9446_v49, %v2180_v30  ;;  %v14041_v24 = vunpack.c.h.bf16 %v9140_v7 }
  0xb7   : > { %14040 = vst [vmem:[#allocation69_spill] sm:$0xff] %v9450_v23  ;;  %v2208_v61 = vmul.f32 %v9446_v49, %v2182_v38  ;;  %v2210_v63 = vmul.f32 %v9446_v49, %v9283_v2  ;;  %v2285_v42 = vmul.f32 %v9450_v23, %v2182_v38  ;;  %v2287_v10 = vmul.f32 %v9450_v23, %v9283_v2 }
  0xb8   : > { %v2206_v3 = vmul.f32 %v9446_v49, %v14041_v24  ;;  %v2289_v30 = vmul.f32 %v9450_v23, %v9426_v18  ;;  %v2291_v24 = vmul.f32 %v9450_v23, %v9287_v40  ;;  %v2239_v19 = vrot.slane %v2204_v34, 4  ;;  %4711 = vmatpush1.bf16.msra.mxu1 %v8340_v14 }
  0xb9   : > { %v2245_v5 = vrot.slane %v2208_v61, 4  ;;  %v2246_v49 = vrot.slane %v2210_v63, 4  ;;  %v2319_v41 = vrot.slane %v2285_v42, 4  ;;  %v2320_v38 = vrot.slane %v2287_v10, 4  ;;  %4712 = vmatprep.subr.bf16.mxu1 %v8344_v27  ;;  %v8350_v10 = vld [vmem:[%s13473_s2 + $0x1d4] ss:$8 sps:$4 sm:$0xff]  }
  0xba   : > { %v2240_v4 = vrot.slane %v2206_v3, 4  ;;  %v2325_v31 = vrot.slane %v2289_v30, 4  ;;  %v2326_v48 = vrot.slane %v2291_v24, 4  ;;  %v2365_v23 = vmul.f32 %v9454_v46, %v9426_v18  ;;  %v8346_v3 = vld [vmem:[%s13473_s2 + $0x1c0] ss:$8 sps:$4 sm:$0xff]  }
  0xbb   : > { %v2247_v51 = vsel %vm2235_vm3, %v2245_v5, %v2246_v49  ;;  %v2367_v34 = vmul.f32 %v9454_v46, %v9287_v40  ;;  %v2321_v14 = vsel %vm2235_vm3, %v2319_v41, %v2320_v38  ;;  %v2371_v5 = vmul.f32 %v9454_v46, %v9292_v1  ;;  %v8352_v24 = vld [vmem:[%s13473_s2 + $0x1d0] ss:$8 sps:$4 sm:$0xff]  }
  0xbc   : > { %v2241_v2 = vsel %vm2235_vm3, %v2239_v19, %v2240_v4  ;;  %v2271_v63 = vadd.f32 %v2247_v51, %v2166_v29  ;;  %v2327_v42 = vsel %vm2235_vm3, %v2325_v31, %v2326_v48  ;;  %v2369_v19 = vmul.f32 %v9454_v46, %v9431_v22  ;;  %4713 = vmatpush1.bf16.msra.mxu1 %v8346_v3 }
  0xbd   : > { %v2269_v61 = vadd.f32 %v2241_v2, %v2164_v21  ;;  %v2399_v4 = vrot.slane %v2365_v23, 4  ;;  %v2400_v49 = vrot.slane %v2367_v34, 4  ;;  %v2445_v41 = vmul.f32 %v9461_v16, %v9431_v22  ;;  %4714 = vmatprep.subr.bf16.mxu1 %v8350_v10 }
  0xbe   : > { %v2351_v21 = vadd.f32 %v2327_v42, %v2271_v63  ;;  %v2447_v48 = vmul.f32 %v9461_v16, %v9292_v1  ;;  %v2405_v51 = vrot.slane %v2369_v19, 4  ;;  %v2406_v29 = vrot.slane %v2371_v5, 4  ;;  %v8356_v42 = vld [vmem:[%s13473_s2 + $0x1e4] ss:$8 sps:$4 sm:$0xff]  }
  0xbf   : > { %v2349_v30 = vadd.f32 %v2321_v14, %v2269_v61  ;;  %v2401_v31 = vsel %vm2235_vm3, %v2399_v4, %v2400_v49  ;;  %v2449_v23 = vmul.f32 %v9461_v16, %v9438_v53  ;;  %v2451_v38 = vmul.f32 %v9461_v16, %v9299_v39 }
  0xc0   : > { %v2479_v2 = vrot.slane %v2445_v41, 4  ;;  %v2480_v34 = vrot.slane %v2447_v48, 4  ;;  %v2407_v3 = vsel %vm2235_vm3, %v2405_v51, %v2406_v29  ;;  %v2525_v63 = vmul.f32 %v9465_v52, %v9438_v53  ;;  %4715 = vmatpush1.bf16.msra.mxu1 %v8352_v24 }
  0xc1   : > { %v2429_v27 = vadd.f32 %v2401_v31, %v2349_v30  ;;  %v2485_v61 = vrot.slane %v2449_v23, 4  ;;  %v2527_v14 = vmul.f32 %v9465_v52, %v9299_v39  ;;  %v2431_v19 = vadd.f32 %v2407_v3, %v2351_v21  ;;  %4716 = vmatprep.subr.bf16.mxu1 %v8356_v42  ;;  %v8358_v31 = vld [vmem:[%s13473_s2 + $0x1e0] ss:$8 sps:$4 sm:$0xff]  }
  0xc2   : > { %v2481_v5 = vsel %vm2235_vm3, %v2479_v2, %v2480_v34  ;;  %v2486_v4 = vrot.slane %v2451_v38, 4  ;;  %v2529_v49 = vmul.f32 %v9465_v52, %v9442_v8  ;;  %v2531_v30 = vmul.f32 %v9465_v52, %v9303_v12 }
  0xc3   : > { %v2509_v10 = vadd.f32 %v2481_v5, %v2429_v27  ;;  %v2559_v41 = vrot.slane %v2525_v63, 4  ;;  %v2560_v48 = vrot.slane %v2527_v14, 4  ;;  %v808_v29 = vmul.f32 %v9473_v57, %v8878_v6 }
  0xc4   : > { %v2487_v51 = vsel %vm2235_vm3, %v2485_v61, %v2486_v4  ;;  %v2565_v21 = vrot.slane %v2529_v49, 4  ;;  %v810_v23 = vmul.f32 %v9473_v57, %v8885_v9  ;;  %v2566_v38 = vrot.slane %v2531_v30, 4  ;;  %4717 = vmatpush1.bf16.msra.mxu1 %v8358_v31 }
  0xc5   : > { %v2511_v24 = vadd.f32 %v2487_v51, %v2431_v19  ;;  %v2561_v27 = vsel %vm2235_vm3, %v2559_v41, %v2560_v48  ;;  %v9549_v2 = vrot.slane %v8856_v56, %v8814_v37  ;;  %v816_v3 = vadd.f32 %v808_v29, %v8939_v28 }
  0xc6   : > { %v2589_v34 = vadd.f32 %v2561_v27, %v2509_v10  ;;  %v818_v61 = vadd.f32 %v810_v23, %v9469_v55  ;;  %v9555_v63 = vrot.slane %v8864_v60, %v8814_v37  ;;  %v2567_v14 = vsel %vm2235_vm3, %v2565_v21, %v2566_v38 }
  0xc7   : > { %v832_v42 = vmul.f32 %v9549_v2, %v8885_v9  ;;  %v834_v19 = vmul.f32 %v9549_v2, %v8889_v11  ;;  %v9564_v5 = vrot.slane %v8868_v62, %v8814_v37  ;;  %v2591_v4 = vadd.f32 %v2567_v14, %v2511_v24 }
  0xc8   : > { %v856_v28 = vmul.f32 %v9555_v63, %v8889_v11  ;;  %v858_v55 = vmul.f32 %v9555_v63, %v8899_v15  ;;  %v14042_v49 = vunpack.c.l.bf16 %v8861_v58  ;;  %v932_v21 = vmul.f32 %v9004_v35, %v8878_v6 }
  0xc9   : > { %v840_v30 = vadd.f32 %v832_v42, %v816_v3  ;;  %v842_v41 = vadd.f32 %v834_v19, %v818_v61  ;;  %v880_v48 = vmul.f32 %v9564_v5, %v8899_v15  ;;  %v882_v31 = vmul.f32 %v9564_v5, %v8903_v17 }
  0xca   : > { %v928_v10 = vmul.f32 %v9004_v35, %v14042_v49  ;;  %v2597_v51 = vpack.c.bf16 %v2591_v4, %v2589_v34  ;;  %v934_v29 = vmul.f32 %v9004_v35, %v8970_v0  ;;  %v1009_v27 = vmul.f32 %v9015_v59, %v8878_v6  ;;  %v14054_v35 = vld [vmem:[#allocation6_spill] sm:$0xff] }
  0xcb   : > { %v864_v24 = vadd.f32 %v856_v28, %v840_v30  ;;  %v866_v58 = vadd.f32 %v858_v55, %v842_v41  ;;  %v1011_v38 = vmul.f32 %v9015_v59, %v8970_v0  ;;  %v14043_v3 = vrot.slane %v9031_v47, 1  ;;  %v14044_v28 = vld [vmem:[#allocation20_spill] sm:$0xff] }
  0xcc   : > { %v961_v23 = vrot.slane %v928_v10, 1  ;;  %4933 = vmatprep.mubr.bf16.mxu0 %v2597_v51  ;;  %v967_v61 = vrot.slane %v932_v21, 1  ;;  %v968_v14 = vrot.slane %v934_v29, 1  ;;  %v1013_v42 = vmul.f32 %v9015_v59, %v8885_v9  ;;  %v14045_v41 = vld [vmem:[#allocation32_spill] sm:$0xff] }
  0xcd   : > { %v888_v19 = vadd.f32 %v880_v48, %v864_v24  ;;  %v890_v4 = vadd.f32 %v882_v31, %v866_v58  ;;  %v1015_v55 = vmul.f32 %v9015_v59, %v14044_v28  ;;  %v1041_v49 = vrot.slane %v1009_v27, 1  ;;  %v14046_v24 = vld [vmem:[#allocation22_spill] sm:$0xff] }
  0xce   : > { %v963_v34 = vsel %vm960_vm0, %v961_v23, %v14043_v3  ;;  %v969_v6 = vsel %vm960_vm0, %v967_v61, %v968_v14  ;;  %v1042_v10 = vrot.slane %v1011_v38, 1  ;;  %v1047_v30 = vrot.slane %v1013_v42, 1  ;;  %v14053_v59 = vld [vmem:[#allocation38_spill] sm:$0xff] }
  0xcf   : > { %v1089_v47 = vmul.f32 %v14045_v41, %v8885_v9  ;;  %v993_v51 = vadd.f32 %v963_v34, %v888_v19  ;;  %v995_v23 = vadd.f32 %v969_v6, %v890_v4  ;;  %v1048_v21 = vrot.slane %v1015_v55, 1  ;;  %v14047_v34 = vld [vmem:[#allocation34_spill] sm:$0xff] }
  0xd0   : > { %v1091_v29 = vmul.f32 %v14045_v41, %v14044_v28  ;;  %v1043_v48 = vsel %vm960_vm0, %v1041_v49, %v1042_v10  ;;  %v1093_v31 = vmul.f32 %v14045_v41, %v8889_v11  ;;  %v1095_v58 = vmul.f32 %v14045_v41, %v14046_v24  ;;  %v14048_v10 = vld [vmem:[#allocation24_spill] sm:$0xff] }
  0xd1   : > { %v1121_v27 = vrot.slane %v1089_v47, 1  ;;  %v1049_v38 = vsel %vm960_vm0, %v1047_v30, %v1048_v21  ;;  %v1073_v3 = vadd.f32 %v1043_v48, %v993_v51  ;;  %v1169_v14 = vmul.f32 %v14047_v34, %v8889_v11 }
  0xd2   : > { %v1122_v61 = vrot.slane %v1091_v29, 1  ;;  %v1075_v42 = vadd.f32 %v1049_v38, %v995_v23  ;;  %v1127_v19 = vrot.slane %v1093_v31, 1  ;;  %v1128_v4 = vrot.slane %v1095_v58, 1  ;;  %v14049_v23 = vld [vmem:[#allocation36_spill] sm:$0xff] }
  0xd3   : > { %v1171_v55 = vmul.f32 %v14047_v34, %v14046_v24  ;;  %v1173_v6 = vmul.f32 %v14047_v34, %v8899_v15  ;;  %v1175_v47 = vmul.f32 %v14047_v34, %v14048_v10  ;;  %v1201_v30 = vrot.slane %v1169_v14, 1  ;;  %v14050_v34 = vld [vmem:[#allocation26_spill] sm:$0xff] }
  0xd4   : > { %v1123_v49 = vsel %vm960_vm0, %v1121_v27, %v1122_v61  ;;  %v1129_v51 = vsel %vm960_vm0, %v1127_v19, %v1128_v4  ;;  %v1249_v48 = vmul.f32 %v14049_v23, %v8899_v15  ;;  %v1251_v27 = vmul.f32 %v14049_v23, %v14048_v10 }
  0xd5   : > { %v1153_v21 = vadd.f32 %v1123_v49, %v1073_v3  ;;  %v1202_v29 = vrot.slane %v1171_v55, 1  ;;  %v1155_v31 = vadd.f32 %v1129_v51, %v1075_v42  ;;  %v1207_v58 = vrot.slane %v1173_v6, 1  ;;  %v14052_v49 = vld [vmem:[#allocation47_spill] sm:$0xff] }
  0xd6   : > { %v1208_v38 = vrot.slane %v1175_v47, 1  ;;  %v1253_v37 = vmul.f32 %v14049_v23, %v8903_v17  ;;  %v1255_v14 = vmul.f32 %v14049_v23, %v14050_v34  ;;  %v1281_v19 = vrot.slane %v1249_v48, 1 }
  0xd7   : > { %v1203_v61 = vsel %vm960_vm0, %v1201_v30, %v1202_v29  ;;  %v1282_v55 = vrot.slane %v1251_v27, 1  ;;  %v14051_v42 = vunpack.c.l.bf16 %v8894_v13  ;;  %v1357_v30 = vmul.f32 %v14052_v49, %v14053_v59 }
  0xd8   : > { %v1209_v3 = vsel %vm960_vm0, %v1207_v58, %v1208_v38  ;;  %v1233_v4 = vadd.f32 %v1203_v61, %v1153_v21  ;;  %v1287_v51 = vrot.slane %v1253_v37, 1  ;;  %v1288_v41 = vrot.slane %v1255_v14, 1 }
  0xd9   : > { %v1355_v6 = vmul.f32 %v14052_v49, %v14051_v42  ;;  %v1235_v47 = vadd.f32 %v1209_v3, %v1155_v31  ;;  %v1283_v29 = vsel %vm960_vm0, %v1281_v19, %v1282_v55  ;;  %v1359_v23 = vmul.f32 %v14052_v49, %v8970_v0 }
  0xda   : > { %v9633_v21 = vrot.slane %v8852_v54, %v14054_v35  ;;  %v1289_v13 = vsel %vm960_vm0, %v1287_v51, %v1288_v41  ;;  %v1313_v58 = vadd.f32 %v1283_v29, %v1233_v4  ;;  %v1392_v38 = vrot.slane %v1357_v30, 2  ;;  %v14058_v41 = vld [vmem:[#allocation39_spill] sm:$0xff] }
  0xdb   : > { %v1387_v48 = vrot.slane %v1355_v6, 2  ;;  %v9638_v37 = vrot.slane %v8856_v56, %v14054_v35  ;;  %v1315_v31 = vadd.f32 %v1289_v13, %v1235_v47  ;;  %v14057_v27 = vrot.slane %v9194_v45, 2 }
  0xdc   : > { %14055 = vst [vmem:[#allocation20_spill] sm:$0xff] %v9633_v21  ;;  %v1393_v14 = vrot.slane %v1359_v23, 2  ;;  %v1434_v19 = vmul.f32 %v9633_v21, %v14053_v59  ;;  %v1436_v55 = vmul.f32 %v9633_v21, %v8970_v0  ;;  %v1438_v4 = vmul.f32 %v9633_v21, %v14058_v41  ;;  %v14059_v0 = vld [vmem:[#allocation41_spill] sm:$0xff] }
  0xdd   : > { %14056 = vst [vmem:[#allocation26_spill] sm:$0xff] %v9638_v37  ;;  %v1388_v61 = vsel %vm1385_vm1, %v14057_v27, %v1387_v48  ;;  %v1440_v42 = vmul.f32 %v9633_v21, %v14044_v28  ;;  %v1514_v45 = vmul.f32 %v9638_v37, %v14058_v41  ;;  %v1516_v23 = vmul.f32 %v9638_v37, %v14044_v28 }
  0xde   : > { %v1418_v3 = vadd.f32 %v1388_v61, %v1313_v58  ;;  %v1394_v6 = vsel %vm1385_vm1, %v1392_v38, %v1393_v14  ;;  %v1466_v47 = vrot.slane %v1434_v19, 2  ;;  %v1467_v30 = vrot.slane %v1436_v55, 2 }
  0xdf   : > { %v1420_v51 = vadd.f32 %v1394_v6, %v1315_v31  ;;  %v1472_v29 = vrot.slane %v1438_v4, 2  ;;  %v1473_v48 = vrot.slane %v1440_v42, 2  ;;  %v1518_v13 = vmul.f32 %v9638_v37, %v14059_v0 }
  0xe0   : > { %v1520_v58 = vmul.f32 %v9638_v37, %v14046_v24  ;;  %v1546_v27 = vrot.slane %v1514_v45, 2  ;;  %v1547_v61 = vrot.slane %v1516_v23, 2  ;;  %v1468_v38 = vsel %vm1385_vm1, %v1466_v47, %v1467_v30  ;;  %v14062_v23 = vld [vmem:[#allocation43_spill] sm:$0xff] }
  0xe1   : > { %v1474_v14 = vsel %vm1385_vm1, %v1472_v29, %v1473_v48  ;;  %v9664_v19 = vrot.slane %v8864_v60, %v14054_v35  ;;  %v9668_v31 = vrot.slane %v8868_v62, %v14054_v35  ;;  %v1498_v55 = vadd.f32 %v1468_v38, %v1418_v3  ;;  %v14063_v35 = vld [vmem:[#allocation45_spill] sm:$0xff] }
  0xe2   : > { %v1500_v4 = vadd.f32 %v1474_v14, %v1420_v51  ;;  %v1548_v42 = vsel %vm1385_vm1, %v1546_v27, %v1547_v61  ;;  %v1552_v6 = vrot.slane %v1518_v13, 2  ;;  %v1553_v37 = vrot.slane %v1520_v58, 2 }
  0xe3   : > { %14060 = vst [vmem:[#allocation38_spill] sm:$0xff] %v9664_v19  ;;  %14061 = vst [vmem:[#allocation39_spill] sm:$0xff] %v9668_v31  ;;  %v1594_v45 = vmul.f32 %v9664_v19, %v14059_v0  ;;  %v1596_v47 = vmul.f32 %v9664_v19, %v14046_v24  ;;  %v1598_v30 = vmul.f32 %v9664_v19, %v14062_v23  ;;  %v14064_v24 = vunpack.c.l.bf16 %v9062_v36 }
  0xe4   : > { %v1578_v29 = vadd.f32 %v1548_v42, %v1498_v55  ;;  %v1600_v48 = vmul.f32 %v9664_v19, %v14048_v10  ;;  %v1674_v3 = vmul.f32 %v9668_v31, %v14062_v23  ;;  %v1676_v51 = vmul.f32 %v9668_v31, %v14048_v10 }
  0xe5   : > { %v1554_v13 = vsel %vm1385_vm1, %v1552_v6, %v1553_v37  ;;  %v1626_v58 = vrot.slane %v1594_v45, 2  ;;  %v1627_v27 = vrot.slane %v1596_v47, 2  ;;  %v1632_v61 = vrot.slane %v1598_v30, 2 }
  0xe6   : > { %v1580_v38 = vadd.f32 %v1554_v13, %v1500_v4  ;;  %v1633_v14 = vrot.slane %v1600_v48, 2  ;;  %v1678_v21 = vmul.f32 %v9668_v31, %v14063_v35  ;;  %v1680_v55 = vmul.f32 %v9668_v31, %v14050_v34  ;;  %v14065_v13 = vld [vmem:[#allocation53_spill] sm:$0xff] }
  0xe7   : > { %v1628_v42 = vsel %vm1385_vm1, %v1626_v58, %v1627_v27  ;;  %v1706_v19 = vrot.slane %v1674_v3, 2  ;;  %v1707_v49 = vrot.slane %v1676_v51, 2  ;;  %v1778_v10 = vmul.f32 %v9307_v33, %v14064_v24  ;;  %v14066_v27 = vld [vmem:[#allocation7_spill] sm:$0xff] }
  0xe8   : > { %v1634_v37 = vsel %vm1385_vm1, %v1632_v61, %v1633_v14  ;;  %v1658_v6 = vadd.f32 %v1628_v42, %v1578_v29  ;;  %v1712_v45 = vrot.slane %v1678_v21, 2  ;;  %v1713_v4 = vrot.slane %v1680_v55, 2 }
  0xe9   : > { %v1660_v47 = vadd.f32 %v1634_v37, %v1580_v38  ;;  %v1708_v30 = vsel %vm1385_vm1, %v1706_v19, %v1707_v49  ;;  %v1782_v48 = vmul.f32 %v9307_v33, %v14053_v59  ;;  %v1784_v58 = vmul.f32 %v9307_v33, %v14065_v13 }
  0xea   : > { %v1714_v3 = vsel %vm1385_vm1, %v1712_v45, %v1713_v4  ;;  %v1738_v51 = vadd.f32 %v1708_v30, %v1658_v6  ;;  %v1811_v36 = vrot.slane %v1778_v10, 3  ;;  %v9701_v24 = vrot.slane %v8852_v54, %v14066_v27  ;;  %v14070_v6 = vld [vmem:[#allocation54_spill] sm:$0xff] }
  0xeb   : > { %v1740_v29 = vadd.f32 %v1714_v3, %v1660_v47  ;;  %v1817_v21 = vrot.slane %v1782_v48, 3  ;;  %v1818_v61 = vrot.slane %v1784_v58, 3  ;;  %v9705_v49 = vrot.slane %v8856_v56, %v14066_v27 }
  0xec   : > { %14067 = vst [vmem:[#allocation41_spill] sm:$0xff] %v9701_v24  ;;  %v14069_v19 = vrot.slane %v9339_v50, 3  ;;  %v1859_v14 = vmul.f32 %v9701_v24, %v14053_v59  ;;  %v1861_v10 = vmul.f32 %v9701_v24, %v14065_v13  ;;  %v1863_v55 = vmul.f32 %v9701_v24, %v14058_v41 }
  0xed   : > { %14068 = vst [vmem:[#allocation43_spill] sm:$0xff] %v9705_v49  ;;  %v1819_v42 = vsel %vm1810_vm2, %v1817_v21, %v1818_v61  ;;  %v1865_v45 = vmul.f32 %v9701_v24, %v14070_v6  ;;  %v1939_v50 = vmul.f32 %v9705_v49, %v14058_v41  ;;  %v1941_v58 = vmul.f32 %v9705_v49, %v14070_v6 }
  0xee   : > { %v1813_v38 = vsel %vm1810_vm2, %v1811_v36, %v14069_v19  ;;  %v1845_v4 = vadd.f32 %v1819_v42, %v1740_v29  ;;  %v1891_v47 = vrot.slane %v1859_v14, 3  ;;  %v1892_v30 = vrot.slane %v1861_v10, 3  ;;  %v14071_v36 = vld [vmem:[#allocation55_spill] sm:$0xff] }
  0xef   : > { %v1843_v37 = vadd.f32 %v1813_v38, %v1738_v51  ;;  %v1897_v48 = vrot.slane %v1863_v55, 3  ;;  %v1898_v59 = vrot.slane %v1865_v45, 3  ;;  %v1943_v3 = vmul.f32 %v9705_v49, %v14059_v0 }
  0xf0   : > { %v1945_v51 = vmul.f32 %v9705_v49, %v14071_v36  ;;  %v1893_v21 = vsel %vm1810_vm2, %v1891_v47, %v1892_v30  ;;  %v1971_v61 = vrot.slane %v1939_v50, 3  ;;  %v9730_v19 = vrot.slane %v8864_v60, %v14066_v27 }
  0xf1   : > { %v9734_v29 = vrot.slane %v8868_v62, %v14066_v27  ;;  %v1899_v38 = vsel %vm1810_vm2, %v1897_v48, %v1898_v59  ;;  %v1923_v14 = vadd.f32 %v1893_v21, %v1843_v37  ;;  %v1972_v10 = vrot.slane %v1941_v58, 3  ;;  %v14074_v27 = vld [vmem:[#allocation56_spill] sm:$0xff] }
  0xf2   : > { %14072 = vst [vmem:[#allocation45_spill] sm:$0xff] %v9730_v19  ;;  %v1977_v55 = vrot.slane %v1943_v3, 3  ;;  %v1925_v42 = vadd.f32 %v1899_v38, %v1845_v4  ;;  %v1978_v45 = vrot.slane %v1945_v51, 3  ;;  %v2019_v49 = vmul.f32 %v9730_v19, %v14059_v0 }
  0xf3   : > { %14073 = vst [vmem:[#allocation53_spill] sm:$0xff] %v9734_v29  ;;  %v2021_v50 = vmul.f32 %v9730_v19, %v14071_v36  ;;  %v1973_v47 = vsel %vm1810_vm2, %v1971_v61, %v1972_v10  ;;  %v2023_v30 = vmul.f32 %v9730_v19, %v14062_v23  ;;  %v2025_v24 = vmul.f32 %v9730_v19, %v14074_v27  ;;  %v14075_v19 = vld [vmem:[#allocation57_spill] sm:$0xff] }
  0xf4   : > { %v2099_v37 = vmul.f32 %v9734_v29, %v14062_v23  ;;  %v1979_v4 = vsel %vm1810_vm2, %v1977_v55, %v1978_v45  ;;  %v2003_v48 = vadd.f32 %v1973_v47, %v1923_v14  ;;  %v2051_v59 = vrot.slane %v2019_v49, 3 }
  0xf5   : > { %v2052_v58 = vrot.slane %v2021_v50, 3  ;;  %v2005_v3 = vadd.f32 %v1979_v4, %v1925_v42  ;;  %v2057_v51 = vrot.slane %v2023_v30, 3  ;;  %v2058_v21 = vrot.slane %v2025_v24, 3  ;;  %v14076_v42 = vld [vmem:[#allocation9_spill] sm:$0xff] }
  0xf6   : > { %v2101_v61 = vmul.f32 %v9734_v29, %v14074_v27  ;;  %v2103_v10 = vmul.f32 %v9734_v29, %v14063_v35  ;;  %v2105_v33 = vmul.f32 %v9734_v29, %v14075_v19  ;;  %v2131_v31 = vrot.slane %v2099_v37, 3 }
  0xf7   : > { %v2053_v38 = vsel %vm1810_vm2, %v2051_v59, %v2052_v58  ;;  %v2059_v55 = vsel %vm1810_vm2, %v2057_v51, %v2058_v21  ;;  %v9759_v45 = vrot.slane %v14076_v42, %v8833_v44  ;;  %v9763_v30 = vrot.slane %v8852_v54, %v8833_v44 }
  0xf8   : > { %v2083_v14 = vadd.f32 %v2053_v38, %v2003_v48  ;;  %v2132_v49 = vrot.slane %v2101_v61, 3  ;;  %v2085_v24 = vadd.f32 %v2059_v55, %v2005_v3  ;;  %v2137_v50 = vrot.slane %v2103_v10, 3 }
  0xf9   : > { %14077 = vst [vmem:[#allocation54_spill] sm:$0xff] %v9759_v45  ;;  %v2138_v47 = vrot.slane %v2105_v33, 3  ;;  %14078 = vst [vmem:[#allocation9_spill] sm:$0xff] %v9763_v30  ;;  %v14079_v59 = vunpack.c.l.bf16 %v9277_v25  ;;  %v14080_v48 = vunpack.c.l.bf16 %v9140_v7  ;;  %v14081_v51 = vunpack.c.l.bf16 %v9394_v32 }
  0xfa   : > { %v2133_v4 = vsel %vm1810_vm2, %v2131_v31, %v2132_v49  ;;  %v2209_v54 = vmul.f32 %v9759_v45, %v14065_v13  ;;  %v2286_v49 = vmul.f32 %v9763_v30, %v14065_v13  ;;  %v2288_v42 = vmul.f32 %v9763_v30, %v9424_v20 }
  0xfb   : > { %v2203_v37 = vmul.f32 %v9759_v45, %v14079_v59  ;;  %v2205_v58 = vmul.f32 %v9759_v45, %v14080_v48  ;;  %v2207_v3 = vmul.f32 %v9759_v45, %v14081_v51  ;;  %v2139_v33 = vsel %vm1810_vm2, %v2137_v50, %v2138_v47 }
  0xfc   : > { %v2163_v21 = vadd.f32 %v2133_v4, %v2083_v14  ;;  %v14082_v31 = vmov %v14081_v51  ;;  %v2165_v61 = vadd.f32 %v2139_v33, %v2085_v24  ;;  %v2243_v55 = vrot.slane %v2209_v54, 4 }
  0xfd   : > { %v2284_v25 = vmul.f32 %v9763_v30, %v14082_v31  ;;  %v2236_v38 = vrot.slane %v2203_v37, 4  ;;  %v2237_v10 = vrot.slane %v2205_v58, 4  ;;  %v2242_v7 = vrot.slane %v2207_v3, 4 }
  0xfe   : > { %v2290_v14 = vmul.f32 %v9763_v30, %v14070_v6  ;;  %v9790_v32 = vrot.slane %v8856_v56, %v8833_v44  ;;  %v9794_v24 = vrot.slane %v8864_v60, %v8833_v44  ;;  %v2317_v59 = vrot.slane %v2286_v49, 4  ;;  %v9812_v49 = vld [vmem:[%s8829_s12 + $0x60] sm:$0xff] }
  0xff   : > { %v2238_v50 = vsel %vm2235_vm3, %v2236_v38, %v2237_v10  ;;  %v2316_v47 = vrot.slane %v2284_v25, 4  ;;  %v2244_v4 = vsel %vm2235_vm3, %v2242_v7, %v2243_v55  ;;  %v2322_v37 = vrot.slane %v2288_v42, 4 }
 0x100   : > { %14083 = vst [vmem:[#allocation70_spill] sm:$0xff] %v9790_v32  ;;  %14084 = vst [vmem:[#allocation71_spill] sm:$0xff] %v9794_v24  ;;  %v2268_v13 = vadd.f32 %v2238_v50, %v2163_v21  ;;  %v2270_v48 = vadd.f32 %v2244_v4, %v2165_v61  ;;  %v2323_v58 = vrot.slane %v2290_v14, 4  ;;  %v2364_v51 = vmul.f32 %v9790_v32, %v9424_v20 }
 0x101   : > { %v2366_v3 = vmul.f32 %v9790_v32, %v14070_v6  ;;  %v2318_v56 = vsel %vm2235_vm3, %v2316_v47, %v2317_v59  ;;  %v2368_v60 = vmul.f32 %v9790_v32, %v9429_v43  ;;  %v2370_v33 = vmul.f32 %v9790_v32, %v14071_v36 }
 0x102   : > { %v2444_v21 = vmul.f32 %v9794_v24, %v9429_v43  ;;  %v2324_v54 = vsel %vm2235_vm3, %v2322_v37, %v2323_v58  ;;  %v2348_v31 = vadd.f32 %v2318_v56, %v2268_v13  ;;  %v2396_v25 = vrot.slane %v2364_v51, 4 }
 0x103   : > { %v2397_v61 = vrot.slane %v2366_v3, 4  ;;  %v2350_v38 = vadd.f32 %v2324_v54, %v2270_v48  ;;  %v2402_v10 = vrot.slane %v2368_v60, 4  ;;  %v2403_v7 = vrot.slane %v2370_v33, 4  ;;  %v9825_v48 = vld [vmem:[%s8829_s12 + $0x70] sm:$0xff]  ;;  %v14086_v54 = vld [vmem:[#allocation67_spill] sm:$0xff] }
 0x104   : > { %v2446_v55 = vmul.f32 %v9794_v24, %v14071_v36  ;;  %v2448_v14 = vmul.f32 %v9794_v24, %v9436_v26  ;;  %v2450_v50 = vmul.f32 %v9794_v24, %v14074_v27  ;;  %v2476_v47 = vrot.slane %v2444_v21, 4 }
 0x105   : > { %v2398_v42 = vsel %vm2235_vm3, %v2396_v25, %v2397_v61  ;;  %v2404_v4 = vsel %vm2235_vm3, %v2402_v10, %v2403_v7  ;;  %v9822_v37 = vrot.slane %v8868_v62, %v8833_v44  ;;  %v9828_v56 = vunpack.c.h.bf16 %v9812_v49 }
 0x106   : > { %v2428_v13 = vadd.f32 %v2398_v42, %v2348_v31  ;;  %v2477_v59 = vrot.slane %v2446_v55, 4  ;;  %v2430_v58 = vadd.f32 %v2404_v4, %v2350_v38  ;;  %v2482_v51 = vrot.slane %v2448_v14, 4 }
 0x107   : > { %14085 = vst [vmem:[#allocation72_spill] sm:$0xff] %v9822_v37  ;;  %v2483_v3 = vrot.slane %v2450_v50, 4  ;;  %v2524_v33 = vmul.f32 %v9822_v37, %v9436_v26  ;;  %v2526_v21 = vmul.f32 %v9822_v37, %v14074_v27  ;;  %v2528_v62 = vmul.f32 %v9822_v37, %v14086_v54  ;;  %v14087_v50 = vld [vmem:[#allocation10_spill] sm:$0xff]  ;;  %v14095_v26 = vld [vmem:[#allocation19_spill] sm:$0xff] }
 0x108   : > { %v2478_v60 = vsel %vm2235_vm3, %v2476_v47, %v2477_v59  ;;  %v2530_v61 = vmul.f32 %v9822_v37, %v14075_v19  ;;  %v14088_v47 = vld [vmem:[#allocation15_spill] sm:$0xff]  ;;  %v14094_v54 = vld [vmem:[#allocation18_spill] sm:$0xff]  ;;  %v885_v30 = vmul.f32 %v14095_v26, %v9828_v56 }
 0x109   : > { %v2484_v31 = vsel %vm2235_vm3, %v2482_v51, %v2483_v3  ;;  %v2508_v25 = vadd.f32 %v2478_v60, %v2428_v13  ;;  %v2556_v7 = vrot.slane %v2524_v33, 4  ;;  %v2557_v55 = vrot.slane %v2526_v21, 4  ;;  %v14089_v59 = vld [vmem:[#allocation11_spill] sm:$0xff]  ;;  %v14090_v51 = vld [vmem:[#allocation16_spill] sm:$0xff]  ;;  %v14093_v21 = vld [vmem:[#allocation13_spill] sm:$0xff] }
 0x10a   : > { %v2510_v10 = vadd.f32 %v2484_v31, %v2430_v58  ;;  %v2562_v42 = vrot.slane %v2528_v62, 4  ;;  %v2563_v14 = vrot.slane %v2530_v61, 4  ;;  %v789_v4 = vmul.f32 %v14088_v47, %v14087_v50  ;;  %v14091_v60 = vld [vmem:[#allocation12_spill] sm:$0xff]  ;;  %v14092_v58 = vld [vmem:[#allocation17_spill] sm:$0xff]  ;;  %v9855_v31 = vld [vmem:[%s8829_s12 + $0x68] sm:$0x11] }
 0x10b   : > { %v791_v44 = vmul.f32 %v14088_v47, %v14089_v59  ;;  %v813_v13 = vmul.f32 %v14090_v51, %v14089_v59  ;;  %v2558_v3 = vsel %vm2235_vm3, %v2556_v7, %v2557_v55  ;;  %v815_v37 = vmul.f32 %v14090_v51, %v14091_v60  ;;  %v9858_v61 = vld [vmem:[%s8829_s12 + $0x78] sm:$0x11] }
 0x10c   : > { %v837_v33 = vmul.f32 %v14092_v58, %v14091_v60  ;;  %v839_v62 = vmul.f32 %v14092_v58, %v14093_v21  ;;  %v2564_v47 = vsel %vm2235_vm3, %v2562_v42, %v2563_v14  ;;  %v2588_v38 = vadd.f32 %v2558_v3, %v2508_v25  ;;  %v8275_v58 = vld [vmem:[%s13473_s2 + $0x200] ss:$8 sps:$4 sm:$0xff]   ;;  %v14098_v3 = vld [vmem:[#allocation21_spill] sm:$0xff] }
 0x10d   : > { %v821_v24 = vadd.f32 %v813_v13, %v789_v4  ;;  %v861_v7 = vmul.f32 %v14094_v54, %v14093_v21  ;;  %v2590_v55 = vadd.f32 %v2564_v47, %v2510_v10  ;;  %v823_v32 = vadd.f32 %v815_v37, %v791_v44  ;;  %v14097_v4 = vld [vmem:[#allocation29_spill] sm:$0xff]  ;;  %v14099_v47 = vld [vmem:[#allocation23_spill] sm:$0xff] }
 0x10e   : > { %v863_v51 = vmul.f32 %v14094_v54, %v9828_v56  ;;  %v14096_v42 = vunpack.c.h.bf16 %v9825_v48  ;;  %v9874_v14 = vunpack.c.h.bf16 %v9855_v31  ;;  %v8283_v54 = vld [vmem:[%s13473_s2 + $0x214] ss:$8 sps:$4 sm:$0xff]   ;;  %v937_v13 = vmul.f32 %v14097_v4, %v14087_v50 }
 0x10f   : > { %v845_v43 = vadd.f32 %v837_v33, %v821_v24  ;;  %v2596_v37 = vpack.c.bf16 %v2590_v55, %v2588_v38  ;;  %v847_v10 = vadd.f32 %v839_v62, %v823_v32  ;;  %v939_v24 = vmul.f32 %v14097_v4, %v14098_v3  ;;  %v14100_v38 = vld [vmem:[#allocation31_spill] sm:$0xff] }
 0x110   : > { %v887_v25 = vmul.f32 %v14095_v26, %v14096_v42  ;;  %v941_v26 = vmul.f32 %v14097_v4, %v14089_v59  ;;  %v943_v42 = vmul.f32 %v14097_v4, %v14099_v47  ;;  %v1018_v55 = vmul.f32 %v14100_v38, %v14089_v59  ;;  %v8289_v59 = vld [vmem:[%s13473_s2 + $0x224] ss:$8 sps:$4 sm:$0xff]  }
 0x111   : > { %v869_v33 = vadd.f32 %v861_v7, %v845_v43  ;;  %4934 = vmatmul.mubr.bf16.vlgmr.msra.gmra.mrb[0].mxu0 %v2596_v37  ;;  %v871_v44 = vadd.f32 %v863_v51, %v847_v10  ;;  %v976_v45 = vrot.slane %v937_v13, 1  ;;  %v977_v32 = vrot.slane %v939_v24, 1  ;;  %v8281_v43 = vld [vmem:[%s13473_s2 + $0x210] ss:$8 sps:$4 sm:$0xff]  }
 0x112   : > { %v1020_v50 = vmul.f32 %v14100_v38, %v14099_v47  ;;  %7011 = vmatpush1.bf16.msra.mxu0 %v8275_v58  ;;  %v982_v7 = vrot.slane %v941_v26, 1  ;;  %v983_v20 = vrot.slane %v943_v42, 1  ;;  %v1022_v4 = vmul.f32 %v14100_v38, %v14091_v60  ;;  %v14101_v10 = vld [vmem:[#allocation25_spill] sm:$0xff] }
 0x113   : > { %v893_v62 = vadd.f32 %v885_v30, %v869_v33  ;;  %7012 = vmatprep.subr.bf16.mxu0 %v8283_v54  ;;  %v895_v51 = vadd.f32 %v887_v25, %v871_v44  ;;  %v978_v37 = vsel %vm960_vm0, %v976_v45, %v977_v32  ;;  %v1024_v58 = vmul.f32 %v14100_v38, %v14101_v10  ;;  %v14102_v54 = vld [vmem:[#allocation33_spill] sm:$0xff]  ;;  %v8287_v45 = vld [vmem:[%s13473_s2 + $0x220] ss:$8 sps:$4 sm:$0xff]  }
 0x114   : > { %v1056_v13 = vrot.slane %v1018_v55, 1  ;;  %v984_v24 = vsel %vm960_vm0, %v982_v7, %v983_v20  ;;  %v1057_v33 = vrot.slane %v1020_v50, 1  ;;  %v1062_v26 = vrot.slane %v1022_v4, 1  ;;  %v14103_v44 = vld [vmem:[#allocation27_spill] sm:$0xff]  ;;  %v8295_v50 = vld [vmem:[%s13473_s2 + $0x234] ss:$8 sps:$4 sm:$0xff]  }
 0x115   : > { %v998_v30 = vadd.f32 %v978_v37, %v893_v62  ;;  %v1000_v42 = vadd.f32 %v984_v24, %v895_v51  ;;  %v1063_v29 = vrot.slane %v1024_v58, 1  ;;  %v1098_v19 = vmul.f32 %v14102_v54, %v14091_v60  ;;  %v14104_v55 = vld [vmem:[#allocation35_spill] sm:$0xff]  ;;  %v8362_v60 = vld [vmem:[%s13473_s2 + $0x1f4] ss:$8 sps:$4 sm:$0xff]   ;;  %v8364_v51 = vld [vmem:[%s13473_s2 + $0x1f0] ss:$8 sps:$4 sm:$0xff]  }
 0x116   : > { %v1100_v27 = vmul.f32 %v14102_v54, %v14101_v10  ;;  %7013 = vmatpush1.bf16.msra.mxu0 %v8281_v43  ;;  %v1058_v25 = vsel %vm960_vm0, %v1056_v13, %v1057_v33  ;;  %v1102_v20 = vmul.f32 %v14102_v54, %v14093_v21  ;;  %v1104_v38 = vmul.f32 %v14102_v54, %v14103_v44  ;;  %v8293_v24 = vld [vmem:[%s13473_s2 + $0x230] ss:$8 sps:$4 sm:$0xff]  }
 0x117   : > { %v1178_v32 = vmul.f32 %v14104_v55, %v14093_v21  ;;  %7014 = vmatprep.subr.bf16.mxu0 %v8289_v59  ;;  %v1064_v43 = vsel %vm960_vm0, %v1062_v26, %v1063_v29  ;;  %v1078_v62 = vadd.f32 %v1058_v25, %v998_v30  ;;  %v1136_v7 = vrot.slane %v1098_v19, 1  ;;  %4718 = vmatprep.subr.bf16.mxu1 %v8362_v60  ;;  %v9942_v25 = vld [vmem:[%s8829_s12 + $0x60] sm:$0xee]  ;;  %v9950_v60 = vld [vmem:[%s8829_s12 + $0x70] sm:$0xee] }
 0x118   : > { %v1137_v4 = vrot.slane %v1100_v27, 1  ;;  %v1080_v37 = vadd.f32 %v1064_v43, %v1000_v42  ;;  %v1142_v21 = vrot.slane %v1102_v20, 1  ;;  %v1143_v58 = vrot.slane %v1104_v38, 1  ;;  %4719 = vmatpush1.bf16.msra.mxu1 %v8364_v51  ;;  %v14105_v42 = vld [vmem:[#allocation37_spill] sm:$0xff]  ;;  %v8301_v20 = vld [vmem:[%s13473_s2 + $0x244] ss:$8 sps:$4 sm:$0xff]  }
 0x119   : > { %v1180_v59 = vmul.f32 %v14104_v55, %v14103_v44  ;;  %v1182_v29 = vmul.f32 %v14104_v55, %v9828_v56  ;;  %v1184_v27 = vmul.f32 %v14104_v55, %v9874_v14  ;;  %v1216_v19 = vrot.slane %v1178_v32, 1 }
 0x11a   : > { %v1138_v13 = vsel %vm960_vm0, %v1136_v7, %v1137_v4  ;;  %7015 = vmatpush1.bf16.msra.mxu0 %v8287_v45  ;;  %v1144_v30 = vsel %vm960_vm0, %v1142_v21, %v1143_v58  ;;  %v1258_v54 = vmul.f32 %v14105_v42, %v9828_v56  ;;  %v1260_v32 = vmul.f32 %v14105_v42, %v9874_v14 }
 0x11b   : > { %v1158_v33 = vadd.f32 %v1138_v13, %v1078_v62  ;;  %v1217_v26 = vrot.slane %v1180_v59, 1  ;;  %7016 = vmatprep.subr.bf16.mxu0 %v8295_v50  ;;  %v1160_v38 = vadd.f32 %v1144_v30, %v1080_v37  ;;  %v1222_v45 = vrot.slane %v1182_v29, 1  ;;  %v8299_v59 = vld [vmem:[%s13473_s2 + $0x240] ss:$8 sps:$4 sm:$0xff]   ;;  %v8307_v30 = vld [vmem:[%s13473_s2 + $0x254] ss:$8 sps:$4 sm:$0xff]  }
 0x11c   : > { %v1223_v55 = vrot.slane %v1184_v27, 1  ;;  %v14106_v62 = vunpack.c.h.bf16 %v9825_v48  ;;  %v14107_v50 = vunpack.c.h.bf16 %v9858_v61  ;;  %v1296_v4 = vrot.slane %v1258_v54, 1 }
 0x11d   : > { %v1218_v43 = vsel %vm960_vm0, %v1216_v19, %v1217_v26  ;;  %v1297_v21 = vrot.slane %v1260_v32, 1  ;;  %v9961_v58 = vunpack.c.h.bf16 %v9942_v25  ;;  %v14108_v26 = vld [vmem:[#allocation40_spill] sm:$0xff]  ;;  %v14114_v19 = vld [vmem:[#allocation46_spill] sm:$0xff] }
 0x11e   : > { %v1262_v56 = vmul.f32 %v14105_v42, %v14106_v62  ;;  %v1264_v7 = vmul.f32 %v14105_v42, %v14107_v50  ;;  %v1224_v51 = vsel %vm960_vm0, %v1222_v45, %v1223_v55  ;;  %v1238_v37 = vadd.f32 %v1218_v43, %v1158_v33  ;;  %7017 = vmatpush1.bf16.msra.mxu0 %v8293_v24  ;;  %v14109_v42 = vld [vmem:[#allocation48_spill] sm:$0xff]  ;;  %v14110_v45 = vld [vmem:[#allocation42_spill] sm:$0xff]  ;;  %v14111_v43 = vld [vmem:[#allocation49_spill] sm:$0xff] }
 0x11f   : > { %v1240_v13 = vadd.f32 %v1224_v51, %v1160_v38  ;;  %7018 = vmatprep.subr.bf16.mxu0 %v8301_v20  ;;  %v1298_v33 = vsel %vm960_vm0, %v1296_v4, %v1297_v21  ;;  %v1362_v54 = vmul.f32 %v14109_v42, %v14108_v26  ;;  %v1364_v24 = vmul.f32 %v14109_v42, %v14098_v3  ;;  %v8305_v3 = vld [vmem:[%s13473_s2 + $0x250] ss:$8 sps:$4 sm:$0xff]  }
 0x120   : > { %v1302_v29 = vrot.slane %v1262_v56, 1  ;;  %v1303_v27 = vrot.slane %v1264_v7, 1  ;;  %v1366_v38 = vmul.f32 %v14109_v42, %v14110_v45  ;;  %v1318_v32 = vadd.f32 %v1298_v33, %v1238_v37  ;;  %v14112_v37 = vld [vmem:[#allocation44_spill] sm:$0xff] }
 0x121   : > { %v1368_v20 = vmul.f32 %v14109_v42, %v14099_v47  ;;  %v1443_v62 = vmul.f32 %v14111_v43, %v14110_v45  ;;  %v1401_v50 = vrot.slane %v1362_v54, 2  ;;  %v1402_v7 = vrot.slane %v1364_v24, 2  ;;  %v14113_v42 = vld [vmem:[#allocation50_spill] sm:$0xff] }
 0x122   : > { %v1304_v55 = vsel %vm960_vm0, %v1302_v29, %v1303_v27  ;;  %v1407_v4 = vrot.slane %v1366_v38, 2  ;;  %7019 = vmatpush1.bf16.msra.mxu0 %v8299_v59  ;;  %v1445_v21 = vmul.f32 %v14111_v43, %v14099_v47  ;;  %v1447_v29 = vmul.f32 %v14111_v43, %v14112_v37 }
 0x123   : > { %v1320_v56 = vadd.f32 %v1304_v55, %v1240_v13  ;;  %v1408_v51 = vrot.slane %v1368_v20, 2  ;;  %v1449_v27 = vmul.f32 %v14111_v43, %v14101_v10  ;;  %7020 = vmatprep.subr.bf16.mxu0 %v8307_v30  ;;  %v8313_v13 = vld [vmem:[%s13473_s2 + $0x264] ss:$8 sps:$4 sm:$0xff]   ;;  %v1403_v59 = vsel %vm1385_vm1, %v1401_v50, %v1402_v7 }
 0x124   : > { %v1481_v33 = vrot.slane %v1443_v62, 2  ;;  %v1523_v54 = vmul.f32 %v14113_v42, %v14112_v37  ;;  %v1525_v47 = vmul.f32 %v14113_v42, %v14101_v10  ;;  %v1423_v38 = vadd.f32 %v1403_v59, %v1318_v32  ;;  %v8311_v62 = vld [vmem:[%s13473_s2 + $0x260] ss:$8 sps:$4 sm:$0xff]  }
 0x125   : > { %v1409_v24 = vsel %vm1385_vm1, %v1407_v4, %v1408_v51  ;;  %v1482_v55 = vrot.slane %v1445_v21, 2  ;;  %v1487_v20 = vrot.slane %v1447_v29, 2  ;;  %v1488_v30 = vrot.slane %v1449_v27, 2  ;;  %v14115_v32 = vld [vmem:[#allocation51_spill] sm:$0xff]  ;;  %v8319_v51 = vld [vmem:[%s13473_s2 + $0x274] ss:$8 sps:$4 sm:$0xff]  }
 0x126   : > { %v1425_v43 = vadd.f32 %v1409_v24, %v1320_v56  ;;  %v1527_v36 = vmul.f32 %v14113_v42, %v14114_v19  ;;  %v1529_v50 = vmul.f32 %v14113_v42, %v14103_v44  ;;  %7021 = vmatpush1.bf16.msra.mxu0 %v8305_v3  ;;  %v1561_v7 = vrot.slane %v1523_v54, 2 }
 0x127   : > { %v1483_v10 = vsel %vm1385_vm1, %v1481_v33, %v1482_v55  ;;  %v1562_v4 = vrot.slane %v1525_v47, 2  ;;  %v1603_v56 = vmul.f32 %v14115_v32, %v14114_v19  ;;  %7022 = vmatprep.subr.bf16.mxu0 %v8313_v13  ;;  %v1489_v3 = vsel %vm1385_vm1, %v1487_v20, %v1488_v30  ;;  %v10023_v20 = vld [vmem:[%s8829_s12 + $0x68] sm:$0x33] }
 0x128   : > { %v1503_v21 = vadd.f32 %v1483_v10, %v1423_v38  ;;  %v1567_v29 = vrot.slane %v1527_v36, 2  ;;  %v1568_v27 = vrot.slane %v1529_v50, 2  ;;  %v1505_v59 = vadd.f32 %v1489_v3, %v1425_v43  ;;  %v10026_v36 = vld [vmem:[%s8829_s12 + $0x78] sm:$0x33]  ;;  %v14116_v50 = vld [vmem:[#allocation52_spill] sm:$0xff] }
 0x129   : > { %v1563_v33 = vsel %vm1385_vm1, %v1561_v7, %v1562_v4  ;;  %v1605_v42 = vmul.f32 %v14115_v32, %v14103_v44  ;;  %v1607_v54 = vmul.f32 %v14115_v32, %v9961_v58  ;;  %v1609_v24 = vmul.f32 %v14115_v32, %v9874_v14  ;;  %v8317_v38 = vld [vmem:[%s13473_s2 + $0x270] ss:$8 sps:$4 sm:$0xff]   ;;  %v8325_v7 = vld [vmem:[%s13473_s2 + $0x284] ss:$8 sps:$4 sm:$0xff]  }
 0x12a   : > { %v1569_v13 = vsel %vm1385_vm1, %v1567_v29, %v1568_v27  ;;  %v1583_v47 = vadd.f32 %v1563_v33, %v1503_v21  ;;  %v1641_v55 = vrot.slane %v1603_v56, 2  ;;  %7023 = vmatpush1.bf16.msra.mxu0 %v8311_v62  ;;  %v1683_v10 = vmul.f32 %v14116_v50, %v9961_v58 }
 0x12b   : > { %v1585_v44 = vadd.f32 %v1569_v13, %v1505_v59  ;;  %v1642_v43 = vrot.slane %v1605_v42, 2  ;;  %v1647_v30 = vrot.slane %v1607_v54, 2  ;;  %7024 = vmatprep.subr.bf16.mxu0 %v8319_v51  ;;  %v1648_v4 = vrot.slane %v1609_v24, 2  ;;  %v8323_v13 = vld [vmem:[%s13473_s2 + $0x280] ss:$8 sps:$4 sm:$0xff]  }
 0x12c   : > { %v1685_v32 = vmul.f32 %v14116_v50, %v9874_v14  ;;  %v14117_v62 = vunpack.c.h.bf16 %v9950_v60  ;;  %v14118_v3 = vunpack.c.h.bf16 %v9858_v61  ;;  %v1721_v27 = vrot.slane %v1683_v10, 2 }
 0x12d   : > { %v1643_v29 = vsel %vm1385_vm1, %v1641_v55, %v1642_v43  ;;  %v10046_v51 = vunpack.c.h.bf16 %v10023_v20  ;;  %v1769_v59 = vunpack.c.h.bf16 %v10026_v36  ;;  %v1649_v33 = vsel %vm1385_vm1, %v1647_v30, %v1648_v4  ;;  %v14119_v55 = vld [vmem:[#allocation59_spill] sm:$0xff]  ;;  %v14120_v4 = vld [vmem:[#allocation60_spill] sm:$0xff] }
 0x12e   : > { %v1687_v56 = vmul.f32 %v14116_v50, %v14117_v62  ;;  %v1689_v21 = vmul.f32 %v14116_v50, %v14118_v3  ;;  %v1663_v42 = vadd.f32 %v1643_v29, %v1583_v47  ;;  %v1722_v14 = vrot.slane %v1685_v32, 2  ;;  %7025 = vmatpush1.bf16.msra.mxu0 %v8317_v38  ;;  %v8331_v47 = vld [vmem:[%s13473_s2 + $0x294] ss:$8 sps:$4 sm:$0xff]  }
 0x12f   : > { %v1665_v24 = vadd.f32 %v1649_v33, %v1585_v44  ;;  %v1787_v43 = vmul.f32 %v14119_v55, %v14108_v26  ;;  %v1789_v10 = vmul.f32 %v14119_v55, %v9287_v40  ;;  %7026 = vmatprep.subr.bf16.mxu0 %v8325_v7  ;;  %v1791_v38 = vmul.f32 %v14119_v55, %v14110_v45  ;;  %v8329_v33 = vld [vmem:[%s13473_s2 + $0x290] ss:$8 sps:$4 sm:$0xff]  }
 0x130   : > { %v1727_v54 = vrot.slane %v1687_v56, 2  ;;  %v1728_v50 = vrot.slane %v1689_v21, 2  ;;  %v1723_v30 = vsel %vm1385_vm1, %v1721_v27, %v1722_v14  ;;  %v1793_v44 = vmul.f32 %v14119_v55, %v9292_v1 }
 0x131   : > { %v1868_v32 = vmul.f32 %v14120_v4, %v14110_v45  ;;  %v1743_v62 = vadd.f32 %v1723_v30, %v1663_v42  ;;  %v1826_v56 = vrot.slane %v1787_v43, 3  ;;  %v1827_v7 = vrot.slane %v1789_v10, 3  ;;  %v14121_v43 = vld [vmem:[#allocation61_spill] sm:$0xff] }
 0x132   : > { %v1729_v26 = vsel %vm1385_vm1, %v1727_v54, %v1728_v50  ;;  %v1832_v21 = vrot.slane %v1791_v38, 3  ;;  %v1833_v29 = vrot.slane %v1793_v44, 3  ;;  %v1870_v27 = vmul.f32 %v14120_v4, %v9292_v1  ;;  %7027 = vmatpush1.bf16.msra.mxu0 %v8323_v13 }
 0x133   : > { %v1745_v3 = vadd.f32 %v1729_v26, %v1665_v24  ;;  %v1828_v14 = vsel %vm1810_vm2, %v1826_v56, %v1827_v7  ;;  %v1872_v45 = vmul.f32 %v14120_v4, %v14112_v37  ;;  %v1874_v42 = vmul.f32 %v14120_v4, %v9299_v39  ;;  %7028 = vmatprep.subr.bf16.mxu0 %v8331_v47  ;;  %v8337_v24 = vld [vmem:[%s13473_s2 + $0x2a4] ss:$8 sps:$4 sm:$0xff]  }
 0x134   : > { %v1906_v54 = vrot.slane %v1868_v32, 3  ;;  %v1834_v13 = vsel %vm1810_vm2, %v1832_v21, %v1833_v29  ;;  %v1848_v50 = vadd.f32 %v1828_v14, %v1743_v62  ;;  %v1907_v55 = vrot.slane %v1870_v27, 3  ;;  %v14122_v21 = vld [vmem:[#allocation62_spill] sm:$0xff]  ;;  %v8343_v27 = vld [vmem:[%s13473_s2 + $0x2b4] ss:$8 sps:$4 sm:$0xff]  }
 0x135   : > { %v1948_v10 = vmul.f32 %v14121_v43, %v14112_v37  ;;  %v1850_v30 = vadd.f32 %v1834_v13, %v1745_v3  ;;  %v1912_v38 = vrot.slane %v1872_v45, 3  ;;  %v1913_v44 = vrot.slane %v1874_v42, 3  ;;  %v8335_v37 = vld [vmem:[%s13473_s2 + $0x2a0] ss:$8 sps:$4 sm:$0xff]  }
 0x136   : > { %v1950_v26 = vmul.f32 %v14121_v43, %v9299_v39  ;;  %v1908_v4 = vsel %vm1810_vm2, %v1906_v54, %v1907_v55  ;;  %v1952_v47 = vmul.f32 %v14121_v43, %v14114_v19  ;;  %v1954_v32 = vmul.f32 %v14121_v43, %v9303_v12  ;;  %7029 = vmatpush1.bf16.msra.mxu0 %v8329_v33 }
 0x137   : > { %v1986_v56 = vrot.slane %v1948_v10, 3  ;;  %v1914_v62 = vsel %vm1810_vm2, %v1912_v38, %v1913_v44  ;;  %v1928_v7 = vadd.f32 %v1908_v4, %v1848_v50  ;;  %v2028_v29 = vmul.f32 %v14122_v21, %v14114_v19  ;;  %7030 = vmatprep.subr.bf16.mxu0 %v8337_v24  ;;  %v14123_v10 = vld [vmem:[#allocation63_spill] sm:$0xff]  ;;  %v10111_v38 = vld [vmem:[%s8829_s12 + $0x60] sm:$0xcc]  ;;  %v8341_v44 = vld [vmem:[%s13473_s2 + $0x2b0] ss:$8 sps:$4 sm:$0xff]  }
 0x138   : > { %v1987_v3 = vrot.slane %v1950_v26, 3  ;;  %v1930_v14 = vadd.f32 %v1914_v62, %v1850_v30  ;;  %v1992_v45 = vrot.slane %v1952_v47, 3  ;;  %v1993_v33 = vrot.slane %v1954_v32, 3 }
 0x139   : > { %v2030_v42 = vmul.f32 %v14122_v21, %v9303_v12  ;;  %v2032_v13 = vmul.f32 %v14122_v21, %v9961_v58  ;;  %v2034_v19 = vmul.f32 %v14122_v21, %v10046_v51  ;;  %v2066_v24 = vrot.slane %v2028_v29, 3 }
 0x13a   : > { %v1988_v54 = vsel %vm1810_vm2, %v1986_v56, %v1987_v3  ;;  %v1994_v50 = vsel %vm1810_vm2, %v1992_v45, %v1993_v33  ;;  %v2108_v30 = vmul.f32 %v14123_v10, %v9961_v58  ;;  %7031 = vmatpush1.bf16.msra.mxu0 %v8335_v37  ;;  %v2110_v32 = vmul.f32 %v14123_v10, %v10046_v51  ;;  %v10119_v56 = vld [vmem:[%s8829_s12 + $0x70] sm:$0xcc]  ;;  %v8349_v58 = vld [vmem:[%s13473_s2 + $0x2c4] ss:$8 sps:$4 sm:$0xff]  }
 0x13b   : > { %v2008_v55 = vadd.f32 %v1988_v54, %v1928_v7  ;;  %v2067_v43 = vrot.slane %v2030_v42, 3  ;;  %v2010_v26 = vadd.f32 %v1994_v50, %v1930_v14  ;;  %v2072_v4 = vrot.slane %v2032_v13, 3  ;;  %7032 = vmatprep.subr.bf16.mxu0 %v8343_v27  ;;  %v14125_v50 = vld [vmem:[#allocation68_spill] sm:$0xff] }
 0x13c   : > { %v2073_v47 = vrot.slane %v2034_v19, 3  ;;  %v14124_v37 = vunpack.c.h.bf16 %v9950_v60  ;;  %v2114_v3 = vmul.f32 %v14123_v10, %v1769_v59  ;;  %v2146_v21 = vrot.slane %v2108_v30, 3  ;;  %v8347_v19 = vld [vmem:[%s13473_s2 + $0x2c0] ss:$8 sps:$4 sm:$0xff]   ;;  %v8355_v30 = vld [vmem:[%s13473_s2 + $0x2d4] ss:$8 sps:$4 sm:$0xff]  }
 0x13d   : > { %v2068_v62 = vsel %vm1810_vm2, %v2066_v24, %v2067_v43  ;;  %v2147_v45 = vrot.slane %v2110_v32, 3  ;;  %v2192_v27 = vunpack.c.h.bf16 %v10111_v38  ;;  %v2194_v13 = vunpack.c.h.bf16 %v10119_v56 }
 0x13e   : > { %v2112_v7 = vmul.f32 %v14123_v10, %v14124_v37  ;;  %v2074_v29 = vsel %vm1810_vm2, %v2072_v4, %v2073_v47  ;;  %v2088_v14 = vadd.f32 %v2068_v62, %v2008_v55  ;;  %v2153_v54 = vrot.slane %v2114_v3, 3  ;;  %7033 = vmatpush1.bf16.msra.mxu0 %v8341_v44  ;;  %v14126_v47 = vld [vmem:[#allocation69_spill] sm:$0xff] }
 0x13f   : > { %v2090_v33 = vadd.f32 %v2074_v29, %v2010_v26  ;;  %v2148_v24 = vsel %vm1810_vm2, %v2146_v21, %v2147_v45  ;;  %v2212_v43 = vmul.f32 %v14125_v50, %v9426_v18  ;;  %v2214_v55 = vmul.f32 %v14125_v50, %v9287_v40  ;;  %7034 = vmatprep.subr.bf16.mxu0 %v8349_v58  ;;  %v8353_v29 = vld [vmem:[%s13473_s2 + $0x2d0] ss:$8 sps:$4 sm:$0xff]  }
 0x140   : > { %v2152_v42 = vrot.slane %v2112_v7, 3  ;;  %v2216_v10 = vmul.f32 %v14125_v50, %v9431_v22  ;;  %v2168_v26 = vadd.f32 %v2148_v24, %v2088_v14  ;;  %v2218_v4 = vmul.f32 %v14125_v50, %v9292_v1 }
 0x141   : > { %v2293_v18 = vmul.f32 %v14126_v47, %v9431_v22  ;;  %v2251_v62 = vrot.slane %v2212_v43, 4  ;;  %v2252_v40 = vrot.slane %v2214_v55, 4  ;;  %v2295_v58 = vmul.f32 %v14126_v47, %v9292_v1 }
 0x142   : > { %v2154_v44 = vsel %vm1810_vm2, %v2152_v42, %v2153_v54  ;;  %v2257_v37 = vrot.slane %v2216_v10, 4  ;;  %v2258_v7 = vrot.slane %v2218_v4, 4  ;;  %v2297_v3 = vmul.f32 %v14126_v47, %v9438_v53  ;;  %7035 = vmatpush1.bf16.msra.mxu0 %v8347_v19  ;;  %v8361_v19 = vld [vmem:[%s13473_s2 + $0x2e4] ss:$8 sps:$4 sm:$0xff]  }
 0x143   : > { %v2170_v32 = vadd.f32 %v2154_v44, %v2090_v33  ;;  %v2299_v21 = vmul.f32 %v14126_v47, %v9299_v39  ;;  %v2253_v22 = vsel %vm2235_vm3, %v2251_v62, %v2252_v40  ;;  %v2331_v14 = vrot.slane %v2293_v18, 4  ;;  %7036 = vmatprep.subr.bf16.mxu0 %v8355_v30 }
 0x144   : > { %v2373_v45 = vmul.f32 %v9454_v46, %v9438_v53  ;;  %v2375_v1 = vmul.f32 %v9454_v46, %v9299_v39  ;;  %v2259_v33 = vsel %vm2235_vm3, %v2257_v37, %v2258_v7  ;;  %v2273_v42 = vadd.f32 %v2253_v22, %v2168_v26 }
 0x145   : > { %v2332_v54 = vrot.slane %v2295_v58, 4  ;;  %v2337_v24 = vrot.slane %v2297_v3, 4  ;;  %v2275_v50 = vadd.f32 %v2259_v33, %v2170_v32  ;;  %v2338_v43 = vrot.slane %v2299_v21, 4  ;;  %v8359_v32 = vld [vmem:[%s13473_s2 + $0x2e0] ss:$8 sps:$4 sm:$0xff]  }
 0x146   : > { %v2377_v55 = vmul.f32 %v9454_v46, %v9442_v8  ;;  %v2379_v53 = vmul.f32 %v9454_v46, %v9303_v12  ;;  %v2411_v10 = vrot.slane %v2373_v45, 4  ;;  %v2412_v30 = vrot.slane %v2375_v1, 4  ;;  %7037 = vmatpush1.bf16.msra.mxu0 %v8353_v29 }
 0x147   : > { %v2333_v39 = vsel %vm2235_vm3, %v2331_v14, %v2332_v54  ;;  %v2453_v44 = vmul.f32 %v9461_v16, %v9442_v8  ;;  %v2339_v26 = vsel %vm2235_vm3, %v2337_v24, %v2338_v43  ;;  %v2455_v40 = vmul.f32 %v9461_v16, %v9303_v12  ;;  %7038 = vmatprep.subr.bf16.mxu0 %v8361_v19 }
 0x148   : > { %v2353_v4 = vadd.f32 %v2333_v39, %v2273_v42  ;;  %v2417_v47 = vrot.slane %v2377_v55, 4  ;;  %v2418_v18 = vrot.slane %v2379_v53, 4  ;;  %v2355_v62 = vadd.f32 %v2339_v26, %v2275_v50  ;;  %v14127_v55 = vld [vmem:[#allocation14_spill] sm:$0xff] }
 0x149   : > { %v2413_v46 = vsel %vm2235_vm3, %v2411_v10, %v2412_v30  ;;  %v2457_v8 = vmul.f32 %v9461_v16, %v2192_v27  ;;  %v2459_v58 = vmul.f32 %v9461_v16, %v10046_v51  ;;  %v2491_v3 = vrot.slane %v2453_v44, 4 }
 0x14a   : > { %v2419_v37 = vsel %vm2235_vm3, %v2417_v47, %v2418_v18  ;;  %v2433_v7 = vadd.f32 %v2413_v46, %v2353_v4  ;;  %v2492_v29 = vrot.slane %v2455_v40, 4  ;;  %v2533_v14 = vmul.f32 %v9465_v52, %v2192_v27  ;;  %7039 = vmatpush1.bf16.msra.mxu0 %v8359_v32 }
 0x14b   : > { %v2435_v21 = vadd.f32 %v2419_v37, %v2355_v62  ;;  %v2497_v22 = vrot.slane %v2457_v8, 4  ;;  %v2498_v12 = vrot.slane %v2459_v58, 4  ;;  %v2535_v45 = vmul.f32 %v9465_v52, %v10046_v51  ;;  %v14128_v58 = vld [vmem:[#allocation28_spill] sm:$0xff] }
 0x14c   : > { %v2537_v1 = vmul.f32 %v9465_v52, %v2194_v13  ;;  %v2539_v33 = vmul.f32 %v9465_v52, %v1769_v59  ;;  %v2493_v16 = vsel %vm2235_vm3, %v2491_v3, %v2492_v29  ;;  %v2571_v42 = vrot.slane %v2533_v14, 4  ;;  %v14129_v29 = vld [vmem:[#allocation22_spill] sm:$0xff] }
 0x14d   : > { %v10201_v54 = vunpack.c.l.bf16 %v9812_v49  ;;  %v774_v24 = vunpack.c.l.bf16 %v9825_v48  ;;  %v2499_v27 = vsel %vm2235_vm3, %v2497_v22, %v2498_v12  ;;  %v2513_v19 = vadd.f32 %v2493_v16, %v2433_v7 }
 0x14e   : > { %v2572_v50 = vrot.slane %v2535_v45, 4  ;;  %v2577_v51 = vrot.slane %v2537_v1, 4  ;;  %v2515_v43 = vadd.f32 %v2499_v27, %v2435_v21  ;;  %v2578_v13 = vrot.slane %v2539_v33, 4 }
 0x14f   : > { %v788_v53 = vmul.f32 %v14127_v55, %v8885_v9  ;;  %v790_v52 = vmul.f32 %v14127_v55, %v8889_v11  ;;  %v812_v49 = vmul.f32 %v9473_v57, %v8889_v11  ;;  %v814_v39 = vmul.f32 %v9473_v57, %v8899_v15 }
 0x150   : > { %v2573_v59 = vsel %vm2235_vm3, %v2571_v42, %v2572_v50  ;;  %v836_v10 = vmul.f32 %v9549_v2, %v8899_v15  ;;  %v2579_v30 = vsel %vm2235_vm3, %v2577_v51, %v2578_v13  ;;  %v838_v26 = vmul.f32 %v9549_v2, %v8903_v17  ;;  %v14131_v50 = vld [vmem:[#allocation24_spill] sm:$0xff] }
 0x151   : > { %v2593_v44 = vadd.f32 %v2573_v59, %v2513_v19  ;;  %v860_v4 = vmul.f32 %v9555_v63, %v8903_v17  ;;  %v2595_v47 = vadd.f32 %v2579_v30, %v2515_v43  ;;  %v820_v18 = vadd.f32 %v812_v49, %v788_v53 }
 0x152   : > { %v822_v32 = vadd.f32 %v814_v39, %v790_v52  ;;  %v862_v62 = vmul.f32 %v9555_v63, %v10201_v54  ;;  %v884_v57 = vmul.f32 %v9564_v5, %v10201_v54  ;;  %v886_v46 = vmul.f32 %v9564_v5, %v774_v24  ;;  %v14132_v39 = vld [vmem:[#allocation32_spill] sm:$0xff] }
 0x153   : > { %v10229_v40 = vunpack.c.l.bf16 %v9855_v31  ;;  %v918_v2 = vunpack.c.l.bf16 %v9858_v61  ;;  %v2599_v8 = vpack.c.bf16 %v2595_v47, %v2593_v44  ;;  %v844_v37 = vadd.f32 %v836_v10, %v820_v18  ;;  %v14130_v31 = vld [vmem:[#allocation30_spill] sm:$0xff] }
 0x154   : > { %v846_v7 = vadd.f32 %v838_v26, %v822_v32  ;;  %v936_v3 = vmul.f32 %v14128_v58, %v8885_v9  ;;  %v938_v63 = vmul.f32 %v14128_v58, %v14044_v28  ;;  %v940_v21 = vmul.f32 %v14128_v58, %v8889_v11 }
 0x155   : > { %v942_v5 = vmul.f32 %v14128_v58, %v14129_v29  ;;  %v1017_v22 = vmul.f32 %v14130_v31, %v8889_v11  ;;  %4943 = vmatprep.mubr.bf16.mxu0 %v2599_v8  ;;  %v868_v14 = vadd.f32 %v860_v4, %v844_v37  ;;  %v1019_v1 = vmul.f32 %v14130_v31, %v14129_v29 }
 0x156   : > { %v870_v12 = vadd.f32 %v862_v62, %v846_v7  ;;  %v973_v45 = vrot.slane %v936_v3, 1  ;;  %v974_v9 = vrot.slane %v938_v63, 1  ;;  %v979_v33 = vrot.slane %v940_v21, 1  ;;  %v14133_v62 = vld [vmem:[#allocation34_spill] sm:$0xff] }
 0x157   : > { %v980_v16 = vrot.slane %v942_v5, 1  ;;  %v1021_v42 = vmul.f32 %v14130_v31, %v8899_v15  ;;  %v892_v27 = vadd.f32 %v884_v57, %v868_v14  ;;  %v1023_v51 = vmul.f32 %v14130_v31, %v14131_v50 }
 0x158   : > { %v894_v19 = vadd.f32 %v886_v46, %v870_v12  ;;  %v1053_v43 = vrot.slane %v1017_v22, 1  ;;  %v975_v11 = vsel %vm960_vm0, %v973_v45, %v974_v9  ;;  %v1054_v55 = vrot.slane %v1019_v1, 1 }
 0x159   : > { %v981_v13 = vsel %vm960_vm0, %v979_v33, %v980_v16  ;;  %v1059_v53 = vrot.slane %v1021_v42, 1  ;;  %v997_v52 = vadd.f32 %v975_v11, %v892_v27  ;;  %v1060_v49 = vrot.slane %v1023_v51, 1 }
 0x15a   : > { %v999_v59 = vadd.f32 %v981_v13, %v894_v19  ;;  %v1097_v10 = vmul.f32 %v14132_v39, %v8899_v15  ;;  %v1055_v30 = vsel %vm960_vm0, %v1053_v43, %v1054_v55  ;;  %v1099_v44 = vmul.f32 %v14132_v39, %v14131_v50 }
 0x15b   : > { %v1101_v26 = vmul.f32 %v14132_v39, %v8903_v17  ;;  %v1103_v4 = vmul.f32 %v14132_v39, %v14050_v34  ;;  %v1061_v47 = vsel %vm960_vm0, %v1059_v53, %v1060_v49  ;;  %v1077_v18 = vadd.f32 %v1055_v30, %v997_v52  ;;  %v14135_v53 = vld [vmem:[#allocation47_spill] sm:$0xff] }
 0x15c   : > { %v1133_v32 = vrot.slane %v1097_v10, 1  ;;  %v1177_v57 = vmul.f32 %v14133_v62, %v8903_v17  ;;  %v1079_v46 = vadd.f32 %v1061_v47, %v999_v59  ;;  %v1134_v15 = vrot.slane %v1099_v44, 1  ;;  %v14134_v17 = vld [vmem:[#allocation36_spill] sm:$0xff] }
 0x15d   : > { %v1139_v8 = vrot.slane %v1101_v26, 1  ;;  %v1140_v37 = vrot.slane %v1103_v4, 1  ;;  %v1179_v7 = vmul.f32 %v14133_v62, %v14050_v34  ;;  %v1181_v58 = vmul.f32 %v14133_v62, %v10201_v54  ;;  %v14136_v4 = vld [vmem:[#allocation20_spill] sm:$0xff] }
 0x15e   : > { %v1183_v3 = vmul.f32 %v14133_v62, %v10229_v40  ;;  %v1213_v63 = vrot.slane %v1177_v57, 1  ;;  %v1135_v21 = vsel %vm960_vm0, %v1133_v32, %v1134_v15  ;;  %v1257_v31 = vmul.f32 %v14134_v17, %v10201_v54 }
 0x15f   : > { %v1141_v5 = vsel %vm960_vm0, %v1139_v8, %v1140_v37  ;;  %v1259_v22 = vmul.f32 %v14134_v17, %v10229_v40  ;;  %v1157_v14 = vadd.f32 %v1135_v21, %v1077_v18  ;;  %v1214_v45 = vrot.slane %v1179_v7, 1  ;;  %v14137_v8 = vld [vmem:[#allocation26_spill] sm:$0xff] }
 0x160   : > { %v1159_v12 = vadd.f32 %v1141_v5, %v1079_v46  ;;  %v1219_v1 = vrot.slane %v1181_v58, 1  ;;  %v1220_v9 = vrot.slane %v1183_v3, 1  ;;  %v1261_v33 = vmul.f32 %v14134_v17, %v774_v24 }
 0x161   : > { %v1263_v16 = vmul.f32 %v14134_v17, %v918_v2  ;;  %v1293_v42 = vrot.slane %v1257_v31, 1  ;;  %v1215_v27 = vsel %vm960_vm0, %v1213_v63, %v1214_v45  ;;  %v1294_v54 = vrot.slane %v1259_v22, 1 }
 0x162   : > { %v10282_v19 = vunpack.c.l.bf16 %v9942_v25  ;;  %v1343_v51 = vunpack.c.l.bf16 %v9950_v60  ;;  %v1221_v43 = vsel %vm960_vm0, %v1219_v1, %v1220_v9  ;;  %v1237_v11 = vadd.f32 %v1215_v27, %v1157_v14  ;;  %v14149_v60 = vld [vmem:[#allocation54_spill] sm:$0xff] }
 0x163   : > { %v1299_v13 = vrot.slane %v1261_v33, 1  ;;  %v1300_v48 = vrot.slane %v1263_v16, 1  ;;  %v1239_v55 = vadd.f32 %v1221_v43, %v1159_v12  ;;  %v1295_v24 = vsel %vm960_vm0, %v1293_v42, %v1294_v54  ;;  %v14138_v12 = vld [vmem:[#allocation38_spill] sm:$0xff] }
 0x164   : > { %v1361_v52 = vmul.f32 %v14135_v53, %v14058_v41  ;;  %v1363_v59 = vmul.f32 %v14135_v53, %v14044_v28  ;;  %v1317_v25 = vadd.f32 %v1295_v24, %v1237_v11  ;;  %v1365_v39 = vmul.f32 %v14135_v53, %v14059_v0 }
 0x165   : > { %v1301_v49 = vsel %vm960_vm0, %v1299_v13, %v1300_v48  ;;  %v1367_v10 = vmul.f32 %v14135_v53, %v14129_v29  ;;  %v1442_v47 = vmul.f32 %v14136_v4, %v14059_v0  ;;  %v1444_v28 = vmul.f32 %v14136_v4, %v14129_v29  ;;  %v14139_v48 = vld [vmem:[#allocation39_spill] sm:$0xff] }
 0x166   : > { %v1319_v30 = vadd.f32 %v1301_v49, %v1239_v55  ;;  %v1398_v44 = vrot.slane %v1361_v52, 2  ;;  %v1399_v26 = vrot.slane %v1363_v59, 2  ;;  %v1404_v18 = vrot.slane %v1365_v39, 2 }
 0x167   : > { %v1405_v32 = vrot.slane %v1367_v10, 2  ;;  %v1446_v62 = vmul.f32 %v14136_v4, %v14062_v23  ;;  %v1448_v46 = vmul.f32 %v14136_v4, %v14131_v50  ;;  %v1478_v15 = vrot.slane %v1442_v47, 2 }
 0x168   : > { %v1400_v57 = vsel %vm1385_vm1, %v1398_v44, %v1399_v26  ;;  %v1522_v37 = vmul.f32 %v14137_v8, %v14062_v23  ;;  %v1479_v3 = vrot.slane %v1444_v28, 2  ;;  %v1524_v29 = vmul.f32 %v14137_v8, %v14131_v50 }
 0x169   : > { %v1406_v7 = vsel %vm1385_vm1, %v1404_v18, %v1405_v32  ;;  %v1422_v58 = vadd.f32 %v1400_v57, %v1317_v25  ;;  %v1484_v63 = vrot.slane %v1446_v62, 2  ;;  %v1485_v5 = vrot.slane %v1448_v46, 2  ;;  %v14140_v57 = vld [vmem:[#allocation58_spill] sm:$0xff] }
 0x16a   : > { %v1424_v21 = vadd.f32 %v1406_v7, %v1319_v30  ;;  %v1526_v17 = vmul.f32 %v14137_v8, %v14063_v35  ;;  %v1480_v31 = vsel %vm1385_vm1, %v1478_v15, %v1479_v3  ;;  %v1528_v22 = vmul.f32 %v14137_v8, %v14050_v34  ;;  %v14141_v15 = vld [vmem:[#allocation55_spill] sm:$0xff] }
 0x16b   : > { %v1558_v14 = vrot.slane %v1522_v37, 2  ;;  %v1602_v45 = vmul.f32 %v14138_v12, %v14063_v35  ;;  %v1486_v1 = vsel %vm1385_vm1, %v1484_v63, %v1485_v5  ;;  %v1502_v9 = vadd.f32 %v1480_v31, %v1422_v58  ;;  %v8367_v37 = vld [vmem:[%s13473_s2 + $0x2f4] ss:$8 sps:$4 sm:$0xff]  }
 0x16c   : > { %v1559_v33 = vrot.slane %v1524_v29, 2  ;;  %v1564_v16 = vrot.slane %v1526_v17, 2  ;;  %v1504_v42 = vadd.f32 %v1486_v1, %v1424_v21  ;;  %v1565_v27 = vrot.slane %v1528_v22, 2  ;;  %v8365_v21 = vld [vmem:[%s13473_s2 + $0x2f0] ss:$8 sps:$4 sm:$0xff]   ;;  %7040 = vmatprep.subr.bf16.mxu0 %v8367_v37 }
 0x16d   : > { %v1604_v50 = vmul.f32 %v14138_v12, %v14050_v34  ;;  %v1606_v54 = vmul.f32 %v14138_v12, %v10282_v19  ;;  %v1608_v11 = vmul.f32 %v14138_v12, %v10229_v40  ;;  %v1638_v13 = vrot.slane %v1602_v45, 2  ;;  %v14143_v12 = vld [vmem:[#allocation56_spill] sm:$0xff]  ;;  %7041 = vmatpush1.bf16.msra.mxu0 %v8365_v21 }
 0x16e   : > { %v1560_v43 = vsel %vm1385_vm1, %v1558_v14, %v1559_v33  ;;  %v1682_v55 = vmul.f32 %v14139_v48, %v10282_v19  ;;  %v1566_v24 = vsel %vm1385_vm1, %v1564_v16, %v1565_v27  ;;  %v1684_v34 = vmul.f32 %v14139_v48, %v10229_v40  ;;  %v14144_v33 = vld [vmem:[#allocation43_spill] sm:$0xff] }
 0x16f   : > { %v1582_v53 = vadd.f32 %v1560_v43, %v1502_v9  ;;  %v1639_v52 = vrot.slane %v1604_v50, 2  ;;  %v1644_v59 = vrot.slane %v1606_v54, 2  ;;  %v1584_v49 = vadd.f32 %v1566_v24, %v1504_v42 }
 0x170   : > { %v1645_v25 = vrot.slane %v1608_v11, 2  ;;  %v1686_v39 = vmul.f32 %v14139_v48, %v1343_v51  ;;  %v1688_v30 = vmul.f32 %v14139_v48, %v918_v2  ;;  %v1718_v44 = vrot.slane %v1682_v55, 2  ;;  %v14145_v48 = vld [vmem:[#allocation57_spill] sm:$0xff] }
 0x171   : > { %v1640_v10 = vsel %vm1385_vm1, %v1638_v13, %v1639_v52  ;;  %v10338_v26 = vunpack.c.l.bf16 %v10023_v20  ;;  %v1719_v18 = vrot.slane %v1684_v34, 2  ;;  %v1768_v62 = vunpack.c.l.bf16 %v10026_v36 }
 0x172   : > { %v1646_v4 = vsel %vm1385_vm1, %v1644_v59, %v1645_v25  ;;  %v1662_v47 = vadd.f32 %v1640_v10, %v1582_v53  ;;  %v1724_v32 = vrot.slane %v1686_v39, 2  ;;  %v1725_v28 = vrot.slane %v1688_v30, 2 }
 0x173   : > { %v1664_v40 = vadd.f32 %v1646_v4, %v1584_v49  ;;  %v1786_v46 = vmul.f32 %v14140_v57, %v14058_v41  ;;  %v1720_v61 = vsel %vm1385_vm1, %v1718_v44, %v1719_v18  ;;  %v1788_v2 = vmul.f32 %v14140_v57, %v14070_v6  ;;  %v14142_v41 = vld [vmem:[#allocation41_spill] sm:$0xff] }
 0x174   : > { %v1790_v20 = vmul.f32 %v14140_v57, %v14059_v0  ;;  %v1792_v8 = vmul.f32 %v14140_v57, %v14141_v15  ;;  %v1726_v7 = vsel %vm1385_vm1, %v1724_v32, %v1725_v28  ;;  %v1742_v58 = vadd.f32 %v1720_v61, %v1662_v47  ;;  %v14147_v61 = vld [vmem:[#allocation53_spill] sm:$0xff] }
 0x175   : > { %v1823_v3 = vrot.slane %v1786_v46, 3  ;;  %v1867_v63 = vmul.f32 %v14142_v41, %v14059_v0  ;;  %v1744_v5 = vadd.f32 %v1726_v7, %v1664_v40  ;;  %v1824_v29 = vrot.slane %v1788_v2, 3 }
 0x176   : > { %v1829_v17 = vrot.slane %v1790_v20, 3  ;;  %v1830_v31 = vrot.slane %v1792_v8, 3  ;;  %v1869_v22 = vmul.f32 %v14142_v41, %v14141_v15  ;;  %v1871_v14 = vmul.f32 %v14142_v41, %v14062_v23 }
 0x177   : > { %v1873_v45 = vmul.f32 %v14142_v41, %v14143_v12  ;;  %v1903_v1 = vrot.slane %v1867_v63, 3  ;;  %v1825_v0 = vsel %vm1810_vm2, %v1823_v3, %v1824_v29  ;;  %v1947_v16 = vmul.f32 %v14144_v33, %v14062_v23  ;;  %v14146_v23 = vld [vmem:[#allocation45_spill] sm:$0xff] }
 0x178   : > { %v1831_v9 = vsel %vm1810_vm2, %v1829_v17, %v1830_v31  ;;  %v1949_v42 = vmul.f32 %v14144_v33, %v14143_v12  ;;  %v1847_v27 = vadd.f32 %v1825_v0, %v1742_v58  ;;  %v1904_v54 = vrot.slane %v1869_v22, 3  ;;  %v14148_v31 = vld [vmem:[#allocation64_spill] sm:$0xff] }
 0x179   : > { %v1849_v50 = vadd.f32 %v1831_v9, %v1744_v5  ;;  %v1909_v43 = vrot.slane %v1871_v14, 3  ;;  %v1910_v11 = vrot.slane %v1873_v45, 3  ;;  %v1951_v13 = vmul.f32 %v14144_v33, %v14063_v35  ;;  %v14150_v14 = vld [vmem:[#allocation65_spill] sm:$0xff] }
 0x17a   : > { %v1953_v55 = vmul.f32 %v14144_v33, %v14145_v48  ;;  %v1983_v24 = vrot.slane %v1947_v16, 3  ;;  %v1905_v53 = vsel %vm1810_vm2, %v1903_v1, %v1904_v54  ;;  %v1984_v52 = vrot.slane %v1949_v42, 3  ;;  %v14151_v9 = vld [vmem:[#allocation9_spill] sm:$0xff] }
 0x17b   : > { %v2027_v59 = vmul.f32 %v14146_v23, %v14063_v35  ;;  %v2029_v49 = vmul.f32 %v14146_v23, %v14145_v48  ;;  %v1911_v25 = vsel %vm1810_vm2, %v1909_v43, %v1910_v11  ;;  %v1927_v34 = vadd.f32 %v1905_v53, %v1847_v27  ;;  %v14152_v43 = vld [vmem:[#allocation66_spill] sm:$0xff] }
 0x17c   : > { %v1989_v39 = vrot.slane %v1951_v13, 3  ;;  %v1990_v10 = vrot.slane %v1953_v55, 3  ;;  %v1929_v30 = vadd.f32 %v1911_v25, %v1849_v50  ;;  %v1985_v44 = vsel %vm1810_vm2, %v1983_v24, %v1984_v52  ;;  %v14153_v53 = vld [vmem:[#allocation70_spill] sm:$0xff] }
 0x17d   : > { %v2031_v4 = vmul.f32 %v14146_v23, %v10282_v19  ;;  %v2033_v47 = vmul.f32 %v14146_v23, %v10338_v26  ;;  %v2007_v35 = vadd.f32 %v1985_v44, %v1927_v34  ;;  %v2063_v32 = vrot.slane %v2027_v59, 3 }
 0x17e   : > { %v1991_v18 = vsel %vm1810_vm2, %v1989_v39, %v1990_v10  ;;  %v2064_v40 = vrot.slane %v2029_v49, 3  ;;  %v2107_v2 = vmul.f32 %v14147_v61, %v10282_v19  ;;  %v2109_v8 = vmul.f32 %v14147_v61, %v10338_v26  ;;  %v14154_v10 = vld [vmem:[#allocation67_spill] sm:$0xff] }
 0x17f   : > { %v2009_v28 = vadd.f32 %v1991_v18, %v1929_v30  ;;  %v2069_v57 = vrot.slane %v2031_v4, 3  ;;  %v2070_v46 = vrot.slane %v2033_v47, 3  ;;  %v2111_v37 = vmul.f32 %v14147_v61, %v1343_v51  ;;  %v14155_v18 = vld [vmem:[#allocation71_spill] sm:$0xff] }
 0x180   : > { %v2065_v20 = vsel %vm1810_vm2, %v2063_v32, %v2064_v40  ;;  %v2113_v7 = vmul.f32 %v14147_v61, %v1768_v62  ;;  %v2143_v41 = vrot.slane %v2107_v2, 3  ;;  %v2191_v63 = vunpack.c.l.bf16 %v10111_v38 }
 0x181   : > { %v2071_v58 = vsel %vm1810_vm2, %v2069_v57, %v2070_v46  ;;  %v2087_v3 = vadd.f32 %v2065_v20, %v2007_v35  ;;  %v2144_v21 = vrot.slane %v2109_v8, 3  ;;  %v2149_v5 = vrot.slane %v2111_v37, 3 }
 0x182   : > { %v2089_v19 = vadd.f32 %v2071_v58, %v2009_v28  ;;  %v2150_v29 = vrot.slane %v2113_v7, 3  ;;  %v2193_v17 = vunpack.c.l.bf16 %v10119_v56  ;;  %v2211_v22 = vmul.f32 %v14149_v60, %v14148_v31  ;;  %v14156_v7 = vld [vmem:[#allocation72_spill] sm:$0xff] }
 0x183   : > { %v2213_v51 = vmul.f32 %v14149_v60, %v14070_v6  ;;  %v2215_v45 = vmul.f32 %v14149_v60, %v14150_v14  ;;  %v2145_v1 = vsel %vm1810_vm2, %v2143_v41, %v2144_v21  ;;  %v2217_v38 = vmul.f32 %v14149_v60, %v14141_v15 }
 0x184   : > { %v2151_v0 = vsel %vm1810_vm2, %v2149_v5, %v2150_v29  ;;  %v2292_v33 = vmul.f32 %v14151_v9, %v14150_v14  ;;  %v2167_v56 = vadd.f32 %v2145_v1, %v2087_v3  ;;  %v2248_v42 = vrot.slane %v2211_v22, 4  ;;  %v7788_v3 = vld [vmem:[%s8841_s17 + $0x28] sm:$0x77]  ;;  %v7789_v22 = vld [vmem:[%s8841_s17 + $0x30] sm:$0x77] }
 0x185   : > { %v2169_v16 = vadd.f32 %v2151_v0, %v2089_v19  ;;  %v2249_v27 = vrot.slane %v2213_v51, 4  ;;  %v2254_v50 = vrot.slane %v2215_v45, 4  ;;  %v2255_v54 = vrot.slane %v2217_v38, 4  ;;  %v7790_v45 = vld [vmem:[%s8841_s17 + $0x38] sm:$0x77] }
 0x186   : > { %v2294_v6 = vmul.f32 %v14151_v9, %v14141_v15  ;;  %v2296_v11 = vmul.f32 %v14151_v9, %v14152_v43  ;;  %v2298_v55 = vmul.f32 %v14151_v9, %v14143_v12  ;;  %v2328_v24 = vrot.slane %v2292_v33, 4 }
 0x187   : > { %v2250_v13 = vsel %vm2235_vm3, %v2248_v42, %v2249_v27  ;;  %v2372_v52 = vmul.f32 %v14153_v53, %v14152_v43  ;;  %v2256_v23 = vsel %vm2235_vm3, %v2254_v50, %v2255_v54  ;;  %v2374_v15 = vmul.f32 %v14153_v53, %v14143_v12  ;;  %v7796_v43 = vld [vmem:[%s8829_s12 + $0xd0] sm:$0xff] }
 0x188   : > { %v2272_v59 = vadd.f32 %v2250_v13, %v2167_v56  ;;  %v2329_v49 = vrot.slane %v2294_v6, 4  ;;  %v2334_v25 = vrot.slane %v2296_v11, 4  ;;  %v2274_v34 = vadd.f32 %v2256_v23, %v2169_v16  ;;  %v7792_v16 = vld [vmem:[%s8841_s17 + $0x48] sm:$0x77] }
 0x189   : > { %v2335_v39 = vrot.slane %v2298_v55, 4  ;;  %v2376_v30 = vmul.f32 %v14153_v53, %v14154_v10  ;;  %v2378_v4 = vmul.f32 %v14153_v53, %v14145_v48  ;;  %v2408_v47 = vrot.slane %v2372_v52, 4  ;;  %v7797_v11 = vld [vmem:[%s8829_s12 + $0xe0] sm:$0xff]  ;;  %v7798_v52 = vld [vmem:[%s8829_s12 + $0xf0] sm:$0xff] }
 0x18a   : > { %v2330_v44 = vsel %vm2235_vm3, %v2328_v24, %v2329_v49  ;;  %v2452_v35 = vmul.f32 %v14155_v18, %v14154_v10  ;;  %v2409_v28 = vrot.slane %v2374_v15, 4  ;;  %v2454_v61 = vmul.f32 %v14155_v18, %v14145_v48 }
 0x18b   : > { %v2336_v32 = vsel %vm2235_vm3, %v2334_v25, %v2335_v39  ;;  %v2352_v40 = vadd.f32 %v2330_v44, %v2272_v59  ;;  %v2414_v57 = vrot.slane %v2376_v30, 4  ;;  %v2415_v12 = vrot.slane %v2378_v4, 4  ;;  %v7799_v25 = vld [vmem:[%s8829_s12 + $0x100] sm:$0xff] }
 0x18c   : > { %v2354_v46 = vadd.f32 %v2336_v32, %v2274_v34  ;;  %v2456_v2 = vmul.f32 %v14155_v18, %v2191_v63  ;;  %v2410_v20 = vsel %vm2235_vm3, %v2408_v47, %v2409_v28  ;;  %v2458_v8 = vmul.f32 %v14155_v18, %v10338_v26  ;;  %v7800_v34 = vld [vmem:[%s8829_s12 + $0x110] sm:$0xff]  ;;  %v10500_v32 = vld [vmem:[%s8829_s12 + $0xc8] sm:$0x11] }
 0x18d   : > { %v2488_v37 = vrot.slane %v2452_v35, 4  ;;  %v2532_v58 = vmul.f32 %v14156_v7, %v2191_v63  ;;  %v2416_v41 = vsel %vm2235_vm3, %v2414_v57, %v2415_v12  ;;  %v2432_v19 = vadd.f32 %v2410_v20, %v2352_v40  ;;  %14162 = vst [vmem:[#allocation17_spill] sm:$0xff] %v10500_v32  ;;  %v14167_v12 = vld [vmem:[#allocation4_spill] sm:$0xff] }
 0x18e   : > { %v2489_v21 = vrot.slane %v2454_v61, 4  ;;  %v2494_v5 = vrot.slane %v2456_v2, 4  ;;  %v2434_v29 = vadd.f32 %v2416_v41, %v2354_v46  ;;  %v2495_v48 = vrot.slane %v2458_v8, 4 }
 0x18f   : > { %v2534_v31 = vmul.f32 %v14156_v7, %v10338_v26  ;;  %v2536_v60 = vmul.f32 %v14156_v7, %v2193_v17  ;;  %v2538_v63 = vmul.f32 %v14156_v7, %v1768_v62  ;;  %v2568_v14 = vrot.slane %v2532_v58, 4  ;;  %v7791_v17 = vld [vmem:[%s8841_s17 + $0x40] sm:$0x77] }
 0x190   : > { %v2490_v51 = vsel %vm2235_vm3, %v2488_v37, %v2489_v21  ;;  %v10452_v1 = vunpack.c.l.bf16 %v7788_v3  ;;  %v2496_v0 = vsel %vm2235_vm3, %v2494_v5, %v2495_v48  ;;  %v10457_v42 = vunpack.c.h.bf16 %v7788_v3  ;;  %v10462_v62 = vld [vmem:[%s8829_s12 + $0xc0] sm:$0xff]  ;;  %v7805_v48 = vld [vmem:[%s8829_s12 + $0xe8] sm:$0x11] }
 0x191   : > { %v2512_v38 = vadd.f32 %v2490_v51, %v2432_v19  ;;  %v2569_v26 = vrot.slane %v2534_v31, 4  ;;  %v2574_v9 = vrot.slane %v2536_v60, 4  ;;  %v2514_v33 = vadd.f32 %v2496_v0, %v2434_v29  ;;  %v7804_v29 = vld [vmem:[%s8829_s12 + $0xd8] sm:$0x11] }
 0x192   : > { %14157 = vst [vmem:[#allocation10_spill] sm:$0xff] %v10452_v1  ;;  %v2575_v56 = vrot.slane %v2538_v63, 4  ;;  %v10459_v36 = vunpack.c.l.bf16 %v7789_v22  ;;  %v10465_v50 = vunpack.c.h.bf16 %v7789_v22  ;;  %v10467_v54 = vunpack.c.l.bf16 %v7790_v45  ;;  %v7806_v63 = vld [vmem:[%s8829_s12 + $0xf8] sm:$0x11] }
 0x193   : > { %v2570_v27 = vsel %vm2235_vm3, %v2568_v14, %v2569_v26  ;;  %v10469_v6 = vunpack.c.h.bf16 %v7790_v45  ;;  %v10474_v24 = vunpack.c.l.bf16 %v7791_v17  ;;  %v10476_v53 = vunpack.c.h.bf16 %v7791_v17  ;;  %v7807_v26 = vld [vmem:[%s8829_s12 + $0x108] sm:$0x11] }
 0x194   : > { %v2576_v13 = vsel %vm2235_vm3, %v2574_v9, %v2575_v56  ;;  %v2592_v55 = vadd.f32 %v2570_v27, %v2512_v38  ;;  %v10479_v59 = vunpack.c.l.bf16 %v7792_v16  ;;  %v10481_v49 = vunpack.c.h.bf16 %v7792_v16  ;;  %v7808_v9 = vld [vmem:[%s8829_s12 + $0x118] sm:$0x11] }
 0x195   : > { %v2594_v23 = vadd.f32 %v2576_v13, %v2514_v33  ;;  %v13632_v39 = vunpack.c.l.bf16 %v10462_v62  ;;  %v2660_v15 = vunpack.c.h.bf16 %v10462_v62  ;;  %v10487_v10 = vunpack.c.l.bf16 %v7796_v43 }
 0x196   : > { %v10489_v30 = vunpack.c.h.bf16 %v7796_v43  ;;  %v10491_v44 = vunpack.c.l.bf16 %v7797_v11  ;;  %v10493_v47 = vunpack.c.h.bf16 %v7797_v11  ;;  %v10495_v18 = vunpack.c.l.bf16 %v7798_v52 }
 0x197   : > { %v2598_v4 = vpack.c.bf16 %v2594_v23, %v2592_v55  ;;  %v10497_v35 = vunpack.c.h.bf16 %v7798_v52  ;;  %v10502_v40 = vunpack.c.l.bf16 %v7799_v25  ;;  %v10504_v28 = vunpack.c.h.bf16 %v7799_v25 }
 0x198   : > { %14158 = vst [vmem:[#allocation15_spill] sm:$0xff] %v10491_v44  ;;  %14159 = vst [vmem:[#allocation11_spill] sm:$0xff] %v10493_v47  ;;  %v10506_v57 = vunpack.c.l.bf16 %v7800_v34  ;;  %v10508_v46 = vunpack.c.h.bf16 %v7800_v34  ;;  %v10512_v61 = vrot.slane %v10452_v1, %v14167_v12  ;;  %v10516_v2 = vrot.slane %v10457_v42, %v14167_v12 }
 0x199   : > { %14160 = vst [vmem:[#allocation16_spill] sm:$0xff] %v10495_v18  ;;  %14161 = vst [vmem:[#allocation12_spill] sm:$0xff] %v10497_v35  ;;  %4944 = vmatmul.mubr.bf16.gmra.mrb[4].mxu0 %v2598_v4  ;;  %v10520_v20 = vrot.slane %v10465_v50, %v14167_v12  ;;  %v10524_v8 = vrot.slane %v10469_v6, %v14167_v12  ;;  %v10528_v37 = vrot.slane %v10476_v53, %v14167_v12 }
 0x19a   : > { %14163 = vst [vmem:[#allocation13_spill] sm:$0xff] %v10502_v40  ;;  %14164 = vst [vmem:[#allocation18_spill] sm:$0xff] %v10504_v28  ;;  %v10532_v7 = vrot.slane %v10481_v49, %v14167_v12  ;;  %v13631_v58 = vunpack.c.l.bf16 %v10500_v32  ;;  %v13633_v3 = vunpack.c.h.bf16 %v10500_v32  ;;  %v10539_v41 = vmul.f32 %v10512_v61, %v13632_v39 }
 0x19b   : > { %14165 = vst [vmem:[#allocation19_spill] sm:$0xff] %v10506_v57  ;;  %14166 = vst [vmem:[#allocation29_spill] sm:$0xff] %v10508_v46  ;;  %v2684_v19 = vmul.f32 %v10516_v2, %v2660_v15  ;;  %v2686_v21 = vmul.f32 %v10516_v2, %v10489_v30  ;;  %v2708_v5 = vmul.f32 %v10520_v20, %v10489_v30  ;;  %v10565_v33 = vunpack.c.l.bf16 %v7804_v29 }
 0x19c   : > { %14168 = vst [vmem:[#allocation21_spill] sm:$0xff] %v10512_v61  ;;  %14169 = vst [vmem:[#allocation23_spill] sm:$0xff] %v10516_v2  ;;  %v2710_v31 = vmul.f32 %v10520_v20, %v10493_v47  ;;  %v2732_v60 = vmul.f32 %v10524_v8, %v10493_v47  ;;  %v2734_v22 = vmul.f32 %v10524_v8, %v10497_v35  ;;  %v10567_v56 = vunpack.c.h.bf16 %v7804_v29 }
 0x19d   : > { %14170 = vst [vmem:[#allocation31_spill] sm:$0xff] %v10520_v20  ;;  %14171 = vst [vmem:[#allocation25_spill] sm:$0xff] %v10524_v8  ;;  %v2756_v51 = vmul.f32 %v10528_v37, %v10497_v35  ;;  %v2716_v14 = vadd.f32 %v2708_v5, %v2684_v19  ;;  %v2758_v45 = vmul.f32 %v10528_v37, %v10504_v28  ;;  %v10569_v16 = vunpack.c.l.bf16 %v7805_v48  ;;  %v14182_v19 = vld [vmem:[#allocation5_spill] sm:$0xff] }
 0x19e   : > { %14172 = vst [vmem:[#allocation33_spill] sm:$0xff] %v10528_v37  ;;  %14173 = vst [vmem:[#allocation27_spill] sm:$0xff] %v10532_v7  ;;  %v2780_v0 = vmul.f32 %v10532_v7, %v10504_v28  ;;  %v2782_v38 = vmul.f32 %v10532_v7, %v10508_v46  ;;  %v2718_v17 = vadd.f32 %v2710_v31, %v2686_v21  ;;  %v10571_v43 = vunpack.c.h.bf16 %v7805_v48 }
 0x19f   : > { %14174 = vst [vmem:[#allocation35_spill] sm:$0xff] %v10569_v16  ;;  %v2740_v27 = vadd.f32 %v2732_v60, %v2716_v14  ;;  %v10573_v11 = vunpack.c.l.bf16 %v7806_v63  ;;  %v10575_v13 = vunpack.c.h.bf16 %v7806_v63  ;;  %v10577_v52 = vunpack.c.l.bf16 %v7807_v26 }
 0x1a0   : > { %14175 = vst [vmem:[#allocation37_spill] sm:$0xff] %v10571_v43  ;;  %v2742_v55 = vadd.f32 %v2734_v22, %v2718_v17  ;;  %v10579_v23 = vunpack.c.h.bf16 %v7807_v26  ;;  %v10581_v25 = vunpack.c.l.bf16 %v7808_v9  ;;  %v10583_v4 = vunpack.c.h.bf16 %v7808_v9 }
 0x1a1   : > { %14176 = vst [vmem:[#allocation40_spill] sm:$0xff] %v10573_v11  ;;  %14177 = vst [vmem:[#allocation48_spill] sm:$0xff] %v10575_v13  ;;  %v2764_v34 = vadd.f32 %v2756_v51, %v2740_v27  ;;  %v10587_v21 = vrot.slane %v10452_v1, %v14182_v19  ;;  %v10591_v5 = vrot.slane %v10457_v42, %v14182_v19 }
 0x1a2   : > { %14178 = vst [vmem:[#allocation42_spill] sm:$0xff] %v10577_v52  ;;  %14179 = vst [vmem:[#allocation49_spill] sm:$0xff] %v10579_v23  ;;  %v2766_v29 = vadd.f32 %v2758_v45, %v2742_v55  ;;  %v10595_v48 = vrot.slane %v10459_v36, %v14182_v19  ;;  %v10599_v31 = vrot.slane %v10465_v50, %v14182_v19 }
 0x1a3   : > { %14180 = vst [vmem:[#allocation44_spill] sm:$0xff] %v10581_v25  ;;  %14181 = vst [vmem:[#allocation50_spill] sm:$0xff] %v10583_v4  ;;  %v10603_v60 = vrot.slane %v10467_v54, %v14182_v19  ;;  %v2788_v22 = vadd.f32 %v2780_v0, %v2764_v34  ;;  %v2828_v51 = vmul.f32 %v10591_v5, %v2660_v15 }
 0x1a4   : > { %14183 = vst [vmem:[#allocation46_spill] sm:$0xff] %v10587_v21  ;;  %14184 = vst [vmem:[#allocation51_spill] sm:$0xff] %v10591_v5  ;;  %v10609_v63 = vmul.f32 %v10587_v21, %v13631_v58  ;;  %v2830_v14 = vmul.f32 %v10591_v5, %v13633_v3  ;;  %v2790_v45 = vadd.f32 %v2782_v38, %v2766_v29 }
 0x1a5   : > { %14185 = vst [vmem:[#allocation52_spill] sm:$0xff] %v10595_v48  ;;  %14186 = vst [vmem:[#allocation59_spill] sm:$0xff] %v10599_v31  ;;  %v2832_v26 = vmul.f32 %v10591_v5, %v10489_v30  ;;  %v2834_v9 = vmul.f32 %v10591_v5, %v10567_v56  ;;  %v2908_v0 = vmul.f32 %v10599_v31, %v10489_v30  ;;  %v2862_v17 = vrot.slane %v2828_v51, 1 }
 0x1a6   : > { %14187 = vst [vmem:[#allocation60_spill] sm:$0xff] %v10603_v60  ;;  %v2863_v27 = vrot.slane %v2830_v14, 1  ;;  %v2910_v55 = vmul.f32 %v10599_v31, %v10567_v56  ;;  %v2912_v38 = vmul.f32 %v10599_v31, %v10493_v47  ;;  %v2914_v29 = vmul.f32 %v10599_v31, %v10571_v43 }
 0x1a7   : > { %v2868_v34 = vrot.slane %v2832_v26, 1  ;;  %v2869_v58 = vrot.slane %v2834_v9, 1  ;;  %v2942_v3 = vrot.slane %v2908_v0, 1  ;;  %v10630_v51 = vrot.slane %v10469_v6, %v14182_v19 }
 0x1a8   : > { %v2864_v39 = vsel %vm960_vm0, %v2862_v17, %v2863_v27  ;;  %v2943_v30 = vrot.slane %v2910_v55, 1  ;;  %v2948_v26 = vrot.slane %v2912_v38, 1  ;;  %v2949_v9 = vrot.slane %v2914_v29, 1 }
 0x1a9   : > { %14188 = vst [vmem:[#allocation61_spill] sm:$0xff] %v10630_v51  ;;  %v2870_v14 = vsel %vm960_vm0, %v2868_v34, %v2869_v58  ;;  %v2892_v15 = vadd.f32 %v2864_v39, %v2788_v22  ;;  %v2988_v31 = vmul.f32 %v10630_v51, %v10493_v47  ;;  %v2990_v17 = vmul.f32 %v10630_v51, %v10571_v43  ;;  %v10644_v58 = vld [vmem:[%s8829_s12 + $0xc0] sm:$0xee] }
 0x1aa   : > { %v2894_v5 = vadd.f32 %v2870_v14, %v2790_v45  ;;  %v2944_v7 = vsel %vm960_vm0, %v2942_v3, %v2943_v30  ;;  %v2950_v0 = vsel %vm960_vm0, %v2948_v26, %v2949_v9  ;;  %v2992_v55 = vmul.f32 %v10630_v51, %v10497_v35  ;;  %14189 = vst [vmem:[#allocation62_spill] sm:$0xff] %v10644_v58 }
 0x1ab   : > { %v2972_v27 = vadd.f32 %v2944_v7, %v2892_v15  ;;  %v2994_v39 = vmul.f32 %v10630_v51, %v10575_v13  ;;  %v3022_v45 = vrot.slane %v2988_v31, 1  ;;  %v3023_v3 = vrot.slane %v2990_v17, 1  ;;  %v7813_v51 = vld [vmem:[%s8829_s12 + $0xe0] sm:$0xee] }
 0x1ac   : > { %v2974_v22 = vadd.f32 %v2950_v0, %v2894_v5  ;;  %v10648_v34 = vrot.slane %v10474_v24, %v14182_v19  ;;  %v3028_v38 = vrot.slane %v2992_v55, 1  ;;  %v10652_v7 = vrot.slane %v10476_v53, %v14182_v19 }
 0x1ad   : > { %v3029_v29 = vrot.slane %v2994_v39, 1  ;;  %v10656_v15 = vrot.slane %v10479_v59, %v14182_v19  ;;  %v3024_v30 = vsel %vm960_vm0, %v3022_v45, %v3023_v3  ;;  %v10661_v5 = vrot.slane %v10481_v49, %v14182_v19 }
 0x1ae   : > { %14190 = vst [vmem:[#allocation63_spill] sm:$0xff] %v10648_v34  ;;  %14191 = vst [vmem:[#allocation68_spill] sm:$0xff] %v10652_v7  ;;  %v3052_v9 = vadd.f32 %v3024_v30, %v2972_v27  ;;  %v3068_v17 = vmul.f32 %v10652_v7, %v10497_v35  ;;  %v3070_v0 = vmul.f32 %v10652_v7, %v10575_v13 }
 0x1af   : > { %14192 = vst [vmem:[#allocation69_spill] sm:$0xff] %v10656_v15  ;;  %14193 = vst [vmem:[#allocation14_spill] sm:$0xff] %v10661_v5  ;;  %v3030_v26 = vsel %vm960_vm0, %v3028_v38, %v3029_v29  ;;  %v3072_v39 = vmul.f32 %v10652_v7, %v10504_v28  ;;  %v3074_v45 = vmul.f32 %v10652_v7, %v10579_v23  ;;  %v7812_v38 = vld [vmem:[%s8829_s12 + $0xd0] sm:$0xee] }
 0x1b0   : > { %v3054_v55 = vadd.f32 %v3030_v26, %v2974_v22  ;;  %v3148_v3 = vmul.f32 %v10661_v5, %v10504_v28  ;;  %v3102_v27 = vrot.slane %v3068_v17, 1  ;;  %v3103_v29 = vrot.slane %v3070_v0, 1  ;;  %v7814_v0 = vld [vmem:[%s8829_s12 + $0xf0] sm:$0xee] }
 0x1b1   : > { %v3150_v30 = vmul.f32 %v10661_v5, %v10579_v23  ;;  %v3152_v22 = vmul.f32 %v10661_v5, %v10508_v46  ;;  %v3108_v26 = vrot.slane %v3072_v39, 1  ;;  %v3109_v14 = vrot.slane %v3074_v45, 1  ;;  %v7815_v46 = vld [vmem:[%s8829_s12 + $0x100] sm:$0xee]  ;;  %v7816_v39 = vld [vmem:[%s8829_s12 + $0x110] sm:$0xee] }
 0x1b2   : > { %v3154_v31 = vmul.f32 %v10661_v5, %v10583_v4  ;;  %v3182_v7 = vrot.slane %v3148_v3, 1  ;;  %v3104_v37 = vsel %vm960_vm0, %v3102_v27, %v3103_v29  ;;  %v10686_v28 = vunpack.c.l.bf16 %v7812_v38 }
 0x1b3   : > { %v3183_v8 = vrot.slane %v3150_v30, 1  ;;  %v3188_v17 = vrot.slane %v3152_v22, 1  ;;  %v3110_v20 = vsel %vm960_vm0, %v3108_v26, %v3109_v14  ;;  %v3132_v35 = vadd.f32 %v3104_v37, %v3052_v9  ;;  %v10704_v37 = vld [vmem:[%s8829_s12 + $0xc8] sm:$0x33] }
 0x1b4   : > { %14194 = vst [vmem:[#allocation28_spill] sm:$0xff] %v10686_v28  ;;  %v3189_v2 = vrot.slane %v3154_v31, 1  ;;  %v10691_v45 = vunpack.c.h.bf16 %v7812_v38  ;;  %v3134_v47 = vadd.f32 %v3110_v20, %v3054_v55  ;;  %v10694_v5 = vunpack.c.l.bf16 %v7813_v51 }
 0x1b5   : > { %v3184_v3 = vsel %vm960_vm0, %v3182_v7, %v3183_v8  ;;  %v10696_v27 = vunpack.c.h.bf16 %v7813_v51  ;;  %v10699_v22 = vunpack.c.l.bf16 %v7814_v0  ;;  %v10701_v19 = vunpack.c.h.bf16 %v7814_v0  ;;  %v14203_v51 = vld [vmem:[#allocation6_spill] sm:$0xff] }
 0x1b6   : > { %14195 = vst [vmem:[#allocation22_spill] sm:$0xff] %v10694_v5  ;;  %v3190_v29 = vsel %vm960_vm0, %v3188_v17, %v3189_v2  ;;  %v3212_v30 = vadd.f32 %v3184_v3, %v3132_v35  ;;  %v10706_v14 = vunpack.c.l.bf16 %v7815_v46  ;;  %v10708_v9 = vunpack.c.h.bf16 %v7815_v46 }
 0x1b7   : > { %14196 = vst [vmem:[#allocation30_spill] sm:$0xff] %v10696_v27  ;;  %14197 = vst [vmem:[#allocation24_spill] sm:$0xff] %v10699_v22  ;;  %v3214_v31 = vadd.f32 %v3190_v29, %v3134_v47  ;;  %v10710_v20 = vunpack.c.l.bf16 %v7816_v39  ;;  %v10712_v8 = vunpack.c.h.bf16 %v7816_v39  ;;  %v10716_v7 = vrot.slane %v10452_v1, %v14203_v51 }
 0x1b8   : > { %14198 = vst [vmem:[#allocation32_spill] sm:$0xff] %v10701_v19  ;;  %14199 = vst [vmem:[#allocation34_spill] sm:$0xff] %v10706_v14  ;;  %v10720_v35 = vrot.slane %v10457_v42, %v14203_v51  ;;  %v10724_v2 = vrot.slane %v10465_v50, %v14203_v51  ;;  %v10728_v47 = vrot.slane %v10469_v6, %v14203_v51  ;;  %v14210_v26 = vunpack.c.l.bf16 %v10644_v58 }
 0x1b9   : > { %14200 = vst [vmem:[#allocation36_spill] sm:$0xff] %v10708_v9  ;;  %14201 = vst [vmem:[#allocation47_spill] sm:$0xff] %v10710_v20  ;;  %v10732_v46 = vrot.slane %v10476_v53, %v14203_v51  ;;  %v10736_v55 = vrot.slane %v10481_v49, %v14203_v51  ;;  %v14211_v0 = vunpack.c.h.bf16 %v10644_v58  ;;  %v14212_v3 = vunpack.c.h.bf16 %v10500_v32 }
 0x1ba   : > { %14202 = vst [vmem:[#allocation20_spill] sm:$0xff] %v10712_v8  ;;  %14204 = vst [vmem:[#allocation26_spill] sm:$0xff] %v10716_v7  ;;  %v10742_v17 = vmul.f32 %v10716_v7, %v14210_v26  ;;  %v3256_v20 = vmul.f32 %v10720_v35, %v10691_v45  ;;  %v3258_v14 = vmul.f32 %v10720_v35, %v10567_v56 }
 0x1bb   : > { %14205 = vst [vmem:[#allocation38_spill] sm:$0xff] %v10720_v35  ;;  %14206 = vst [vmem:[#allocation39_spill] sm:$0xff] %v10724_v2  ;;  %v3252_v39 = vmul.f32 %v10720_v35, %v14211_v0  ;;  %v3254_v29 = vmul.f32 %v10720_v35, %v14212_v3  ;;  %v3332_v38 = vmul.f32 %v10724_v2, %v10691_v45 }
 0x1bc   : > { %14207 = vst [vmem:[#allocation58_spill] sm:$0xff] %v10728_v47  ;;  %14208 = vst [vmem:[#allocation55_spill] sm:$0xff] %v10732_v46  ;;  %v3334_v26 = vmul.f32 %v10724_v2, %v10567_v56  ;;  %v3336_v22 = vmul.f32 %v10724_v2, %v10696_v27  ;;  %v3292_v3 = vrot.slane %v3256_v20, 2  ;;  %v3293_v28 = vrot.slane %v3258_v14, 2 }
 0x1bd   : > { %14209 = vst [vmem:[#allocation41_spill] sm:$0xff] %v10736_v55  ;;  %v3286_v5 = vrot.slane %v3252_v39, 2  ;;  %v3287_v51 = vrot.slane %v3254_v29, 2  ;;  %v3338_v7 = vmul.f32 %v10724_v2, %v10571_v43  ;;  %v3366_v32 = vrot.slane %v3332_v38, 2 }
 0x1be   : > { %v3367_v35 = vrot.slane %v3334_v26, 2  ;;  %v3372_v15 = vrot.slane %v3336_v22, 2  ;;  %v3412_v56 = vmul.f32 %v10728_v47, %v10696_v27  ;;  %v3414_v52 = vmul.f32 %v10728_v47, %v10571_v43 }
 0x1bf   : > { %v3288_v25 = vsel %vm1385_vm1, %v3286_v5, %v3287_v51  ;;  %v3294_v0 = vsel %vm1385_vm1, %v3292_v3, %v3293_v28  ;;  %v3373_v14 = vrot.slane %v3338_v7, 2  ;;  %v3416_v38 = vmul.f32 %v10728_v47, %v10701_v19 }
 0x1c0   : > { %v3316_v39 = vadd.f32 %v3288_v25, %v3212_v30  ;;  %v3368_v20 = vsel %vm1385_vm1, %v3366_v32, %v3367_v35  ;;  %v3318_v29 = vadd.f32 %v3294_v0, %v3214_v31  ;;  %v3418_v5 = vmul.f32 %v10728_v47, %v10575_v13 }
 0x1c1   : > { %v3446_v22 = vrot.slane %v3412_v56, 2  ;;  %v3374_v51 = vsel %vm1385_vm1, %v3372_v15, %v3373_v14  ;;  %v3447_v2 = vrot.slane %v3414_v52, 2  ;;  %v3492_v43 = vmul.f32 %v10732_v46, %v10701_v19 }
 0x1c2   : > { %v3396_v26 = vadd.f32 %v3368_v20, %v3316_v39  ;;  %v3398_v28 = vadd.f32 %v3374_v51, %v3318_v29  ;;  %v3452_v25 = vrot.slane %v3416_v38, 2  ;;  %v3453_v32 = vrot.slane %v3418_v5, 2  ;;  %v7820_v29 = vld [vmem:[%s8829_s12 + $0xd8] sm:$0x33]  ;;  %v7821_v51 = vld [vmem:[%s8829_s12 + $0xe8] sm:$0x33] }
 0x1c3   : > { %v3494_v30 = vmul.f32 %v10732_v46, %v10575_v13  ;;  %v3448_v31 = vsel %vm1385_vm1, %v3446_v22, %v3447_v2  ;;  %v3496_v7 = vmul.f32 %v10732_v46, %v10708_v9  ;;  %v3498_v15 = vmul.f32 %v10732_v46, %v10579_v23 }
 0x1c4   : > { %v3526_v52 = vrot.slane %v3492_v43, 2  ;;  %v3454_v35 = vsel %vm1385_vm1, %v3452_v25, %v3453_v32  ;;  %v3476_v0 = vadd.f32 %v3448_v31, %v3396_v26  ;;  %v3572_v56 = vmul.f32 %v10736_v55, %v10708_v9  ;;  %v7822_v32 = vld [vmem:[%s8829_s12 + $0xf8] sm:$0x33] }
 0x1c5   : > { %v3527_v3 = vrot.slane %v3494_v30, 2  ;;  %v3478_v39 = vadd.f32 %v3454_v35, %v3398_v28  ;;  %v3532_v20 = vrot.slane %v3496_v7, 2  ;;  %v3533_v14 = vrot.slane %v3498_v15, 2  ;;  %v7824_v35 = vld [vmem:[%s8829_s12 + $0x118] sm:$0x33] }
 0x1c6   : > { %v3574_v2 = vmul.f32 %v10736_v55, %v10579_v23  ;;  %v3576_v43 = vmul.f32 %v10736_v55, %v10712_v8  ;;  %v3578_v5 = vmul.f32 %v10736_v55, %v10583_v4  ;;  %v3606_v22 = vrot.slane %v3572_v56, 2 }
 0x1c7   : > { %v3528_v38 = vsel %vm1385_vm1, %v3526_v52, %v3527_v3  ;;  %v3534_v26 = vsel %vm1385_vm1, %v3532_v20, %v3533_v14  ;;  %v7823_v52 = vld [vmem:[%s8829_s12 + $0x108] sm:$0x33]  ;;  %v10801_v3 = vunpack.c.l.bf16 %v7820_v29  ;;  %v10804_v55 = vunpack.c.h.bf16 %v7820_v29 }
 0x1c8   : > { %v3556_v28 = vadd.f32 %v3528_v38, %v3476_v0  ;;  %v3607_v25 = vrot.slane %v3574_v2, 2  ;;  %v3558_v31 = vadd.f32 %v3534_v26, %v3478_v39  ;;  %v3612_v7 = vrot.slane %v3576_v43, 2  ;;  %v10816_v38 = vld [vmem:[%s8829_s12 + $0xc0] sm:$0xcc] }
 0x1c9   : > { %v3613_v15 = vrot.slane %v3578_v5, 2  ;;  %14213 = vst [vmem:[#allocation56_spill] sm:$0xff] %v10801_v3  ;;  %v10806_v56 = vunpack.c.l.bf16 %v7821_v51  ;;  %v10808_v20 = vunpack.c.h.bf16 %v7821_v51  ;;  %v10811_v2 = vunpack.c.l.bf16 %v7822_v32  ;;  %v14222_v51 = vld [vmem:[#allocation7_spill] sm:$0xff] }
 0x1ca   : > { %v3608_v46 = vsel %vm1385_vm1, %v3606_v22, %v3607_v25  ;;  %v10813_v39 = vunpack.c.h.bf16 %v7822_v32  ;;  %v10818_v5 = vunpack.c.l.bf16 %v7823_v52  ;;  %v10820_v26 = vunpack.c.h.bf16 %v7823_v52 }
 0x1cb   : > { %14214 = vst [vmem:[#allocation43_spill] sm:$0xff] %v10806_v56  ;;  %14215 = vst [vmem:[#allocation57_spill] sm:$0xff] %v10808_v20  ;;  %v3614_v0 = vsel %vm1385_vm1, %v3612_v7, %v3613_v15  ;;  %v3636_v14 = vadd.f32 %v3608_v46, %v3556_v28  ;;  %v10822_v29 = vunpack.c.l.bf16 %v7824_v35  ;;  %v10824_v22 = vunpack.c.h.bf16 %v7824_v35 }
 0x1cc   : > { %14216 = vst [vmem:[#allocation45_spill] sm:$0xff] %v10811_v2  ;;  %14217 = vst [vmem:[#allocation53_spill] sm:$0xff] %v10813_v39  ;;  %v3638_v43 = vadd.f32 %v3614_v0, %v3558_v31  ;;  %v10828_v25 = vrot.slane %v10452_v1, %v14222_v51  ;;  %v10832_v46 = vrot.slane %v10457_v42, %v14222_v51  ;;  %v14229_v52 = vunpack.c.h.bf16 %v10644_v58 }
 0x1cd   : > { %14218 = vst [vmem:[#allocation64_spill] sm:$0xff] %v10818_v5  ;;  %14219 = vst [vmem:[#allocation54_spill] sm:$0xff] %v10820_v26  ;;  %v10836_v28 = vrot.slane %v10465_v50, %v14222_v51  ;;  %v10840_v32 = vrot.slane %v10469_v6, %v14222_v51  ;;  %v10844_v31 = vrot.slane %v10476_v53, %v14222_v51  ;;  %v14230_v0 = vunpack.c.l.bf16 %v10704_v37 }
 0x1ce   : > { %14220 = vst [vmem:[#allocation65_spill] sm:$0xff] %v10822_v29  ;;  %14221 = vst [vmem:[#allocation9_spill] sm:$0xff] %v10824_v22  ;;  %v10848_v7 = vrot.slane %v10481_v49, %v14222_v51  ;;  %v3676_v35 = vmul.f32 %v10832_v46, %v14229_v52  ;;  %v14231_v47 = vunpack.c.h.bf16 %v10704_v37  ;;  %v3680_v23 = vmul.f32 %v10832_v46, %v10691_v45 }
 0x1cf   : > { %14223 = vst [vmem:[#allocation66_spill] sm:$0xff] %v10828_v25  ;;  %14224 = vst [vmem:[#allocation70_spill] sm:$0xff] %v10832_v46  ;;  %v10857_v30 = vmul.f32 %v10828_v25, %v14230_v0  ;;  %v3682_v13 = vmul.f32 %v10832_v46, %v10804_v55  ;;  %v3756_v15 = vmul.f32 %v10836_v28, %v10691_v45 }
 0x1d0   : > { %14225 = vst [vmem:[#allocation67_spill] sm:$0xff] %v10836_v28  ;;  %14226 = vst [vmem:[#allocation71_spill] sm:$0xff] %v10840_v32  ;;  %v3678_v4 = vmul.f32 %v10832_v46, %v14231_v47  ;;  %v3758_v52 = vmul.f32 %v10836_v28, %v10804_v55  ;;  %v3760_v0 = vmul.f32 %v10836_v28, %v10696_v27  ;;  %v3710_v29 = vrot.slane %v3676_v35, 3 }
 0x1d1   : > { %14227 = vst [vmem:[#allocation72_spill] sm:$0xff] %v10844_v31  ;;  %14228 = vst [vmem:[#allocation73_spill] sm:$0xff] %v10848_v7  ;;  %v3716_v47 = vrot.slane %v3680_v23, 3  ;;  %v3717_v2 = vrot.slane %v3682_v13, 3  ;;  %v3762_v56 = vmul.f32 %v10836_v28, %v10808_v20  ;;  %v3790_v51 = vrot.slane %v3756_v15, 3 }
 0x1d2   : > { %v3711_v5 = vrot.slane %v3678_v4, 3  ;;  %v3791_v46 = vrot.slane %v3758_v52, 3  ;;  %v3796_v45 = vrot.slane %v3760_v0, 3  ;;  %v3836_v25 = vmul.f32 %v10840_v32, %v10696_v27 }
 0x1d3   : > { %v3838_v58 = vmul.f32 %v10840_v32, %v10808_v20  ;;  %v3718_v1 = vsel %vm1810_vm2, %v3716_v47, %v3717_v2  ;;  %v3797_v13 = vrot.slane %v3762_v56, 3  ;;  %v3840_v15 = vmul.f32 %v10840_v32, %v10701_v19 }
 0x1d4   : > { %v3712_v3 = vsel %vm1810_vm2, %v3710_v29, %v3711_v5  ;;  %v3792_v23 = vsel %vm1810_vm2, %v3790_v51, %v3791_v46  ;;  %v3742_v4 = vadd.f32 %v3718_v1, %v3638_v43  ;;  %v3842_v5 = vmul.f32 %v10840_v32, %v10813_v39 }
 0x1d5   : > { %v3740_v35 = vadd.f32 %v3712_v3, %v3636_v14  ;;  %v3870_v29 = vrot.slane %v3836_v25, 3  ;;  %v3798_v52 = vsel %vm1810_vm2, %v3796_v45, %v3797_v13  ;;  %v3871_v28 = vrot.slane %v3838_v58, 3 }
 0x1d6   : > { %v3916_v27 = vmul.f32 %v10844_v31, %v10701_v19  ;;  %v3822_v2 = vadd.f32 %v3798_v52, %v3742_v4  ;;  %v3876_v3 = vrot.slane %v3840_v15, 3  ;;  %v3877_v14 = vrot.slane %v3842_v5, 3  ;;  %v10902_v4 = vld [vmem:[%s8829_s12 + $0xd0] sm:$0xcc]  ;;  %v7829_v52 = vld [vmem:[%s8829_s12 + $0xe0] sm:$0xcc] }
 0x1d7   : > { %v3820_v0 = vadd.f32 %v3792_v23, %v3740_v35  ;;  %v3918_v1 = vmul.f32 %v10844_v31, %v10813_v39  ;;  %v3872_v56 = vsel %vm1810_vm2, %v3870_v29, %v3871_v28  ;;  %v3920_v43 = vmul.f32 %v10844_v31, %v10708_v9 }
 0x1d8   : > { %v3922_v51 = vmul.f32 %v10844_v31, %v10820_v26  ;;  %v3950_v58 = vrot.slane %v3916_v27, 3  ;;  %v3878_v25 = vsel %vm1810_vm2, %v3876_v3, %v3877_v14  ;;  %v3996_v45 = vmul.f32 %v10848_v7, %v10708_v9  ;;  %v7830_v14 = vld [vmem:[%s8829_s12 + $0xf0] sm:$0xcc] }
 0x1d9   : > { %v3900_v46 = vadd.f32 %v3872_v56, %v3820_v0  ;;  %v3951_v47 = vrot.slane %v3918_v1, 3  ;;  %v3902_v35 = vadd.f32 %v3878_v25, %v3822_v2  ;;  %v3956_v23 = vrot.slane %v3920_v43, 3  ;;  %v7831_v25 = vld [vmem:[%s8829_s12 + $0x100] sm:$0xcc] }
 0x1da   : > { %v3957_v13 = vrot.slane %v3922_v51, 3  ;;  %v3998_v28 = vmul.f32 %v10848_v7, %v10820_v26  ;;  %v4000_v15 = vmul.f32 %v10848_v7, %v10712_v8  ;;  %v4002_v5 = vmul.f32 %v10848_v7, %v10824_v22 }
 0x1db   : > { %v3952_v27 = vsel %vm1810_vm2, %v3950_v58, %v3951_v47  ;;  %v4030_v29 = vrot.slane %v3996_v45, 3  ;;  %v4076_v1 = vunpack.c.h.bf16 %v10816_v38  ;;  %v7832_v58 = vld [vmem:[%s8829_s12 + $0x110] sm:$0xcc]  ;;  %v4078_v7 = vunpack.c.h.bf16 %v10902_v4 }
 0x1dc   : > { %v3958_v0 = vsel %vm1810_vm2, %v3956_v23, %v3957_v13  ;;  %v3980_v2 = vadd.f32 %v3952_v27, %v3900_v46  ;;  %v4031_v3 = vrot.slane %v3998_v28, 3  ;;  %v4036_v43 = vrot.slane %v4000_v15, 3 }
 0x1dd   : > { %v3982_v56 = vadd.f32 %v3958_v0, %v3902_v35  ;;  %v4037_v51 = vrot.slane %v4002_v5, 3  ;;  %v10918_v45 = vunpack.c.l.bf16 %v7829_v52  ;;  %v10920_v32 = vunpack.c.h.bf16 %v7829_v52  ;;  %v14240_v0 = vld [vmem:[#allocation8_spill] sm:$0xff] }
 0x1de   : > { %v4032_v31 = vsel %vm1810_vm2, %v4030_v29, %v4031_v3  ;;  %v10923_v13 = vunpack.c.l.bf16 %v7830_v14  ;;  %v10925_v35 = vunpack.c.h.bf16 %v7830_v14  ;;  %v10927_v27 = vunpack.c.l.bf16 %v7831_v25 }
 0x1df   : > { %14232 = vst [vmem:[#allocation74_spill] sm:$0xff] %v10918_v45  ;;  %14233 = vst [vmem:[#allocation75_spill] sm:$0xff] %v10920_v32  ;;  %v4038_v46 = vsel %vm1810_vm2, %v4036_v43, %v4037_v51  ;;  %v4060_v23 = vadd.f32 %v4032_v31, %v3980_v2  ;;  %v10929_v15 = vunpack.c.h.bf16 %v7831_v25  ;;  %v10931_v5 = vunpack.c.l.bf16 %v7832_v58 }
 0x1e0   : > { %14234 = vst [vmem:[#allocation76_spill] sm:$0xff] %v10923_v13  ;;  %14235 = vst [vmem:[#allocation77_spill] sm:$0xff] %v10925_v35  ;;  %v4062_v28 = vadd.f32 %v4038_v46, %v3982_v56  ;;  %v10933_v29 = vunpack.c.h.bf16 %v7832_v58  ;;  %v10937_v52 = vrot.slane %v10457_v42, %v14240_v0  ;;  %v10941_v31 = vrot.slane %v10465_v50, %v14240_v0 }
 0x1e1   : > { %14236 = vst [vmem:[#allocation78_spill] sm:$0xff] %v10927_v27  ;;  %14237 = vst [vmem:[#allocation79_spill] sm:$0xff] %v10929_v15  ;;  %v10945_v2 = vrot.slane %v10469_v6, %v14240_v0  ;;  %v10949_v3 = vrot.slane %v10476_v53, %v14240_v0  ;;  %v10953_v14 = vrot.slane %v10481_v49, %v14240_v0  ;;  %v14247_v6 = vunpack.c.h.bf16 %v10704_v37 }
 0x1e2   : > { %14238 = vst [vmem:[#allocation80_spill] sm:$0xff] %v10931_v5  ;;  %14239 = vst [vmem:[#allocation81_spill] sm:$0xff] %v10933_v29  ;;  %v10957_v42 = vmul.f32 %v10512_v61, %v10487_v10  ;;  %v10961_v50 = vrot.slane %v10459_v36, %v14167_v12  ;;  %v4100_v56 = vmul.f32 %v10937_v52, %v4076_v1 }
 0x1e3   : > { %14241 = vst [vmem:[#allocation8_spill] sm:$0xff] %v10937_v52  ;;  %14242 = vst [vmem:[#allocation82_spill] sm:$0xff] %v10941_v31  ;;  %v4102_v43 = vmul.f32 %v10937_v52, %v14247_v6  ;;  %v4104_v53 = vmul.f32 %v10937_v52, %v4078_v7  ;;  %v4106_v49 = vmul.f32 %v10937_v52, %v10804_v55 }
 0x1e4   : > { %14243 = vst [vmem:[#allocation83_spill] sm:$0xff] %v10945_v2  ;;  %14244 = vst [vmem:[#allocation84_spill] sm:$0xff] %v10949_v3  ;;  %v4180_v51 = vmul.f32 %v10941_v31, %v4078_v7  ;;  %v4182_v25 = vmul.f32 %v10941_v31, %v10804_v55  ;;  %v4184_v58 = vmul.f32 %v10941_v31, %v10920_v32  ;;  %v4134_v46 = vrot.slane %v4100_v56, 4 }
 0x1e5   : > { %14245 = vst [vmem:[#allocation85_spill] sm:$0xff] %v10953_v14  ;;  %14246 = vst [vmem:[#allocation86_spill] sm:$0xff] %v10961_v50  ;;  %v4186_v1 = vmul.f32 %v10941_v31, %v10808_v20  ;;  %v4135_v47 = vrot.slane %v4102_v43, 4  ;;  %v4140_v61 = vrot.slane %v4104_v53, 4  ;;  %v4141_v6 = vrot.slane %v4106_v49, 4 }
 0x1e6   : > { %v4214_v8 = vrot.slane %v4180_v51, 4  ;;  %v4215_v9 = vrot.slane %v4182_v25, 4  ;;  %v4220_v19 = vrot.slane %v4184_v58, 4  ;;  %v4260_v55 = vmul.f32 %v10945_v2, %v10920_v32 }
 0x1e7   : > { %v4221_v5 = vrot.slane %v4186_v1, 4  ;;  %v4136_v52 = vsel %vm2235_vm3, %v4134_v46, %v4135_v47  ;;  %v4142_v7 = vsel %vm2235_vm3, %v4140_v61, %v4141_v6  ;;  %v4262_v27 = vmul.f32 %v10945_v2, %v10808_v20 }
 0x1e8   : > { %v4164_v13 = vadd.f32 %v4136_v52, %v4060_v23  ;;  %v4166_v31 = vadd.f32 %v4142_v7, %v4062_v28  ;;  %v4216_v56 = vsel %vm2235_vm3, %v4214_v8, %v4215_v9  ;;  %v4264_v53 = vmul.f32 %v10945_v2, %v10925_v35 }
 0x1e9   : > { %v4222_v43 = vsel %vm2235_vm3, %v4220_v19, %v4221_v5  ;;  %v4266_v47 = vmul.f32 %v10945_v2, %v10813_v39  ;;  %v4294_v49 = vrot.slane %v4260_v55, 4  ;;  %v4295_v61 = vrot.slane %v4262_v27, 4 }
 0x1ea   : > { %v4244_v51 = vadd.f32 %v4216_v56, %v4164_v13  ;;  %v4246_v25 = vadd.f32 %v4222_v43, %v4166_v31  ;;  %v4340_v58 = vmul.f32 %v10949_v3, %v10925_v35  ;;  %v4342_v23 = vmul.f32 %v10949_v3, %v10813_v39 }
 0x1eb   : > { %v4296_v9 = vsel %vm2235_vm3, %v4294_v49, %v4295_v61  ;;  %v4300_v8 = vrot.slane %v4264_v53, 4  ;;  %v4301_v19 = vrot.slane %v4266_v47, 4  ;;  %v4344_v28 = vmul.f32 %v10949_v3, %v10929_v15 }
 0x1ec   : > { %v4324_v5 = vadd.f32 %v4296_v9, %v4244_v51  ;;  %v4346_v52 = vmul.f32 %v10949_v3, %v10820_v26  ;;  %v4374_v27 = vrot.slane %v4340_v58, 4  ;;  %v4375_v13 = vrot.slane %v4342_v23, 4 }
 0x1ed   : > { %v4302_v31 = vsel %vm2235_vm3, %v4300_v8, %v4301_v19  ;;  %v4380_v1 = vrot.slane %v4344_v28, 4  ;;  %v4420_v46 = vmul.f32 %v10953_v14, %v10929_v15  ;;  %v4422_v6 = vmul.f32 %v10953_v14, %v10820_v26 }
 0x1ee   : > { %v4326_v7 = vadd.f32 %v4302_v31, %v4246_v25  ;;  %v4376_v55 = vsel %vm2235_vm3, %v4374_v27, %v4375_v13  ;;  %v4381_v56 = vrot.slane %v4346_v52, 4  ;;  %v4424_v43 = vmul.f32 %v10953_v14, %v10933_v29 }
 0x1ef   : > { %v4404_v53 = vadd.f32 %v4376_v55, %v4324_v5  ;;  %v4426_v47 = vmul.f32 %v10953_v14, %v10824_v22  ;;  %v4454_v49 = vrot.slane %v4420_v46, 4  ;;  %v4455_v61 = vrot.slane %v4422_v6, 4 }
 0x1f0   : > { %v4382_v51 = vsel %vm2235_vm3, %v4380_v1, %v4381_v56  ;;  %v4460_v58 = vrot.slane %v4424_v43, 4  ;;  %v2707_v23 = vmul.f32 %v10961_v50, %v10487_v10  ;;  %v2709_v25 = vmul.f32 %v10961_v50, %v10491_v44 }
 0x1f1   : > { %v4406_v9 = vadd.f32 %v4382_v51, %v4326_v7  ;;  %v4456_v8 = vsel %vm2235_vm3, %v4454_v49, %v4455_v61  ;;  %v4461_v19 = vrot.slane %v4426_v47, 4  ;;  %v11016_v28 = vrot.slane %v10467_v54, %v14167_v12 }
 0x1f2   : > { %v4484_v5 = vadd.f32 %v4456_v8, %v4404_v53  ;;  %v2715_v52 = vadd.f32 %v2707_v23, %v10539_v41  ;;  %v2717_v27 = vadd.f32 %v2709_v25, %v10957_v42  ;;  %v11022_v13 = vrot.slane %v10474_v24, %v14167_v12 }
 0x1f3   : > { %14248 = vst [vmem:[#allocation87_spill] sm:$0xff] %v11016_v28  ;;  %v4462_v31 = vsel %vm2235_vm3, %v4460_v58, %v4461_v19  ;;  %v2731_v1 = vmul.f32 %v11016_v28, %v10491_v44  ;;  %v2733_v46 = vmul.f32 %v11016_v28, %v10495_v18  ;;  %v11031_v6 = vrot.slane %v10479_v59, %v14167_v12  ;;  %v7949_v28 = vld [vmem:[%s8829_s12 + $0x1b8] sm:$0x11] }
 0x1f4   : > { %14249 = vst [vmem:[#allocation88_spill] sm:$0xff] %v11022_v13  ;;  %v4486_v7 = vadd.f32 %v4462_v31, %v4406_v9  ;;  %v2755_v41 = vmul.f32 %v11022_v13, %v10495_v18  ;;  %v2757_v42 = vmul.f32 %v11022_v13, %v10502_v40  ;;  %v14251_v55 = vunpack.c.l.bf16 %v10462_v62 }
 0x1f5   : > { %14250 = vst [vmem:[#allocation89_spill] sm:$0xff] %v11031_v6  ;;  %v2739_v43 = vadd.f32 %v2731_v1, %v2715_v52  ;;  %v2741_v53 = vadd.f32 %v2733_v46, %v2717_v27  ;;  %v2779_v47 = vmul.f32 %v11031_v6, %v10502_v40  ;;  %v2781_v49 = vmul.f32 %v11031_v6, %v10506_v57 }
 0x1f6   : > { %v2827_v56 = vmul.f32 %v10587_v21, %v14251_v55  ;;  %v4492_v61 = vpack.c.bf16 %v4486_v7, %v4484_v5  ;;  %v2831_v51 = vmul.f32 %v10587_v21, %v10487_v10  ;;  %v2833_v58 = vmul.f32 %v10587_v21, %v10565_v33  ;;  %v7948_v21 = vld [vmem:[%s8829_s12 + $0x1a8] sm:$0x11] }
 0x1f7   : > { %v2763_v25 = vadd.f32 %v2755_v41, %v2739_v43  ;;  %v2765_v62 = vadd.f32 %v2757_v42, %v2741_v53  ;;  %v2907_v9 = vmul.f32 %v10595_v48, %v10487_v10  ;;  %v2909_v8 = vmul.f32 %v10595_v48, %v10565_v33 }
 0x1f8   : > { %v2859_v23 = vrot.slane %v2827_v56, 1  ;;  %4720 = vmatprep.mubr.bf16.mxu1 %v4492_v61  ;;  %v14252_v19 = vrot.slane %v10609_v63, 1  ;;  %v2865_v52 = vrot.slane %v2831_v51, 1  ;;  %v2866_v27 = vrot.slane %v2833_v58, 1 }
 0x1f9   : > { %v2911_v31 = vmul.f32 %v10595_v48, %v10491_v44  ;;  %v2787_v1 = vadd.f32 %v2779_v47, %v2763_v25  ;;  %v2789_v46 = vadd.f32 %v2781_v49, %v2765_v62  ;;  %v2913_v7 = vmul.f32 %v10595_v48, %v10569_v16  ;;  %v14270_v48 = vld [vmem:[#allocation62_spill] sm:$0xff] }
 0x1fa   : > { %v2861_v5 = vsel %vm960_vm0, %v2859_v23, %v14252_v19  ;;  %v2939_v41 = vrot.slane %v2907_v9, 1  ;;  %v2867_v10 = vsel %vm960_vm0, %v2865_v52, %v2866_v27  ;;  %v2940_v42 = vrot.slane %v2909_v8, 1 }
 0x1fb   : > { %v2945_v55 = vrot.slane %v2911_v31, 1  ;;  %v2987_v63 = vmul.f32 %v10603_v60, %v10491_v44  ;;  %v2891_v56 = vadd.f32 %v2861_v5, %v2787_v1  ;;  %v2893_v43 = vadd.f32 %v2867_v10, %v2789_v46  ;;  %v14253_v1 = vld [vmem:[#allocation42_spill] sm:$0xff] }
 0x1fc   : > { %v2946_v53 = vrot.slane %v2913_v7, 1  ;;  %v2989_v61 = vmul.f32 %v10603_v60, %v10569_v16  ;;  %v2941_v47 = vsel %vm960_vm0, %v2939_v41, %v2940_v42  ;;  %v2991_v49 = vmul.f32 %v10603_v60, %v10495_v18 }
 0x1fd   : > { %v2993_v51 = vmul.f32 %v10603_v60, %v10573_v11  ;;  %v3019_v58 = vrot.slane %v2987_v63, 1  ;;  %v2971_v25 = vadd.f32 %v2941_v47, %v2891_v56  ;;  %v3067_v9 = vmul.f32 %v10648_v34, %v10495_v18 }
 0x1fe   : > { %v2947_v23 = vsel %vm960_vm0, %v2945_v55, %v2946_v53  ;;  %v3020_v62 = vrot.slane %v2989_v61, 1  ;;  %v3025_v19 = vrot.slane %v2991_v49, 1  ;;  %v3069_v52 = vmul.f32 %v10648_v34, %v10573_v11  ;;  %v14254_v55 = vld [vmem:[#allocation69_spill] sm:$0xff] }
 0x1ff   : > { %v2973_v8 = vadd.f32 %v2947_v23, %v2893_v43  ;;  %v3026_v5 = vrot.slane %v2993_v51, 1  ;;  %v3071_v31 = vmul.f32 %v10648_v34, %v10502_v40  ;;  %v3073_v46 = vmul.f32 %v10648_v34, %v14253_v1  ;;  %v14255_v51 = vld [vmem:[#allocation44_spill] sm:$0xff]  ;;  %v14260_v34 = vld [vmem:[#allocation6_spill] sm:$0xff] }
 0x200   : > { %v3021_v27 = vsel %vm960_vm0, %v3019_v58, %v3020_v62  ;;  %v3099_v7 = vrot.slane %v3067_v9, 1  ;;  %v3100_v42 = vrot.slane %v3069_v52, 1  ;;  %v3147_v63 = vmul.f32 %v14254_v55, %v10502_v40  ;;  %v7950_v40 = vld [vmem:[%s8829_s12 + $0x1c8] sm:$0x11] }
 0x201   : > { %v3027_v41 = vsel %vm960_vm0, %v3025_v19, %v3026_v5  ;;  %v3051_v10 = vadd.f32 %v3021_v27, %v2971_v25  ;;  %v3105_v43 = vrot.slane %v3071_v31, 1  ;;  %v3106_v53 = vrot.slane %v3073_v46, 1  ;;  %v14256_v19 = vld [vmem:[#allocation17_spill] sm:$0xff]  ;;  %v14258_v5 = vld [vmem:[#allocation26_spill] sm:$0xff] }
 0x202   : > { %v3053_v56 = vadd.f32 %v3027_v41, %v2973_v8  ;;  %v3149_v61 = vmul.f32 %v14254_v55, %v14253_v1  ;;  %v3101_v47 = vsel %vm960_vm0, %v3099_v7, %v3100_v42  ;;  %v3151_v49 = vmul.f32 %v14254_v55, %v10506_v57  ;;  %v14259_v41 = vld [vmem:[#allocation28_spill] sm:$0xff] }
 0x203   : > { %v3153_v58 = vmul.f32 %v14254_v55, %v14255_v51  ;;  %v3179_v23 = vrot.slane %v3147_v63, 1  ;;  %v3107_v25 = vsel %vm960_vm0, %v3105_v43, %v3106_v53  ;;  %v3131_v62 = vadd.f32 %v3101_v47, %v3051_v10 }
 0x204   : > { %v3180_v9 = vrot.slane %v3149_v61, 1  ;;  %v14257_v8 = vunpack.c.l.bf16 %v14256_v19  ;;  %v3133_v27 = vadd.f32 %v3107_v25, %v3053_v56  ;;  %v3185_v31 = vrot.slane %v3151_v49, 1 }
 0x205   : > { %v3186_v46 = vrot.slane %v3153_v58, 1  ;;  %v3255_v7 = vmul.f32 %v14258_v5, %v14259_v41  ;;  %v3257_v55 = vmul.f32 %v14258_v5, %v10565_v33  ;;  %v11100_v10 = vrot.slane %v10459_v36, %v14260_v34 }
 0x206   : > { %v3253_v52 = vmul.f32 %v14258_v5, %v14257_v8  ;;  %v3181_v42 = vsel %vm960_vm0, %v3179_v23, %v3180_v9  ;;  %v11105_v56 = vrot.slane %v10467_v54, %v14260_v34  ;;  %v14263_v49 = vrot.slane %v10742_v17, 2  ;;  %v14264_v8 = vld [vmem:[#allocation22_spill] sm:$0xff] }
 0x207   : > { %14261 = vst [vmem:[#allocation17_spill] sm:$0xff] %v11100_v10  ;;  %v3187_v43 = vsel %vm960_vm0, %v3185_v31, %v3186_v46  ;;  %v3211_v53 = vadd.f32 %v3181_v42, %v3131_v62  ;;  %v3289_v61 = vrot.slane %v3255_v7, 2  ;;  %v3290_v23 = vrot.slane %v3257_v55, 2 }
 0x208   : > { %v3284_v63 = vrot.slane %v3253_v52, 2  ;;  %14262 = vst [vmem:[#allocation28_spill] sm:$0xff] %v11105_v56  ;;  %v3213_v47 = vadd.f32 %v3187_v43, %v3133_v27  ;;  %v3331_v25 = vmul.f32 %v11100_v10, %v14259_v41  ;;  %v3333_v19 = vmul.f32 %v11100_v10, %v10565_v33  ;;  %v14265_v33 = vld [vmem:[#allocation24_spill] sm:$0xff] }
 0x209   : > { %v3335_v62 = vmul.f32 %v11100_v10, %v14264_v8  ;;  %v3337_v52 = vmul.f32 %v11100_v10, %v10569_v16  ;;  %v3291_v27 = vsel %vm1385_vm1, %v3289_v61, %v3290_v23  ;;  %v3411_v17 = vmul.f32 %v11105_v56, %v14264_v8  ;;  %v14269_v10 = vld [vmem:[#allocation47_spill] sm:$0xff] }
 0x20a   : > { %v3285_v58 = vsel %vm1385_vm1, %v14263_v49, %v3284_v63  ;;  %v3363_v31 = vrot.slane %v3331_v25, 2  ;;  %v3413_v55 = vmul.f32 %v11105_v56, %v10569_v16  ;;  %v3317_v46 = vadd.f32 %v3291_v27, %v3213_v47 }
 0x20b   : > { %v3315_v9 = vadd.f32 %v3285_v58, %v3211_v53  ;;  %v3364_v7 = vrot.slane %v3333_v19, 2  ;;  %v3369_v42 = vrot.slane %v3335_v62, 2  ;;  %v3370_v63 = vrot.slane %v3337_v52, 2 }
 0x20c   : > { %v3415_v43 = vmul.f32 %v11105_v56, %v14265_v33  ;;  %v3417_v53 = vmul.f32 %v11105_v56, %v10573_v11  ;;  %v3443_v49 = vrot.slane %v3411_v17, 2  ;;  %v3444_v58 = vrot.slane %v3413_v55, 2  ;;  %v14268_v55 = vld [vmem:[#allocation34_spill] sm:$0xff] }
 0x20d   : > { %v3365_v61 = vsel %vm1385_vm1, %v3363_v31, %v3364_v7  ;;  %v3371_v23 = vsel %vm1385_vm1, %v3369_v42, %v3370_v63  ;;  %v11131_v25 = vrot.slane %v10474_v24, %v14260_v34  ;;  %v11135_v47 = vrot.slane %v10479_v59, %v14260_v34 }
 0x20e   : > { %v3395_v19 = vadd.f32 %v3365_v61, %v3315_v9  ;;  %v3397_v62 = vadd.f32 %v3371_v23, %v3317_v46  ;;  %v3445_v52 = vsel %vm1385_vm1, %v3443_v49, %v3444_v58  ;;  %v3449_v27 = vrot.slane %v3415_v43, 2 }
 0x20f   : > { %14266 = vst [vmem:[#allocation6_spill] sm:$0xff] %v11131_v25  ;;  %14267 = vst [vmem:[#allocation90_spill] sm:$0xff] %v11135_v47  ;;  %v3450_v56 = vrot.slane %v3417_v53, 2  ;;  %v3491_v17 = vmul.f32 %v11131_v25, %v14265_v33  ;;  %v3493_v31 = vmul.f32 %v11131_v25, %v10573_v11  ;;  %v3495_v7 = vmul.f32 %v11131_v25, %v14268_v55 }
 0x210   : > { %v3475_v42 = vadd.f32 %v3445_v52, %v3395_v19  ;;  %v3497_v63 = vmul.f32 %v11131_v25, %v14253_v1  ;;  %v3571_v9 = vmul.f32 %v11135_v47, %v14268_v55  ;;  %v3573_v46 = vmul.f32 %v11135_v47, %v14253_v1  ;;  %v14272_v1 = vld [vmem:[#allocation66_spill] sm:$0xff] }
 0x211   : > { %v3451_v43 = vsel %vm1385_vm1, %v3449_v27, %v3450_v56  ;;  %v3523_v53 = vrot.slane %v3491_v17, 2  ;;  %v3524_v49 = vrot.slane %v3493_v31, 2  ;;  %v3529_v58 = vrot.slane %v3495_v7, 2 }
 0x212   : > { %v3477_v61 = vadd.f32 %v3451_v43, %v3397_v62  ;;  %v3530_v23 = vrot.slane %v3497_v63, 2  ;;  %v3575_v5 = vmul.f32 %v11135_v47, %v14269_v10  ;;  %v3577_v19 = vmul.f32 %v11135_v47, %v14255_v51  ;;  %v14273_v43 = vld [vmem:[#allocation56_spill] sm:$0xff] }
 0x213   : > { %v3525_v52 = vsel %vm1385_vm1, %v3523_v53, %v3524_v49  ;;  %v3603_v25 = vrot.slane %v3571_v9, 2  ;;  %v3604_v60 = vrot.slane %v3573_v46, 2  ;;  %v14271_v11 = vunpack.c.l.bf16 %v14270_v48  ;;  %v14274_v49 = vld [vmem:[#allocation7_spill] sm:$0xff] }
 0x214   : > { %v3531_v56 = vsel %vm1385_vm1, %v3529_v58, %v3530_v23  ;;  %v3555_v27 = vadd.f32 %v3525_v52, %v3475_v42  ;;  %v3609_v17 = vrot.slane %v3575_v5, 2  ;;  %v3610_v62 = vrot.slane %v3577_v19, 2 }
 0x215   : > { %v3675_v16 = vmul.f32 %v14272_v1, %v14271_v11  ;;  %v3557_v31 = vadd.f32 %v3531_v56, %v3477_v61  ;;  %v3605_v7 = vsel %vm1385_vm1, %v3603_v25, %v3604_v60  ;;  %v3679_v63 = vmul.f32 %v14272_v1, %v14259_v41 }
 0x216   : > { %v3681_v53 = vmul.f32 %v14272_v1, %v14273_v43  ;;  %v3611_v9 = vsel %vm1385_vm1, %v3609_v17, %v3610_v62  ;;  %v3635_v46 = vadd.f32 %v3605_v7, %v3555_v27  ;;  %v11168_v11 = vrot.slane %v10459_v36, %v14274_v49  ;;  %v14278_v27 = vld [vmem:[#allocation43_spill] sm:$0xff] }
 0x217   : > { %v3707_v48 = vrot.slane %v3675_v16, 3  ;;  %v3637_v42 = vadd.f32 %v3611_v9, %v3557_v31  ;;  %v3713_v5 = vrot.slane %v3679_v63, 3  ;;  %v11172_v60 = vrot.slane %v10467_v54, %v14274_v49 }
 0x218   : > { %14275 = vst [vmem:[#allocation62_spill] sm:$0xff] %v11168_v11  ;;  %v3714_v58 = vrot.slane %v3681_v53, 3  ;;  %v14277_v25 = vrot.slane %v10857_v30, 3  ;;  %v3755_v23 = vmul.f32 %v11168_v11, %v14259_v41  ;;  %v3757_v16 = vmul.f32 %v11168_v11, %v14273_v43 }
 0x219   : > { %14276 = vst [vmem:[#allocation56_spill] sm:$0xff] %v11172_v60  ;;  %v3759_v19 = vmul.f32 %v11168_v11, %v14264_v8  ;;  %v3761_v17 = vmul.f32 %v11168_v11, %v14278_v27  ;;  %v3835_v30 = vmul.f32 %v11172_v60, %v14264_v8  ;;  %v3837_v53 = vmul.f32 %v11172_v60, %v14278_v27  ;;  %v14282_v11 = vld [vmem:[#allocation64_spill] sm:$0xff] }
 0x21a   : > { %v3709_v61 = vsel %vm1810_vm2, %v3707_v48, %v14277_v25  ;;  %v3715_v52 = vsel %vm1810_vm2, %v3713_v5, %v3714_v58  ;;  %v3787_v31 = vrot.slane %v3755_v23, 3  ;;  %v3788_v7 = vrot.slane %v3757_v16, 3  ;;  %v14279_v48 = vld [vmem:[#allocation45_spill] sm:$0xff] }
 0x21b   : > { %v3739_v56 = vadd.f32 %v3709_v61, %v3635_v46  ;;  %v3741_v62 = vadd.f32 %v3715_v52, %v3637_v42  ;;  %v3793_v63 = vrot.slane %v3759_v19, 3  ;;  %v3794_v41 = vrot.slane %v3761_v17, 3 }
 0x21c   : > { %v3839_v9 = vmul.f32 %v11172_v60, %v14265_v33  ;;  %v3841_v46 = vmul.f32 %v11172_v60, %v14279_v48  ;;  %v3789_v5 = vsel %vm1810_vm2, %v3787_v31, %v3788_v7  ;;  %v3867_v58 = vrot.slane %v3835_v30, 3 }
 0x21d   : > { %v11197_v25 = vrot.slane %v10474_v24, %v14274_v49  ;;  %v11201_v42 = vrot.slane %v10479_v59, %v14274_v49  ;;  %v3795_v61 = vsel %vm1810_vm2, %v3793_v63, %v3794_v41  ;;  %v3819_v23 = vadd.f32 %v3789_v5, %v3739_v56 }
 0x21e   : > { %v3868_v16 = vrot.slane %v3837_v53, 3  ;;  %v3873_v19 = vrot.slane %v3839_v9, 3  ;;  %v3821_v52 = vadd.f32 %v3795_v61, %v3741_v62  ;;  %v3874_v17 = vrot.slane %v3841_v46, 3 }
 0x21f   : > { %14280 = vst [vmem:[#allocation7_spill] sm:$0xff] %v11197_v25  ;;  %14281 = vst [vmem:[#allocation91_spill] sm:$0xff] %v11201_v42  ;;  %v3915_v60 = vmul.f32 %v11197_v25, %v14265_v33  ;;  %v3917_v30 = vmul.f32 %v11197_v25, %v14279_v48  ;;  %v3919_v7 = vmul.f32 %v11197_v25, %v14268_v55 }
 0x220   : > { %v3869_v31 = vsel %vm1810_vm2, %v3867_v58, %v3868_v16  ;;  %v3921_v1 = vmul.f32 %v11197_v25, %v14282_v11  ;;  %v3995_v56 = vmul.f32 %v11201_v42, %v14268_v55  ;;  %v3875_v62 = vsel %vm1810_vm2, %v3873_v19, %v3874_v17  ;;  %v14283_v25 = vld [vmem:[#allocation65_spill] sm:$0xff] }
 0x221   : > { %v3899_v63 = vadd.f32 %v3869_v31, %v3819_v23  ;;  %v3947_v41 = vrot.slane %v3915_v60, 3  ;;  %v3948_v53 = vrot.slane %v3917_v30, 3  ;;  %v3901_v9 = vadd.f32 %v3875_v62, %v3821_v52  ;;  %v14284_v52 = vld [vmem:[#allocation10_spill] sm:$0xff] }
 0x222   : > { %v3953_v46 = vrot.slane %v3919_v7, 3  ;;  %v3954_v5 = vrot.slane %v3921_v1, 3  ;;  %v3997_v58 = vmul.f32 %v11201_v42, %v14282_v11  ;;  %v3999_v16 = vmul.f32 %v11201_v42, %v14269_v10 }
 0x223   : > { %v3949_v61 = vsel %vm1810_vm2, %v3947_v41, %v3948_v53  ;;  %v4001_v47 = vmul.f32 %v11201_v42, %v14283_v25  ;;  %v4027_v55 = vrot.slane %v3995_v56, 3  ;;  %v11226_v17 = vrot.slane %v14284_v52, %v14240_v0 }
 0x224   : > { %v3955_v19 = vsel %vm1810_vm2, %v3953_v46, %v3954_v5  ;;  %v3979_v23 = vadd.f32 %v3949_v61, %v3899_v63  ;;  %v4028_v60 = vrot.slane %v3997_v58, 3  ;;  %v4033_v30 = vrot.slane %v3999_v16, 3 }
 0x225   : > { %14285 = vst [vmem:[#allocation10_spill] sm:$0xff] %v11226_v17  ;;  %v3981_v1 = vadd.f32 %v3955_v19, %v3901_v9  ;;  %v4034_v31 = vrot.slane %v4001_v47, 3  ;;  %v11230_v7 = vrot.slane %v10459_v36, %v14240_v0  ;;  %v14287_v41 = vunpack.c.l.bf16 %v10816_v38 }
 0x226   : > { %v4029_v62 = vsel %vm1810_vm2, %v4027_v55, %v4028_v60  ;;  %v14288_v63 = vunpack.c.l.bf16 %v10704_v37  ;;  %v14289_v46 = vunpack.c.l.bf16 %v10902_v4  ;;  %v4105_v36 = vmul.f32 %v11226_v17, %v14273_v43 }
 0x227   : > { %14286 = vst [vmem:[#allocation92_spill] sm:$0xff] %v11230_v7  ;;  %v4099_v56 = vmul.f32 %v11226_v17, %v14287_v41  ;;  %v4035_v47 = vsel %vm1810_vm2, %v4033_v30, %v4034_v31  ;;  %v4059_v5 = vadd.f32 %v4029_v62, %v3979_v23  ;;  %v4181_v60 = vmul.f32 %v11230_v7, %v14273_v43 }
 0x228   : > { %v4101_v53 = vmul.f32 %v11226_v17, %v14288_v63  ;;  %v4103_v9 = vmul.f32 %v11226_v17, %v14289_v46  ;;  %v14290_v55 = vmov %v14289_v46  ;;  %v4061_v58 = vadd.f32 %v4035_v47, %v3981_v1  ;;  %v14293_v47 = vld [vmem:[#allocation76_spill] sm:$0xff] }
 0x229   : > { %v4179_v38 = vmul.f32 %v11230_v7, %v14290_v55  ;;  %v4131_v61 = vrot.slane %v4099_v56, 4  ;;  %v4138_v19 = vrot.slane %v4105_v36, 4  ;;  %v4183_v52 = vmul.f32 %v11230_v7, %v10918_v45 }
 0x22a   : > { %v4132_v16 = vrot.slane %v4101_v53, 4  ;;  %v4137_v37 = vrot.slane %v4103_v9, 4  ;;  %v4185_v23 = vmul.f32 %v11230_v7, %v14278_v27  ;;  %v11257_v4 = vrot.slane %v10467_v54, %v14240_v0 }
 0x22b   : > { %v4211_v31 = vrot.slane %v4179_v38, 4  ;;  %v11261_v1 = vrot.slane %v10474_v24, %v14240_v0  ;;  %v4212_v41 = vrot.slane %v4181_v60, 4  ;;  %v4217_v56 = vrot.slane %v4183_v52, 4  ;;  %v7931_v52 = vld [vmem:[%s8841_s17 + $0x50] sm:$0x77] }
 0x22c   : > { %v4133_v30 = vsel %vm2235_vm3, %v4131_v61, %v4132_v16  ;;  %14291 = vst [vmem:[#allocation93_spill] sm:$0xff] %v11257_v4  ;;  %v4139_v62 = vsel %vm2235_vm3, %v4137_v37, %v4138_v19  ;;  %v4218_v53 = vrot.slane %v4185_v23, 4  ;;  %v4259_v46 = vmul.f32 %v11257_v4, %v10918_v45 }
 0x22d   : > { %14292 = vst [vmem:[#allocation94_spill] sm:$0xff] %v11261_v1  ;;  %v4163_v43 = vadd.f32 %v4133_v30, %v4059_v5  ;;  %v4165_v63 = vadd.f32 %v4139_v62, %v4061_v58  ;;  %v4261_v9 = vmul.f32 %v11257_v4, %v14278_v27  ;;  %v4213_v54 = vsel %vm2235_vm3, %v4211_v31, %v4212_v41  ;;  %v14294_v30 = vld [vmem:[#allocation78_spill] sm:$0xff]  ;;  %v7947_v27 = vld [vmem:[%s8829_s12 + $0x198] sm:$0x11] }
 0x22e   : > { %v4263_v24 = vmul.f32 %v11257_v4, %v14293_v47  ;;  %v4265_v36 = vmul.f32 %v11257_v4, %v14279_v48  ;;  %v4339_v5 = vmul.f32 %v11261_v1, %v14293_v47  ;;  %v4219_v55 = vsel %vm2235_vm3, %v4217_v56, %v4218_v53  ;;  %v7943_v47 = vld [vmem:[%s8829_s12 + $0x1d0] sm:$0xff] }
 0x22f   : > { %v4243_v38 = vadd.f32 %v4213_v54, %v4163_v43  ;;  %v4291_v58 = vrot.slane %v4259_v46, 4  ;;  %v4292_v61 = vrot.slane %v4261_v9, 4  ;;  %v4245_v16 = vadd.f32 %v4219_v55, %v4165_v63 }
 0x230   : > { %v4297_v37 = vrot.slane %v4263_v24, 4  ;;  %v4298_v19 = vrot.slane %v4265_v36, 4  ;;  %v4341_v60 = vmul.f32 %v11261_v1, %v14279_v48  ;;  %v4343_v31 = vmul.f32 %v11261_v1, %v14294_v30 }
 0x231   : > { %v4293_v23 = vsel %vm2235_vm3, %v4291_v58, %v4292_v61  ;;  %v4345_v62 = vmul.f32 %v11261_v1, %v14282_v11  ;;  %v4371_v43 = vrot.slane %v4339_v5, 4  ;;  %v11287_v53 = vrot.slane %v10479_v59, %v14240_v0  ;;  %v7932_v61 = vld [vmem:[%s8841_s17 + $0x58] sm:$0x77]  ;;  %v7933_v59 = vld [vmem:[%s8841_s17 + $0x60] sm:$0x77] }
 0x232   : > { %v4299_v41 = vsel %vm2235_vm3, %v4297_v37, %v4298_v19  ;;  %v4323_v56 = vadd.f32 %v4293_v23, %v4243_v38  ;;  %v4372_v63 = vrot.slane %v4341_v60, 4  ;;  %v4377_v9 = vrot.slane %v4343_v31, 4  ;;  %v14296_v38 = vld [vmem:[#allocation80_spill] sm:$0xff]  ;;  %v7934_v60 = vld [vmem:[%s8841_s17 + $0x68] sm:$0x77] }
 0x233   : > { %14295 = vst [vmem:[#allocation95_spill] sm:$0xff] %v11287_v53  ;;  %v4325_v46 = vadd.f32 %v4299_v41, %v4245_v16  ;;  %v4378_v54 = vrot.slane %v4345_v62, 4  ;;  %v11289_v24 = vunpack.c.l.bf16 %v7931_v52  ;;  %v4419_v5 = vmul.f32 %v11287_v53, %v14294_v30  ;;  %v7942_v30 = vld [vmem:[%s8829_s12 + $0x1c0] sm:$0xff] }
 0x234   : > { %v4373_v36 = vsel %vm2235_vm3, %v4371_v43, %v4372_v63  ;;  %v4421_v55 = vmul.f32 %v11287_v53, %v14282_v11  ;;  %v4423_v58 = vmul.f32 %v11287_v53, %v14296_v38  ;;  %v4425_v19 = vmul.f32 %v11287_v53, %v14283_v25  ;;  %v7935_v63 = vld [vmem:[%s8841_s17 + $0x70] sm:$0x77] }
 0x235   : > { %v4379_v16 = vsel %vm2235_vm3, %v4377_v9, %v4378_v54  ;;  %v4403_v37 = vadd.f32 %v4373_v36, %v4323_v56  ;;  %v11304_v23 = vunpack.c.h.bf16 %v7931_v52  ;;  %v4451_v62 = vrot.slane %v4419_v5, 4  ;;  %v11314_v9 = vld [vmem:[%s8829_s12 + $0x180] sm:$0xff]  ;;  %v7939_v52 = vld [vmem:[%s8829_s12 + $0x190] sm:$0xff] }
 0x236   : > { %v4405_v31 = vadd.f32 %v4379_v16, %v4325_v46  ;;  %v4452_v43 = vrot.slane %v4421_v55, 4  ;;  %v4457_v41 = vrot.slane %v4423_v58, 4  ;;  %v4458_v1 = vrot.slane %v4425_v19, 4  ;;  %v7940_v55 = vld [vmem:[%s8829_s12 + $0x1a0] sm:$0xff]  ;;  %v7941_v58 = vld [vmem:[%s8829_s12 + $0x1b0] sm:$0xff] }
 0x237   : > { %v11307_v38 = vunpack.c.l.bf16 %v7932_v61  ;;  %v11309_v4 = vunpack.c.h.bf16 %v7932_v61  ;;  %v11311_v56 = vunpack.c.l.bf16 %v7933_v59  ;;  %v11318_v46 = vunpack.c.h.bf16 %v7933_v59 }
 0x238   : > { %v4453_v54 = vsel %vm2235_vm3, %v4451_v62, %v4452_v43  ;;  %v11320_v36 = vunpack.c.l.bf16 %v7934_v60  ;;  %v11322_v5 = vunpack.c.h.bf16 %v7934_v60  ;;  %v4459_v16 = vsel %vm2235_vm3, %v4457_v41, %v4458_v1 }
 0x239   : > { %v4483_v61 = vadd.f32 %v4453_v54, %v4403_v37  ;;  %v11327_v19 = vunpack.c.l.bf16 %v7935_v63  ;;  %v11329_v53 = vunpack.c.h.bf16 %v7935_v63  ;;  %v4485_v7 = vadd.f32 %v4459_v16, %v4405_v31 }
 0x23a   : > { %v13777_v62 = vunpack.c.l.bf16 %v11314_v9  ;;  %v13778_v59 = vunpack.c.h.bf16 %v11314_v9  ;;  %v11335_v43 = vunpack.c.l.bf16 %v7939_v52  ;;  %v11337_v60 = vunpack.c.h.bf16 %v7939_v52 }
 0x23b   : > { %v11339_v17 = vunpack.c.l.bf16 %v7940_v55  ;;  %v11341_v45 = vunpack.c.h.bf16 %v7940_v55  ;;  %v11343_v1 = vunpack.c.l.bf16 %v7941_v58  ;;  %v4491_v37 = vpack.c.bf16 %v4485_v7, %v4483_v61 }
 0x23c   : > { %v11345_v41 = vunpack.c.h.bf16 %v7941_v58  ;;  %v11347_v63 = vunpack.c.l.bf16 %v7942_v30  ;;  %v11349_v31 = vunpack.c.h.bf16 %v7942_v30  ;;  %v11351_v54 = vunpack.c.l.bf16 %v7943_v47 }
 0x23d   : > { %14297 = vst [vmem:[#allocation96_spill] sm:$0xff] %v11341_v45  ;;  %v11353_v16 = vunpack.c.h.bf16 %v7943_v47  ;;  %v11357_v52 = vrot.slane %v11289_v24, %v14167_v12  ;;  %v11361_v55 = vrot.slane %v11304_v23, %v14167_v12  ;;  %4721 = vmatmul.mubr.bf16.vlgmr.msra.gmra.mrb[0].mxu1 %v4491_v37  ;;  %v11365_v7 = vrot.slane %v11307_v38, %v14167_v12 }
 0x23e   : > { %14298 = vst [vmem:[#allocation97_spill] sm:$0xff] %v11345_v41  ;;  %14299 = vst [vmem:[#allocation98_spill] sm:$0xff] %v11349_v31  ;;  %v11369_v30 = vrot.slane %v11309_v4, %v14167_v12  ;;  %v11373_v47 = vrot.slane %v11318_v46, %v14167_v12  ;;  %v11377_v58 = vrot.slane %v11322_v5, %v14167_v12  ;;  %v11421_v44 = vunpack.c.l.bf16 %v7947_v27 }
 0x23f   : > { %14300 = vst [vmem:[#allocation99_spill] sm:$0xff] %v11353_v16  ;;  %14301 = vst [vmem:[#allocation100_spill] sm:$0xff] %v11361_v55  ;;  %v5005_v61 = vmul.f32 %v11357_v52, %v13777_v62  ;;  %v5006_v37 = vmul.f32 %v11361_v55, %v13778_v59  ;;  %v5008_v42 = vmul.f32 %v11361_v55, %v11337_v60  ;;  %v11400_v55 = vld [vmem:[%s8829_s12 + $0x188] sm:$0x11] }
 0x240   : > { %14302 = vst [vmem:[#allocation101_spill] sm:$0xff] %v11369_v30  ;;  %14303 = vst [vmem:[#allocation102_spill] sm:$0xff] %v11373_v47  ;;  %v11389_v25 = vrot.slane %v11329_v53, %v14167_v12  ;;  %v5029_v11 = vmul.f32 %v11365_v7, %v11335_v43  ;;  %v5030_v48 = vmul.f32 %v11369_v30, %v11337_v60  ;;  %v14321_v2 = vunpack.c.l.bf16 %v11400_v55 }
 0x241   : > { %14304 = vst [vmem:[#allocation103_spill] sm:$0xff] %v11377_v58  ;;  %v5032_v62 = vmul.f32 %v11369_v30, %v11341_v45  ;;  %v5054_v59 = vmul.f32 %v11373_v47, %v11341_v45  ;;  %v5056_v10 = vmul.f32 %v11373_v47, %v11345_v41  ;;  %v5078_v33 = vmul.f32 %v11377_v58, %v11345_v41  ;;  %v7951_v47 = vld [vmem:[%s8829_s12 + $0x1d8] sm:$0x11] }
 0x242   : > { %14305 = vst [vmem:[#allocation104_spill] sm:$0xff] %v11389_v25  ;;  %v5080_v8 = vmul.f32 %v11377_v58, %v11349_v31  ;;  %v5102_v51 = vmul.f32 %v11389_v25, %v11349_v31  ;;  %v11412_v30 = vadd.f32 %v5029_v11, %v5005_v61  ;;  %v5038_v6 = vadd.f32 %v5030_v48, %v5006_v37 }
 0x243   : > { %v5040_v13 = vadd.f32 %v5032_v62, %v5008_v42  ;;  %v5104_v57 = vmul.f32 %v11389_v25, %v11353_v16  ;;  %v11423_v58 = vunpack.c.h.bf16 %v7947_v27  ;;  %v11425_v11 = vunpack.c.l.bf16 %v7948_v21 }
 0x244   : > { %v5062_v14 = vadd.f32 %v5054_v59, %v5038_v6  ;;  %v11427_v48 = vunpack.c.h.bf16 %v7948_v21  ;;  %v11429_v42 = vunpack.c.l.bf16 %v7949_v28  ;;  %v11431_v62 = vunpack.c.h.bf16 %v7949_v28  ;;  %v14312_v6 = vld [vmem:[#allocation5_spill] sm:$0xff] }
 0x245   : > { %v5064_v3 = vadd.f32 %v5056_v10, %v5040_v13  ;;  %v11433_v61 = vunpack.c.l.bf16 %v7950_v40  ;;  %v11435_v37 = vunpack.c.h.bf16 %v7950_v40  ;;  %v11437_v25 = vunpack.c.l.bf16 %v7951_v47 }
 0x246   : > { %14306 = vst [vmem:[#allocation105_spill] sm:$0xff] %v11427_v48  ;;  %14307 = vst [vmem:[#allocation106_spill] sm:$0xff] %v11431_v62  ;;  %v5086_v50 = vadd.f32 %v5078_v33, %v5062_v14  ;;  %v11439_v27 = vunpack.c.h.bf16 %v7951_v47  ;;  %v11443_v13 = vrot.slane %v11289_v24, %v14312_v6  ;;  %v11447_v21 = vrot.slane %v11304_v23, %v14312_v6 }
 0x247   : > { %14308 = vst [vmem:[#allocation107_spill] sm:$0xff] %v11433_v61  ;;  %14309 = vst [vmem:[#allocation108_spill] sm:$0xff] %v11435_v37  ;;  %v5088_v18 = vadd.f32 %v5080_v8, %v5064_v3  ;;  %v11451_v28 = vrot.slane %v11307_v38, %v14312_v6  ;;  %v11455_v40 = vrot.slane %v11309_v4, %v14312_v6  ;;  %v14319_v33 = vunpack.c.l.bf16 %v11314_v9  ;;  %v7958_v61 = vld [vmem:[%s8829_s12 + $0x1c0] sm:$0xee] }
 0x248   : > { %14310 = vst [vmem:[#allocation109_spill] sm:$0xff] %v11437_v25  ;;  %14311 = vst [vmem:[#allocation110_spill] sm:$0xff] %v11439_v27  ;;  %v5110_v3 = vadd.f32 %v5102_v51, %v5086_v50  ;;  %v11459_v10 = vrot.slane %v11311_v56, %v14312_v6  ;;  %v11463_v8 = vrot.slane %v11318_v46, %v14312_v6  ;;  %v14320_v47 = vunpack.c.h.bf16 %v11314_v9 }
 0x249   : > { %14313 = vst [vmem:[#allocation111_spill] sm:$0xff] %v11443_v13  ;;  %14314 = vst [vmem:[#allocation112_spill] sm:$0xff] %v11447_v21  ;;  %v5112_v14 = vadd.f32 %v5104_v57, %v5088_v18  ;;  %v5149_v59 = vmul.f32 %v11443_v13, %v14319_v33  ;;  %v5151_v18 = vmul.f32 %v11443_v13, %v14321_v2  ;;  %v14322_v57 = vunpack.c.h.bf16 %v11400_v55 }
 0x24a   : > { %14315 = vst [vmem:[#allocation113_spill] sm:$0xff] %v11451_v28  ;;  %14316 = vst [vmem:[#allocation114_spill] sm:$0xff] %v11455_v40  ;;  %v5150_v29 = vmul.f32 %v11447_v21, %v14320_v47  ;;  %v5154_v51 = vmul.f32 %v11447_v21, %v11337_v60  ;;  %v11481_v15 = vmul.f32 %v11443_v13, %v11421_v44 }
 0x24b   : > { %14317 = vst [vmem:[#allocation115_spill] sm:$0xff] %v11459_v10  ;;  %14318 = vst [vmem:[#allocation116_spill] sm:$0xff] %v11463_v8  ;;  %v5152_v50 = vmul.f32 %v11447_v21, %v14322_v57  ;;  %v5156_v9 = vmul.f32 %v11447_v21, %v11423_v58  ;;  %v5230_v33 = vmul.f32 %v11455_v40, %v11337_v60  ;;  %v5181_v47 = vrot.slane %v5149_v59, 1 }
 0x24c   : > { %v5182_v35 = vrot.slane %v5151_v18, 1  ;;  %v5184_v2 = vrot.slane %v5150_v29, 1  ;;  %v5190_v57 = vrot.slane %v5154_v51, 1  ;;  %v5232_v39 = vmul.f32 %v11455_v40, %v11423_v58 }
 0x24d   : > { %v5185_v32 = vrot.slane %v5152_v50, 1  ;;  %v5191_v26 = vrot.slane %v5156_v9, 1  ;;  %v5234_v60 = vmul.f32 %v11455_v40, %v11341_v45  ;;  %v5236_v29 = vmul.f32 %v11455_v40, %v11427_v48 }
 0x24e   : > { %v11491_v20 = vsel %vm960_vm0, %v5181_v47, %v5182_v35  ;;  %v5264_v50 = vrot.slane %v5230_v33, 1  ;;  %v5265_v51 = vrot.slane %v5232_v39, 1  ;;  %v5310_v35 = vmul.f32 %v11463_v8, %v11341_v45 }
 0x24f   : > { %14323 = vst [vmem:[#allocation117_spill] sm:$0xff] %v11491_v20  ;;  %v5186_v21 = vsel %vm960_vm0, %v5184_v2, %v5185_v32  ;;  %v5192_v59 = vsel %vm960_vm0, %v5190_v57, %v5191_v26  ;;  %v5270_v22 = vrot.slane %v5234_v60, 1  ;;  %v5271_v25 = vrot.slane %v5236_v29, 1  ;;  %v7955_v57 = vld [vmem:[%s8829_s12 + $0x190] sm:$0xee] }
 0x250   : > { %v5214_v18 = vadd.f32 %v5186_v21, %v5110_v3  ;;  %v5216_v9 = vadd.f32 %v5192_v59, %v5112_v14  ;;  %v5266_v32 = vsel %vm960_vm0, %v5264_v50, %v5265_v51  ;;  %v5312_v47 = vmul.f32 %v11463_v8, %v11427_v48  ;;  %v11509_v21 = vld [vmem:[%s8829_s12 + $0x180] sm:$0xee]  ;;  %v7959_v20 = vld [vmem:[%s8829_s12 + $0x1d0] sm:$0xee] }
 0x251   : > { %v5314_v2 = vmul.f32 %v11463_v8, %v11345_v41  ;;  %v5316_v26 = vmul.f32 %v11463_v8, %v11431_v62  ;;  %v5272_v39 = vsel %vm960_vm0, %v5270_v22, %v5271_v25  ;;  %v5344_v14 = vrot.slane %v5310_v35, 1 }
 0x252   : > { %v5294_v3 = vadd.f32 %v5266_v32, %v5214_v18  ;;  %v11514_v33 = vrot.slane %v11320_v36, %v14312_v6  ;;  %v5296_v60 = vadd.f32 %v5272_v39, %v5216_v9  ;;  %v5345_v29 = vrot.slane %v5312_v47, 1 }
 0x253   : > { %v5350_v59 = vrot.slane %v5314_v2, 1  ;;  %v5351_v50 = vrot.slane %v5316_v26, 1  ;;  %v11519_v51 = vrot.slane %v11322_v5, %v14312_v6  ;;  %v11523_v8 = vrot.slane %v11327_v19, %v14312_v6 }
 0x254   : > { %14324 = vst [vmem:[#allocation118_spill] sm:$0xff] %v11514_v33  ;;  %v11527_v22 = vrot.slane %v11329_v53, %v14312_v6  ;;  %v5346_v18 = vsel %vm960_vm0, %v5344_v14, %v5345_v29  ;;  %v11533_v32 = vunpack.c.l.bf16 %v7955_v57 }
 0x255   : > { %14325 = vst [vmem:[#allocation119_spill] sm:$0xff] %v11519_v51  ;;  %14326 = vst [vmem:[#allocation120_spill] sm:$0xff] %v11523_v8  ;;  %v5352_v9 = vsel %vm960_vm0, %v5350_v59, %v5351_v50  ;;  %v5374_v47 = vadd.f32 %v5346_v18, %v5294_v3  ;;  %v5390_v26 = vmul.f32 %v11519_v51, %v11345_v41  ;;  %v7957_v41 = vld [vmem:[%s8829_s12 + $0x1b0] sm:$0xee] }
 0x256   : > { %14327 = vst [vmem:[#allocation121_spill] sm:$0xff] %v11527_v22  ;;  %v5376_v2 = vadd.f32 %v5352_v9, %v5296_v60  ;;  %v5392_v39 = vmul.f32 %v11519_v51, %v11431_v62  ;;  %v5394_v25 = vmul.f32 %v11519_v51, %v11349_v31  ;;  %v5396_v14 = vmul.f32 %v11519_v51, %v11435_v37  ;;  %v7956_v9 = vld [vmem:[%s8829_s12 + $0x1a0] sm:$0xee] }
 0x257   : > { %v5470_v29 = vmul.f32 %v11527_v22, %v11349_v31  ;;  %v5472_v3 = vmul.f32 %v11527_v22, %v11435_v37  ;;  %v5424_v60 = vrot.slane %v5390_v26, 1  ;;  %v5474_v50 = vmul.f32 %v11527_v22, %v11353_v16 }
 0x258   : > { %v5425_v59 = vrot.slane %v5392_v39, 1  ;;  %v5476_v18 = vmul.f32 %v11527_v22, %v11439_v27  ;;  %v5430_v35 = vrot.slane %v5394_v25, 1  ;;  %v5431_v6 = vrot.slane %v5396_v14, 1 }
 0x259   : > { %v5504_v51 = vrot.slane %v5470_v29, 1  ;;  %v5505_v40 = vrot.slane %v5472_v3, 1  ;;  %v5510_v45 = vrot.slane %v5474_v50, 1  ;;  %v11555_v26 = vunpack.c.h.bf16 %v7955_v57 }
 0x25a   : > { %v5426_v31 = vsel %vm960_vm0, %v5424_v60, %v5425_v59  ;;  %v5511_v8 = vrot.slane %v5476_v18, 1  ;;  %v5432_v39 = vsel %vm960_vm0, %v5430_v35, %v5431_v6  ;;  %v11560_v22 = vunpack.c.l.bf16 %v7956_v9 }
 0x25b   : > { %v5454_v16 = vadd.f32 %v5426_v31, %v5374_v47  ;;  %v5506_v33 = vsel %vm960_vm0, %v5504_v51, %v5505_v40  ;;  %v5456_v25 = vadd.f32 %v5432_v39, %v5376_v2  ;;  %v11563_v29 = vunpack.c.h.bf16 %v7956_v9 }
 0x25c   : > { %14328 = vst [vmem:[#allocation122_spill] sm:$0xff] %v11560_v22  ;;  %v5512_v14 = vsel %vm960_vm0, %v5510_v45, %v5511_v8  ;;  %v11565_v3 = vunpack.c.l.bf16 %v7957_v41  ;;  %v11567_v59 = vunpack.c.h.bf16 %v7957_v41  ;;  %v11569_v57 = vunpack.c.l.bf16 %v7958_v61 }
 0x25d   : > { %14329 = vst [vmem:[#allocation123_spill] sm:$0xff] %v11563_v29  ;;  %v5534_v60 = vadd.f32 %v5506_v33, %v5454_v16  ;;  %v11571_v50 = vunpack.c.h.bf16 %v7958_v61  ;;  %v5536_v31 = vadd.f32 %v5512_v14, %v5456_v25  ;;  %v11573_v6 = vunpack.c.l.bf16 %v7959_v20 }
 0x25e   : > { %14330 = vst [vmem:[#allocation124_spill] sm:$0xff] %v11565_v3  ;;  %14331 = vst [vmem:[#allocation125_spill] sm:$0xff] %v11567_v59  ;;  %v11575_v40 = vunpack.c.h.bf16 %v7959_v20  ;;  %v11579_v51 = vrot.slane %v11289_v24, %v14260_v34  ;;  %v11583_v45 = vrot.slane %v11304_v23, %v14260_v34  ;;  %v11587_v41 = vrot.slane %v11307_v38, %v14260_v34 }
 0x25f   : > { %14332 = vst [vmem:[#allocation126_spill] sm:$0xff] %v11569_v57  ;;  %14333 = vst [vmem:[#allocation127_spill] sm:$0xff] %v11571_v50  ;;  %v11591_v16 = vrot.slane %v11309_v4, %v14260_v34  ;;  %v11595_v20 = vrot.slane %v11311_v56, %v14260_v34  ;;  %v14341_v61 = vunpack.c.l.bf16 %v11509_v21  ;;  %v14342_v33 = vunpack.c.l.bf16 %v11400_v55 }
 0x260   : > { %14334 = vst [vmem:[#allocation128_spill] sm:$0xff] %v11573_v6  ;;  %14335 = vst [vmem:[#allocation129_spill] sm:$0xff] %v11575_v40  ;;  %v11605_v47 = vmul.f32 %v11579_v51, %v11533_v32  ;;  %v11609_v2 = vrot.slane %v11318_v46, %v14260_v34  ;;  %v14345_v18 = vunpack.c.h.bf16 %v11509_v21  ;;  %v14346_v39 = vunpack.c.h.bf16 %v11400_v55 }
 0x261   : > { %14336 = vst [vmem:[#allocation130_spill] sm:$0xff] %v11579_v51  ;;  %14337 = vst [vmem:[#allocation131_spill] sm:$0xff] %v11583_v45  ;;  %v5573_v8 = vmul.f32 %v11579_v51, %v14341_v61  ;;  %v5575_v35 = vmul.f32 %v11579_v51, %v14342_v33  ;;  %v5578_v14 = vmul.f32 %v11583_v45, %v11555_v26 }
 0x262   : > { %14338 = vst [vmem:[#allocation132_spill] sm:$0xff] %v11587_v41  ;;  %14339 = vst [vmem:[#allocation133_spill] sm:$0xff] %v11591_v16  ;;  %v5574_v9 = vmul.f32 %v11583_v45, %v14345_v18  ;;  %v5576_v25 = vmul.f32 %v11583_v45, %v14346_v39  ;;  %v5580_v61 = vmul.f32 %v11583_v45, %v11423_v58 }
 0x263   : > { %14340 = vst [vmem:[#allocation134_spill] sm:$0xff] %v11595_v20  ;;  %14343 = vst [vmem:[#allocation135_spill] sm:$0xff] %v11605_v47  ;;  %v5605_v33 = vrot.slane %v5573_v8, 2  ;;  %v5606_v6 = vrot.slane %v5575_v35, 2  ;;  %v5654_v3 = vmul.f32 %v11591_v16, %v11555_v26  ;;  %v5614_v18 = vrot.slane %v5578_v14, 2 }
 0x264   : > { %14344 = vst [vmem:[#allocation136_spill] sm:$0xff] %v11609_v2  ;;  %v5608_v20 = vrot.slane %v5574_v9, 2  ;;  %v5609_v22 = vrot.slane %v5576_v25, 2  ;;  %v5615_v41 = vrot.slane %v5580_v61, 2  ;;  %v5656_v39 = vmul.f32 %v11591_v16, %v11423_v58 }
 0x265   : > { %v11625_v55 = vsel %vm1385_vm1, %v5605_v33, %v5606_v6  ;;  %v5658_v45 = vmul.f32 %v11591_v16, %v11563_v29  ;;  %v5660_v8 = vmul.f32 %v11591_v16, %v11427_v48  ;;  %v5688_v9 = vrot.slane %v5654_v3, 2  ;;  %v7964_v16 = vld [vmem:[%s8829_s12 + $0x1a8] sm:$0x33] }
 0x266   : > { %14347 = vst [vmem:[#allocation137_spill] sm:$0xff] %v11625_v55  ;;  %v5610_v35 = vsel %vm1385_vm1, %v5608_v20, %v5609_v22  ;;  %v5616_v57 = vsel %vm1385_vm1, %v5614_v18, %v5615_v41  ;;  %v5734_v25 = vmul.f32 %v11609_v2, %v11563_v29  ;;  %v5689_v61 = vrot.slane %v5656_v39, 2 }
 0x267   : > { %v5638_v14 = vadd.f32 %v5610_v35, %v5534_v60  ;;  %v5640_v6 = vadd.f32 %v5616_v57, %v5536_v31  ;;  %v5694_v33 = vrot.slane %v5658_v45, 2  ;;  %v5695_v55 = vrot.slane %v5660_v8, 2 }
 0x268   : > { %v5736_v58 = vmul.f32 %v11609_v2, %v11427_v48  ;;  %v5738_v47 = vmul.f32 %v11609_v2, %v11567_v59  ;;  %v5740_v22 = vmul.f32 %v11609_v2, %v11431_v62  ;;  %v5690_v41 = vsel %vm1385_vm1, %v5688_v9, %v5689_v61 }
 0x269   : > { %v5768_v3 = vrot.slane %v5734_v25, 2  ;;  %v11646_v60 = vrot.slane %v11320_v36, %v14260_v34  ;;  %v11650_v57 = vrot.slane %v11322_v5, %v14260_v34  ;;  %v5696_v31 = vsel %vm1385_vm1, %v5694_v33, %v5695_v55 }
 0x26a   : > { %v5718_v45 = vadd.f32 %v5690_v41, %v5638_v14  ;;  %v5769_v20 = vrot.slane %v5736_v58, 2  ;;  %v5774_v18 = vrot.slane %v5738_v47, 2  ;;  %v5720_v39 = vadd.f32 %v5696_v31, %v5640_v6  ;;  %v11667_v14 = vld [vmem:[%s8829_s12 + $0x188] sm:$0x33]  ;;  %v7963_v6 = vld [vmem:[%s8829_s12 + $0x198] sm:$0x33] }
 0x26b   : > { %14348 = vst [vmem:[#allocation138_spill] sm:$0xff] %v11646_v60  ;;  %14349 = vst [vmem:[#allocation139_spill] sm:$0xff] %v11650_v57  ;;  %v5775_v8 = vrot.slane %v5740_v22, 2  ;;  %v5814_v35 = vmul.f32 %v11650_v57, %v11567_v59  ;;  %v5816_v9 = vmul.f32 %v11650_v57, %v11431_v62  ;;  %v5818_v61 = vmul.f32 %v11650_v57, %v11571_v50 }
 0x26c   : > { %v5770_v25 = vsel %vm1385_vm1, %v5768_v3, %v5769_v20  ;;  %v5820_v55 = vmul.f32 %v11650_v57, %v11435_v37  ;;  %v11664_v47 = vrot.slane %v11327_v19, %v14260_v34  ;;  %v11673_v57 = vrot.slane %v11329_v53, %v14260_v34  ;;  %v7965_v34 = vld [vmem:[%s8829_s12 + $0x1b8] sm:$0x33] }
 0x26d   : > { %v5776_v33 = vsel %vm1385_vm1, %v5774_v18, %v5775_v8  ;;  %v5798_v58 = vadd.f32 %v5770_v25, %v5718_v45  ;;  %v5848_v22 = vrot.slane %v5814_v35, 2  ;;  %v5849_v41 = vrot.slane %v5816_v9, 2 }
 0x26e   : > { %14350 = vst [vmem:[#allocation140_spill] sm:$0xff] %v11664_v47  ;;  %v5800_v3 = vadd.f32 %v5776_v33, %v5720_v39  ;;  %v5854_v31 = vrot.slane %v5818_v61, 2  ;;  %v5855_v20 = vrot.slane %v5820_v55, 2  ;;  %14351 = vst [vmem:[#allocation141_spill] sm:$0xff] %v11673_v57  ;;  %v11679_v45 = vunpack.c.l.bf16 %v7963_v6  ;;  %v7966_v33 = vld [vmem:[%s8829_s12 + $0x1c8] sm:$0x33] }
 0x26f   : > { %v5850_v2 = vsel %vm1385_vm1, %v5848_v22, %v5849_v41  ;;  %v5894_v35 = vmul.f32 %v11673_v57, %v11571_v50  ;;  %v5896_v9 = vmul.f32 %v11673_v57, %v11435_v37  ;;  %v5898_v61 = vmul.f32 %v11673_v57, %v11575_v40  ;;  %v7967_v22 = vld [vmem:[%s8829_s12 + $0x1d8] sm:$0x33] }
 0x270   : > { %14352 = vst [vmem:[#allocation142_spill] sm:$0xff] %v11679_v45  ;;  %v5856_v8 = vsel %vm1385_vm1, %v5854_v31, %v5855_v20  ;;  %v5878_v39 = vadd.f32 %v5850_v2, %v5798_v58  ;;  %v5900_v55 = vmul.f32 %v11673_v57, %v11439_v27  ;;  %v11693_v41 = vunpack.c.h.bf16 %v7963_v6 }
 0x271   : > { %v5880_v25 = vadd.f32 %v5856_v8, %v5800_v3  ;;  %v5928_v31 = vrot.slane %v5894_v35, 2  ;;  %v5929_v2 = vrot.slane %v5896_v9, 2  ;;  %v11695_v58 = vunpack.c.l.bf16 %v7964_v16 }
 0x272   : > { %v11697_v20 = vunpack.c.h.bf16 %v7964_v16  ;;  %v5934_v18 = vrot.slane %v5898_v61, 2  ;;  %v5935_v62 = vrot.slane %v5900_v55, 2  ;;  %v11699_v37 = vunpack.c.l.bf16 %v7965_v34 }
 0x273   : > { %14353 = vst [vmem:[#allocation143_spill] sm:$0xff] %v11695_v58  ;;  %v11701_v3 = vunpack.c.h.bf16 %v7965_v34  ;;  %v5930_v8 = vsel %vm1385_vm1, %v5928_v31, %v5929_v2  ;;  %v11704_v48 = vunpack.c.l.bf16 %v7966_v33  ;;  %v11706_v57 = vunpack.c.h.bf16 %v7966_v33 }
 0x274   : > { %14354 = vst [vmem:[#allocation144_spill] sm:$0xff] %v11699_v37  ;;  %v11708_v6 = vunpack.c.l.bf16 %v7967_v22  ;;  %v5936_v35 = vsel %vm1385_vm1, %v5934_v18, %v5935_v62  ;;  %v5958_v9 = vadd.f32 %v5930_v8, %v5878_v39  ;;  %v11711_v27 = vunpack.c.h.bf16 %v7967_v22 }
 0x275   : > { %14355 = vst [vmem:[#allocation145_spill] sm:$0xff] %v11704_v48  ;;  %v11715_v16 = vrot.slane %v11289_v24, %v14274_v49  ;;  %v5960_v61 = vadd.f32 %v5936_v35, %v5880_v25  ;;  %v11719_v34 = vrot.slane %v11304_v23, %v14274_v49  ;;  %v11723_v55 = vrot.slane %v11309_v4, %v14274_v49 }
 0x276   : > { %14356 = vst [vmem:[#allocation146_spill] sm:$0xff] %v11708_v6  ;;  %v11727_v33 = vrot.slane %v11318_v46, %v14274_v49  ;;  %v14361_v62 = vunpack.c.l.bf16 %v11509_v21  ;;  %v14362_v39 = vunpack.c.l.bf16 %v11667_v14  ;;  %v11741_v31 = vrot.slane %v11322_v5, %v14274_v49 }
 0x277   : > { %14357 = vst [vmem:[#allocation147_spill] sm:$0xff] %v11715_v16  ;;  %14358 = vst [vmem:[#allocation148_spill] sm:$0xff] %v11719_v34  ;;  %v11737_v22 = vmul.f32 %v11715_v16, %v11679_v45  ;;  %v14365_v2 = vunpack.c.h.bf16 %v11509_v21  ;;  %v14366_v35 = vunpack.c.h.bf16 %v11667_v14  ;;  %v6002_v6 = vmul.f32 %v11719_v34, %v11555_v26 }
 0x278   : > { %14359 = vst [vmem:[#allocation149_spill] sm:$0xff] %v11723_v55  ;;  %14360 = vst [vmem:[#allocation150_spill] sm:$0xff] %v11727_v33  ;;  %v5997_v18 = vmul.f32 %v11715_v16, %v14361_v62  ;;  %v5999_v25 = vmul.f32 %v11715_v16, %v14362_v39  ;;  %v6004_v39 = vmul.f32 %v11719_v34, %v11693_v41 }
 0x279   : > { %14363 = vst [vmem:[#allocation151_spill] sm:$0xff] %v11737_v22  ;;  %14364 = vst [vmem:[#allocation152_spill] sm:$0xff] %v11741_v31  ;;  %v5998_v8 = vmul.f32 %v11719_v34, %v14365_v2  ;;  %v6000_v62 = vmul.f32 %v11719_v34, %v14366_v35  ;;  %v6078_v45 = vmul.f32 %v11723_v55, %v11555_v26  ;;  %v6038_v2 = vrot.slane %v6002_v6, 3 }
 0x27a   : > { %v6029_v48 = vrot.slane %v5997_v18, 3  ;;  %v6030_v37 = vrot.slane %v5999_v25, 3  ;;  %v6039_v47 = vrot.slane %v6004_v39, 3  ;;  %v6080_v35 = vmul.f32 %v11723_v55, %v11693_v41 }
 0x27b   : > { %v6032_v21 = vrot.slane %v5998_v8, 3  ;;  %v6033_v16 = vrot.slane %v6000_v62, 3  ;;  %v6082_v34 = vmul.f32 %v11723_v55, %v11563_v29  ;;  %v6084_v18 = vmul.f32 %v11723_v55, %v11697_v20  ;;  %v7975_v55 = vld [vmem:[%s8829_s12 + $0x1d0] sm:$0xcc] }
 0x27c   : > { %v11757_v60 = vsel %vm1810_vm2, %v6029_v48, %v6030_v37  ;;  %v6040_v26 = vsel %vm1810_vm2, %v6038_v2, %v6039_v47  ;;  %v6112_v8 = vrot.slane %v6078_v45, 3  ;;  %v6158_v6 = vmul.f32 %v11727_v33, %v11563_v29 }
 0x27d   : > { %14367 = vst [vmem:[#allocation153_spill] sm:$0xff] %v11757_v60  ;;  %v6034_v25 = vsel %vm1810_vm2, %v6032_v21, %v6033_v16  ;;  %v6064_v48 = vadd.f32 %v6040_v26, %v5960_v61  ;;  %v6113_v37 = vrot.slane %v6080_v35, 3  ;;  %v6118_v39 = vrot.slane %v6082_v34, 3 }
 0x27e   : > { %v6062_v62 = vadd.f32 %v6034_v25, %v5958_v9  ;;  %v6119_v58 = vrot.slane %v6084_v18, 3  ;;  %v6160_v60 = vmul.f32 %v11727_v33, %v11697_v20  ;;  %v6162_v22 = vmul.f32 %v11727_v33, %v11567_v59 }
 0x27f   : > { %v6164_v16 = vmul.f32 %v11727_v33, %v11701_v3  ;;  %v6114_v47 = vsel %vm1810_vm2, %v6112_v8, %v6113_v37  ;;  %v6192_v45 = vrot.slane %v6158_v6, 3  ;;  %v6238_v21 = vmul.f32 %v11741_v31, %v11567_v59 }
 0x280   : > { %v6240_v9 = vmul.f32 %v11741_v31, %v11701_v3  ;;  %v6120_v61 = vsel %vm1810_vm2, %v6118_v39, %v6119_v58  ;;  %v6142_v34 = vadd.f32 %v6114_v47, %v6062_v62  ;;  %v6193_v2 = vrot.slane %v6160_v60, 3  ;;  %v7970_v39 = vld [vmem:[%s8829_s12 + $0x180] sm:$0xcc] }
 0x281   : > { %v6198_v35 = vrot.slane %v6162_v22, 3  ;;  %v6144_v18 = vadd.f32 %v6120_v61, %v6064_v48  ;;  %v6199_v25 = vrot.slane %v6164_v16, 3  ;;  %v6242_v26 = vmul.f32 %v11741_v31, %v11571_v50 }
 0x282   : > { %v6244_v8 = vmul.f32 %v11741_v31, %v11706_v57  ;;  %v6194_v6 = vsel %vm1810_vm2, %v6192_v45, %v6193_v2  ;;  %v6272_v37 = vrot.slane %v6238_v21, 3  ;;  %v6273_v33 = vrot.slane %v6240_v9, 3  ;;  %v7971_v9 = vld [vmem:[%s8829_s12 + $0x190] sm:$0xcc]  ;;  %v7974_v31 = vld [vmem:[%s8829_s12 + $0x1c0] sm:$0xcc] }
 0x283   : > { %v11788_v58 = vrot.slane %v11329_v53, %v14274_v49  ;;  %v6200_v60 = vsel %vm1810_vm2, %v6198_v35, %v6199_v25  ;;  %v6222_v22 = vadd.f32 %v6194_v6, %v6142_v34  ;;  %v6278_v62 = vrot.slane %v6242_v26, 3 }
 0x284   : > { %v6279_v48 = vrot.slane %v6244_v8, 3  ;;  %v6224_v16 = vadd.f32 %v6200_v60, %v6144_v18  ;;  %v6274_v47 = vsel %vm1810_vm2, %v6272_v37, %v6273_v33  ;;  %v7972_v18 = vld [vmem:[%s8829_s12 + $0x1a0] sm:$0xcc]  ;;  %v7973_v8 = vld [vmem:[%s8829_s12 + $0x1b0] sm:$0xcc]  ;;  %v6397_v6 = vunpack.c.l.bf16 %v7970_v39 }
 0x285   : > { %14368 = vst [vmem:[#allocation154_spill] sm:$0xff] %v11788_v58  ;;  %v6318_v45 = vmul.f32 %v11788_v58, %v11571_v50  ;;  %v6320_v21 = vmul.f32 %v11788_v58, %v11706_v57  ;;  %v6302_v2 = vadd.f32 %v6274_v47, %v6222_v22  ;;  %v6322_v34 = vmul.f32 %v11788_v58, %v11575_v40 }
 0x286   : > { %v6280_v61 = vsel %vm1810_vm2, %v6278_v62, %v6279_v48  ;;  %v6324_v35 = vmul.f32 %v11788_v58, %v11711_v27  ;;  %v6398_v50 = vunpack.c.h.bf16 %v7970_v39  ;;  %v6399_v59 = vunpack.c.l.bf16 %v7971_v9 }
 0x287   : > { %v6304_v33 = vadd.f32 %v6280_v61, %v6224_v16  ;;  %v6352_v25 = vrot.slane %v6318_v45, 3  ;;  %v6353_v26 = vrot.slane %v6320_v21, 3  ;;  %v6358_v37 = vrot.slane %v6322_v34, 3 }
 0x288   : > { %v6359_v60 = vrot.slane %v6324_v35, 3  ;;  %v6400_v62 = vunpack.c.h.bf16 %v7971_v9  ;;  %v11808_v48 = vunpack.c.l.bf16 %v7972_v18  ;;  %v11810_v47 = vunpack.c.h.bf16 %v7972_v18 }
 0x289   : > { %v6354_v22 = vsel %vm1810_vm2, %v6352_v25, %v6353_v26  ;;  %v11813_v45 = vunpack.c.l.bf16 %v7973_v8  ;;  %v11815_v21 = vunpack.c.h.bf16 %v7973_v8  ;;  %v11817_v34 = vunpack.c.l.bf16 %v7974_v31 }
 0x28a   : > { %14369 = vst [vmem:[#allocation155_spill] sm:$0xff] %v11808_v48  ;;  %v6360_v58 = vsel %vm1810_vm2, %v6358_v37, %v6359_v60  ;;  %v6382_v16 = vadd.f32 %v6354_v22, %v6302_v2  ;;  %v11819_v35 = vunpack.c.h.bf16 %v7974_v31  ;;  %v11821_v39 = vunpack.c.l.bf16 %v7975_v55 }
 0x28b   : > { %14370 = vst [vmem:[#allocation156_spill] sm:$0xff] %v11813_v45  ;;  %v6384_v61 = vadd.f32 %v6360_v58, %v6304_v33  ;;  %14371 = vst [vmem:[#allocation157_spill] sm:$0xff] %v11817_v34  ;;  %v11823_v25 = vunpack.c.h.bf16 %v7975_v55  ;;  %v11827_v9 = vrot.slane %v11289_v24, %v14240_v0  ;;  %v11831_v2 = vrot.slane %v11304_v23, %v14240_v0 }
 0x28c   : > { %14372 = vst [vmem:[#allocation158_spill] sm:$0xff] %v11821_v39  ;;  %v11835_v18 = vrot.slane %v11307_v38, %v14240_v0  ;;  %v11839_v31 = vrot.slane %v11309_v4, %v14240_v0  ;;  %v11843_v55 = vrot.slane %v11318_v46, %v14240_v0  ;;  %v11847_v24 = vrot.slane %v11322_v5, %v14240_v0 }
 0x28d   : > { %14373 = vst [vmem:[#allocation159_spill] sm:$0xff] %v11827_v9  ;;  %14374 = vst [vmem:[#allocation160_spill] sm:$0xff] %v11831_v2  ;;  %v11851_v23 = vrot.slane %v11329_v53, %v14240_v0  ;;  %v11854_v58 = vmul.f32 %v11827_v9, %v6397_v6  ;;  %v6422_v33 = vmul.f32 %v11831_v2, %v6398_v50  ;;  %v14378_v4 = vunpack.c.l.bf16 %v11667_v14 }
 0x28e   : > { %14375 = vst [vmem:[#allocation161_spill] sm:$0xff] %v11835_v18  ;;  %14376 = vst [vmem:[#allocation162_spill] sm:$0xff] %v11839_v31  ;;  %v14379_v46 = vunpack.c.h.bf16 %v11667_v14  ;;  %v11866_v5 = vmul.f32 %v11827_v9, %v6399_v59  ;;  %v6426_v53 = vmul.f32 %v11831_v2, %v6400_v62  ;;  %v6428_v6 = vmul.f32 %v11831_v2, %v11693_v41 }
 0x28f   : > { %14377 = vst [vmem:[#allocation163_spill] sm:$0xff] %v11843_v55  ;;  %v11860_v26 = vmul.f32 %v11827_v9, %v14378_v4  ;;  %v11872_v37 = vmul.f32 %v11835_v18, %v6399_v59  ;;  %v6456_v22 = vrot.slane %v6422_v33, 4  ;;  %v6502_v29 = vmul.f32 %v11839_v31, %v6400_v62 }
 0x290   : > { %v6424_v8 = vmul.f32 %v11831_v2, %v14379_v46  ;;  %v6462_v46 = vrot.slane %v6426_v53, 4  ;;  %v6463_v40 = vrot.slane %v6428_v6, 4  ;;  %v6504_v2 = vmul.f32 %v11839_v31, %v11693_v41 }
 0x291   : > { %v6506_v59 = vmul.f32 %v11839_v31, %v11810_v47  ;;  %v6508_v50 = vmul.f32 %v11839_v31, %v11697_v20  ;;  %v6536_v53 = vrot.slane %v6502_v29, 4  ;;  %v6584_v41 = vmul.f32 %v11843_v55, %v11697_v20 }
 0x292   : > { %v6457_v4 = vrot.slane %v6424_v8, 4  ;;  %v6464_v33 = vsel %vm2235_vm3, %v6462_v46, %v6463_v40  ;;  %v6537_v60 = vrot.slane %v6504_v2, 4  ;;  %v6588_v40 = vmul.f32 %v11843_v55, %v11701_v3 }
 0x293   : > { %v6488_v6 = vadd.f32 %v6464_v33, %v6384_v61  ;;  %v6542_v62 = vrot.slane %v6506_v59, 4  ;;  %v6543_v34 = vrot.slane %v6508_v50, 4  ;;  %v6662_v61 = vmul.f32 %v11847_v24, %v11815_v21 }
 0x294   : > { %v6458_v39 = vsel %vm2235_vm3, %v6456_v22, %v6457_v4  ;;  %v6582_v22 = vmul.f32 %v11843_v55, %v11810_v47  ;;  %v6586_v4 = vmul.f32 %v11843_v55, %v11815_v21  ;;  %v6617_v59 = vrot.slane %v6584_v41, 4 }
 0x295   : > { %v6486_v8 = vadd.f32 %v6458_v39, %v6382_v16  ;;  %v6538_v16 = vsel %vm2235_vm3, %v6536_v53, %v6537_v60  ;;  %v6544_v29 = vsel %vm2235_vm3, %v6542_v62, %v6543_v34  ;;  %v6664_v39 = vmul.f32 %v11847_v24, %v11701_v3 }
 0x296   : > { %v6568_v50 = vadd.f32 %v6544_v29, %v6488_v6  ;;  %v6616_v46 = vrot.slane %v6582_v22, 4  ;;  %v6622_v33 = vrot.slane %v6586_v4, 4  ;;  %v6623_v14 = vrot.slane %v6588_v40, 4 }
 0x297   : > { %v6566_v2 = vadd.f32 %v6538_v16, %v6486_v8  ;;  %v6666_v31 = vmul.f32 %v11847_v24, %v11819_v35  ;;  %v6668_v60 = vmul.f32 %v11847_v24, %v11706_v57  ;;  %v6696_v53 = vrot.slane %v6662_v61, 4 }
 0x298   : > { %v6618_v34 = vsel %vm2235_vm3, %v6616_v46, %v6617_v59  ;;  %v6697_v62 = vrot.slane %v6664_v39, 4  ;;  %v6742_v55 = vmul.f32 %v11851_v23, %v11819_v35  ;;  %v6624_v8 = vsel %vm2235_vm3, %v6622_v33, %v6623_v14 }
 0x299   : > { %v6646_v6 = vadd.f32 %v6618_v34, %v6566_v2  ;;  %v6702_v22 = vrot.slane %v6666_v31, 4  ;;  %v6703_v41 = vrot.slane %v6668_v60, 4  ;;  %v6648_v4 = vadd.f32 %v6624_v8, %v6568_v50 }
 0x29a   : > { %v6698_v40 = vsel %vm2235_vm3, %v6696_v53, %v6697_v62  ;;  %v6744_v16 = vmul.f32 %v11851_v23, %v11706_v57  ;;  %v6746_v29 = vmul.f32 %v11851_v23, %v11823_v25  ;;  %v6748_v46 = vmul.f32 %v11851_v23, %v11711_v27 }
 0x29b   : > { %v6704_v61 = vsel %vm2235_vm3, %v6702_v22, %v6703_v41  ;;  %v6726_v39 = vadd.f32 %v6698_v40, %v6646_v6  ;;  %v6776_v59 = vrot.slane %v6742_v55, 4  ;;  %v5007_v50 = vmul.f32 %v11357_v52, %v11335_v43 }
 0x29c   : > { %v6728_v14 = vadd.f32 %v6704_v61, %v6648_v4  ;;  %v6777_v2 = vrot.slane %v6744_v16, 4  ;;  %v6782_v31 = vrot.slane %v6746_v29, 4  ;;  %v6783_v33 = vrot.slane %v6748_v46, 4 }
 0x29d   : > { %v5031_v60 = vmul.f32 %v11365_v7, %v11339_v17  ;;  %v11923_v34 = vrot.slane %v11311_v56, %v14167_v12  ;;  %v11927_v53 = vrot.slane %v11320_v36, %v14167_v12  ;;  %v11932_v62 = vrot.slane %v11327_v19, %v14167_v12 }
 0x29e   : > { %v6778_v55 = vsel %vm2235_vm3, %v6776_v59, %v6777_v2  ;;  %v5153_v8 = vmul.f32 %v11443_v13, %v11335_v43  ;;  %v5229_v6 = vmul.f32 %v11451_v28, %v11335_v43  ;;  %v6784_v22 = vsel %vm2235_vm3, %v6782_v31, %v6783_v33 }
 0x29f   : > { %14380 = vst [vmem:[#allocation164_spill] sm:$0xff] %v11927_v53  ;;  %14381 = vst [vmem:[#allocation165_spill] sm:$0xff] %v11932_v62  ;;  %v6806_v41 = vadd.f32 %v6778_v55, %v6726_v39  ;;  %v5039_v4 = vadd.f32 %v5031_v60, %v5007_v50  ;;  %v5053_v40 = vmul.f32 %v11923_v34, %v11339_v17  ;;  %v14382_v55 = vrot.slane %v11481_v15, 1 }
 0x2a0   : > { %v6808_v16 = vadd.f32 %v6784_v22, %v6728_v14  ;;  %v5055_v29 = vmul.f32 %v11923_v34, %v11343_v1  ;;  %v5077_v61 = vmul.f32 %v11927_v53, %v11343_v1  ;;  %v5079_v46 = vmul.f32 %v11927_v53, %v11347_v63  ;;  %v14394_v53 = vld [vmem:[#allocation124_spill] sm:$0xff] }
 0x2a1   : > { %v5061_v59 = vadd.f32 %v5053_v40, %v11412_v30  ;;  %v5101_v43 = vmul.f32 %v11932_v62, %v11347_v63  ;;  %v5103_v39 = vmul.f32 %v11932_v62, %v11351_v54  ;;  %v5187_v2 = vrot.slane %v5153_v8, 1 }
 0x2a2   : > { %v6814_v31 = vpack.c.bf16 %v6808_v16, %v6806_v41  ;;  %v5063_v14 = vadd.f32 %v5055_v29, %v5039_v4  ;;  %v5231_v50 = vmul.f32 %v11451_v28, %v11421_v44  ;;  %v5233_v33 = vmul.f32 %v11451_v28, %v11339_v17 }
 0x2a3   : > { %v5085_v60 = vadd.f32 %v5077_v61, %v5061_v59  ;;  %v5189_v30 = vsel %vm960_vm0, %v5187_v2, %v14382_v55  ;;  %v5235_v22 = vmul.f32 %v11451_v28, %v11425_v11  ;;  %v5261_v40 = vrot.slane %v5229_v6, 1 }
 0x2a4   : > { %7042 = vmatprep.mubr.bf16.mxu0 %v6814_v31  ;;  %v5087_v12 = vadd.f32 %v5079_v46, %v5063_v14  ;;  %v5262_v8 = vrot.slane %v5231_v50, 1  ;;  %v5267_v41 = vrot.slane %v5233_v33, 1  ;;  %v5309_v4 = vmul.f32 %v11459_v10, %v11339_v17  ;;  %v14383_v31 = vld [vmem:[#allocation117_spill] sm:$0xff] }
 0x2a5   : > { %v5109_v16 = vadd.f32 %v5101_v43, %v5085_v60  ;;  %v5268_v29 = vrot.slane %v5235_v22, 1  ;;  %v5311_v61 = vmul.f32 %v11459_v10, %v11425_v11  ;;  %v5313_v15 = vmul.f32 %v11459_v10, %v11343_v1  ;;  %v14384_v22 = vld [vmem:[#allocation118_spill] sm:$0xff] }
 0x2a6   : > { %v5111_v59 = vadd.f32 %v5103_v39, %v5087_v12  ;;  %v5263_v2 = vsel %vm960_vm0, %v5261_v40, %v5262_v8  ;;  %v5315_v6 = vmul.f32 %v11459_v10, %v11429_v42  ;;  %v5341_v46 = vrot.slane %v5309_v4, 1  ;;  %v14385_v4 = vld [vmem:[#allocation107_spill] sm:$0xff] }
 0x2a7   : > { %v5213_v14 = vadd.f32 %v14383_v31, %v5109_v16  ;;  %v5269_v50 = vsel %vm960_vm0, %v5267_v41, %v5268_v29  ;;  %v5342_v33 = vrot.slane %v5311_v61, 1  ;;  %v5347_v43 = vrot.slane %v5313_v15, 1  ;;  %v14386_v31 = vld [vmem:[#allocation120_spill] sm:$0xff] }
 0x2a8   : > { %v5215_v60 = vadd.f32 %v5189_v30, %v5111_v59  ;;  %v5348_v55 = vrot.slane %v5315_v6, 1  ;;  %v5389_v28 = vmul.f32 %v14384_v22, %v11343_v1  ;;  %v5391_v12 = vmul.f32 %v14384_v22, %v11429_v42 }
 0x2a9   : > { %v5293_v39 = vadd.f32 %v5263_v2, %v5213_v14  ;;  %v5343_v40 = vsel %vm960_vm0, %v5341_v46, %v5342_v33  ;;  %v5393_v8 = vmul.f32 %v14384_v22, %v11347_v63  ;;  %v5395_v16 = vmul.f32 %v14384_v22, %v14385_v4 }
 0x2aa   : > { %v5295_v41 = vadd.f32 %v5269_v50, %v5215_v60  ;;  %v5349_v29 = vsel %vm960_vm0, %v5347_v43, %v5348_v55  ;;  %v5421_v30 = vrot.slane %v5389_v28, 1  ;;  %v5422_v61 = vrot.slane %v5391_v12, 1  ;;  %v14387_v28 = vld [vmem:[#allocation109_spill] sm:$0xff] }
 0x2ab   : > { %v5373_v15 = vadd.f32 %v5343_v40, %v5293_v39  ;;  %v5427_v59 = vrot.slane %v5393_v8, 1  ;;  %v5428_v6 = vrot.slane %v5395_v16, 1  ;;  %v5469_v10 = vmul.f32 %v14386_v31, %v11347_v63 }
 0x2ac   : > { %v5375_v2 = vadd.f32 %v5349_v29, %v5295_v41  ;;  %v5423_v46 = vsel %vm960_vm0, %v5421_v30, %v5422_v61  ;;  %v5471_v14 = vmul.f32 %v14386_v31, %v14385_v4  ;;  %v5473_v33 = vmul.f32 %v14386_v31, %v11351_v54  ;;  %v14388_v41 = vld [vmem:[#allocation132_spill] sm:$0xff]  ;;  %v14389_v61 = vld [vmem:[#allocation122_spill] sm:$0xff] }
 0x2ad   : > { %v5429_v50 = vsel %vm960_vm0, %v5427_v59, %v5428_v6  ;;  %v5453_v43 = vadd.f32 %v5423_v46, %v5373_v15  ;;  %v5475_v60 = vmul.f32 %v14386_v31, %v14387_v28  ;;  %v5501_v55 = vrot.slane %v5469_v10, 1  ;;  %v14391_v31 = vld [vmem:[#allocation135_spill] sm:$0xff] }
 0x2ae   : > { %v5455_v12 = vadd.f32 %v5429_v50, %v5375_v2  ;;  %v5502_v39 = vrot.slane %v5471_v14, 1  ;;  %v5507_v40 = vrot.slane %v5473_v33, 1  ;;  %v5579_v8 = vmul.f32 %v11579_v51, %v11421_v44  ;;  %v14390_v2 = vld [vmem:[#allocation134_spill] sm:$0xff] }
 0x2af   : > { %v5508_v16 = vrot.slane %v5475_v60, 1  ;;  %v5653_v29 = vmul.f32 %v14388_v41, %v11533_v32  ;;  %v5655_v30 = vmul.f32 %v14388_v41, %v11421_v44  ;;  %v5657_v15 = vmul.f32 %v14388_v41, %v14389_v61 }
 0x2b0   : > { %v5503_v59 = vsel %vm960_vm0, %v5501_v55, %v5502_v39  ;;  %v5612_v6 = vrot.slane %v5579_v8, 2  ;;  %v5659_v10 = vmul.f32 %v14388_v41, %v11425_v11  ;;  %v5733_v46 = vmul.f32 %v14390_v2, %v14389_v61  ;;  %v14393_v55 = vld [vmem:[#allocation137_spill] sm:$0xff] }
 0x2b1   : > { %v5509_v14 = vsel %vm960_vm0, %v5507_v40, %v5508_v16  ;;  %v5533_v33 = vadd.f32 %v5503_v59, %v5453_v43  ;;  %v5685_v50 = vrot.slane %v5653_v29, 2  ;;  %v5686_v60 = vrot.slane %v5655_v30, 2  ;;  %v14395_v59 = vld [vmem:[#allocation138_spill] sm:$0xff] }
 0x2b2   : > { %v5535_v51 = vadd.f32 %v5509_v14, %v5455_v12  ;;  %v14392_v44 = vrot.slane %v14391_v31, 2  ;;  %v5691_v13 = vrot.slane %v5657_v15, 2  ;;  %v5692_v62 = vrot.slane %v5659_v10, 2 }
 0x2b3   : > { %v5637_v39 = vadd.f32 %v14393_v55, %v5533_v33  ;;  %v5687_v8 = vsel %vm1385_vm1, %v5685_v50, %v5686_v60  ;;  %v5735_v41 = vmul.f32 %v14390_v2, %v11425_v11  ;;  %v5737_v40 = vmul.f32 %v14390_v2, %v14394_v53  ;;  %v14396_v50 = vld [vmem:[#allocation126_spill] sm:$0xff] }
 0x2b4   : > { %v5613_v22 = vsel %vm1385_vm1, %v14392_v44, %v5612_v6  ;;  %v5693_v16 = vsel %vm1385_vm1, %v5691_v13, %v5692_v62  ;;  %v5739_v31 = vmul.f32 %v14390_v2, %v11429_v42  ;;  %v5765_v12 = vrot.slane %v5733_v46, 2 }
 0x2b5   : > { %v5639_v43 = vadd.f32 %v5613_v22, %v5535_v51  ;;  %v5717_v29 = vadd.f32 %v5687_v8, %v5637_v39  ;;  %v5766_v30 = vrot.slane %v5735_v41, 2  ;;  %v5771_v15 = vrot.slane %v5737_v40, 2  ;;  %v14397_v41 = vld [vmem:[#allocation140_spill] sm:$0xff] }
 0x2b6   : > { %v5813_v6 = vmul.f32 %v14395_v59, %v14394_v53  ;;  %v5772_v14 = vrot.slane %v5739_v31, 2  ;;  %v5815_v33 = vmul.f32 %v14395_v59, %v11429_v42  ;;  %v5817_v51 = vmul.f32 %v14395_v59, %v14396_v50 }
 0x2b7   : > { %v5719_v10 = vadd.f32 %v5693_v16, %v5639_v43  ;;  %v5767_v13 = vsel %vm1385_vm1, %v5765_v12, %v5766_v30  ;;  %v5819_v62 = vmul.f32 %v14395_v59, %v14385_v4  ;;  %v5893_v46 = vmul.f32 %v14397_v41, %v14396_v50  ;;  %v14398_v16 = vld [vmem:[#allocation128_spill] sm:$0xff]  ;;  %v14399_v59 = vld [vmem:[#allocation147_spill] sm:$0xff] }
 0x2b8   : > { %v5845_v22 = vrot.slane %v5813_v6, 2  ;;  %v5773_v60 = vsel %vm1385_vm1, %v5771_v15, %v5772_v14  ;;  %v5797_v44 = vadd.f32 %v5767_v13, %v5717_v29  ;;  %v5846_v55 = vrot.slane %v5815_v33, 2 }
 0x2b9   : > { %v5851_v39 = vrot.slane %v5817_v51, 2  ;;  %v5799_v8 = vadd.f32 %v5773_v60, %v5719_v10  ;;  %v5852_v40 = vrot.slane %v5819_v62, 2  ;;  %v5895_v43 = vmul.f32 %v14397_v41, %v14385_v4 }
 0x2ba   : > { %v5897_v31 = vmul.f32 %v14397_v41, %v14398_v16  ;;  %v5847_v12 = vsel %vm1385_vm1, %v5845_v22, %v5846_v55  ;;  %v5899_v30 = vmul.f32 %v14397_v41, %v14387_v28  ;;  %v5925_v6 = vrot.slane %v5893_v46, 2 }
 0x2bb   : > { %v6001_v15 = vmul.f32 %v14399_v59, %v11533_v32  ;;  %v5853_v29 = vsel %vm1385_vm1, %v5851_v39, %v5852_v40  ;;  %v5877_v14 = vadd.f32 %v5847_v12, %v5797_v44  ;;  %v5926_v10 = vrot.slane %v5895_v43, 2  ;;  %v14404_v40 = vld [vmem:[#allocation151_spill] sm:$0xff] }
 0x2bc   : > { %v5931_v33 = vrot.slane %v5897_v31, 2  ;;  %v5879_v51 = vadd.f32 %v5853_v29, %v5799_v8  ;;  %v5932_v13 = vrot.slane %v5899_v30, 2  ;;  %v12042_v60 = vrot.slane %v11307_v38, %v14274_v49  ;;  %v14406_v30 = vld [vmem:[#allocation142_spill] sm:$0xff]  ;;  %v14407_v29 = vld [vmem:[#allocation143_spill] sm:$0xff] }
 0x2bd   : > { %v6035_v62 = vrot.slane %v6001_v15, 3  ;;  %v5927_v22 = vsel %vm1385_vm1, %v5925_v6, %v5926_v10  ;;  %v12047_v46 = vrot.slane %v11311_v56, %v14274_v49  ;;  %v12051_v55 = vrot.slane %v11320_v36, %v14274_v49  ;;  %v14408_v10 = vld [vmem:[#allocation153_spill] sm:$0xff] }
 0x2be   : > { %14400 = vst [vmem:[#allocation117_spill] sm:$0xff] %v12042_v60  ;;  %v12055_v44 = vrot.slane %v11327_v19, %v14274_v49  ;;  %v5933_v39 = vsel %vm1385_vm1, %v5931_v33, %v5932_v13  ;;  %v5957_v8 = vadd.f32 %v5927_v22, %v5877_v14  ;;  %v14405_v38 = vrot.slane %v14404_v40, 3 }
 0x2bf   : > { %14401 = vst [vmem:[#allocation107_spill] sm:$0xff] %v12047_v46  ;;  %14402 = vst [vmem:[#allocation109_spill] sm:$0xff] %v12051_v55  ;;  %v6077_v31 = vmul.f32 %v12042_v60, %v11533_v32  ;;  %v5959_v12 = vadd.f32 %v5933_v39, %v5879_v51  ;;  %v6079_v6 = vmul.f32 %v12042_v60, %v14406_v30 }
 0x2c0   : > { %14403 = vst [vmem:[#allocation135_spill] sm:$0xff] %v12055_v44  ;;  %v6037_v43 = vsel %vm1810_vm2, %v6035_v62, %v14405_v38  ;;  %v6081_v15 = vmul.f32 %v12042_v60, %v14389_v61  ;;  %v6083_v49 = vmul.f32 %v12042_v60, %v14407_v29  ;;  %v6061_v33 = vadd.f32 %v14408_v10, %v5957_v8  ;;  %v14409_v38 = vld [vmem:[#allocation144_spill] sm:$0xff] }
 0x2c1   : > { %v6109_v14 = vrot.slane %v6077_v31, 3  ;;  %v6157_v13 = vmul.f32 %v12047_v46, %v14389_v61  ;;  %v6159_v62 = vmul.f32 %v12047_v46, %v14407_v29  ;;  %v6063_v32 = vadd.f32 %v6037_v43, %v5959_v12 }
 0x2c2   : > { %v6110_v51 = vrot.slane %v6079_v6, 3  ;;  %v6115_v22 = vrot.slane %v6081_v15, 3  ;;  %v6116_v39 = vrot.slane %v6083_v49, 3  ;;  %v6161_v40 = vmul.f32 %v12047_v46, %v14394_v53 }
 0x2c3   : > { %v6163_v59 = vmul.f32 %v12047_v46, %v14409_v38  ;;  %v6189_v60 = vrot.slane %v6157_v13, 3  ;;  %v6190_v41 = vrot.slane %v6159_v62, 3  ;;  %v6237_v10 = vmul.f32 %v12051_v55, %v14394_v53  ;;  %v14410_v62 = vld [vmem:[#allocation145_spill] sm:$0xff] }
 0x2c4   : > { %v6111_v8 = vsel %vm1810_vm2, %v6109_v14, %v6110_v51  ;;  %v6117_v31 = vsel %vm1810_vm2, %v6115_v22, %v6116_v39  ;;  %v6239_v43 = vmul.f32 %v12051_v55, %v14409_v38  ;;  %v6195_v49 = vrot.slane %v6161_v40, 3 }
 0x2c5   : > { %v6141_v12 = vadd.f32 %v6111_v8, %v6061_v33  ;;  %v6143_v6 = vadd.f32 %v6117_v31, %v6063_v32  ;;  %v6191_v15 = vsel %vm1810_vm2, %v6189_v60, %v6190_v41  ;;  %v6196_v2 = vrot.slane %v6163_v59, 3  ;;  %v14411_v31 = vld [vmem:[#allocation146_spill] sm:$0xff] }
 0x2c6   : > { %v6241_v13 = vmul.f32 %v12051_v55, %v14396_v50  ;;  %v6243_v14 = vmul.f32 %v12051_v55, %v14410_v62  ;;  %v6269_v51 = vrot.slane %v6237_v10, 3  ;;  %v6270_v39 = vrot.slane %v6239_v43, 3 }
 0x2c7   : > { %v6221_v22 = vadd.f32 %v6191_v15, %v6141_v12  ;;  %v6317_v46 = vmul.f32 %v12055_v44, %v14396_v50  ;;  %v6319_v33 = vmul.f32 %v12055_v44, %v14410_v62  ;;  %v6197_v32 = vsel %vm1810_vm2, %v6195_v49, %v6196_v2 }
 0x2c8   : > { %v6275_v41 = vrot.slane %v6241_v13, 3  ;;  %v6276_v60 = vrot.slane %v6243_v14, 3  ;;  %v6321_v59 = vmul.f32 %v12055_v44, %v14398_v16  ;;  %v6223_v40 = vadd.f32 %v6197_v32, %v6143_v6 }
 0x2c9   : > { %v6271_v8 = vsel %vm1810_vm2, %v6269_v51, %v6270_v39  ;;  %v6323_v10 = vmul.f32 %v12055_v44, %v14411_v31  ;;  %v6349_v43 = vrot.slane %v6317_v46, 3  ;;  %v6350_v55 = vrot.slane %v6319_v33, 3 }
 0x2ca   : > { %v6277_v12 = vsel %vm1810_vm2, %v6275_v41, %v6276_v60  ;;  %v6301_v15 = vadd.f32 %v6271_v8, %v6221_v22  ;;  %v6355_v50 = vrot.slane %v6321_v59, 3  ;;  %v6427_v2 = vmul.f32 %v11827_v9, %v14406_v30  ;;  %v14435_v9 = vld [vmem:[#allocation49_spill] sm:$0xff] }
 0x2cb   : > { %v6303_v53 = vadd.f32 %v6277_v12, %v6223_v40  ;;  %v6356_v61 = vrot.slane %v6323_v10, 3  ;;  %v14412_v49 = vrot.slane %v11860_v26, 4  ;;  %v14413_v6 = vrot.slane %v11854_v58, 4  ;;  %v12136_v12 = vld [vmem:[%s8829_s12 + $0x130] sm:$0xff] }
 0x2cc   : > { %v6351_v14 = vsel %vm1810_vm2, %v6349_v43, %v6350_v55  ;;  %v6503_v46 = vmul.f32 %v11835_v18, %v14406_v30  ;;  %v6505_v51 = vmul.f32 %v11835_v18, %v11808_v48  ;;  %v6507_v22 = vmul.f32 %v11835_v18, %v14407_v29 }
 0x2cd   : > { %v6455_v13 = vsel %vm2235_vm3, %v14413_v6, %v14412_v49  ;;  %v6357_v39 = vsel %vm1810_vm2, %v6355_v50, %v6356_v61  ;;  %v6381_v33 = vadd.f32 %v6351_v14, %v6301_v15  ;;  %v6460_v26 = vrot.slane %v6427_v2, 4 }
 0x2ce   : > { %v12117_v58 = vrot.slane %v11311_v56, %v14240_v0  ;;  %v6383_v55 = vadd.f32 %v6357_v39, %v6303_v53  ;;  %v6534_v32 = vrot.slane %v6503_v46, 4  ;;  %v6539_v41 = vrot.slane %v6505_v51, 4 }
 0x2cf   : > { %v6540_v30 = vrot.slane %v6507_v22, 4  ;;  %v14415_v60 = vrot.slane %v11866_v5, 4  ;;  %v6485_v40 = vadd.f32 %v6455_v13, %v6381_v33  ;;  %v14416_v10 = vrot.slane %v11872_v37, 4  ;;  %v12133_v5 = vld [vmem:[%s8829_s12 + $0x120] sm:$0xff] }
 0x2d0   : > { %14414 = vst [vmem:[#allocation137_spill] sm:$0xff] %v12117_v58  ;;  %v6581_v61 = vmul.f32 %v12117_v58, %v11808_v48  ;;  %v6583_v50 = vmul.f32 %v12117_v58, %v14407_v29  ;;  %v6585_v43 = vmul.f32 %v12117_v58, %v11813_v45  ;;  %v6587_v2 = vmul.f32 %v12117_v58, %v14409_v38  ;;  %v14433_v58 = vld [vmem:[#allocation48_spill] sm:$0xff] }
 0x2d1   : > { %v6461_v59 = vsel %vm2235_vm3, %v14415_v60, %v6460_v26  ;;  %v6535_v56 = vsel %vm2235_vm3, %v14416_v10, %v6534_v32  ;;  %v6541_v53 = vsel %vm2235_vm3, %v6539_v41, %v6540_v30  ;;  %v12142_v37 = vrot.slane %v11320_v36, %v14240_v0  ;;  %v14419_v32 = vld [vmem:[#allocation157_spill] sm:$0xff]  ;;  %v14420_v10 = vld [vmem:[#allocation158_spill] sm:$0xff] }
 0x2d2   : > { %v6487_v8 = vadd.f32 %v6461_v59, %v6383_v55  ;;  %v6565_v15 = vadd.f32 %v6535_v56, %v6485_v40  ;;  %v6613_v49 = vrot.slane %v6581_v61, 4  ;;  %v6614_v6 = vrot.slane %v6583_v50, 4 }
 0x2d3   : > { %v6619_v14 = vrot.slane %v6585_v43, 4  ;;  %14417 = vst [vmem:[#allocation128_spill] sm:$0xff] %v12142_v37  ;;  %v12146_v46 = vrot.slane %v11327_v19, %v14240_v0  ;;  %v6620_v22 = vrot.slane %v6587_v2, 4  ;;  %v12150_v39 = vunpack.c.h.bf16 %v12133_v5 }
 0x2d4   : > { %v6567_v13 = vadd.f32 %v6541_v53, %v6487_v8  ;;  %v6615_v51 = vsel %vm2235_vm3, %v6613_v49, %v6614_v6  ;;  %v6661_v55 = vmul.f32 %v12142_v37, %v11813_v45  ;;  %v6663_v36 = vmul.f32 %v12142_v37, %v14409_v38  ;;  %v14421_v49 = vld [vmem:[#allocation11_spill] sm:$0xff] }
 0x2d5   : > { %14418 = vst [vmem:[#allocation151_spill] sm:$0xff] %v12146_v46  ;;  %v6645_v26 = vadd.f32 %v6615_v51, %v6565_v15  ;;  %v6665_v41 = vmul.f32 %v12142_v37, %v14419_v32  ;;  %v6621_v0 = vsel %vm2235_vm3, %v6619_v14, %v6620_v22  ;;  %v6667_v19 = vmul.f32 %v12142_v37, %v14410_v62  ;;  %v14422_v6 = vld [vmem:[#allocation23_spill] sm:$0xff] }
 0x2d6   : > { %v6741_v30 = vmul.f32 %v12146_v46, %v14419_v32  ;;  %v6743_v60 = vmul.f32 %v12146_v46, %v14410_v62  ;;  %v6647_v59 = vadd.f32 %v6621_v0, %v6567_v13  ;;  %v6693_v40 = vrot.slane %v6661_v55, 4  ;;  %v14423_v13 = vld [vmem:[#allocation12_spill] sm:$0xff] }
 0x2d7   : > { %v6694_v61 = vrot.slane %v6663_v36, 4  ;;  %v6699_v50 = vrot.slane %v6665_v41, 4  ;;  %v6700_v8 = vrot.slane %v6667_v19, 4  ;;  %v6745_v56 = vmul.f32 %v12146_v46, %v14420_v10 }
 0x2d8   : > { %v6747_v53 = vmul.f32 %v12146_v46, %v14411_v31  ;;  %v6773_v43 = vrot.slane %v6741_v30, 4  ;;  %v6774_v2 = vrot.slane %v6743_v60, 4  ;;  %v2688_v14 = vmul.f32 %v14422_v6, %v14421_v49  ;;  %v14424_v30 = vld [vmem:[#allocation31_spill] sm:$0xff]  ;;  %v14460_v31 = vld [vmem:[#allocation72_spill] sm:$0xff] }
 0x2d9   : > { %v6695_v15 = vsel %vm2235_vm3, %v6693_v40, %v6694_v61  ;;  %v2690_v51 = vmul.f32 %v14422_v6, %v14423_v13  ;;  %v6701_v22 = vsel %vm2235_vm3, %v6699_v50, %v6700_v8  ;;  %v6779_v36 = vrot.slane %v6745_v56, 4  ;;  %v14425_v40 = vld [vmem:[#allocation18_spill] sm:$0xff]  ;;  %v12182_v61 = vld [vmem:[%s8829_s12 + $0x128] sm:$0x11]  ;;  %v14426_v6 = vld [vmem:[#allocation25_spill] sm:$0xff] }
 0x2da   : > { %v6725_v55 = vadd.f32 %v6695_v15, %v6645_v26  ;;  %v6780_v41 = vrot.slane %v6747_v53, 4  ;;  %v6727_v0 = vadd.f32 %v6701_v22, %v6647_v59  ;;  %v6775_v19 = vsel %vm2235_vm3, %v6773_v43, %v6774_v2  ;;  %v14427_v26 = vld [vmem:[#allocation29_spill] sm:$0xff] }
 0x2db   : > { %v2712_v33 = vmul.f32 %v14424_v30, %v14423_v13  ;;  %v2714_v60 = vmul.f32 %v14424_v30, %v14425_v40  ;;  %v2736_v50 = vmul.f32 %v14426_v6, %v14425_v40  ;;  %v2738_v8 = vmul.f32 %v14426_v6, %v14427_v26  ;;  %v12190_v59 = vld [vmem:[%s8829_s12 + $0x138] sm:$0x11] }
 0x2dc   : > { %v6781_v46 = vsel %vm2235_vm3, %v6779_v36, %v6780_v41  ;;  %v6805_v37 = vadd.f32 %v6775_v19, %v6725_v55  ;;  %v14428_v15 = vld [vmem:[#allocation33_spill] sm:$0xff]  ;;  %v14429_v36 = vld [vmem:[#allocation27_spill] sm:$0xff]  ;;  %v14430_v41 = vunpack.c.h.bf16 %v12136_v12  ;;  %v12202_v30 = vunpack.c.h.bf16 %v12182_v61 }
 0x2dd   : > { %v6807_v56 = vadd.f32 %v6781_v46, %v6727_v0  ;;  %v2720_v53 = vadd.f32 %v2712_v33, %v2688_v14  ;;  %v2722_v43 = vadd.f32 %v2714_v60, %v2690_v51  ;;  %v2760_v2 = vmul.f32 %v14428_v15, %v14427_v26  ;;  %v14431_v51 = vld [vmem:[#allocation51_spill] sm:$0xff]  ;;  %v14432_v60 = vld [vmem:[#allocation37_spill] sm:$0xff] }
 0x2de   : > { %v2762_v22 = vmul.f32 %v14428_v15, %v12150_v39  ;;  %v2784_v55 = vmul.f32 %v14429_v36, %v12150_v39  ;;  %v2786_v19 = vmul.f32 %v14429_v36, %v14430_v41  ;;  %v2836_v0 = vmul.f32 %v14431_v51, %v14421_v49 }
 0x2df   : > { %v6813_v6 = vpack.c.bf16 %v6807_v56, %v6805_v37  ;;  %v2744_v46 = vadd.f32 %v2736_v50, %v2720_v53  ;;  %v2746_v33 = vadd.f32 %v2738_v8, %v2722_v43  ;;  %v2838_v15 = vmul.f32 %v14431_v51, %v14432_v60  ;;  %v14434_v37 = vld [vmem:[#allocation59_spill] sm:$0xff] }
 0x2e0   : > { %v2840_v10 = vmul.f32 %v14431_v51, %v14423_v13  ;;  %v2842_v36 = vmul.f32 %v14431_v51, %v14433_v58  ;;  %v2916_v50 = vmul.f32 %v14434_v37, %v14423_v13  ;;  %v2918_v8 = vmul.f32 %v14434_v37, %v14433_v58 }
 0x2e1   : > { %7043 = vmatmul.mubr.bf16.vlgmr.msra.gmra.mrb[0].mxu0 %v6813_v6  ;;  %v2768_v41 = vadd.f32 %v2760_v2, %v2744_v46  ;;  %v2770_v32 = vadd.f32 %v2762_v22, %v2746_v33  ;;  %v2874_v56 = vrot.slane %v2836_v0, 1  ;;  %v2875_v49 = vrot.slane %v2838_v15, 1 }
 0x2e2   : > { %v2880_v53 = vrot.slane %v2840_v10, 1  ;;  %v2881_v43 = vrot.slane %v2842_v36, 1  ;;  %v2920_v45 = vmul.f32 %v14434_v37, %v14425_v40  ;;  %v2922_v6 = vmul.f32 %v14434_v37, %v14435_v9 }
 0x2e3   : > { %v2792_v14 = vadd.f32 %v2784_v55, %v2768_v41  ;;  %v2794_v18 = vadd.f32 %v2786_v19, %v2770_v32  ;;  %v2876_v2 = vsel %vm960_vm0, %v2874_v56, %v2875_v49  ;;  %v2954_v13 = vrot.slane %v2916_v50, 1  ;;  %v14436_v32 = vld [vmem:[#allocation61_spill] sm:$0xff]  ;;  %v14437_v50 = vld [vmem:[#allocation50_spill] sm:$0xff] }
 0x2e4   : > { %v2882_v22 = vsel %vm960_vm0, %v2880_v53, %v2881_v43  ;;  %v2955_v46 = vrot.slane %v2918_v8, 1  ;;  %v2960_v0 = vrot.slane %v2920_v45, 1  ;;  %v2961_v15 = vrot.slane %v2922_v6, 1  ;;  %v14438_v45 = vld [vmem:[#allocation68_spill] sm:$0xff] }
 0x2e5   : > { %v2896_v33 = vadd.f32 %v2876_v2, %v2792_v14  ;;  %v2898_v51 = vadd.f32 %v2882_v22, %v2794_v18  ;;  %v2996_v55 = vmul.f32 %v14436_v32, %v14425_v40  ;;  %v2998_v19 = vmul.f32 %v14436_v32, %v14435_v9 }
 0x2e6   : > { %v2956_v10 = vsel %vm960_vm0, %v2954_v13, %v2955_v46  ;;  %v3000_v36 = vmul.f32 %v14436_v32, %v14427_v26  ;;  %v2962_v41 = vsel %vm960_vm0, %v2960_v0, %v2961_v15  ;;  %v3002_v18 = vmul.f32 %v14436_v32, %v14437_v50 }
 0x2e7   : > { %v2976_v37 = vadd.f32 %v2956_v10, %v2896_v33  ;;  %v3076_v14 = vmul.f32 %v14438_v45, %v14427_v26  ;;  %v2978_v8 = vadd.f32 %v2962_v41, %v2898_v51  ;;  %v3034_v56 = vrot.slane %v2996_v55, 1  ;;  %v14439_v26 = vld [vmem:[#allocation14_spill] sm:$0xff] }
 0x2e8   : > { %v3035_v49 = vrot.slane %v2998_v19, 1  ;;  %v3040_v40 = vrot.slane %v3000_v36, 1  ;;  %v3041_v53 = vrot.slane %v3002_v18, 1  ;;  %v3078_v43 = vmul.f32 %v14438_v45, %v14437_v50  ;;  %v12247_v51 = vld [vmem:[%s8829_s12 + $0x120] sm:$0xee] }
 0x2e9   : > { %v3080_v6 = vmul.f32 %v14438_v45, %v12150_v39  ;;  %v3082_v2 = vmul.f32 %v14438_v45, %v12202_v30  ;;  %v3114_v13 = vrot.slane %v3076_v14, 1  ;;  %v3156_v46 = vmul.f32 %v14439_v26, %v12150_v39  ;;  %v12257_v45 = vld [vmem:[%s8829_s12 + $0x130] sm:$0xee] }
 0x2ea   : > { %v3036_v22 = vsel %vm960_vm0, %v3034_v56, %v3035_v49  ;;  %v3158_v33 = vmul.f32 %v14439_v26, %v12202_v30  ;;  %v3042_v0 = vsel %vm960_vm0, %v3040_v40, %v3041_v53  ;;  %v3115_v10 = vrot.slane %v3078_v43, 1 }
 0x2eb   : > { %v3056_v15 = vadd.f32 %v3036_v22, %v2976_v37  ;;  %v3120_v32 = vrot.slane %v3080_v6, 1  ;;  %v3058_v55 = vadd.f32 %v3042_v0, %v2978_v8  ;;  %v3121_v19 = vrot.slane %v3082_v2, 1  ;;  %v14443_v0 = vld [vmem:[#allocation38_spill] sm:$0xff]  ;;  %v14448_v22 = vld [vmem:[#allocation20_spill] sm:$0xff] }
 0x2ec   : > { %v14440_v36 = vunpack.c.h.bf16 %v12136_v12  ;;  %v14441_v18 = vunpack.c.h.bf16 %v12190_v59  ;;  %v3116_v14 = vsel %vm960_vm0, %v3114_v13, %v3115_v10  ;;  %v3194_v56 = vrot.slane %v3156_v46, 1  ;;  %v14444_v10 = vld [vmem:[#allocation32_spill] sm:$0xff] }
 0x2ed   : > { %v3195_v49 = vrot.slane %v3158_v33, 1  ;;  %v12261_v37 = vunpack.c.h.bf16 %v12247_v51  ;;  %v3122_v8 = vsel %vm960_vm0, %v3120_v32, %v3121_v19  ;;  %v3136_v40 = vadd.f32 %v3116_v14, %v3056_v15 }
 0x2ee   : > { %v3160_v41 = vmul.f32 %v14439_v26, %v14440_v36  ;;  %v3162_v39 = vmul.f32 %v14439_v26, %v14441_v18  ;;  %v3138_v6 = vadd.f32 %v3122_v8, %v3058_v55  ;;  %v14442_v26 = vld [vmem:[#allocation30_spill] sm:$0xff]  ;;  %v3262_v33 = vmul.f32 %v14443_v0, %v14432_v60 }
 0x2ef   : > { %v3196_v2 = vsel %vm960_vm0, %v3194_v56, %v3195_v49  ;;  %v3260_v36 = vmul.f32 %v14443_v0, %v14442_v26  ;;  %v3264_v32 = vmul.f32 %v14443_v0, %v14444_v10  ;;  %v3266_v55 = vmul.f32 %v14443_v0, %v14433_v58  ;;  %v14446_v49 = vld [vmem:[#allocation36_spill] sm:$0xff] }
 0x2f0   : > { %v3200_v53 = vrot.slane %v3160_v41, 1  ;;  %v3201_v43 = vrot.slane %v3162_v39, 1  ;;  %v3216_v46 = vadd.f32 %v3196_v2, %v3136_v40  ;;  %v14445_v41 = vld [vmem:[#allocation39_spill] sm:$0xff]  ;;  %v3299_v39 = vrot.slane %v3262_v33, 2 }
 0x2f1   : > { %v3298_v19 = vrot.slane %v3260_v36, 2  ;;  %v3340_v18 = vmul.f32 %v14445_v41, %v14444_v10  ;;  %v3304_v14 = vrot.slane %v3264_v32, 2  ;;  %v3342_v56 = vmul.f32 %v14445_v41, %v14433_v58 }
 0x2f2   : > { %v3202_v13 = vsel %vm960_vm0, %v3200_v53, %v3201_v43  ;;  %v3344_v8 = vmul.f32 %v14445_v41, %v14446_v49  ;;  %v3305_v60 = vrot.slane %v3266_v55, 2  ;;  %v3346_v40 = vmul.f32 %v14445_v41, %v14435_v9  ;;  %v14447_v43 = vld [vmem:[#allocation58_spill] sm:$0xff] }
 0x2f3   : > { %v3218_v15 = vadd.f32 %v3202_v13, %v3138_v6  ;;  %v3378_v53 = vrot.slane %v3340_v18, 2  ;;  %v3420_v6 = vmul.f32 %v14447_v43, %v14446_v49  ;;  %v3300_v2 = vsel %vm1385_vm1, %v3298_v19, %v3299_v39 }
 0x2f4   : > { %v3379_v0 = vrot.slane %v3342_v56, 2  ;;  %v3384_v36 = vrot.slane %v3344_v8, 2  ;;  %v3422_v13 = vmul.f32 %v14447_v43, %v14435_v9  ;;  %v3306_v58 = vsel %vm1385_vm1, %v3304_v14, %v3305_v60 }
 0x2f5   : > { %v3320_v33 = vadd.f32 %v3300_v2, %v3216_v46  ;;  %v3385_v32 = vrot.slane %v3346_v40, 2  ;;  %v3424_v55 = vmul.f32 %v14447_v43, %v14448_v22  ;;  %v3322_v48 = vadd.f32 %v3306_v58, %v3218_v15  ;;  %v14449_v46 = vld [vmem:[#allocation55_spill] sm:$0xff] }
 0x2f6   : > { %v3380_v41 = vsel %vm1385_vm1, %v3378_v53, %v3379_v0  ;;  %v3426_v18 = vmul.f32 %v14447_v43, %v14437_v50  ;;  %v3458_v44 = vrot.slane %v3420_v6, 2  ;;  %v3459_v56 = vrot.slane %v3422_v13, 2  ;;  %v14450_v6 = vld [vmem:[#allocation41_spill] sm:$0xff]  ;;  %v12308_v58 = vld [vmem:[%s8829_s12 + $0x128] sm:$0x33] }
 0x2f7   : > { %v3386_v19 = vsel %vm1385_vm1, %v3384_v36, %v3385_v32  ;;  %v3400_v39 = vadd.f32 %v3380_v41, %v3320_v33  ;;  %v3464_v9 = vrot.slane %v3424_v55, 2  ;;  %v3500_v60 = vmul.f32 %v14449_v46, %v14448_v22  ;;  %v12313_v55 = vld [vmem:[%s8829_s12 + $0x138] sm:$0x33] }
 0x2f8   : > { %v3402_v8 = vadd.f32 %v3386_v19, %v3322_v48  ;;  %v3465_v14 = vrot.slane %v3426_v18, 2  ;;  %v3502_v15 = vmul.f32 %v14449_v46, %v14437_v50  ;;  %v3460_v40 = vsel %vm1385_vm1, %v3458_v44, %v3459_v56 }
 0x2f9   : > { %v3504_v53 = vmul.f32 %v14449_v46, %v12261_v37  ;;  %v3506_v43 = vmul.f32 %v14449_v46, %v12202_v30  ;;  %v3580_v2 = vmul.f32 %v14450_v6, %v12261_v37  ;;  %v3480_v0 = vadd.f32 %v3460_v40, %v3400_v39 }
 0x2fa   : > { %v3466_v48 = vsel %vm1385_vm1, %v3464_v9, %v3465_v14  ;;  %v3538_v36 = vrot.slane %v3500_v60, 2  ;;  %v3539_v13 = vrot.slane %v3502_v15, 2  ;;  %v3582_v44 = vmul.f32 %v14450_v6, %v12202_v30 }
 0x2fb   : > { %v3482_v33 = vadd.f32 %v3466_v48, %v3402_v8  ;;  %v3544_v50 = vrot.slane %v3504_v53, 2  ;;  %v3545_v32 = vrot.slane %v3506_v43, 2  ;;  %v14451_v18 = vunpack.c.h.bf16 %v12257_v45  ;;  %v14453_v48 = vld [vmem:[#allocation70_spill] sm:$0xff] }
 0x2fc   : > { %v3540_v41 = vsel %vm1385_vm1, %v3538_v36, %v3539_v13  ;;  %v14452_v39 = vunpack.c.h.bf16 %v12190_v59  ;;  %v3618_v9 = vrot.slane %v3580_v2, 2  ;;  %v3619_v46 = vrot.slane %v3582_v44, 2  ;;  %v14454_v13 = vld [vmem:[#allocation57_spill] sm:$0xff]  ;;  %v14456_v44 = vld [vmem:[#allocation67_spill] sm:$0xff] }
 0x2fd   : > { %v3584_v19 = vmul.f32 %v14450_v6, %v14451_v18  ;;  %v3546_v8 = vsel %vm1385_vm1, %v3544_v50, %v3545_v32  ;;  %v3560_v14 = vadd.f32 %v3540_v41, %v3480_v0  ;;  %v12324_v60 = vunpack.c.h.bf16 %v12308_v58  ;;  %v14455_v32 = vld [vmem:[#allocation53_spill] sm:$0xff] }
 0x2fe   : > { %v3586_v56 = vmul.f32 %v14450_v6, %v14452_v39  ;;  %v3562_v30 = vadd.f32 %v3546_v8, %v3482_v33  ;;  %v3620_v43 = vsel %vm1385_vm1, %v3618_v9, %v3619_v46  ;;  %v3684_v36 = vmul.f32 %v14453_v48, %v14442_v26  ;;  %v14457_v46 = vld [vmem:[#allocation54_spill] sm:$0xff] }
 0x2ff   : > { %v3624_v15 = vrot.slane %v3584_v19, 2  ;;  %v3686_v6 = vmul.f32 %v14453_v48, %v14454_v13  ;;  %v3688_v2 = vmul.f32 %v14453_v48, %v14444_v10  ;;  %v3640_v50 = vadd.f32 %v3620_v43, %v3560_v14  ;;  %v14458_v43 = vld [vmem:[#allocation71_spill] sm:$0xff] }
 0x300   : > { %v3625_v40 = vrot.slane %v3586_v56, 2  ;;  %v3690_v33 = vmul.f32 %v14453_v48, %v14455_v32  ;;  %v3764_v41 = vmul.f32 %v14456_v44, %v14444_v10  ;;  %v3722_v19 = vrot.slane %v3684_v36, 3 }
 0x301   : > { %v3723_v39 = vrot.slane %v3686_v6, 3  ;;  %v3728_v56 = vrot.slane %v3688_v2, 3  ;;  %v3766_v9 = vmul.f32 %v14456_v44, %v14455_v32  ;;  %v3768_v8 = vmul.f32 %v14456_v44, %v14446_v49 }
 0x302   : > { %v3626_v0 = vsel %vm1385_vm1, %v3624_v15, %v3625_v40  ;;  %v3729_v26 = vrot.slane %v3690_v33, 3  ;;  %v3770_v14 = vmul.f32 %v14456_v44, %v14457_v46  ;;  %v3802_v40 = vrot.slane %v3764_v41, 3  ;;  %v14459_v44 = vld [vmem:[#allocation9_spill] sm:$0xff] }
 0x303   : > { %v3642_v18 = vadd.f32 %v3626_v0, %v3562_v30  ;;  %v3724_v15 = vsel %vm1810_vm2, %v3722_v19, %v3723_v39  ;;  %v3844_v10 = vmul.f32 %v14458_v43, %v14446_v49  ;;  %v3846_v30 = vmul.f32 %v14458_v43, %v14457_v46 }
 0x304   : > { %v3730_v48 = vsel %vm1810_vm2, %v3728_v56, %v3729_v26  ;;  %v3744_v36 = vadd.f32 %v3724_v15, %v3640_v50  ;;  %v3803_v6 = vrot.slane %v3766_v9, 3  ;;  %v3808_v2 = vrot.slane %v3768_v8, 3 }
 0x305   : > { %v3746_v0 = vadd.f32 %v3730_v48, %v3642_v18  ;;  %v3809_v33 = vrot.slane %v3770_v14, 3  ;;  %v3848_v53 = vmul.f32 %v14458_v43, %v14448_v22  ;;  %v3850_v19 = vmul.f32 %v14458_v43, %v14459_v44  ;;  %v12368_v48 = vld [vmem:[%s8829_s12 + $0x120] sm:$0xcc] }
 0x306   : > { %v3804_v41 = vsel %vm1810_vm2, %v3802_v40, %v3803_v6  ;;  %v3882_v49 = vrot.slane %v3844_v10, 3  ;;  %v3883_v39 = vrot.slane %v3846_v30, 3  ;;  %v3924_v56 = vmul.f32 %v14460_v31, %v14448_v22 }
 0x307   : > { %v3810_v50 = vsel %vm1810_vm2, %v3808_v2, %v3809_v33  ;;  %v3824_v26 = vadd.f32 %v3804_v41, %v3744_v36  ;;  %v3888_v18 = vrot.slane %v3848_v53, 3  ;;  %v3889_v9 = vrot.slane %v3850_v19, 3  ;;  %v12371_v53 = vld [vmem:[%s8829_s12 + $0x130] sm:$0xcc] }
 0x308   : > { %v3826_v8 = vadd.f32 %v3810_v50, %v3746_v0  ;;  %v3884_v14 = vsel %vm1810_vm2, %v3882_v49, %v3883_v39  ;;  %v3926_v15 = vmul.f32 %v14460_v31, %v14459_v44  ;;  %v3928_v40 = vmul.f32 %v14460_v31, %v12261_v37  ;;  %v14461_v0 = vld [vmem:[#allocation73_spill] sm:$0xff] }
 0x309   : > { %v3890_v43 = vsel %vm1810_vm2, %v3888_v18, %v3889_v9  ;;  %v3904_v10 = vadd.f32 %v3884_v14, %v3824_v26  ;;  %v3930_v22 = vmul.f32 %v14460_v31, %v12324_v60  ;;  %v3962_v30 = vrot.slane %v3924_v56, 3 }
 0x30a   : > { %v3906_v36 = vadd.f32 %v3890_v43, %v3826_v8  ;;  %v3963_v6 = vrot.slane %v3926_v15, 3  ;;  %v3968_v2 = vrot.slane %v3928_v40, 3  ;;  %v4004_v33 = vmul.f32 %v14461_v0, %v12261_v37 }
 0x30b   : > { %v3969_v19 = vrot.slane %v3930_v22, 3  ;;  %v4006_v41 = vmul.f32 %v14461_v0, %v12324_v60  ;;  %v14462_v49 = vunpack.c.h.bf16 %v12257_v45  ;;  %v14463_v31 = vunpack.c.h.bf16 %v12313_v55  ;;  %v14464_v22 = vld [vmem:[#allocation75_spill] sm:$0xff] }
 0x30c   : > { %v3964_v50 = vsel %vm1810_vm2, %v3962_v30, %v3963_v6  ;;  %v4042_v26 = vrot.slane %v4004_v33, 3  ;;  %v4088_v18 = vunpack.c.h.bf16 %v12368_v48  ;;  %v4090_v9 = vunpack.c.h.bf16 %v12371_v53  ;;  %v14466_v6 = vld [vmem:[#allocation77_spill] sm:$0xff] }
 0x30d   : > { %v4008_v39 = vmul.f32 %v14461_v0, %v14462_v49  ;;  %v4010_v56 = vmul.f32 %v14461_v0, %v14463_v31  ;;  %v3970_v37 = vsel %vm1810_vm2, %v3968_v2, %v3969_v19  ;;  %v3984_v8 = vadd.f32 %v3964_v50, %v3904_v10  ;;  %v14465_v49 = vld [vmem:[#allocation8_spill] sm:$0xff]  ;;  %v14467_v10 = vld [vmem:[#allocation82_spill] sm:$0xff] }
 0x30e   : > { %v4043_v14 = vrot.slane %v4006_v41, 3  ;;  %v3986_v40 = vadd.f32 %v3970_v37, %v3906_v36  ;;  %v4108_v62 = vmul.f32 %v14465_v49, %v14464_v22  ;;  %v4110_v0 = vmul.f32 %v14465_v49, %v14454_v13 }
 0x30f   : > { %v4048_v15 = vrot.slane %v4008_v39, 3  ;;  %v4049_v43 = vrot.slane %v4010_v56, 3  ;;  %v4112_v33 = vmul.f32 %v14465_v49, %v14466_v6  ;;  %v4114_v31 = vmul.f32 %v14465_v49, %v14455_v32 }
 0x310   : > { %v4044_v30 = vsel %vm1810_vm2, %v4042_v26, %v4043_v14  ;;  %v4188_v2 = vmul.f32 %v14467_v10, %v14466_v6  ;;  %v4146_v41 = vrot.slane %v4108_v62, 4  ;;  %v4147_v39 = vrot.slane %v4110_v0, 4  ;;  %v14468_v14 = vld [vmem:[#allocation79_spill] sm:$0xff] }
 0x311   : > { %v4050_v36 = vsel %vm1810_vm2, %v4048_v15, %v4049_v43  ;;  %v4064_v19 = vadd.f32 %v4044_v30, %v3984_v8  ;;  %v4152_v50 = vrot.slane %v4112_v33, 4  ;;  %v4153_v37 = vrot.slane %v4114_v31, 4 }
 0x312   : > { %v4066_v56 = vadd.f32 %v4050_v36, %v3986_v40  ;;  %v4190_v13 = vmul.f32 %v14467_v10, %v14455_v32  ;;  %v4148_v26 = vsel %vm2235_vm3, %v4146_v41, %v4147_v39  ;;  %v4192_v22 = vmul.f32 %v14467_v10, %v14468_v14  ;;  %v14469_v40 = vld [vmem:[#allocation83_spill] sm:$0xff]  ;;  %v14470_v36 = vld [vmem:[#allocation81_spill] sm:$0xff] }
 0x313   : > { %v4194_v49 = vmul.f32 %v14467_v10, %v14457_v46  ;;  %v4226_v6 = vrot.slane %v4188_v2, 4  ;;  %v4154_v15 = vsel %vm2235_vm3, %v4152_v50, %v4153_v37  ;;  %v4168_v8 = vadd.f32 %v4148_v26, %v4064_v19 }
 0x314   : > { %v4227_v62 = vrot.slane %v4190_v13, 4  ;;  %v4268_v43 = vmul.f32 %v14469_v40, %v14468_v14  ;;  %v4170_v0 = vadd.f32 %v4154_v15, %v4066_v56  ;;  %v4232_v30 = vrot.slane %v4192_v22, 4  ;;  %v14471_v56 = vld [vmem:[#allocation84_spill] sm:$0xff] }
 0x315   : > { %v4233_v33 = vrot.slane %v4194_v49, 4  ;;  %v4270_v32 = vmul.f32 %v14469_v40, %v14457_v46  ;;  %v4272_v41 = vmul.f32 %v14469_v40, %v14470_v36  ;;  %v4274_v10 = vmul.f32 %v14469_v40, %v14459_v44 }
 0x316   : > { %v4228_v31 = vsel %vm2235_vm3, %v4226_v6, %v4227_v62  ;;  %v4306_v2 = vrot.slane %v4268_v43, 4  ;;  %v4348_v37 = vmul.f32 %v14471_v56, %v14470_v36  ;;  %v4350_v46 = vmul.f32 %v14471_v56, %v14459_v44  ;;  %v14472_v43 = vld [vmem:[#allocation85_spill] sm:$0xff] }
 0x317   : > { %v4234_v19 = vsel %vm2235_vm3, %v4232_v30, %v4233_v33  ;;  %v4248_v39 = vadd.f32 %v4228_v31, %v4168_v8  ;;  %v4307_v50 = vrot.slane %v4270_v32, 4  ;;  %v4312_v26 = vrot.slane %v4272_v41, 4 }
 0x318   : > { %v4250_v13 = vadd.f32 %v4234_v19, %v4170_v0  ;;  %v4313_v14 = vrot.slane %v4274_v10, 4  ;;  %v4352_v49 = vmul.f32 %v14471_v56, %v4088_v18  ;;  %v4354_v6 = vmul.f32 %v14471_v56, %v12324_v60 }
 0x319   : > { %v4308_v22 = vsel %vm2235_vm3, %v4306_v2, %v4307_v50  ;;  %v4386_v15 = vrot.slane %v4348_v37, 4  ;;  %v4387_v40 = vrot.slane %v4350_v46, 4  ;;  %v4428_v30 = vmul.f32 %v14472_v43, %v4088_v18 }
 0x31a   : > { %v4314_v8 = vsel %vm2235_vm3, %v4312_v26, %v4313_v14  ;;  %v4328_v62 = vadd.f32 %v4308_v22, %v4248_v39  ;;  %v4392_v33 = vrot.slane %v4352_v49, 4  ;;  %v4393_v32 = vrot.slane %v4354_v6, 4  ;;  %v14475_v14 = vld [vmem:[#allocation21_spill] sm:$0xff]  ;;  %v14476_v22 = vld [vmem:[#allocation16_spill] sm:$0xff]  ;;  %v14477_v6 = vld [vmem:[#allocation86_spill] sm:$0xff] }
 0x31b   : > { %v4330_v0 = vadd.f32 %v4314_v8, %v4250_v13  ;;  %v4430_v44 = vmul.f32 %v14472_v43, %v12324_v60  ;;  %v4388_v31 = vsel %vm2235_vm3, %v4386_v15, %v4387_v40  ;;  %v4432_v36 = vmul.f32 %v14472_v43, %v4090_v9  ;;  %v14474_v9 = vld [vmem:[#allocation15_spill] sm:$0xff] }
 0x31c   : > { %v14473_v41 = vunpack.c.h.bf16 %v12313_v55  ;;  %v4466_v2 = vrot.slane %v4428_v30, 4  ;;  %v4394_v19 = vsel %vm2235_vm3, %v4392_v33, %v4393_v32  ;;  %v4408_v39 = vadd.f32 %v4388_v31, %v4328_v62  ;;  %v14478_v62 = vld [vmem:[#allocation13_spill] sm:$0xff]  ;;  %v14480_v32 = vld [vmem:[#allocation19_spill] sm:$0xff]  ;;  %v14481_v31 = vld [vmem:[#allocation88_spill] sm:$0xff] }
 0x31d   : > { %v4467_v50 = vrot.slane %v4430_v44, 4  ;;  %v12436_v18 = vunpack.c.l.bf16 %v12133_v5  ;;  %v4410_v56 = vadd.f32 %v4394_v19, %v4330_v0  ;;  %v4472_v37 = vrot.slane %v4432_v36, 4 }
 0x31e   : > { %v4434_v10 = vmul.f32 %v14472_v43, %v14473_v41  ;;  %v13964_v60 = vunpack.c.l.bf16 %v12136_v12  ;;  %v2687_v46 = vmul.f32 %v14475_v14, %v14474_v9  ;;  %v2689_v49 = vmul.f32 %v14475_v14, %v14476_v22  ;;  %v14479_v43 = vld [vmem:[#allocation87_spill] sm:$0xff]  ;;  %v14483_v14 = vld [vmem:[#allocation46_spill] sm:$0xff] }
 0x31f   : > { %v4468_v26 = vsel %vm2235_vm3, %v4466_v2, %v4467_v50  ;;  %v2711_v15 = vmul.f32 %v14477_v6, %v14476_v22  ;;  %v2713_v40 = vmul.f32 %v14477_v6, %v14478_v62  ;;  %v2735_v30 = vmul.f32 %v14479_v43, %v14478_v62  ;;  %v14482_v2 = vld [vmem:[#allocation89_spill] sm:$0xff] }
 0x320   : > { %v4473_v13 = vrot.slane %v4434_v10, 4  ;;  %v4488_v5 = vadd.f32 %v4468_v26, %v4408_v39  ;;  %v2737_v44 = vmul.f32 %v14479_v43, %v14480_v32  ;;  %v2759_v36 = vmul.f32 %v14481_v31, %v14480_v32 }
 0x321   : > { %v2719_v33 = vadd.f32 %v2711_v15, %v2687_v46  ;;  %v2721_v41 = vadd.f32 %v2713_v40, %v2689_v49  ;;  %v2761_v10 = vmul.f32 %v14481_v31, %v12436_v18  ;;  %v2783_v19 = vmul.f32 %v14482_v2, %v12436_v18  ;;  %v14484_v49 = vld [vmem:[#allocation35_spill] sm:$0xff]  ;;  %v14485_v40 = vld [vmem:[#allocation40_spill] sm:$0xff] }
 0x322   : > { %v4474_v8 = vsel %vm2235_vm3, %v4472_v37, %v4473_v13  ;;  %v2785_v39 = vmul.f32 %v14482_v2, %v13964_v60  ;;  %v12463_v37 = vunpack.c.l.bf16 %v12182_v61  ;;  %v2835_v46 = vmul.f32 %v14483_v14, %v14474_v9  ;;  %v14486_v61 = vld [vmem:[#allocation52_spill] sm:$0xff] }
 0x323   : > { %v4490_v0 = vadd.f32 %v4474_v8, %v4410_v56  ;;  %v2743_v56 = vadd.f32 %v2735_v30, %v2719_v33  ;;  %v2745_v26 = vadd.f32 %v2737_v44, %v2721_v41  ;;  %v2837_v6 = vmul.f32 %v14483_v14, %v14484_v49 }
 0x324   : > { %v2839_v15 = vmul.f32 %v14483_v14, %v14476_v22  ;;  %v2915_v43 = vmul.f32 %v14486_v61, %v14476_v22  ;;  %v2917_v30 = vmul.f32 %v14486_v61, %v14485_v40  ;;  %v2871_v33 = vrot.slane %v2835_v46, 1 }
 0x325   : > { %v4494_v50 = vpack.c.bf16 %v4490_v0, %v4488_v5  ;;  %v2767_v8 = vadd.f32 %v2759_v36, %v2743_v56  ;;  %v2841_v5 = vmul.f32 %v14483_v14, %v14485_v40  ;;  %v2769_v0 = vadd.f32 %v2761_v10, %v2745_v26 }
 0x326   : > { %v2872_v9 = vrot.slane %v2837_v6, 1  ;;  %v2877_v44 = vrot.slane %v2839_v15, 1  ;;  %v2919_v2 = vmul.f32 %v14486_v61, %v14478_v62  ;;  %v2951_v13 = vrot.slane %v2915_v43, 1  ;;  %v14488_v6 = vld [vmem:[#allocation60_spill] sm:$0xff] }
 0x327   : > { %4730 = vmatprep.mubr.bf16.mxu1 %v4494_v50  ;;  %v2791_v31 = vadd.f32 %v2783_v19, %v2767_v8  ;;  %v2878_v41 = vrot.slane %v2841_v5, 1  ;;  %v14487_v50 = vld [vmem:[#allocation42_spill] sm:$0xff]  ;;  %v2793_v56 = vadd.f32 %v2785_v39, %v2769_v0  ;;  %v2952_v22 = vrot.slane %v2917_v30, 1  ;;  %v14489_v43 = vld [vmem:[#allocation44_spill] sm:$0xff] }
 0x328   : > { %v2921_v36 = vmul.f32 %v14486_v61, %v14487_v50  ;;  %v2873_v14 = vsel %vm960_vm0, %v2871_v33, %v2872_v9  ;;  %v2957_v10 = vrot.slane %v2919_v2, 1  ;;  %v2995_v15 = vmul.f32 %v14488_v6, %v14478_v62 }
 0x329   : > { %v2879_v60 = vsel %vm960_vm0, %v2877_v44, %v2878_v41  ;;  %v2895_v38 = vadd.f32 %v2873_v14, %v2791_v31  ;;  %v2953_v19 = vsel %vm960_vm0, %v2951_v13, %v2952_v22  ;;  %v2997_v8 = vmul.f32 %v14488_v6, %v14487_v50  ;;  %v14490_v13 = vld [vmem:[#allocation63_spill] sm:$0xff] }
 0x32a   : > { %v2958_v26 = vrot.slane %v2921_v36, 1  ;;  %v2897_v46 = vadd.f32 %v2879_v60, %v2793_v56  ;;  %v2999_v61 = vmul.f32 %v14488_v6, %v14480_v32  ;;  %v3001_v30 = vmul.f32 %v14488_v6, %v14489_v43  ;;  %v14491_v56 = vld [vmem:[#allocation69_spill] sm:$0xff] }
 0x32b   : > { %v2975_v5 = vadd.f32 %v2953_v19, %v2895_v38  ;;  %v3031_v33 = vrot.slane %v2995_v15, 1  ;;  %v3032_v60 = vrot.slane %v2997_v8, 1  ;;  %v3075_v9 = vmul.f32 %v14490_v13, %v14480_v32 }
 0x32c   : > { %v2959_v39 = vsel %vm960_vm0, %v2957_v10, %v2958_v26  ;;  %v3037_v44 = vrot.slane %v2999_v61, 1  ;;  %v3038_v62 = vrot.slane %v3001_v30, 1  ;;  %v3077_v31 = vmul.f32 %v14490_v13, %v14489_v43 }
 0x32d   : > { %v2977_v0 = vadd.f32 %v2959_v39, %v2897_v46  ;;  %v3079_v38 = vmul.f32 %v14490_v13, %v12436_v18  ;;  %v3033_v41 = vsel %vm960_vm0, %v3031_v33, %v3032_v60  ;;  %v3081_v2 = vmul.f32 %v14490_v13, %v12463_v37 }
 0x32e   : > { %v3111_v36 = vrot.slane %v3075_v9, 1  ;;  %v3155_v14 = vmul.f32 %v14491_v56, %v12436_v18  ;;  %v3039_v22 = vsel %vm960_vm0, %v3037_v44, %v3038_v62  ;;  %v3055_v32 = vadd.f32 %v3033_v41, %v2975_v5  ;;  %v14494_v62 = vld [vmem:[#allocation22_spill] sm:$0xff] }
 0x32f   : > { %v3112_v10 = vrot.slane %v3077_v31, 1  ;;  %v3117_v26 = vrot.slane %v3079_v38, 1  ;;  %v3057_v46 = vadd.f32 %v3039_v22, %v2977_v0  ;;  %v3118_v19 = vrot.slane %v3081_v2, 1  ;;  %v14495_v31 = vld [vmem:[#allocation26_spill] sm:$0xff] }
 0x330   : > { %v3157_v6 = vmul.f32 %v14491_v56, %v12463_v37  ;;  %v14492_v15 = vunpack.c.l.bf16 %v12136_v12  ;;  %v14493_v61 = vunpack.c.l.bf16 %v12190_v59  ;;  %v3191_v30 = vrot.slane %v3155_v14, 1 }
 0x331   : > { %v3113_v39 = vsel %vm960_vm0, %v3111_v36, %v3112_v10  ;;  %v12516_v5 = vunpack.c.l.bf16 %v12247_v51  ;;  %v3119_v0 = vsel %vm960_vm0, %v3117_v26, %v3118_v19  ;;  %v3241_v12 = vunpack.c.l.bf16 %v12257_v45  ;;  %v14496_v36 = vld [vmem:[#allocation24_spill] sm:$0xff]  ;;  %v14497_v10 = vld [vmem:[#allocation17_spill] sm:$0xff] }
 0x332   : > { %v3159_v8 = vmul.f32 %v14491_v56, %v14492_v15  ;;  %v3161_v18 = vmul.f32 %v14491_v56, %v14493_v61  ;;  %v3135_v33 = vadd.f32 %v3113_v39, %v3055_v32  ;;  %v3192_v60 = vrot.slane %v3157_v6, 1 }
 0x333   : > { %v3137_v9 = vadd.f32 %v3119_v0, %v3057_v46  ;;  %v3259_v38 = vmul.f32 %v14495_v31, %v14494_v62  ;;  %v3261_v2 = vmul.f32 %v14495_v31, %v14484_v49  ;;  %v3263_v51 = vmul.f32 %v14495_v31, %v14496_v36 }
 0x334   : > { %v3197_v13 = vrot.slane %v3159_v8, 1  ;;  %v3198_v44 = vrot.slane %v3161_v18, 1  ;;  %v3193_v41 = vsel %vm960_vm0, %v3191_v30, %v3192_v60  ;;  %v3265_v56 = vmul.f32 %v14495_v31, %v14485_v40  ;;  %v14498_v8 = vld [vmem:[#allocation34_spill] sm:$0xff] }
 0x335   : > { %v3215_v22 = vadd.f32 %v3193_v41, %v3135_v33  ;;  %v3295_v32 = vrot.slane %v3259_v38, 2  ;;  %v3339_v26 = vmul.f32 %v14497_v10, %v14496_v36  ;;  %v3296_v19 = vrot.slane %v3261_v2, 2  ;;  %v14499_v33 = vld [vmem:[#allocation28_spill] sm:$0xff]  ;;  %v14500_v41 = vld [vmem:[#allocation47_spill] sm:$0xff] }
 0x336   : > { %v3199_v14 = vsel %vm960_vm0, %v3197_v13, %v3198_v44  ;;  %v3301_v6 = vrot.slane %v3263_v51, 2  ;;  %v3302_v15 = vrot.slane %v3265_v56, 2  ;;  %v3341_v49 = vmul.f32 %v14497_v10, %v14485_v40 }
 0x337   : > { %v3217_v46 = vadd.f32 %v3199_v14, %v3137_v9  ;;  %v3343_v39 = vmul.f32 %v14497_v10, %v14498_v8  ;;  %v3345_v61 = vmul.f32 %v14497_v10, %v14487_v50  ;;  %v3375_v18 = vrot.slane %v3339_v26, 2  ;;  %v14501_v10 = vld [vmem:[#allocation6_spill] sm:$0xff] }
 0x338   : > { %v3297_v30 = vsel %vm1385_vm1, %v3295_v32, %v3296_v19  ;;  %v3303_v0 = vsel %vm1385_vm1, %v3301_v6, %v3302_v15  ;;  %v3419_v60 = vmul.f32 %v14499_v33, %v14498_v8  ;;  %v3421_v13 = vmul.f32 %v14499_v33, %v14487_v50 }
 0x339   : > { %v3319_v9 = vadd.f32 %v3297_v30, %v3215_v22  ;;  %v3321_v44 = vadd.f32 %v3303_v0, %v3217_v46  ;;  %v3376_v40 = vrot.slane %v3341_v49, 2  ;;  %v3381_v31 = vrot.slane %v3343_v39, 2 }
 0x33a   : > { %v3382_v38 = vrot.slane %v3345_v61, 2  ;;  %v3423_v2 = vmul.f32 %v14499_v33, %v14500_v41  ;;  %v3425_v51 = vmul.f32 %v14499_v33, %v14489_v43  ;;  %v3455_v56 = vrot.slane %v3419_v60, 2 }
 0x33b   : > { %v3377_v14 = vsel %vm1385_vm1, %v3375_v18, %v3376_v40  ;;  %v3456_v32 = vrot.slane %v3421_v13, 2  ;;  %v3499_v26 = vmul.f32 %v14501_v10, %v14500_v41  ;;  %v3501_v50 = vmul.f32 %v14501_v10, %v14489_v43 }
 0x33c   : > { %v3383_v22 = vsel %vm1385_vm1, %v3381_v31, %v3382_v38  ;;  %v3399_v46 = vadd.f32 %v3377_v14, %v3319_v9  ;;  %v3461_v19 = vrot.slane %v3423_v2, 2  ;;  %v3462_v6 = vrot.slane %v3425_v51, 2  ;;  %v14502_v9 = vld [vmem:[#allocation90_spill] sm:$0xff] }
 0x33d   : > { %v3401_v15 = vadd.f32 %v3383_v22, %v3321_v44  ;;  %v3457_v49 = vsel %vm1385_vm1, %v3455_v56, %v3456_v32  ;;  %v3503_v39 = vmul.f32 %v14501_v10, %v12516_v5  ;;  %v3505_v61 = vmul.f32 %v14501_v10, %v12463_v37 }
 0x33e   : > { %v3463_v18 = vsel %vm1385_vm1, %v3461_v19, %v3462_v6  ;;  %v3479_v30 = vadd.f32 %v3457_v49, %v3399_v46  ;;  %v3535_v0 = vrot.slane %v3499_v26, 2  ;;  %v3536_v33 = vrot.slane %v3501_v50, 2  ;;  %v14504_v19 = vld [vmem:[#allocation66_spill] sm:$0xff] }
 0x33f   : > { %v3481_v43 = vadd.f32 %v3463_v18, %v3401_v15  ;;  %v3541_v60 = vrot.slane %v3503_v39, 2  ;;  %v3542_v13 = vrot.slane %v3505_v61, 2  ;;  %v3579_v40 = vmul.f32 %v14502_v9, %v12516_v5  ;;  %v14505_v15 = vld [vmem:[#allocation43_spill] sm:$0xff]  ;;  %v14506_v61 = vld [vmem:[#allocation45_spill] sm:$0xff] }
 0x340   : > { %v3537_v44 = vsel %vm1385_vm1, %v3535_v0, %v3536_v33  ;;  %v3581_v31 = vmul.f32 %v14502_v9, %v12463_v37  ;;  %v3583_v38 = vmul.f32 %v14502_v9, %v3241_v12  ;;  %v14503_v2 = vunpack.c.l.bf16 %v12190_v59 }
 0x341   : > { %v3543_v56 = vsel %vm1385_vm1, %v3541_v60, %v3542_v13  ;;  %v3559_v14 = vadd.f32 %v3537_v44, %v3479_v30  ;;  %v3615_v32 = vrot.slane %v3579_v40, 2  ;;  %v12573_v10 = vunpack.c.l.bf16 %v12308_v58  ;;  %v14507_v30 = vld [vmem:[#allocation62_spill] sm:$0xff] }
 0x342   : > { %v3585_v51 = vmul.f32 %v14502_v9, %v14503_v2  ;;  %v3561_v26 = vadd.f32 %v3543_v56, %v3481_v43  ;;  %v3616_v50 = vrot.slane %v3581_v31, 2  ;;  %v3621_v22 = vrot.slane %v3583_v38, 2  ;;  %v14508_v38 = vld [vmem:[#allocation64_spill] sm:$0xff] }
 0x343   : > { %v3665_v37 = vunpack.c.l.bf16 %v12313_v55  ;;  %v3683_v6 = vmul.f32 %v14504_v19, %v14494_v62  ;;  %v3685_v59 = vmul.f32 %v14504_v19, %v14505_v15  ;;  %v3687_v49 = vmul.f32 %v14504_v19, %v14496_v36  ;;  %v14522_v55 = vld [vmem:[#allocation96_spill] sm:$0xff] }
 0x344   : > { %v3622_v46 = vrot.slane %v3585_v51, 2  ;;  %v3617_v39 = vsel %vm1385_vm1, %v3615_v32, %v3616_v50  ;;  %v3689_v18 = vmul.f32 %v14504_v19, %v14506_v61  ;;  %v3763_v0 = vmul.f32 %v14507_v30, %v14496_v36  ;;  %v14509_v36 = vld [vmem:[#allocation56_spill] sm:$0xff] }
 0x345   : > { %v3639_v33 = vadd.f32 %v3617_v39, %v3559_v14  ;;  %v3719_v60 = vrot.slane %v3683_v6, 3  ;;  %v3720_v62 = vrot.slane %v3685_v59, 3  ;;  %v3725_v13 = vrot.slane %v3687_v49, 3  ;;  %v14510_v49 = vld [vmem:[#allocation65_spill] sm:$0xff] }
 0x346   : > { %v3623_v58 = vsel %vm1385_vm1, %v3621_v22, %v3622_v46  ;;  %v3726_v9 = vrot.slane %v3689_v18, 3  ;;  %v3765_v40 = vmul.f32 %v14507_v30, %v14506_v61  ;;  %v3767_v44 = vmul.f32 %v14507_v30, %v14498_v8 }
 0x347   : > { %v3641_v43 = vadd.f32 %v3623_v58, %v3561_v26  ;;  %v3721_v31 = vsel %vm1810_vm2, %v3719_v60, %v3720_v62  ;;  %v3769_v2 = vmul.f32 %v14507_v30, %v14508_v38  ;;  %v3799_v51 = vrot.slane %v3763_v0, 3 }
 0x348   : > { %v3843_v56 = vmul.f32 %v14509_v36, %v14498_v8  ;;  %v3727_v14 = vsel %vm1810_vm2, %v3725_v13, %v3726_v9  ;;  %v3743_v32 = vadd.f32 %v3721_v31, %v3639_v33  ;;  %v3800_v26 = vrot.slane %v3765_v40, 3  ;;  %v14511_v8 = vld [vmem:[#allocation7_spill] sm:$0xff] }
 0x349   : > { %v3805_v50 = vrot.slane %v3767_v44, 3  ;;  %v3745_v22 = vadd.f32 %v3727_v14, %v3641_v43  ;;  %v3806_v46 = vrot.slane %v3769_v2, 3  ;;  %v3845_v19 = vmul.f32 %v14509_v36, %v14508_v38 }
 0x34a   : > { %v3847_v6 = vmul.f32 %v14509_v36, %v14500_v41  ;;  %v3801_v59 = vsel %vm1810_vm2, %v3799_v51, %v3800_v26  ;;  %v3849_v39 = vmul.f32 %v14509_v36, %v14510_v49  ;;  %v3879_v58 = vrot.slane %v3843_v56, 3 }
 0x34b   : > { %v3923_v18 = vmul.f32 %v14511_v8, %v14500_v41  ;;  %v3807_v30 = vsel %vm1810_vm2, %v3805_v50, %v3806_v46  ;;  %v3823_v0 = vadd.f32 %v3801_v59, %v3743_v32  ;;  %v3880_v33 = vrot.slane %v3845_v19, 3  ;;  %v14512_v41 = vld [vmem:[#allocation91_spill] sm:$0xff] }
 0x34c   : > { %v3885_v43 = vrot.slane %v3847_v6, 3  ;;  %v3825_v60 = vadd.f32 %v3807_v30, %v3745_v22  ;;  %v3886_v62 = vrot.slane %v3849_v39, 3  ;;  %v3925_v13 = vmul.f32 %v14511_v8, %v14510_v49 }
 0x34d   : > { %v3927_v9 = vmul.f32 %v14511_v8, %v12516_v5  ;;  %v3881_v40 = vsel %vm1810_vm2, %v3879_v58, %v3880_v33  ;;  %v3929_v44 = vmul.f32 %v14511_v8, %v12573_v10  ;;  %v3959_v31 = vrot.slane %v3923_v18, 3 }
 0x34e   : > { %v4003_v2 = vmul.f32 %v14512_v41, %v12516_v5  ;;  %v3887_v51 = vsel %vm1810_vm2, %v3885_v43, %v3886_v62  ;;  %v3903_v36 = vadd.f32 %v3881_v40, %v3823_v0  ;;  %v3960_v56 = vrot.slane %v3925_v13, 3  ;;  %v14513_v0 = vld [vmem:[#allocation74_spill] sm:$0xff]  ;;  %v14515_v62 = vld [vmem:[#allocation76_spill] sm:$0xff] }
 0x34f   : > { %v3965_v14 = vrot.slane %v3927_v9, 3  ;;  %v3905_v32 = vadd.f32 %v3887_v51, %v3825_v60  ;;  %v3966_v26 = vrot.slane %v3929_v44, 3  ;;  %v4005_v50 = vmul.f32 %v14512_v41, %v12573_v10 }
 0x350   : > { %v4007_v22 = vmul.f32 %v14512_v41, %v3241_v12  ;;  %v3961_v46 = vsel %vm1810_vm2, %v3959_v31, %v3960_v56  ;;  %v4009_v5 = vmul.f32 %v14512_v41, %v3665_v37  ;;  %v4039_v19 = vrot.slane %v4003_v2, 3  ;;  %v14514_v12 = vld [vmem:[#allocation10_spill] sm:$0xff] }
 0x351   : > { %v4087_v6 = vunpack.c.l.bf16 %v12368_v48  ;;  %v3967_v59 = vsel %vm1810_vm2, %v3965_v14, %v3966_v26  ;;  %v3983_v39 = vadd.f32 %v3961_v46, %v3903_v36  ;;  %v4040_v58 = vrot.slane %v4005_v50, 3  ;;  %v14517_v56 = vld [vmem:[#allocation78_spill] sm:$0xff]  ;;  %v14518_v46 = vld [vmem:[#allocation93_spill] sm:$0xff] }
 0x352   : > { %v4045_v8 = vrot.slane %v4007_v22, 3  ;;  %v3985_v18 = vadd.f32 %v3967_v59, %v3905_v32  ;;  %v4046_v30 = vrot.slane %v4009_v5, 3  ;;  %v4089_v45 = vunpack.c.l.bf16 %v12371_v53  ;;  %v14516_v53 = vld [vmem:[#allocation92_spill] sm:$0xff] }
 0x353   : > { %v4107_v33 = vmul.f32 %v14514_v12, %v14513_v0  ;;  %v4041_v43 = vsel %vm1810_vm2, %v4039_v19, %v4040_v58  ;;  %v4109_v60 = vmul.f32 %v14514_v12, %v14505_v15  ;;  %v4111_v48 = vmul.f32 %v14514_v12, %v14515_v62 }
 0x354   : > { %v4113_v13 = vmul.f32 %v14514_v12, %v14506_v61  ;;  %v4047_v9 = vsel %vm1810_vm2, %v4045_v8, %v4046_v30  ;;  %v4063_v40 = vadd.f32 %v4041_v43, %v3983_v39  ;;  %v4187_v31 = vmul.f32 %v14516_v53, %v14515_v62 }
 0x355   : > { %v4143_v44 = vrot.slane %v4107_v33, 4  ;;  %v4065_v41 = vadd.f32 %v4047_v9, %v3985_v18  ;;  %v4144_v2 = vrot.slane %v4109_v60, 4  ;;  %v4149_v51 = vrot.slane %v4111_v48, 4  ;;  %v14519_v18 = vld [vmem:[#allocation80_spill] sm:$0xff]  ;;  %v14520_v60 = vld [vmem:[#allocation94_spill] sm:$0xff] }
 0x356   : > { %v4150_v36 = vrot.slane %v4113_v13, 4  ;;  %v4189_v15 = vmul.f32 %v14516_v53, %v14506_v61  ;;  %v4191_v14 = vmul.f32 %v14516_v53, %v14517_v56  ;;  %v4193_v32 = vmul.f32 %v14516_v53, %v14508_v38 }
 0x357   : > { %v4223_v26 = vrot.slane %v4187_v31, 4  ;;  %v4145_v50 = vsel %vm2235_vm3, %v4143_v44, %v4144_v2  ;;  %v4267_v5 = vmul.f32 %v14518_v46, %v14517_v56  ;;  %v4269_v19 = vmul.f32 %v14518_v46, %v14508_v38 }
 0x358   : > { %v4151_v22 = vsel %vm2235_vm3, %v4149_v51, %v4150_v36  ;;  %v4167_v59 = vadd.f32 %v4145_v50, %v4063_v40  ;;  %v4224_v61 = vrot.slane %v4189_v15, 4  ;;  %v4229_v58 = vrot.slane %v4191_v14, 4 }
 0x359   : > { %v4169_v39 = vadd.f32 %v4151_v22, %v4065_v41  ;;  %v4230_v8 = vrot.slane %v4193_v32, 4  ;;  %v4271_v30 = vmul.f32 %v14518_v46, %v14519_v18  ;;  %v4273_v0 = vmul.f32 %v14518_v46, %v14510_v49 }
 0x35a   : > { %v4303_v12 = vrot.slane %v4267_v5, 4  ;;  %v4225_v33 = vsel %vm2235_vm3, %v4223_v26, %v4224_v61  ;;  %v4304_v43 = vrot.slane %v4269_v19, 4  ;;  %v4347_v62 = vmul.f32 %v14520_v60, %v14519_v18  ;;  %v14521_v26 = vld [vmem:[#allocation95_spill] sm:$0xff] }
 0x35b   : > { %v4349_v38 = vmul.f32 %v14520_v60, %v14510_v49  ;;  %v4231_v48 = vsel %vm2235_vm3, %v4229_v58, %v4230_v8  ;;  %v4247_v13 = vadd.f32 %v4225_v33, %v4167_v59  ;;  %v4309_v9 = vrot.slane %v4271_v30, 4  ;;  %v12670_v49 = vld [vmem:[%s8829_s12 + $0x1e0] sm:$0xff]  ;;  %v12681_v59 = vld [vmem:[%s8829_s12 + $0x1f0] sm:$0xff] }
 0x35c   : > { %v4310_v40 = vrot.slane %v4273_v0, 4  ;;  %v4249_v44 = vadd.f32 %v4231_v48, %v4169_v39  ;;  %v4305_v53 = vsel %vm2235_vm3, %v4303_v12, %v4304_v43  ;;  %v4351_v31 = vmul.f32 %v14520_v60, %v4087_v6  ;;  %v14523_v0 = vld [vmem:[#allocation100_spill] sm:$0xff]  ;;  %v14524_v12 = vld [vmem:[#allocation97_spill] sm:$0xff]  ;;  %v14526_v48 = vld [vmem:[#allocation98_spill] sm:$0xff] }
 0x35d   : > { %v4353_v41 = vmul.f32 %v14520_v60, %v12573_v10  ;;  %v4327_v51 = vadd.f32 %v4305_v53, %v4247_v13  ;;  %v4383_v36 = vrot.slane %v4347_v62, 4  ;;  %v4384_v15 = vrot.slane %v4349_v38, 4  ;;  %v14525_v43 = vld [vmem:[#allocation101_spill] sm:$0xff] }
 0x35e   : > { %v4311_v2 = vsel %vm2235_vm3, %v4309_v9, %v4310_v40  ;;  %v4389_v14 = vrot.slane %v4351_v31, 4  ;;  %v4427_v50 = vmul.f32 %v14521_v26, %v4087_v6  ;;  %v4429_v46 = vmul.f32 %v14521_v26, %v12573_v10  ;;  %v14527_v9 = vld [vmem:[#allocation102_spill] sm:$0xff] }
 0x35f   : > { %v4329_v56 = vadd.f32 %v4311_v2, %v4249_v44  ;;  %v4390_v32 = vrot.slane %v4353_v41, 4  ;;  %v4385_v22 = vsel %vm2235_vm3, %v4383_v36, %v4384_v15  ;;  %v4431_v5 = vmul.f32 %v14521_v26, %v4089_v45  ;;  %v12701_v44 = vld [vmem:[%s8829_s12 + $0x1e8] sm:$0x11]  ;;  %v12706_v36 = vld [vmem:[%s8829_s12 + $0x1f8] sm:$0x11] }
 0x360   : > { %v4433_v19 = vmul.f32 %v14521_v26, %v3665_v37  ;;  %v4407_v61 = vadd.f32 %v4385_v22, %v4327_v51  ;;  %v4463_v58 = vrot.slane %v4427_v50, 4  ;;  %v12685_v6 = vunpack.c.h.bf16 %v12670_v49  ;;  %v14528_v2 = vld [vmem:[#allocation99_spill] sm:$0xff]  ;;  %v14530_v26 = vld [vmem:[#allocation104_spill] sm:$0xff] }
 0x361   : > { %v4391_v39 = vsel %vm2235_vm3, %v4389_v14, %v4390_v32  ;;  %v4464_v18 = vrot.slane %v4429_v46, 4  ;;  %v4469_v10 = vrot.slane %v4431_v5, 4  ;;  %v4996_v45 = vunpack.c.h.bf16 %v12681_v59 }
 0x362   : > { %v4409_v8 = vadd.f32 %v4391_v39, %v4329_v56  ;;  %v4470_v30 = vrot.slane %v4433_v19, 4  ;;  %v5010_v37 = vmul.f32 %v14523_v0, %v14522_v55  ;;  %v5012_v33 = vmul.f32 %v14523_v0, %v14524_v12  ;;  %v14529_v56 = vld [vmem:[#allocation103_spill] sm:$0xff] }
 0x363   : > { %v5034_v60 = vmul.f32 %v14525_v43, %v14524_v12  ;;  %v4465_v62 = vsel %vm2235_vm3, %v4463_v58, %v4464_v18  ;;  %v5036_v13 = vmul.f32 %v14525_v43, %v14526_v48  ;;  %v5058_v40 = vmul.f32 %v14527_v9, %v14526_v48  ;;  %v14531_v58 = vld [vmem:[#allocation112_spill] sm:$0xff]  ;;  %v14532_v18 = vld [vmem:[#allocation105_spill] sm:$0xff]  ;;  %v14534_v43 = vld [vmem:[#allocation114_spill] sm:$0xff] }
 0x364   : > { %v4471_v38 = vsel %vm2235_vm3, %v4469_v10, %v4470_v30  ;;  %v4487_v53 = vadd.f32 %v4465_v62, %v4407_v61  ;;  %v5060_v51 = vmul.f32 %v14527_v9, %v14528_v2  ;;  %v5082_v14 = vmul.f32 %v14529_v56, %v14528_v2 }
 0x365   : > { %v4489_v31 = vadd.f32 %v4471_v38, %v4409_v8  ;;  %v5042_v41 = vadd.f32 %v5034_v60, %v5010_v37  ;;  %v5044_v15 = vadd.f32 %v5036_v13, %v5012_v33  ;;  %v5084_v32 = vmul.f32 %v14529_v56, %v12685_v6  ;;  %v14533_v37 = vld [vmem:[#allocation106_spill] sm:$0xff] }
 0x366   : > { %v5106_v50 = vmul.f32 %v14530_v26, %v12685_v6  ;;  %v5108_v5 = vmul.f32 %v14530_v26, %v4996_v45  ;;  %v12718_v19 = vunpack.c.h.bf16 %v12701_v44  ;;  %v13966_v61 = vunpack.c.h.bf16 %v12706_v36 }
 0x367   : > { %v4493_v22 = vpack.c.bf16 %v4489_v31, %v4487_v53  ;;  %v5066_v46 = vadd.f32 %v5058_v40, %v5042_v41  ;;  %v5068_v39 = vadd.f32 %v5060_v51, %v5044_v15  ;;  %v5158_v8 = vmul.f32 %v14531_v58, %v14522_v55  ;;  %v14535_v15 = vld [vmem:[#allocation108_spill] sm:$0xff] }
 0x368   : > { %v5160_v10 = vmul.f32 %v14531_v58, %v14532_v18  ;;  %v5162_v0 = vmul.f32 %v14531_v58, %v14524_v12  ;;  %v5164_v33 = vmul.f32 %v14531_v58, %v14533_v37  ;;  %v5238_v60 = vmul.f32 %v14534_v43, %v14524_v12 }
 0x369   : > { %4731 = vmatmul.mubr.bf16.gmra.mrb[4].mxu1 %v4493_v22  ;;  %v5090_v30 = vadd.f32 %v5082_v14, %v5066_v46  ;;  %v5092_v62 = vadd.f32 %v5084_v32, %v5068_v39  ;;  %v5196_v38 = vrot.slane %v5158_v8, 1  ;;  %v5240_v55 = vmul.f32 %v14534_v43, %v14533_v37 }
 0x36a   : > { %v5197_v13 = vrot.slane %v5160_v10, 1  ;;  %v5202_v40 = vrot.slane %v5162_v0, 1  ;;  %v5203_v53 = vrot.slane %v5164_v33, 1  ;;  %v5242_v31 = vmul.f32 %v14534_v43, %v14526_v48  ;;  %v14538_v33 = vld [vmem:[#allocation119_spill] sm:$0xff] }
 0x36b   : > { %v5114_v9 = vadd.f32 %v5106_v50, %v5090_v30  ;;  %v5116_v41 = vadd.f32 %v5108_v5, %v5092_v62  ;;  %v5244_v56 = vmul.f32 %v14534_v43, %v14535_v15  ;;  %v5276_v14 = vrot.slane %v5238_v60, 1  ;;  %v14536_v50 = vld [vmem:[#allocation116_spill] sm:$0xff]  ;;  %v14537_v30 = vld [vmem:[#allocation110_spill] sm:$0xff] }
 0x36c   : > { %v5198_v51 = vsel %vm960_vm0, %v5196_v38, %v5197_v13  ;;  %v5204_v12 = vsel %vm960_vm0, %v5202_v40, %v5203_v53  ;;  %v5277_v26 = vrot.slane %v5240_v55, 1  ;;  %v5282_v22 = vrot.slane %v5242_v31, 1  ;;  %v8370_v55 = vld [vmem:[%s13474_s3 + $0x4] ss:$8 sps:$4 sm:$0xff]   ;;  %v8373_v31 = vld [vmem:[%s13474_s3 + $0x14] ss:$8 sps:$4 sm:$0xff]  }
 0x36d   : > { %v5218_v32 = vadd.f32 %v5198_v51, %v5114_v9  ;;  %v5220_v46 = vadd.f32 %v5204_v12, %v5116_v41  ;;  %v5283_v39 = vrot.slane %v5244_v56, 1  ;;  %v5318_v58 = vmul.f32 %v14536_v50, %v14526_v48  ;;  %v8368_v48 = vld [vmem:[%s13474_s3] ss:$8 sps:$4 sm:$0xff]   ;;  %7279 = vmatprep.subr.bf16.mxu1 %v8370_v55  ;;  %v12767_v12 = vpop.f32.mrb[0].mxu1 }
 0x36e   : > { %v5320_v8 = vmul.f32 %v14536_v50, %v14535_v15  ;;  %v5278_v5 = vsel %vm960_vm0, %v5276_v14, %v5277_v26  ;;  %v5322_v10 = vmul.f32 %v14536_v50, %v14528_v2  ;;  %v5324_v0 = vmul.f32 %v14536_v50, %v14537_v30  ;;  %v12773_v50 = vld [vmem:[%s8829_s12 + $0x1e0] sm:$0xee]  ;;  %7280 = vmatpush1.bf16.msra.mxu1 %v8368_v48 }
 0x36f   : > { %v5398_v43 = vmul.f32 %v14538_v33, %v14528_v2  ;;  %v5284_v60 = vsel %vm960_vm0, %v5282_v22, %v5283_v39  ;;  %v5298_v62 = vadd.f32 %v5278_v5, %v5218_v32  ;;  %v5356_v38 = vrot.slane %v5318_v58, 1  ;;  %v8371_v58 = vld [vmem:[%s13474_s3 + $0x10] ss:$8 sps:$4 sm:$0xff]   ;;  %7281 = vmatprep.subr.bf16.mxu1 %v8373_v31 }
 0x370   : > { %v5357_v13 = vrot.slane %v5320_v8, 1  ;;  %v5300_v9 = vadd.f32 %v5284_v60, %v5220_v46  ;;  %v5362_v40 = vrot.slane %v5322_v10, 1  ;;  %v5363_v53 = vrot.slane %v5324_v0, 1  ;;  %v14539_v46 = vld [vmem:[#allocation121_spill] sm:$0xff]  ;;  %v12778_v8 = vpop.f32.mrb[1].mxu1 }
 0x371   : > { %v5400_v2 = vmul.f32 %v14538_v33, %v14537_v30  ;;  %v5402_v51 = vmul.f32 %v14538_v33, %v12685_v6  ;;  %v5404_v56 = vmul.f32 %v14538_v33, %v12718_v19  ;;  %v5436_v14 = vrot.slane %v5398_v43, 1  ;;  %14540 = vst [vmem:[#allocation142_spill] sm:$0xff] %v12778_v8  ;;  %v12783_v43 = vld [vmem:[%s8829_s12 + $0x1f0] sm:$0xee]  ;;  %v12795_v48 = vpop.f32.mrb[2].mxu1 }
 0x372   : > { %v5358_v41 = vsel %vm960_vm0, %v5356_v38, %v5357_v13  ;;  %v5364_v32 = vsel %vm960_vm0, %v5362_v40, %v5363_v53  ;;  %v5478_v39 = vmul.f32 %v14539_v46, %v12685_v6  ;;  %v5480_v33 = vmul.f32 %v14539_v46, %v12718_v19  ;;  %v8376_v6 = vld [vmem:[%s13474_s3 + $0x24] ss:$8 sps:$4 sm:$0xff]   ;;  %14541 = vst [vmem:[#allocation143_spill] sm:$0xff] %v12795_v48 }
 0x373   : > { %v5378_v26 = vadd.f32 %v5358_v41, %v5298_v62  ;;  %v5437_v22 = vrot.slane %v5400_v2, 1  ;;  %v5380_v5 = vadd.f32 %v5364_v32, %v5300_v9  ;;  %v5442_v10 = vrot.slane %v5402_v51, 1  ;;  %v12801_v2 = vpop.f32.mrb[3].mxu1  ;;  %7282 = vmatpush1.bf16.msra.mxu1 %v8371_v58  ;;  %v14543_v32 = vld [vmem:[#allocation123_spill] sm:$0xff]  ;;  %v8379_v58 = vld [vmem:[%s13474_s3 + $0x34] ss:$8 sps:$4 sm:$0xff]  }
 0x374   : > { %v5443_v0 = vrot.slane %v5404_v56, 1  ;;  %v5482_v62 = vmul.f32 %v14539_v46, %v4996_v45  ;;  %v5484_v38 = vmul.f32 %v14539_v46, %v13966_v61  ;;  %v5516_v13 = vrot.slane %v5478_v39, 1  ;;  %14542 = vst [vmem:[#allocation153_spill] sm:$0xff] %v12801_v2  ;;  %v8374_v56 = vld [vmem:[%s13474_s3 + $0x20] ss:$8 sps:$4 sm:$0xff]   ;;  %v14545_v39 = vld [vmem:[#allocation125_spill] sm:$0xff]  ;;  %7283 = vmatprep.subr.bf16.mxu1 %v8376_v6 }
 0x375   : > { %v5438_v60 = vsel %vm960_vm0, %v5436_v14, %v5437_v22  ;;  %v5517_v40 = vrot.slane %v5480_v33, 1  ;;  %v12799_v53 = vunpack.c.h.bf16 %v12773_v50  ;;  %v14547_v61 = vld [vmem:[#allocation127_spill] sm:$0xff] }
 0x376   : > { %v5444_v55 = vsel %vm960_vm0, %v5442_v10, %v5443_v0  ;;  %v5458_v9 = vadd.f32 %v5438_v60, %v5378_v26  ;;  %v5522_v41 = vrot.slane %v5482_v62, 1  ;;  %v5523_v51 = vrot.slane %v5484_v38, 1  ;;  %v14544_v26 = vld [vmem:[#allocation131_spill] sm:$0xff]  ;;  %v14546_v60 = vld [vmem:[#allocation133_spill] sm:$0xff] }
 0x377   : > { %v5460_v31 = vadd.f32 %v5444_v55, %v5380_v5  ;;  %v5518_v14 = vsel %vm960_vm0, %v5516_v13, %v5517_v40  ;;  %v5582_v22 = vmul.f32 %v14544_v26, %v14543_v32  ;;  %v5584_v46 = vmul.f32 %v14544_v26, %v14532_v18  ;;  %7284 = vmatpush1.bf16.msra.mxu1 %v8374_v56  ;;  %v14550_v48 = vld [vmem:[#allocation139_spill] sm:$0xff] }
 0x378   : > { %v5586_v5 = vmul.f32 %v14544_v26, %v14545_v39  ;;  %v5524_v10 = vsel %vm960_vm0, %v5522_v41, %v5523_v51  ;;  %v5538_v0 = vadd.f32 %v5518_v14, %v5458_v9  ;;  %v5588_v33 = vmul.f32 %v14544_v26, %v14533_v37  ;;  %v8377_v41 = vld [vmem:[%s13474_s3 + $0x30] ss:$8 sps:$4 sm:$0xff]   ;;  %7285 = vmatprep.subr.bf16.mxu1 %v8379_v58 }
 0x379   : > { %v5662_v62 = vmul.f32 %v14546_v60, %v14545_v39  ;;  %v5540_v38 = vadd.f32 %v5524_v10, %v5460_v31  ;;  %v5620_v13 = vrot.slane %v5582_v22, 2  ;;  %v5621_v18 = vrot.slane %v5584_v46, 2  ;;  %v14548_v14 = vld [vmem:[#allocation136_spill] sm:$0xff]  ;;  %v8382_v22 = vld [vmem:[%s13474_s3 + $0x44] ss:$8 sps:$4 sm:$0xff]  }
 0x37a   : > { %v5626_v55 = vrot.slane %v5586_v5, 2  ;;  %v5627_v40 = vrot.slane %v5588_v33, 2  ;;  %v5664_v6 = vmul.f32 %v14546_v60, %v14533_v37  ;;  %v5666_v45 = vmul.f32 %v14546_v60, %v14547_v61 }
 0x37b   : > { %v5668_v9 = vmul.f32 %v14546_v60, %v14535_v15  ;;  %v5622_v31 = vsel %vm1385_vm1, %v5620_v13, %v5621_v18  ;;  %v5700_v51 = vrot.slane %v5662_v62, 2  ;;  %v5742_v26 = vmul.f32 %v14548_v14, %v14547_v61  ;;  %v14549_v13 = vld [vmem:[#allocation129_spill] sm:$0xff]  ;;  %7286 = vmatpush1.bf16.msra.mxu1 %v8377_v41 }
 0x37c   : > { %v5744_v37 = vmul.f32 %v14548_v14, %v14535_v15  ;;  %v5628_v56 = vsel %vm1385_vm1, %v5626_v55, %v5627_v40  ;;  %v5642_v46 = vadd.f32 %v5622_v31, %v5538_v0  ;;  %v5701_v5 = vrot.slane %v5664_v6, 2  ;;  %7287 = vmatprep.subr.bf16.mxu1 %v8382_v22  ;;  %v8385_v6 = vld [vmem:[%s13474_s3 + $0x54] ss:$8 sps:$4 sm:$0xff]  }
 0x37d   : > { %v5706_v10 = vrot.slane %v5666_v45, 2  ;;  %v5644_v33 = vadd.f32 %v5628_v56, %v5540_v38  ;;  %v5707_v60 = vrot.slane %v5668_v9, 2  ;;  %v5746_v62 = vmul.f32 %v14548_v14, %v14549_v13  ;;  %v8380_v45 = vld [vmem:[%s13474_s3 + $0x40] ss:$8 sps:$4 sm:$0xff]  }
 0x37e   : > { %v5748_v18 = vmul.f32 %v14548_v14, %v14537_v30  ;;  %v5702_v15 = vsel %vm1385_vm1, %v5700_v51, %v5701_v5  ;;  %v5780_v58 = vrot.slane %v5742_v26, 2  ;;  %v5781_v2 = vrot.slane %v5744_v37, 2  ;;  %v12863_v56 = vld [vmem:[%s8829_s12 + $0x1e8] sm:$0x33] }
 0x37f   : > { %v5822_v8 = vmul.f32 %v14550_v48, %v14549_v13  ;;  %v5708_v0 = vsel %vm1385_vm1, %v5706_v10, %v5707_v60  ;;  %v5722_v38 = vadd.f32 %v5702_v15, %v5642_v46  ;;  %v5786_v55 = vrot.slane %v5746_v62, 2  ;;  %v12866_v46 = vld [vmem:[%s8829_s12 + $0x1f8] sm:$0x33]  ;;  %7288 = vmatpush1.bf16.msra.mxu1 %v8380_v45  ;;  %v8388_v45 = vld [vmem:[%s13474_s3 + $0x64] ss:$8 sps:$4 sm:$0xff]  }
 0x380   : > { %v5787_v40 = vrot.slane %v5748_v18, 2  ;;  %v5724_v9 = vadd.f32 %v5708_v0, %v5644_v33  ;;  %v5782_v31 = vsel %vm1385_vm1, %v5780_v58, %v5781_v2  ;;  %v5824_v41 = vmul.f32 %v14550_v48, %v14537_v30  ;;  %v14551_v33 = vld [vmem:[#allocation141_spill] sm:$0xff]  ;;  %7289 = vmatprep.subr.bf16.mxu1 %v8385_v6  ;;  %v14554_v6 = vld [vmem:[#allocation148_spill] sm:$0xff] }
 0x381   : > { %v5826_v51 = vmul.f32 %v14550_v48, %v12799_v53  ;;  %v5802_v26 = vadd.f32 %v5782_v31, %v5722_v38  ;;  %v5828_v37 = vmul.f32 %v14550_v48, %v12718_v19  ;;  %v5860_v22 = vrot.slane %v5822_v8, 2  ;;  %v8383_v60 = vld [vmem:[%s13474_s3 + $0x50] ss:$8 sps:$4 sm:$0xff]  }
 0x382   : > { %v5788_v14 = vsel %vm1385_vm1, %v5786_v55, %v5787_v40  ;;  %v5861_v10 = vrot.slane %v5824_v41, 2  ;;  %v5902_v30 = vmul.f32 %v14551_v33, %v12799_v53  ;;  %v5904_v48 = vmul.f32 %v14551_v33, %v12718_v19 }
 0x383   : > { %v5804_v5 = vadd.f32 %v5788_v14, %v5724_v9  ;;  %v5866_v2 = vrot.slane %v5826_v51, 2  ;;  %v5867_v62 = vrot.slane %v5828_v37, 2  ;;  %v14552_v8 = vunpack.c.h.bf16 %v12783_v43  ;;  %7290 = vmatpush1.bf16.msra.mxu1 %v8383_v60 }
 0x384   : > { %v14553_v15 = vunpack.c.h.bf16 %v12706_v36  ;;  %v5862_v0 = vsel %vm1385_vm1, %v5860_v22, %v5861_v10  ;;  %v5940_v38 = vrot.slane %v5902_v30, 2  ;;  %v12886_v55 = vunpack.c.h.bf16 %v12863_v56  ;;  %v8386_v22 = vld [vmem:[%s13474_s3 + $0x60] ss:$8 sps:$4 sm:$0xff]   ;;  %7291 = vmatprep.subr.bf16.mxu1 %v8388_v45 }
 0x385   : > { %v5906_v18 = vmul.f32 %v14551_v33, %v14552_v8  ;;  %v5988_v19 = vunpack.c.h.bf16 %v12866_v46  ;;  %v5868_v40 = vsel %vm1385_vm1, %v5866_v2, %v5867_v62  ;;  %v5882_v9 = vadd.f32 %v5862_v0, %v5802_v26  ;;  %v14555_v2 = vld [vmem:[#allocation149_spill] sm:$0xff] }
 0x386   : > { %v5908_v58 = vmul.f32 %v14551_v33, %v14553_v15  ;;  %v5941_v31 = vrot.slane %v5904_v48, 2  ;;  %v5884_v51 = vadd.f32 %v5868_v40, %v5804_v5  ;;  %v6006_v37 = vmul.f32 %v14554_v6, %v14543_v32  ;;  %v8391_v32 = vld [vmem:[%s13474_s3 + $0x74] ss:$8 sps:$4 sm:$0xff]  }
 0x387   : > { %v5946_v41 = vrot.slane %v5906_v18, 2  ;;  %v6008_v33 = vmul.f32 %v14554_v6, %v11697_v20  ;;  %v6010_v26 = vmul.f32 %v14554_v6, %v14545_v39  ;;  %v6012_v5 = vmul.f32 %v14554_v6, %v11701_v3  ;;  %7292 = vmatpush1.bf16.msra.mxu1 %v8386_v22 }
 0x388   : > { %v5947_v14 = vrot.slane %v5908_v58, 2  ;;  %v5942_v10 = vsel %vm1385_vm1, %v5940_v38, %v5941_v31  ;;  %v6086_v30 = vmul.f32 %v14555_v2, %v14545_v39  ;;  %v6044_v48 = vrot.slane %v6006_v37, 3  ;;  %7293 = vmatprep.subr.bf16.mxu1 %v8391_v32  ;;  %v8394_v37 = vld [vmem:[%s13474_s3 + $0x84] ss:$8 sps:$4 sm:$0xff]  }
 0x389   : > { %v5962_v62 = vadd.f32 %v5942_v10, %v5882_v9  ;;  %v6045_v8 = vrot.slane %v6008_v33, 3  ;;  %v6050_v15 = vrot.slane %v6010_v26, 3  ;;  %v6051_v58 = vrot.slane %v6012_v5, 3  ;;  %v8389_v9 = vld [vmem:[%s13474_s3 + $0x70] ss:$8 sps:$4 sm:$0xff]  }
 0x38a   : > { %v5948_v60 = vsel %vm1385_vm1, %v5946_v41, %v5947_v14  ;;  %v6088_v0 = vmul.f32 %v14555_v2, %v11701_v3  ;;  %v6090_v39 = vmul.f32 %v14555_v2, %v14547_v61  ;;  %v6092_v45 = vmul.f32 %v14555_v2, %v11706_v57  ;;  %v14556_v14 = vld [vmem:[#allocation150_spill] sm:$0xff] }
 0x38b   : > { %v5964_v18 = vadd.f32 %v5948_v60, %v5884_v51  ;;  %v6046_v38 = vsel %vm1810_vm2, %v6044_v48, %v6045_v8  ;;  %v6124_v40 = vrot.slane %v6086_v30, 3  ;;  %v6052_v31 = vsel %vm1810_vm2, %v6050_v15, %v6051_v58  ;;  %v14557_v48 = vld [vmem:[#allocation152_spill] sm:$0xff]  ;;  %7294 = vmatpush1.bf16.msra.mxu1 %v8389_v9 }
 0x38c   : > { %v6066_v41 = vadd.f32 %v6046_v38, %v5962_v62  ;;  %v6125_v51 = vrot.slane %v6088_v0, 3  ;;  %v6166_v6 = vmul.f32 %v14556_v14, %v14547_v61  ;;  %v6130_v10 = vrot.slane %v6090_v39, 3  ;;  %7295 = vmatprep.subr.bf16.mxu1 %v8394_v37  ;;  %v8397_v39 = vld [vmem:[%s13474_s3 + $0x94] ss:$8 sps:$4 sm:$0xff]   ;;  %v12951_v37 = vld [vmem:[%s8829_s12 + $0x1e0] sm:$0xcc] }
 0x38d   : > { %v6068_v33 = vadd.f32 %v6052_v31, %v5964_v18  ;;  %v6131_v26 = vrot.slane %v6092_v45, 3  ;;  %v6168_v22 = vmul.f32 %v14556_v14, %v11706_v57  ;;  %v6170_v2 = vmul.f32 %v14556_v14, %v14549_v13  ;;  %v8392_v18 = vld [vmem:[%s13474_s3 + $0x80] ss:$8 sps:$4 sm:$0xff]  }
 0x38e   : > { %v6126_v5 = vsel %vm1810_vm2, %v6124_v40, %v6125_v51  ;;  %v6172_v30 = vmul.f32 %v14556_v14, %v11711_v27  ;;  %v6204_v61 = vrot.slane %v6166_v6, 3  ;;  %v6246_v8 = vmul.f32 %v14557_v48, %v14549_v13  ;;  %v14558_v14 = vld [vmem:[#allocation154_spill] sm:$0xff] }
 0x38f   : > { %v6132_v32 = vsel %vm1810_vm2, %v6130_v10, %v6131_v26  ;;  %v6146_v60 = vadd.f32 %v6126_v5, %v6066_v41  ;;  %v6205_v62 = vrot.slane %v6168_v22, 3  ;;  %v6210_v58 = vrot.slane %v6170_v2, 3  ;;  %v12956_v5 = vld [vmem:[%s8829_s12 + $0x1f0] sm:$0xcc]  ;;  %7296 = vmatpush1.bf16.msra.mxu1 %v8392_v18 }
 0x390   : > { %v6148_v15 = vadd.f32 %v6132_v32, %v6068_v33  ;;  %v6211_v0 = vrot.slane %v6172_v30, 3  ;;  %v6248_v38 = vmul.f32 %v14557_v48, %v11711_v27  ;;  %v6250_v45 = vmul.f32 %v14557_v48, %v12799_v53  ;;  %v8395_v2 = vld [vmem:[%s13474_s3 + $0x90] ss:$8 sps:$4 sm:$0xff]   ;;  %7297 = vmatprep.subr.bf16.mxu1 %v8397_v39 }
 0x391   : > { %v6206_v13 = vsel %vm1810_vm2, %v6204_v61, %v6205_v62  ;;  %v6252_v40 = vmul.f32 %v14557_v48, %v12886_v55  ;;  %v6284_v9 = vrot.slane %v6246_v8, 3  ;;  %v6326_v6 = vmul.f32 %v14558_v14, %v12799_v53  ;;  %v8400_v62 = vld [vmem:[%s13474_s3 + $0xa4] ss:$8 sps:$4 sm:$0xff]  }
 0x392   : > { %v6212_v31 = vsel %vm1810_vm2, %v6210_v58, %v6211_v0  ;;  %v6226_v41 = vadd.f32 %v6206_v13, %v6146_v60  ;;  %v6285_v51 = vrot.slane %v6248_v38, 3  ;;  %v6290_v10 = vrot.slane %v6250_v45, 3 }
 0x393   : > { %v6228_v33 = vadd.f32 %v6212_v31, %v6148_v15  ;;  %v6291_v26 = vrot.slane %v6252_v40, 3  ;;  %v6328_v22 = vmul.f32 %v14558_v14, %v12886_v55  ;;  %v14559_v61 = vunpack.c.h.bf16 %v12783_v43  ;;  %v14560_v40 = vld [vmem:[#allocation160_spill] sm:$0xff]  ;;  %7298 = vmatpush1.bf16.msra.mxu1 %v8395_v2 }
 0x394   : > { %v6286_v30 = vsel %vm1810_vm2, %v6284_v9, %v6285_v51  ;;  %v6332_v32 = vmul.f32 %v14558_v14, %v5988_v19  ;;  %v6364_v60 = vrot.slane %v6326_v6, 3  ;;  %v6410_v15 = vunpack.c.h.bf16 %v12951_v37  ;;  %7299 = vmatprep.subr.bf16.mxu1 %v8400_v62  ;;  %v14562_v62 = vld [vmem:[#allocation163_spill] sm:$0xff] }
 0x395   : > { %v6330_v53 = vmul.f32 %v14558_v14, %v14559_v61  ;;  %v6292_v48 = vsel %vm1810_vm2, %v6290_v10, %v6291_v26  ;;  %v6306_v8 = vadd.f32 %v6286_v30, %v6226_v41  ;;  %v6365_v18 = vrot.slane %v6328_v22, 3  ;;  %v8398_v41 = vld [vmem:[%s13474_s3 + $0xa0] ss:$8 sps:$4 sm:$0xff]  }
 0x396   : > { %v6308_v58 = vadd.f32 %v6292_v48, %v6228_v33  ;;  %v6371_v38 = vrot.slane %v6332_v32, 3  ;;  %v6412_v13 = vunpack.c.h.bf16 %v12956_v5  ;;  %v6430_v39 = vmul.f32 %v14560_v40, %v11810_v47  ;;  %v14561_v33 = vld [vmem:[#allocation162_spill] sm:$0xff] }
 0x397   : > { %v6370_v0 = vrot.slane %v6330_v53, 3  ;;  %v6366_v45 = vsel %vm1810_vm2, %v6364_v60, %v6365_v18  ;;  %v6432_v9 = vmul.f32 %v14560_v40, %v11697_v20  ;;  %v6434_v31 = vmul.f32 %v14560_v40, %v11815_v21  ;;  %v8403_v20 = vld [vmem:[%s13474_s3 + $0xb4] ss:$8 sps:$4 sm:$0xff]   ;;  %7300 = vmatpush1.bf16.msra.mxu1 %v8398_v41 }
 0x398   : > { %v6386_v14 = vadd.f32 %v6366_v45, %v6306_v8  ;;  %v6436_v6 = vmul.f32 %v14560_v40, %v11701_v3  ;;  %v6510_v47 = vmul.f32 %v14561_v33, %v11815_v21  ;;  %v6468_v26 = vrot.slane %v6430_v39, 4  ;;  %7301 = vmatprep.subr.bf16.mxu1 %v8403_v20  ;;  %v8406_v45 = vld [vmem:[%s13474_s3 + $0xc4] ss:$8 sps:$4 sm:$0xff]   ;;  %v8404_v20 = vld [vmem:[%s13474_s3 + $0xc0] ss:$8 sps:$4 sm:$0xff]  }
 0x399   : > { %v6372_v51 = vsel %vm1810_vm2, %v6370_v0, %v6371_v38  ;;  %v6469_v22 = vrot.slane %v6432_v9, 4  ;;  %v6474_v2 = vrot.slane %v6434_v31, 4  ;;  %v6512_v61 = vmul.f32 %v14561_v33, %v11701_v3  ;;  %v8401_v3 = vld [vmem:[%s13474_s3 + $0xb0] ss:$8 sps:$4 sm:$0xff]  }
 0x39a   : > { %v6388_v10 = vadd.f32 %v6372_v51, %v6308_v58  ;;  %v6475_v30 = vrot.slane %v6436_v6, 4  ;;  %v6514_v53 = vmul.f32 %v14561_v33, %v11819_v35  ;;  %v6516_v32 = vmul.f32 %v14561_v33, %v11706_v57 }
 0x39b   : > { %v6470_v21 = vsel %vm2235_vm3, %v6468_v26, %v6469_v22  ;;  %v6548_v60 = vrot.slane %v6510_v47, 4  ;;  %v6590_v48 = vmul.f32 %v14562_v62, %v11819_v35  ;;  %v6592_v8 = vmul.f32 %v14562_v62, %v11706_v57  ;;  %7302 = vmatpush1.bf16.msra.mxu1 %v8401_v3 }
 0x39c   : > { %v6476_v18 = vsel %vm2235_vm3, %v6474_v2, %v6475_v30  ;;  %v6490_v58 = vadd.f32 %v6470_v21, %v6386_v14  ;;  %v6549_v0 = vrot.slane %v6512_v61, 4  ;;  %v6554_v38 = vrot.slane %v6514_v53, 4  ;;  %7303 = vmatprep.subr.bf16.mxu1 %v8406_v45  ;;  %v8409_v2 = vld [vmem:[%s13474_s3 + $0xd4] ss:$8 sps:$4 sm:$0xff]  }
 0x39d   : > { %v6492_v40 = vadd.f32 %v6476_v18, %v6388_v10  ;;  %v6555_v35 = vrot.slane %v6516_v32, 4  ;;  %v6594_v57 = vmul.f32 %v14562_v62, %v11823_v25  ;;  %v6596_v39 = vmul.f32 %v14562_v62, %v11711_v27  ;;  %v8407_v18 = vld [vmem:[%s13474_s3 + $0xd0] ss:$8 sps:$4 sm:$0xff]  }
 0x39e   : > { %v6550_v9 = vsel %vm2235_vm3, %v6548_v60, %v6549_v0  ;;  %v6628_v31 = vrot.slane %v6590_v48, 4  ;;  %v6629_v41 = vrot.slane %v6592_v8, 4  ;;  %v6670_v51 = vmul.f32 %v11847_v24, %v11823_v25 }
 0x39f   : > { %v6556_v14 = vsel %vm2235_vm3, %v6554_v38, %v6555_v35  ;;  %v6570_v6 = vadd.f32 %v6550_v9, %v6490_v58  ;;  %v6634_v33 = vrot.slane %v6594_v57, 4  ;;  %v6635_v47 = vrot.slane %v6596_v39, 4  ;;  %7304 = vmatpush1.bf16.msra.mxu1 %v8404_v20 }
 0x3a0   : > { %v6572_v10 = vadd.f32 %v6556_v14, %v6492_v40  ;;  %v6630_v26 = vsel %vm2235_vm3, %v6628_v31, %v6629_v41  ;;  %v6672_v22 = vmul.f32 %v11847_v24, %v11711_v27  ;;  %v6674_v25 = vmul.f32 %v11847_v24, %v6410_v15  ;;  %7305 = vmatprep.subr.bf16.mxu1 %v8409_v2 }
 0x3a1   : > { %v6636_v30 = vsel %vm2235_vm3, %v6634_v33, %v6635_v47  ;;  %v6650_v61 = vadd.f32 %v6630_v26, %v6570_v6  ;;  %v6676_v53 = vmul.f32 %v11847_v24, %v12886_v55  ;;  %v6708_v32 = vrot.slane %v6670_v51, 4  ;;  %v8410_v51 = vld [vmem:[%s13474_s3 + $0xe0] ss:$8 sps:$4 sm:$0xff]   ;;  %v14563_v33 = vld [vmem:[#allocation164_spill] sm:$0xff] }
 0x3a2   : > { %v6652_v21 = vadd.f32 %v6636_v30, %v6572_v10  ;;  %v6709_v60 = vrot.slane %v6672_v22, 4  ;;  %v6714_v62 = vrot.slane %v6674_v25, 4  ;;  %v6750_v27 = vmul.f32 %v11851_v23, %v6410_v15  ;;  %v14564_v22 = vld [vmem:[#allocation165_spill] sm:$0xff] }
 0x3a3   : > { %v6715_v48 = vrot.slane %v6676_v53, 4  ;;  %v6752_v8 = vmul.f32 %v11851_v23, %v12886_v55  ;;  %v6754_v3 = vmul.f32 %v11851_v23, %v6412_v13  ;;  %v6756_v24 = vmul.f32 %v11851_v23, %v5988_v19  ;;  %v8412_v13 = vld [vmem:[%s13474_s3 + $0xe4] ss:$8 sps:$4 sm:$0xff]   ;;  %7306 = vmatpush1.bf16.msra.mxu1 %v8407_v18 }
 0x3a4   : > { %v6710_v58 = vsel %vm2235_vm3, %v6708_v32, %v6709_v60  ;;  %v6788_v15 = vrot.slane %v6750_v27, 4  ;;  %v13049_v0 = vunpack.c.l.bf16 %v12670_v49  ;;  %v4995_v55 = vunpack.c.l.bf16 %v12681_v59  ;;  %7307 = vmatprep.subr.bf16.mxu1 %v8412_v13 }
 0x3a5   : > { %v6716_v23 = vsel %vm2235_vm3, %v6714_v62, %v6715_v48  ;;  %v6730_v19 = vadd.f32 %v6710_v58, %v6650_v61  ;;  %v6789_v38 = vrot.slane %v6752_v8, 4  ;;  %v6794_v45 = vrot.slane %v6754_v3, 4 }
 0x3a6   : > { %v6732_v40 = vadd.f32 %v6716_v23, %v6652_v21  ;;  %v6795_v35 = vrot.slane %v6756_v24, 4  ;;  %v5009_v57 = vmul.f32 %v11357_v52, %v11339_v17  ;;  %v5011_v49 = vmul.f32 %v11357_v52, %v11343_v1  ;;  %v14565_v21 = vld [vmem:[#allocation111_spill] sm:$0xff] }
 0x3a7   : > { %v6790_v39 = vsel %vm2235_vm3, %v6788_v15, %v6789_v38  ;;  %v5033_v9 = vmul.f32 %v11365_v7, %v11343_v1  ;;  %v5035_v31 = vmul.f32 %v11365_v7, %v11347_v63  ;;  %v5057_v41 = vmul.f32 %v11923_v34, %v11347_v63  ;;  %7308 = vmatpush1.bf16.msra.mxu1 %v8410_v51 }
 0x3a8   : > { %v6796_v14 = vsel %vm2235_vm3, %v6794_v45, %v6795_v35  ;;  %v6810_v6 = vadd.f32 %v6790_v39, %v6730_v19  ;;  %v5059_v52 = vmul.f32 %v11923_v34, %v11351_v54  ;;  %v5081_v47 = vmul.f32 %v14563_v33, %v11351_v54 }
 0x3a9   : > { %v6812_v20 = vadd.f32 %v6796_v14, %v6732_v40  ;;  %v5041_v7 = vadd.f32 %v5033_v9, %v5009_v57  ;;  %v5043_v10 = vadd.f32 %v5035_v31, %v5011_v49  ;;  %v5083_v26 = vmul.f32 %v14563_v33, %v13049_v0 }
 0x3aa   : > { %v5105_v25 = vmul.f32 %v14564_v22, %v13049_v0  ;;  %v5107_v2 = vmul.f32 %v14564_v22, %v4995_v55  ;;  %v13083_v30 = vunpack.c.l.bf16 %v12701_v44  ;;  %v5139_v34 = vunpack.c.l.bf16 %v12706_v36  ;;  %v14566_v44 = vld [vmem:[#allocation113_spill] sm:$0xff] }
 0x3ab   : > { %v6816_v61 = vpack.c.bf16 %v6812_v20, %v6810_v6  ;;  %v5065_v53 = vadd.f32 %v5057_v41, %v5041_v7  ;;  %v5067_v32 = vadd.f32 %v5059_v52, %v5043_v10  ;;  %v5157_v60 = vmul.f32 %v14565_v21, %v11339_v17  ;;  %v14567_v41 = vld [vmem:[#allocation115_spill] sm:$0xff]  ;;  %v14568_v10 = vld [vmem:[#allocation118_spill] sm:$0xff] }
 0x3ac   : > { %v5159_v62 = vmul.f32 %v14565_v21, %v11425_v11  ;;  %v5161_v27 = vmul.f32 %v14565_v21, %v11343_v1  ;;  %v5163_v48 = vmul.f32 %v14565_v21, %v11429_v42  ;;  %v5237_v8 = vmul.f32 %v14566_v44, %v11343_v1 }
 0x3ad   : > { %7052 = vmatprep.mubr.bf16.mxu0 %v6816_v61  ;;  %v5089_v3 = vadd.f32 %v5081_v47, %v5065_v53  ;;  %v5091_v24 = vadd.f32 %v5083_v26, %v5067_v32  ;;  %v5193_v18 = vrot.slane %v5157_v60, 1  ;;  %v5239_v17 = vmul.f32 %v14566_v44, %v11429_v42 }
 0x3ae   : > { %v5194_v58 = vrot.slane %v5159_v62, 1  ;;  %v5199_v15 = vrot.slane %v5161_v27, 1  ;;  %v5200_v13 = vrot.slane %v5163_v48, 1  ;;  %v5241_v23 = vmul.f32 %v14566_v44, %v11347_v63 }
 0x3af   : > { %v5113_v19 = vadd.f32 %v5105_v25, %v5089_v3  ;;  %v5115_v38 = vadd.f32 %v5107_v2, %v5091_v24  ;;  %v5243_v45 = vmul.f32 %v14566_v44, %v14385_v4  ;;  %v5273_v40 = vrot.slane %v5237_v8, 1 }
 0x3b0   : > { %v5195_v1 = vsel %vm960_vm0, %v5193_v18, %v5194_v58  ;;  %v5201_v35 = vsel %vm960_vm0, %v5199_v15, %v5200_v13  ;;  %v5274_v57 = vrot.slane %v5239_v17, 1  ;;  %v5279_v49 = vrot.slane %v5241_v23, 1 }
 0x3b1   : > { %v5217_v39 = vadd.f32 %v5195_v1, %v5113_v19  ;;  %v5219_v9 = vadd.f32 %v5201_v35, %v5115_v38  ;;  %v5280_v31 = vrot.slane %v5243_v45, 1  ;;  %v5317_v51 = vmul.f32 %v14567_v41, %v11347_v63 }
 0x3b2   : > { %v5275_v14 = vsel %vm960_vm0, %v5273_v40, %v5274_v57  ;;  %v5319_v6 = vmul.f32 %v14567_v41, %v14385_v4  ;;  %v5321_v52 = vmul.f32 %v14567_v41, %v11351_v54  ;;  %v5323_v33 = vmul.f32 %v14567_v41, %v14387_v28 }
 0x3b3   : > { %v5281_v47 = vsel %vm960_vm0, %v5279_v49, %v5280_v31  ;;  %v5297_v20 = vadd.f32 %v5275_v14, %v5217_v39  ;;  %v5353_v7 = vrot.slane %v5317_v51, 1  ;;  %v5397_v26 = vmul.f32 %v14568_v10, %v11351_v54  ;;  %v14569_v54 = vld [vmem:[#allocation120_spill] sm:$0xff]  ;;  %v14571_v31 = vld [vmem:[#allocation130_spill] sm:$0xff] }
 0x3b4   : > { %v5299_v22 = vadd.f32 %v5281_v47, %v5219_v9  ;;  %v5354_v63 = vrot.slane %v5319_v6, 1  ;;  %v5359_v25 = vrot.slane %v5321_v52, 1  ;;  %v5360_v2 = vrot.slane %v5323_v33, 1  ;;  %v13128_v44 = vpop.f32.mrb[0].mxu0  ;;  %v14570_v9 = vld [vmem:[#allocation122_spill] sm:$0xff]  ;;  %v14572_v6 = vld [vmem:[#allocation124_spill] sm:$0xff] }
 0x3b5   : > { %v5399_v61 = vmul.f32 %v14568_v10, %v14387_v28  ;;  %v5401_v53 = vmul.f32 %v14568_v10, %v13049_v0  ;;  %v5403_v32 = vmul.f32 %v14568_v10, %v13083_v30  ;;  %v5433_v21 = vrot.slane %v5397_v26, 1  ;;  %v13130_v17 = vpop.f32.mrb[1].mxu0  ;;  %v8413_v47 = vld [vmem:[%s13474_s3 + $0xf0] ss:$8 sps:$4 sm:$0xff]  }
 0x3b6   : > { %v5355_v60 = vsel %vm960_vm0, %v5353_v7, %v5354_v63  ;;  %v5361_v62 = vsel %vm960_vm0, %v5359_v25, %v5360_v2  ;;  %v5477_v27 = vmul.f32 %v14569_v54, %v13049_v0  ;;  %v5479_v48 = vmul.f32 %v14569_v54, %v13083_v30  ;;  %v13138_v23 = vpop.f32.mrb[2].mxu0  ;;  %v14573_v26 = vld [vmem:[#allocation132_spill] sm:$0xff] }
 0x3b7   : > { %v5377_v8 = vadd.f32 %v5355_v60, %v5297_v20  ;;  %v5379_v3 = vadd.f32 %v5361_v62, %v5299_v22  ;;  %v5434_v24 = vrot.slane %v5399_v61, 1  ;;  %v5439_v18 = vrot.slane %v5401_v53, 1  ;;  %v13145_v1 = vpop.f32.mrb[3].mxu0  ;;  %v8415_v20 = vld [vmem:[%s13474_s3 + $0xf4] ss:$8 sps:$4 sm:$0xff]   ;;  %v14574_v61 = vld [vmem:[#allocation126_spill] sm:$0xff] }
 0x3b8   : > { %v5440_v58 = vrot.slane %v5403_v32, 1  ;;  %v5481_v15 = vmul.f32 %v14569_v54, %v4995_v55  ;;  %v5483_v0 = vmul.f32 %v14569_v54, %v5139_v34  ;;  %v5513_v13 = vrot.slane %v5477_v27, 1  ;;  %7309 = vmatprep.subr.bf16.mxu1 %v8415_v20  ;;  %v14575_v62 = vld [vmem:[#allocation134_spill] sm:$0xff] }
 0x3b9   : > { %v5435_v19 = vsel %vm960_vm0, %v5433_v21, %v5434_v24  ;;  %v5514_v38 = vrot.slane %v5479_v48, 1  ;;  %v13142_v45 = vunpack.c.l.bf16 %v12773_v50  ;;  %v5563_v40 = vunpack.c.l.bf16 %v12783_v43  ;;  %7310 = vmatpush1.bf16.msra.mxu1 %v8413_v47  ;;  %v14587_v43 = vld [vmem:[#allocation159_spill] sm:$0xff] }
 0x3ba   : > { %v5441_v59 = vsel %vm960_vm0, %v5439_v18, %v5440_v58  ;;  %v5457_v55 = vadd.f32 %v5435_v19, %v5377_v8  ;;  %v5519_v35 = vrot.slane %v5481_v15, 1  ;;  %v5520_v57 = vrot.slane %v5483_v0, 1  ;;  %v14576_v19 = vld [vmem:[#allocation138_spill] sm:$0xff] }
 0x3bb   : > { %v5459_v49 = vadd.f32 %v5441_v59, %v5379_v3  ;;  %v5515_v39 = vsel %vm960_vm0, %v5513_v13, %v5514_v38  ;;  %v5581_v41 = vmul.f32 %v14571_v31, %v14570_v9  ;;  %v5583_v51 = vmul.f32 %v14571_v31, %v11425_v11 }
 0x3bc   : > { %v5521_v50 = vsel %vm960_vm0, %v5519_v35, %v5520_v57  ;;  %v5537_v14 = vadd.f32 %v5515_v39, %v5457_v55  ;;  %v5585_v52 = vmul.f32 %v14571_v31, %v14572_v6  ;;  %v5587_v33 = vmul.f32 %v14571_v31, %v11429_v42 }
 0x3bd   : > { %v5539_v7 = vadd.f32 %v5521_v50, %v5459_v49  ;;  %v5617_v10 = vrot.slane %v5581_v41, 2  ;;  %v5618_v11 = vrot.slane %v5583_v51, 2  ;;  %v5661_v22 = vmul.f32 %v14573_v26, %v14572_v6 }
 0x3be   : > { %v5623_v63 = vrot.slane %v5585_v52, 2  ;;  %v5624_v25 = vrot.slane %v5587_v33, 2  ;;  %v5663_v2 = vmul.f32 %v14573_v26, %v11429_v42  ;;  %v5665_v53 = vmul.f32 %v14573_v26, %v14574_v61 }
 0x3bf   : > { %v5619_v32 = vsel %vm1385_vm1, %v5617_v10, %v5618_v11  ;;  %v5667_v21 = vmul.f32 %v14573_v26, %v14385_v4  ;;  %v5697_v60 = vrot.slane %v5661_v22, 2  ;;  %v5741_v54 = vmul.f32 %v14575_v62, %v14574_v61 }
 0x3c0   : > { %v5625_v27 = vsel %vm1385_vm1, %v5623_v63, %v5624_v25  ;;  %v5641_v48 = vadd.f32 %v5619_v32, %v5537_v14  ;;  %v5698_v8 = vrot.slane %v5663_v2, 2  ;;  %v5703_v3 = vrot.slane %v5665_v53, 2  ;;  %v14577_v14 = vld [vmem:[#allocation140_spill] sm:$0xff] }
 0x3c1   : > { %v5643_v42 = vadd.f32 %v5625_v27, %v5539_v7  ;;  %v5704_v24 = vrot.slane %v5667_v21, 2  ;;  %v5743_v18 = vmul.f32 %v14575_v62, %v14385_v4  ;;  %v5745_v58 = vmul.f32 %v14575_v62, %v14398_v16  ;;  %v14578_v27 = vld [vmem:[#allocation147_spill] sm:$0xff] }
 0x3c2   : > { %v5699_v15 = vsel %vm1385_vm1, %v5697_v60, %v5698_v8  ;;  %v5747_v0 = vmul.f32 %v14575_v62, %v14387_v28  ;;  %v5777_v13 = vrot.slane %v5741_v54, 2  ;;  %v5821_v38 = vmul.f32 %v14576_v19, %v14398_v16  ;;  %v14579_v8 = vld [vmem:[#allocation144_spill] sm:$0xff] }
 0x3c3   : > { %v5705_v59 = vsel %vm1385_vm1, %v5703_v3, %v5704_v24  ;;  %v5721_v55 = vadd.f32 %v5699_v15, %v5641_v48  ;;  %v5778_v35 = vrot.slane %v5743_v18, 2  ;;  %v5783_v57 = vrot.slane %v5745_v58, 2  ;;  %v14580_v58 = vld [vmem:[#allocation117_spill] sm:$0xff] }
 0x3c4   : > { %v5723_v49 = vadd.f32 %v5705_v59, %v5643_v42  ;;  %v5784_v39 = vrot.slane %v5747_v0, 2  ;;  %v5823_v4 = vmul.f32 %v14576_v19, %v14387_v28  ;;  %v5825_v31 = vmul.f32 %v14576_v19, %v13142_v45 }
 0x3c5   : > { %v5779_v41 = vsel %vm1385_vm1, %v5777_v13, %v5778_v35  ;;  %v5827_v51 = vmul.f32 %v14576_v19, %v13083_v30  ;;  %v5857_v50 = vrot.slane %v5821_v38, 2  ;;  %v5901_v52 = vmul.f32 %v14577_v14, %v13142_v45 }
 0x3c6   : > { %v5785_v33 = vsel %vm1385_vm1, %v5783_v57, %v5784_v39  ;;  %v5801_v47 = vadd.f32 %v5779_v41, %v5721_v55  ;;  %v5858_v20 = vrot.slane %v5823_v4, 2  ;;  %v5863_v7 = vrot.slane %v5825_v31, 2  ;;  %v14581_v55 = vld [vmem:[#allocation145_spill] sm:$0xff] }
 0x3c7   : > { %v5803_v10 = vadd.f32 %v5785_v33, %v5723_v49  ;;  %v5864_v11 = vrot.slane %v5827_v51, 2  ;;  %v5903_v28 = vmul.f32 %v14577_v14, %v13083_v30  ;;  %v5905_v26 = vmul.f32 %v14577_v14, %v5563_v40 }
 0x3c8   : > { %v5859_v22 = vsel %vm1385_vm1, %v5857_v50, %v5858_v20  ;;  %v5907_v63 = vmul.f32 %v14577_v14, %v5139_v34  ;;  %v5937_v25 = vrot.slane %v5901_v52, 2  ;;  %v13206_v2 = vunpack.c.l.bf16 %v12863_v56 }
 0x3c9   : > { %v5865_v53 = vsel %vm1385_vm1, %v5863_v7, %v5864_v11  ;;  %v5881_v32 = vadd.f32 %v5859_v22, %v5801_v47  ;;  %v5938_v21 = vrot.slane %v5903_v28, 2  ;;  %v5943_v60 = vrot.slane %v5905_v26, 2  ;;  %v14583_v47 = vld [vmem:[#allocation146_spill] sm:$0xff] }
 0x3ca   : > { %v5883_v30 = vadd.f32 %v5865_v53, %v5803_v10  ;;  %v5944_v62 = vrot.slane %v5907_v63, 2  ;;  %v5987_v54 = vunpack.c.l.bf16 %v12866_v46  ;;  %v6005_v48 = vmul.f32 %v14578_v27, %v14570_v9 }
 0x3cb   : > { %v5939_v36 = vsel %vm1385_vm1, %v5937_v25, %v5938_v21  ;;  %v6007_v34 = vmul.f32 %v14578_v27, %v14407_v29  ;;  %v6009_v56 = vmul.f32 %v14578_v27, %v14572_v6  ;;  %v6011_v3 = vmul.f32 %v14578_v27, %v14579_v8 }
 0x3cc   : > { %v5945_v42 = vsel %vm1385_vm1, %v5943_v60, %v5944_v62  ;;  %v5961_v24 = vadd.f32 %v5939_v36, %v5881_v32  ;;  %v6041_v18 = vrot.slane %v6005_v48, 3  ;;  %v6085_v15 = vmul.f32 %v14580_v58, %v14572_v6  ;;  %v14582_v6 = vld [vmem:[#allocation107_spill] sm:$0xff] }
 0x3cd   : > { %v5963_v0 = vadd.f32 %v5945_v42, %v5883_v30  ;;  %v6042_v9 = vrot.slane %v6007_v34, 3  ;;  %v6047_v13 = vrot.slane %v6009_v56, 3  ;;  %v6048_v19 = vrot.slane %v6011_v3, 3  ;;  %v14585_v3 = vld [vmem:[#allocation135_spill] sm:$0xff] }
 0x3ce   : > { %v6087_v38 = vmul.f32 %v14580_v58, %v14579_v8  ;;  %v6089_v59 = vmul.f32 %v14580_v58, %v14574_v61  ;;  %v6091_v35 = vmul.f32 %v14580_v58, %v14581_v55  ;;  %v6121_v57 = vrot.slane %v6085_v15, 3 }
 0x3cf   : > { %v6043_v49 = vsel %vm1810_vm2, %v6041_v18, %v6042_v9  ;;  %v6049_v39 = vsel %vm1810_vm2, %v6047_v13, %v6048_v19  ;;  %v6165_v4 = vmul.f32 %v14582_v6, %v14574_v61  ;;  %v6167_v31 = vmul.f32 %v14582_v6, %v14581_v55  ;;  %v14584_v61 = vld [vmem:[#allocation109_spill] sm:$0xff] }
 0x3d0   : > { %v6065_v41 = vadd.f32 %v6043_v49, %v5961_v24  ;;  %v6067_v51 = vadd.f32 %v6049_v39, %v5963_v0  ;;  %v6122_v50 = vrot.slane %v6087_v38, 3  ;;  %v6127_v14 = vrot.slane %v6089_v59, 3  ;;  %v14586_v49 = vld [vmem:[#allocation155_spill] sm:$0xff] }
 0x3d1   : > { %v6128_v52 = vrot.slane %v6091_v35, 3  ;;  %v6169_v33 = vmul.f32 %v14582_v6, %v14398_v16  ;;  %v6171_v20 = vmul.f32 %v14582_v6, %v14583_v47  ;;  %v6201_v7 = vrot.slane %v6165_v4, 3  ;;  %v14588_v6 = vld [vmem:[#allocation156_spill] sm:$0xff] }
 0x3d2   : > { %v6123_v10 = vsel %vm1810_vm2, %v6121_v57, %v6122_v50  ;;  %v6202_v11 = vrot.slane %v6167_v31, 3  ;;  %v6245_v28 = vmul.f32 %v14584_v61, %v14398_v16  ;;  %v6247_v26 = vmul.f32 %v14584_v61, %v14583_v47 }
 0x3d3   : > { %v6129_v22 = vsel %vm1810_vm2, %v6127_v14, %v6128_v52  ;;  %v6145_v63 = vadd.f32 %v6123_v10, %v6065_v41  ;;  %v6207_v25 = vrot.slane %v6169_v33, 3  ;;  %v6208_v53 = vrot.slane %v6171_v20, 3  ;;  %v14590_v10 = vld [vmem:[#allocation157_spill] sm:$0xff] }
 0x3d4   : > { %v6147_v32 = vadd.f32 %v6129_v22, %v6067_v51  ;;  %v6203_v21 = vsel %vm1810_vm2, %v6201_v7, %v6202_v11  ;;  %v6249_v60 = vmul.f32 %v14584_v61, %v13142_v45  ;;  %v6251_v30 = vmul.f32 %v14584_v61, %v13206_v2  ;;  %v14589_v51 = vld [vmem:[#allocation161_spill] sm:$0xff] }
 0x3d5   : > { %v6209_v62 = vsel %vm1810_vm2, %v6207_v25, %v6208_v53  ;;  %v6225_v16 = vadd.f32 %v6203_v21, %v6145_v63  ;;  %v6281_v27 = vrot.slane %v6245_v28, 3  ;;  %v6282_v48 = vrot.slane %v6247_v26, 3  ;;  %v14591_v22 = vld [vmem:[#allocation137_spill] sm:$0xff] }
 0x3d6   : > { %v6227_v36 = vadd.f32 %v6209_v62, %v6147_v32  ;;  %v6287_v34 = vrot.slane %v6249_v60, 3  ;;  %v6288_v56 = vrot.slane %v6251_v30, 3  ;;  %v6325_v42 = vmul.f32 %v14585_v3, %v13142_v45  ;;  %v14592_v62 = vld [vmem:[#allocation158_spill] sm:$0xff] }
 0x3d7   : > { %v6283_v24 = vsel %vm1810_vm2, %v6281_v27, %v6282_v48  ;;  %v6327_v18 = vmul.f32 %v14585_v3, %v13206_v2  ;;  %v6329_v58 = vmul.f32 %v14585_v3, %v5563_v40  ;;  %v6331_v15 = vmul.f32 %v14585_v3, %v5987_v54 }
 0x3d8   : > { %v6289_v0 = vsel %vm1810_vm2, %v6287_v34, %v6288_v56  ;;  %v6305_v9 = vadd.f32 %v6283_v24, %v6225_v16  ;;  %v6361_v13 = vrot.slane %v6325_v42, 3  ;;  %v6409_v19 = vunpack.c.l.bf16 %v12951_v37  ;;  %v14593_v34 = vld [vmem:[#allocation128_spill] sm:$0xff] }
 0x3d9   : > { %v6307_v45 = vadd.f32 %v6289_v0, %v6227_v36  ;;  %v6362_v38 = vrot.slane %v6327_v18, 3  ;;  %v6367_v59 = vrot.slane %v6329_v58, 3  ;;  %v6368_v35 = vrot.slane %v6331_v15, 3 }
 0x3da   : > { %v6411_v57 = vunpack.c.l.bf16 %v12956_v5  ;;  %v6429_v39 = vmul.f32 %v14587_v43, %v14586_v49  ;;  %v6431_v40 = vmul.f32 %v14587_v43, %v14407_v29  ;;  %v6433_v4 = vmul.f32 %v14587_v43, %v14588_v6 }
 0x3db   : > { %v6363_v31 = vsel %vm1810_vm2, %v6361_v13, %v6362_v38  ;;  %v6369_v41 = vsel %vm1810_vm2, %v6367_v59, %v6368_v35  ;;  %v6435_v37 = vmul.f32 %v14587_v43, %v14579_v8  ;;  %v6509_v50 = vmul.f32 %v14589_v51, %v14588_v6  ;;  %v14594_v38 = vld [vmem:[#allocation151_spill] sm:$0xff] }
 0x3dc   : > { %v6385_v5 = vadd.f32 %v6363_v31, %v6305_v9  ;;  %v6387_v14 = vadd.f32 %v6369_v41, %v6307_v45  ;;  %v6465_v52 = vrot.slane %v6429_v39, 4  ;;  %v6466_v33 = vrot.slane %v6431_v40, 4 }
 0x3dd   : > { %v6471_v20 = vrot.slane %v6433_v4, 4  ;;  %v6472_v7 = vrot.slane %v6435_v37, 4  ;;  %v6511_v29 = vmul.f32 %v14589_v51, %v14579_v8  ;;  %v6513_v11 = vmul.f32 %v14589_v51, %v14590_v10 }
 0x3de   : > { %v6467_v61 = vsel %vm2235_vm3, %v6465_v52, %v6466_v33  ;;  %v6515_v28 = vmul.f32 %v14589_v51, %v14581_v55  ;;  %v6545_v26 = vrot.slane %v6509_v50, 4  ;;  %v6589_v63 = vmul.f32 %v14591_v22, %v14590_v10 }
 0x3df   : > { %v6473_v25 = vsel %vm2235_vm3, %v6471_v20, %v6472_v7  ;;  %v6489_v53 = vadd.f32 %v6467_v61, %v6385_v5  ;;  %v6546_v32 = vrot.slane %v6511_v29, 4  ;;  %v6551_v21 = vrot.slane %v6513_v11, 4  ;;  %v14596_v20 = vld [vmem:[#allocation143_spill] sm:$0xff] }
 0x3e0   : > { %v6491_v60 = vadd.f32 %v6473_v25, %v6387_v14  ;;  %v6552_v30 = vrot.slane %v6515_v28, 4  ;;  %v6591_v8 = vmul.f32 %v14591_v22, %v14581_v55  ;;  %v6593_v16 = vmul.f32 %v14591_v22, %v14592_v62  ;;  %v8418_v25 = vld [vmem:[%s13476_s5 + $0x48] sm:$0xff]  }
 0x3e1   : > { %v6547_v27 = vsel %vm2235_vm3, %v6545_v26, %v6546_v32  ;;  %v6595_v48 = vmul.f32 %v14591_v22, %v14583_v47  ;;  %v6625_v36 = vrot.slane %v6589_v63, 4  ;;  %v6669_v56 = vmul.f32 %v14593_v34, %v14592_v62  ;;  %v8420_v32 = vld [vmem:[%s13476_s5 + $0x50] sm:$0xff]   ;;  %v8425_v62 = vld [vmem:[%s13476_s5 + $0x20] sm:$0xff]  }
 0x3e2   : > { %v6553_v3 = vsel %vm2235_vm3, %v6551_v21, %v6552_v30  ;;  %v6569_v42 = vadd.f32 %v6547_v27, %v6489_v53  ;;  %v6626_v24 = vrot.slane %v6591_v8, 4  ;;  %v6631_v18 = vrot.slane %v6593_v16, 4  ;;  %v8419_v53 = vld [vmem:[%s13476_s5 + $0x8] sm:$0xff]   ;;  %v8421_v21 = vld [vmem:[%s13476_s5 + $0x10] sm:$0xff]   ;;  %v8423_v30 = vld [vmem:[%s13476_s5 + $0x18] sm:$0xff]  }
 0x3e3   : > { %v6571_v58 = vadd.f32 %v6553_v3, %v6491_v60  ;;  %v6632_v15 = vrot.slane %v6595_v48, 4  ;;  %v6671_v55 = vmul.f32 %v14593_v34, %v14583_v47  ;;  %v6673_v0 = vmul.f32 %v14593_v34, %v6409_v19  ;;  %v8422_v60 = vld [vmem:[%s13476_s5 + $0x58] sm:$0xff]   ;;  %v8424_v8 = vld [vmem:[%s13476_s5 + $0x60] sm:$0xff]   ;;  %v8426_v16 = vld [vmem:[%s13476_s5 + $0x68] sm:$0xff]  }
 0x3e4   : > { %v6627_v9 = vsel %vm2235_vm3, %v6625_v36, %v6626_v24  ;;  %v6675_v13 = vmul.f32 %v14593_v34, %v13206_v2  ;;  %v6705_v45 = vrot.slane %v6669_v56, 4  ;;  %v6749_v59 = vmul.f32 %v14594_v38, %v6409_v19  ;;  %v8427_v27 = vld [vmem:[%s13476_s5 + $0x28] sm:$0xff]   ;;  %v8428_v48 = vld [vmem:[%s13476_s5 + $0x70] sm:$0xff]   ;;  %v8430_v34 = vld [vmem:[%s13476_s5 + $0x78] sm:$0xff]  }
 0x3e5   : > { %v6633_v35 = vsel %vm2235_vm3, %v6631_v18, %v6632_v15  ;;  %v6649_v49 = vadd.f32 %v6627_v9, %v6569_v42  ;;  %v6706_v43 = vrot.slane %v6671_v55, 4  ;;  %v6711_v39 = vrot.slane %v6673_v0, 4  ;;  %v8429_v36 = vld [vmem:[%s13476_s5 + $0x30] sm:$0xff]   ;;  %v7107_v56 = vld [vmem:[%s13475_s4] sm:$0x3]  ;;  %v14599_v24 = vld [vmem:[#allocation5_spill] sm:$0xff] }
 0x3e6   : > { %v6651_v40 = vadd.f32 %v6633_v35, %v6571_v58  ;;  %v6712_v6 = vrot.slane %v6675_v13, 4  ;;  %v6751_v47 = vmul.f32 %v14594_v38, %v13206_v2  ;;  %v6753_v4 = vmul.f32 %v14594_v38, %v6411_v57  ;;  %v14595_v2 = vld [vmem:[#allocation142_spill] sm:$0xff]  ;;  %v14598_v3 = vld [vmem:[#allocation4_spill] sm:$0xff] }
 0x3e7   : > { %v6707_v31 = vsel %vm2235_vm3, %v6705_v45, %v6706_v43  ;;  %v6755_v41 = vmul.f32 %v14594_v38, %v5987_v54  ;;  %v6785_v37 = vrot.slane %v6749_v59, 4  ;;  %v8141_v19 = vadd.f32 %v13128_v44, %v12767_v12  ;;  %v14597_v54 = vld [vmem:[#allocation153_spill] sm:$0xff] }
 0x3e8   : > { %v6713_v51 = vsel %vm2235_vm3, %v6711_v39, %v6712_v6  ;;  %v6729_v50 = vadd.f32 %v6707_v31, %v6649_v49  ;;  %v6786_v5 = vrot.slane %v6751_v47, 4  ;;  %v6791_v14 = vrot.slane %v6753_v4, 4 }
 0x3e9   : > { %v6731_v52 = vadd.f32 %v6713_v51, %v6651_v40  ;;  %v6792_v33 = vrot.slane %v6755_v41, 4  ;;  %v8142_v57 = vadd.f32 %v13130_v17, %v14595_v2  ;;  %v8143_v7 = vadd.f32 %v13138_v23, %v14596_v20  ;;  %v8416_v23 = vld [vmem:[%s13476_s5 + $0x40] sm:$0xff]  }
 0x3ea   : > { %v6787_v46 = vsel %vm2235_vm3, %v6785_v37, %v6786_v5  ;;  %v8144_v29 = vadd.f32 %v13145_v1, %v14597_v54  ;;  %v8417_v1 = vld [vmem:[%s13476_s5] sm:$0xff]   ;;  %8097 = vmatprep.subr.bf16.mxu0 %v8416_v23  ;;  %8125 = vmatprep.subr.bf16.mxu1 %v8416_v23  ;;  %v7112_v42 = vrot.slane %v7107_v56, %v14598_v3 }
 0x3eb   : > { %v6793_v12 = vsel %vm2235_vm3, %v6791_v14, %v6792_v33  ;;  %v6809_v44 = vadd.f32 %v6787_v46, %v6729_v50  ;;  %v7071_v10 = vpack.c.bf16 %v8143_v7, %v8141_v19  ;;  %8098 = vmatpush3.bf16.msra.mxu0 %v8417_v1  ;;  %v7116_v18 = vrot.slane %v7107_v56, %v14599_v24  ;;  %v8431_v14 = vld [vmem:[%s13476_s5 + $0x38] sm:$0xff]  }
 0x3ec   : > { %v6811_v11 = vadd.f32 %v6793_v12, %v6731_v52  ;;  %v7072_v61 = vpack.c.bf16 %v8144_v29, %v8142_v57  ;;  %8099 = vmatprep.subr.bf16.mxu0 %v8418_v25 }
 0x3ee   : > { %v6815_v28 = vpack.c.bf16 %v6811_v11, %v6809_v44  ;;  %7311 = vmatprep.mubr.bf16.mxu1 %v7072_v61 }
 0x3ef   : > { %7312 = vmatmul.mubr.bf16.vlgmr.msra.gmra.mrb[8].mxu1 %v7071_v10  ;;  %8100 = vmatpush3.bf16.msra.mxu0 %v8419_v53 }
 0x3f0   : > { %7053 = vmatmul.mubr.bf16.gmra.mrb[4].mxu0 %v6815_v28  ;;  %8133 = vmatpush3.bf16.msra.mxu1 %v8417_v1 }
 0x3f1   : > { %8126 = vmatprep.subr.bf16.mxu1 %v8418_v25  ;;  %8101 = vmatprep.subr.bf16.mxu0 %v8420_v32 }
 0x3f3   : > { %8102 = vmatpush3.bf16.msra.mxu0 %v8421_v21 }
 0x3f4   : > { %8134 = vmatpush3.bf16.msra.mxu1 %v8419_v53  ;;  %8103 = vmatprep.subr.bf16.mxu0 %v8422_v60 }
 0x3f5   : > { %8127 = vmatprep.subr.bf16.mxu1 %v8420_v32 }
 0x3f7   : > { %8104 = vmatpush3.bf16.msra.mxu0 %v8423_v30 }
 0x3f8   : > { %8135 = vmatpush3.bf16.msra.mxu1 %v8421_v21  ;;  %8105 = vmatprep.subr.bf16.mxu0 %v8424_v8 }
 0x3f9   : > { %8128 = vmatprep.subr.bf16.mxu1 %v8422_v60 }
 0x3fb   : > { %8106 = vmatpush3.bf16.msra.mxu0 %v8425_v62 }
 0x3fc   : > { %8136 = vmatpush3.bf16.msra.mxu1 %v8423_v30  ;;  %8107 = vmatprep.subr.bf16.mxu0 %v8426_v16 }
 0x3fd   : > { %8129 = vmatprep.subr.bf16.mxu1 %v8424_v8 }
 0x3ff   : > { %8108 = vmatpush3.bf16.msra.mxu0 %v8427_v27 }
 0x400   : > { %8137 = vmatpush3.bf16.msra.mxu1 %v8425_v62  ;;  %8109 = vmatprep.subr.bf16.mxu0 %v8428_v48 }
 0x401   : > { %8130 = vmatprep.subr.bf16.mxu1 %v8426_v16 }
 0x403   : > { %8110 = vmatpush3.bf16.msra.mxu0 %v8429_v36 }
 0x404   : > { %8138 = vmatpush3.bf16.msra.mxu1 %v8427_v27  ;;  %8111 = vmatprep.subr.bf16.mxu0 %v8430_v34 }
 0x405   : > { %8131 = vmatprep.subr.bf16.mxu1 %v8428_v48 }
 0x407   : > { %8112 = vmatpush3.bf16.msra.mxu0 %v8431_v14 }
 0x408   : > { %8139 = vmatpush3.bf16.msra.mxu1 %v8429_v36 }
 0x409   : > { %8132 = vmatprep.subr.bf16.mxu1 %v8430_v34 }
 0x40c   : > { %8140 = vmatpush3.bf16.msra.mxu1 %v8431_v14 }
 0x43c   : > { %v4732_v26 = vpop.f32.mrb[4].mxu1 }
 0x43d   : > { %v4734_v17 = vpop.f32.mrb[5].mxu1 }
 0x43e   : > { %v4736_v22 = vpop.f32.mrb[6].mxu1 }
 0x43f   : > { %v13322_v63 = vpop.f32.mrb[7].mxu1 }
 0x4c2   : > { %v7313_v58 = vpop.f32.mrb[8].mxu1 }
 0x4c3   : > { %v7054_v15 = vpop.f32.mrb[4].mxu0  ;;  %v7314_v55 = vadd.f32 %v7313_v58, %v7112_v42  ;;  %v7315_v0 = vpop.f32.mrb[9].mxu1 }
 0x4c4   : > { %v8145_v9 = vadd.f32 %v7054_v15, %v4732_v26  ;;  %v7056_v13 = vpop.f32.mrb[5].mxu0  ;;  %v7316_v45 = vadd.f32 %v7315_v0, %v7116_v18  ;;  %v7317_v38 = vpop.f32.mrb[10].mxu1  ;;  %v8074_v26 = vld [vmem:[%s13477_s6] ss:$0 sm:$0xff] }
 0x4c5   : > { %v8146_v59 = vadd.f32 %v7056_v13, %v4734_v17  ;;  %v7058_v35 = vpop.f32.mrb[6].mxu0  ;;  %v7318_v49 = vadd.f32 %v7317_v38, %v7112_v42  ;;  %v7319_v43 = vpop.f32.mrb[11].mxu1  ;;  %v7332_v4 = vmax.f32 %v7314_v55, 0.0 }
 0x4c6   : > { %v8147_v39 = vadd.f32 %v7058_v35, %v4736_v22  ;;  %v7060_v40 = vpop.f32.mrb[7].mxu0  ;;  %v7320_v6 = vadd.f32 %v7319_v43, %v7116_v18  ;;  %v7333_v37 = vmax.f32 %v7316_v45, 0.0 }
 0x4c7   : > { %v8148_v47 = vadd.f32 %v7060_v40, %v13322_v63  ;;  %v7334_v31 = vmax.f32 %v7318_v49, 0.0 }
 0x4c8   : > { %v7073_v41 = vpack.c.bf16 %v8147_v39, %v8145_v9  ;;  %v7335_v19 = vmax.f32 %v7320_v6, 0.0 }
 0x4c9   : > { %v7074_v51 = vpack.c.bf16 %v8148_v47, %v8146_v59  ;;  %v7340_v50 = vpack.c.bf16 %v7334_v31, %v7332_v4 }
 0x4ca   : > { %v7341_v5 = vpack.c.bf16 %v7335_v19, %v7333_v37 }
 0x4cb   : > { %7321 = vmatprep.mubr.bf16.mxu1 %v7074_v51  ;;  %v8514_v51 = vmov 0  }
 0x4cc   : > { %7322 = vmatmul.mubr.bf16.gmra.mrb[12].mxu1 %v7073_v41  ;;  %7511 = vmatprep.mubr.bf16.mxu0 %v7341_v5 }
 0x4cd   : > { %7512 = vmatmul.mubr.bf16.vlgmr.msra.gmra.mrb[8].mxu0 %v7340_v50  ;;  %8222 = vset.pattern.permute.xlu0 %v8514_v51 }
 0x4ce   : > { %8223 = vset.pattern.permute.xlu1 %v8514_v51 }
 0x59f   : > { %v7323_v52 = vpop.f32.mrb[12].mxu1 }
 0x5a0   : > { %v7324_v33 = vadd.f32 %v7323_v52, %v7112_v42  ;;  %v7325_v2 = vpop.f32.mrb[13].mxu1  ;;  %v8113_v28 = vpop.f32.mrb[8].mxu0 }
 0x5a1   : > { %v7326_v57 = vadd.f32 %v7325_v2, %v7116_v18  ;;  %v7327_v20 = vpop.f32.mrb[14].mxu1  ;;  %v8114_v17 = vpop.f32.mrb[9].mxu0 }
 0x5a2   : > { %v7328_v7 = vadd.f32 %v7327_v20, %v7112_v42  ;;  %v7329_v46 = vpop.f32.mrb[15].mxu1  ;;  %v7336_v29 = vmax.f32 %v7324_v33, 0.0  ;;  %v8115_v22 = vadd.f32 %v8114_v17, %v8113_v28  ;;  %v8116_v63 = vpop.f32.mrb[10].mxu0 }
 0x5a3   : > { %v7330_v54 = vadd.f32 %v7329_v46, %v7116_v18  ;;  %v7337_v44 = vmax.f32 %v7326_v57, 0.0  ;;  %v8117_v23 = vpop.f32.mrb[11].mxu0 }
 0x5a4   : > { %v7338_v12 = vmax.f32 %v7328_v7, 0.0  ;;  %v13381_v1 = vadd.f32 %v8115_v22, %v8074_v26  ;;  %v8118_v25 = vadd.f32 %v8117_v23, %v8116_v63  ;;  %v14600_v63 = vlaneseq }
 0x5a5   : > { %v7339_v10 = vmax.f32 %v7330_v54, 0.0 }
 0x5a6   : > { %v7342_v11 = vpack.c.bf16 %v7338_v12, %v7336_v29  ;;  %7532 = vrot.lane.b32.xlu0 %v13381_v1, %s8512_s20  ;;  %v13385_v53 = vadd.f32 %v8118_v25, %v8074_v26  ;;  %v7621_v23 = vand.u32 127, %v14600_v63 }
 0x5a7   : > { %v7343_v61 = vpack.c.bf16 %v7339_v10, %v7337_v44 }
 0x5a8   : > { %vm7622_vm4 = vcmp.ge.s32.totalorder %v7621_v23, 7  ;;  %vm7623_vm5 = vcmp.lt.s32.totalorder %v7621_v23, 9 }
 0x5a9   : > { %7519 = vmatprep.mubr.bf16.mxu1 %v7343_v61  ;;  %vm13426_vm6 = vmand %vm7622_vm4, %vm7623_vm5 }
 0x5aa   : > { %7520 = vmatmul.mubr.bf16.vlgmr.msra.gmra.mrb[16].mxu1 %v7342_v11  ;;  %7534 = vrot.lane.b32.xlu0 %v13385_v53, %s8512_s20 }
 0x618   : > { %v7533_v32 = vpop.permute.xlu0 %7532 }
 0x619   : > { %v7544_v21 = vmax.f32 %v13381_v1, %v7533_v32 }
 0x61b   : > { %7564 = vrot.lane.b32.xlu0 %v7544_v21, %s8513_s22  ;;  %v7548_v59 = vsub.f32 %v13381_v1, %v7544_v21 }
 0x61c   : > { %v7535_v36 = vpop.permute.xlu0 %7534 }
 0x61d   : > { %v7545_v56 = vmax.f32 %v13385_v53, %v7535_v36  ;;  %v7552_v35 = vmul.f32 1.442695, %v7548_v59 }
 0x61f   : > { %v7549_v39 = vsub.f32 %v13385_v53, %v7545_v56 }
 0x621   : > { %v7554_v37 = vmul.f32 1.442695, %v7549_v39 }
 0x67d   : > { %v8119_v60 = vpop.f32.mrb[16].mxu1 }
 0x67e   : > { %v8120_v30 = vpop.f32.mrb[17].mxu1 }
 0x67f   : > { %v8121_v8 = vadd.f32 %v8120_v30, %v8119_v60  ;;  %v8122_v62 = vpop.f32.mrb[18].mxu1 }
 0x680   : > { %v8123_v16 = vpop.f32.mrb[19].mxu1 }
 0x681   : > { %v13390_v27 = vadd.f32 %v8121_v8, %v8074_v26  ;;  %v8124_v48 = vadd.f32 %v8123_v16, %v8122_v62 }
 0x683   : > { %7536 = vrot.lane.b32.xlu1 %v13390_v27, %s8512_s20  ;;  %v13394_v34 = vadd.f32 %v8124_v48, %v8074_v26 }
 0x687   : > { %7538 = vrot.lane.b32.xlu1 %v13394_v34, %s8512_s20 }
 0x68b   : > { %7566 = vrot.lane.b32.xlu1 %v7545_v56, %s8513_s22 }
 0x68d   : > { %v7565_v3 = vpop.permute.xlu0 %7564 }
 0x68e   : > { %v7576_v42 = vsub.f32 %v13381_v1, %v7565_v3 }
 0x690   : > { %v7580_v24 = vmul.f32 1.442695, %v7576_v42 }
 0x692   : > { %8432 = vpow2.f32 %v7580_v24 }
 0x69c   : > { %v8433_v15 = vpop.eup %8432 }
 0x6f5   : > { %v7537_v18 = vpop.permute.xlu1 %7536 }
 0x6f6   : > { %v13401_v58 = vmax.f32 %v13390_v27, %v7537_v18 }
 0x6f8   : > { %7568 = vrot.lane.b32.xlu0 %v13401_v58, %s8513_s22  ;;  %v7550_v29 = vsub.f32 %v13390_v27, %v13401_v58 }
 0x6f9   : > { %v7539_v55 = vpop.permute.xlu1 %7538 }
 0x6fa   : > { %v13405_v0 = vmax.f32 %v13394_v34, %v7539_v55  ;;  %v7556_v12 = vmul.f32 1.442695, %v7550_v29 }
 0x6fc   : > { %7570 = vrot.lane.b32.xlu1 %v13405_v0, %s8513_s22  ;;  %7592 = vrot.lane.b32.xlu0 %v8433_v15, %s8512_s20  ;;  %v7551_v44 = vsub.f32 %v13394_v34, %v13405_v0 }
 0x6fd   : > { %v7567_v9 = vpop.permute.xlu1 %7566 }
 0x6fe   : > { %v7577_v13 = vsub.f32 %v13385_v53, %v7567_v9  ;;  %v7558_v10 = vmul.f32 1.442695, %v7551_v44 }
 0x700   : > { %v7582_v45 = vmul.f32 1.442695, %v7577_v13 }
 0x702   : > { %8434 = vpow2.f32 %v7582_v45 }
 0x703   : > { %8436 = vpow2.f32 %v7552_v35 }
 0x70c   : > { %v8435_v38 = vpop.eup %8434 }
 0x70d   : > { %7594 = vrot.lane.b32.xlu1 %v8435_v38, %s8512_s20  ;;  %v8437_v6 = vpop.eup %8436 }
 0x76a   : > { %v7569_v49 = vpop.permute.xlu0 %7568 }
 0x76b   : > { %v7578_v43 = vsub.f32 %v13390_v27, %v7569_v49 }
 0x76d   : > { %v7584_v40 = vmul.f32 1.442695, %v7578_v43 }
 0x76e   : > { %v7571_v47 = vpop.permute.xlu1 %7570  ;;  %v7593_v4 = vpop.permute.xlu0 %7592 }
 0x76f   : > { %8438 = vpow2.f32 %v7584_v40  ;;  %v7579_v31 = vsub.f32 %v13394_v34, %v7571_v47  ;;  %v7604_v41 = vadd.f32 %v8437_v6, %v7593_v4 }
 0x771   : > { %v7586_v19 = vmul.f32 1.442695, %v7579_v31  ;;  %8440 = vlog2.f32 %v7604_v41 }
 0x773   : > { %8442 = vpow2.f32 %v7586_v19 }
 0x774   : > { %8444 = vpow2.f32 %v7554_v37 }
 0x779   : > { %v8439_v50 = vpop.eup %8438 }
 0x77a   : > { %7596 = vrot.lane.b32.xlu0 %v8439_v50, %s8512_s20 }
 0x77b   : > { %v8441_v5 = vpop.eup %8440 }
 0x77c   : > { %v7609_v14 = vmul.f32 0.6931472, %v8441_v5 }
 0x77d   : > { %v8443_v52 = vpop.eup %8442 }
 0x77e   : > { %7598 = vrot.lane.b32.xlu1 %v8443_v52, %s8512_s20  ;;  %v7616_v33 = vadd.f32 %v7609_v14, %v7544_v21  ;;  %v8445_v2 = vpop.eup %8444 }
 0x77f   : > { %v7595_v57 = vpop.permute.xlu1 %7594 }
 0x780   : > { %v7605_v20 = vadd.f32 %v8445_v2, %v7595_v57  ;;  %7627 = vperm.xlu0 %8222, %v7616_v33  }
 0x782   : > { %8446 = vlog2.f32 %v7605_v20 }
 0x783   : > { %8448 = vpow2.f32 %v7556_v12 }
 0x784   : > { %8450 = vpow2.f32 %v7558_v10 }
 0x78c   : > { %v8447_v7 = vpop.eup %8446 }
 0x78d   : > { %v7611_v46 = vmul.f32 0.6931472, %v8447_v7  ;;  %v8449_v11 = vpop.eup %8448 }
 0x78e   : > { %v8451_v26 = vpop.eup %8450 }
 0x78f   : > { %v7617_v54 = vadd.f32 %v7611_v46, %v7545_v56 }
 0x791   : > { %7632 = vperm.xlu1 %8223, %v7617_v54  }
 0x7ec   : > { %v7597_v61 = vpop.permute.xlu0 %7596 }
 0x7ed   : > { %v7606_v28 = vadd.f32 %v8449_v11, %v7597_v61 }
 0x7ef   : > { %8452 = vlog2.f32 %v7606_v28 }
 0x7f0   : > { %v7599_v17 = vpop.permute.xlu1 %7598 }
 0x7f1   : > { %v7607_v22 = vadd.f32 %v8451_v26, %v7599_v17 }
 0x7f3   : > { %8454 = vlog2.f32 %v7607_v22 }
 0x7f9   : > { %v8453_v25 = vpop.eup %8452 }
 0x7fa   : > { %v7613_v32 = vmul.f32 0.6931472, %v8453_v25 }
 0x7fc   : > { %v7618_v21 = vadd.f32 %v7613_v32, %v13401_v58 }
 0x7fd   : > { %v8455_v60 = vpop.eup %8454 }
 0x7fe   : > { %v7615_v30 = vmul.f32 0.6931472, %v8455_v60  ;;  %7637 = vperm.xlu1 %8223, %v7618_v21  }
 0x7ff   : > { %v7628_v62 = vpop.permute.xlu0 %7627 }
 0x800   : > { %v7619_v16 = vadd.f32 %v7615_v30, %v13405_v0  ;;  %v7645_v48 = vsub.f32 %v13381_v1, %v7628_v62 }
 0x802   : > { %7642 = vperm.xlu0 %8222, %v7619_v16   ;;  %v7649_v36 = vsel %vm13426_vm6, %v7645_v48, %v13381_v1 }
 0x803   : > { %7653 = vst [vmem:[%s730_s16] sm:$0xff] %v7649_v36 }
 0x810   : > { %v7633_v56 = vpop.permute.xlu1 %7632 }
 0x811   : > { %v7646_v3 = vsub.f32 %v13385_v53, %v7633_v56 }
 0x813   : > { %v7650_v42 = vsel %vm13426_vm6, %v7646_v3, %v13385_v53 }
 0x814   : > { %7654 = vst [vmem:[%s730_s16 + $0x8] sm:$0xff] %v7650_v42 }
 0x87d   : > { %v7638_v24 = vpop.permute.xlu1 %7637 }
 0x87e   : > { %v7647_v18 = vsub.f32 %v13390_v27, %v7638_v24 }
 0x880   : > { %v7651_v58 = vsel %vm13426_vm6, %v7647_v18, %v13390_v27 }
 0x881   : > { %7655 = vst [vmem:[%s730_s16 + $0x10] sm:$0xff] %v7651_v58  ;;  %v7643_v15 = vpop.permute.xlu0 %7642 }
 0x882   : > { %v7648_v1 = vsub.f32 %v13394_v34, %v7643_v15 }
 0x884   : > { %v7652_v55 = vsel %vm13426_vm6, %v7648_v1, %v13394_v34 }
 0x885   : > { %7656 = vst [vmem:[%s730_s16 + $0x18] sm:$0xff] %v7652_v55 }
 0x886 PF: > { %s17_s30 = sadd.s32 1, %s8510_s30   ;;  %s14603_s24 = smov %s8490_s25 }
 0x887   : > { %p14_p12 = scmp.ge.s32.totalorder %s17_s30, 6   ;;  %s14604_s25 = smov %s8608_s13 }
 0x888   : > { %s14605_s26 = smov %s8502_s28  ;;  %s14606_s27 = smov %s8506_s29 }
 0x889   : > { %s14607_s28 = smov %s14610_s8  ;;  %s14608_s29 = smov %s14614_s9 }
 0x88a   :  { %16 = sbr.rel (!%p14_p12) target bundleno = 4 (0x4), region = 174 }

</bundles_post_ra>
